<compile_context>
chip_gen: v6e
topology: v6e:2x2x1
jax: 0.10.0
libtpu: 0.0.40
codegen_flags: <defaults>
</compile_context>

<pallas_src>
import jax
import jax.numpy as jnp
from jax.experimental import pallas as pl
from jax.experimental.pallas import tpu as pltpu


_SMALL_BYTES = 1 << 20                       # below this, XLA's fused sigmoid wins
_LANE_CANDIDATES = (2048, 1024, 512, 256, 128)


def _sigmoid_kernel(x_ref, o_ref):
    x = x_ref[...]
    # sigmoid(x) = 0.5 * tanh(x / 2) + 0.5 : one EUP op; muls/adds co-issue on
    # the VPU so the kernel stays HBM-bandwidth bound on every generation.
    o_ref[...] = (0.5 * jnp.tanh(0.5 * x) + 0.5).astype(o_ref.dtype)


def _block_budget():
    """(target block bytes, vmem_limit_bytes) gated on the chip generation."""
    vmem_cap = 64 * 1024 * 1024              # conservative default (v7x per-TC)
    try:
        info = pltpu.get_tpu_info()
        vmem_cap = int(getattr(info, "vmem_capacity_bytes", vmem_cap))
    except Exception:
        pass
    if vmem_cap >= 100 * 1024 * 1024:        # v5e / v6e: 128 MiB physical VMEM
        return 8 * 1024 * 1024, 64 * 1024 * 1024
    # v7x: 64 MiB per TensorCore — keep 4 MiB blocks so 4 buffers = 16 MiB live.
    return 4 * 1024 * 1024, 32 * 1024 * 1024


def tudui_forward(x: jax.Array) -> jax.Array:
    """Forward pass of Tudui: elementwise sigmoid, NCHW in / NCHW out."""
    orig_shape = x.shape
    n_elems = 1
    for d in orig_shape:
        n_elems *= int(d)
    itemsize = jnp.dtype(x.dtype).itemsize
    n_bytes = n_elems * itemsize

    # Tiny inputs: pallas launch + reshape plumbing costs more than the op.
    if n_bytes < _SMALL_BYTES:
        return jax.nn.sigmoid(x)

    # Pick the widest lane count that divides the flat size exactly -> a
    # lane-dense (rows, lanes) slab with zero padding / extra HBM passes.
    lanes = None
    for cand in _LANE_CANDIDATES:
        if n_elems % cand == 0:
            lanes = cand
            break
    if lanes is None:
        # No lane-dense factorization; padding would double HBM traffic, so
        # let XLA's fused elementwise sigmoid handle it.
        return jax.nn.sigmoid(x)

    rows = n_elems // lanes
    x2d = x.reshape(rows, lanes)

    block_bytes, vmem_limit = _block_budget()
    bytes_per_row = lanes * itemsize
    max_tile_rows = max(8, (block_bytes // bytes_per_row) // 8 * 8)

    if rows <= max_tile_rows:
        tile_rows = rows                      # single block == full extent
    else:
        # Balance blocks so the trailing block is not a tiny ragged remainder.
        num_blocks = pl.cdiv(rows, max_tile_rows)
        tile_rows = min(max_tile_rows,
                        ((pl.cdiv(rows, num_blocks) + 7) // 8) * 8)
    grid = (pl.cdiv(rows, tile_rows),)

    out2d = pl.pallas_call(
        _sigmoid_kernel,
        out_shape=jax.ShapeDtypeStruct((rows, lanes), x.dtype),
        grid=grid,
        in_specs=[pl.BlockSpec((tile_rows, lanes), lambda i: (i, 0))],
        out_specs=pl.BlockSpec((tile_rows, lanes), lambda i: (i, 0)),
        compiler_params=pltpu.CompilerParams(
            dimension_semantics=("parallel",),   # shards row-blocks on v7x's 2 TCs
            vmem_limit_bytes=vmem_limit,
        ),
    )(x2d)

    return out2d.reshape(orig_shape)


if __name__ == "__main__":
    # Tudui has no learnable parameters (ReLU is constructed but unused;
    # forward applies Sigmoid only).
    key = jax.random.PRNGKey(0)

    # Small NCHW example at the module-implied shape.
    x = jax.random.normal(key, (2, 4, 16, 16), dtype=jnp.float32)
    out = jax.block_until_ready(tudui_forward(x))
    assert out.shape == x.shape
    assert jnp.allclose(out, jax.nn.sigmoid(x), atol=1e-5, rtol=1e-5)

    # Exact tensor from the script prologue:
    # torch.reshape(tensor([[1, -0.5], [-1, 3]]), (-1, 1, 2, 2))
    small = jnp.array([[1.0, -0.5], [-1.0, 3.0]], dtype=jnp.float32).reshape(-1, 1, 2, 2)
    out_small = jax.block_until_ready(tudui_forward(small))
    assert jnp.allclose(out_small, jax.nn.sigmoid(small), atol=1e-5, rtol=1e-5)

    # Larger input that exercises the tiled, double-buffered Pallas path
    # (multi-block grid on every generation's block budget).
    xm = jax.random.normal(jax.random.PRNGKey(1), (8, 8, 256, 256), dtype=jnp.float32)
    out_m = jax.block_until_ready(tudui_forward(xm))
    assert out_m.shape == xm.shape
    assert jnp.allclose(out_m, jax.nn.sigmoid(xm), atol=1e-5, rtol=1e-5)

    print("KERNEL_OK")
</pallas_src>

<mosaic_0001>
module attributes {stable_mosaic.version = 11 : i64} {
  func.func @_sigmoid_kernel(%arg0: i32, %arg1: memref<512x2048xf32, #tpu.memory_space<vmem>>, %arg2: memref<512x2048xf32, #tpu.memory_space<vmem>>) attributes {dimension_semantics = [#tpu.dimension_semantics<parallel>], iteration_bounds = array<i64: 4>, scalar_prefetch = 0 : i64, scratch_operands = 0 : i64, tpu.core_type = #tpu.core_type<tc>, window_params = [{transform_indices = @transform_0, window_bounds = array<i64: 512, 2048>}, {transform_indices = @transform_1, window_bounds = array<i64: 512, 2048>}]} {
    %c0 = arith.constant 0 : index
    %c0_0 = arith.constant 0 : index
    %0 = vector.load %arg1[%c0, %c0_0] : memref<512x2048xf32, #tpu.memory_space<vmem>>, vector<512x2048xf32>
    %cst = arith.constant 5.000000e-01 : f32
    %1 = vector.broadcast %cst : f32 to vector<512x2048xf32>
    %2 = arith.mulf %1, %0 : vector<512x2048xf32>
    %3 = math.tanh %2 : vector<512x2048xf32>
    %cst_1 = arith.constant 5.000000e-01 : f32
    %4 = vector.broadcast %cst_1 : f32 to vector<512x2048xf32>
    %5 = arith.mulf %4, %3 : vector<512x2048xf32>
    %cst_2 = arith.constant 5.000000e-01 : f32
    %6 = vector.broadcast %cst_2 : f32 to vector<512x2048xf32>
    %7 = arith.addf %5, %6 : vector<512x2048xf32>
    %c0_3 = arith.constant 0 : index
    %c0_4 = arith.constant 0 : index
    %8 = vector.load %arg2[%c0_3, %c0_4] : memref<512x2048xf32, #tpu.memory_space<vmem>>, vector<512x2048xf32>
    tpu.vector_store %arg2[%c0_3, %c0_4], %7 {strides = array<i32>} : memref<512x2048xf32, #tpu.memory_space<vmem>>, vector<512x2048xf32>,
    return
  }
  func.func @transform_0(%arg0: i32) -> (i32, i32) {
    %c0_i32 = arith.constant 0 : i32
    %c0_i32_0 = arith.constant 0 : i32
    return %arg0, %c0_i32 : i32, i32
  }
  func.func @transform_1(%arg0: i32) -> (i32, i32) {
    %c0_i32 = arith.constant 0 : i32
    %c0_i32_0 = arith.constant 0 : i32
    return %arg0, %c0_i32 : i32, i32
  }
}

</mosaic_0001>

<bundles_post_ra>
// kernel: tpu_custom_call.1
= control target key start
LH: loop header
LB: loop body
LE: loop exit
PB: predicated region body
PF: predicated region fallthrough
CT: control target
= control target key end

     0   :  { %6 = vsyncpa [#allocation3], 0  ;;  %s10807_s0 = inlined_call_operand.hbm [shape: f32[2048,2048], index: 0, kind: input, shape index: {}]   ;;  %s10808_s1 = inlined_call_operand.hbm [shape: f32[2048,2048], index: 1, kind: output, shape index: {}]  }
   0x1   :  { %8 = vsyncpa [#allocation3 + $0x1], 0 }
   0x2   :  { %9 = vsyncpa [#allocation4], 0 }
   0x3   :  { %11 = vsyncpa [#allocation4 + $0x1], 0  ;;  %s8598_s6 = smov 0   ;;  %s8600_s7 = smov 0  }
   0x4   :  { %s8602_s8 = smov 0   ;;  %s8604_s9 = smov 0  }
   0x5 LB: > { %s8619_s10 = sadd.s32 4294967295, %s8580_s9   ;;  %s6370_s11 = sadd.s32 4294967294, %s8580_s9   ;;  %s8580_s9 = sphi %s8604_s9, %s10822_s9   ;;  %s8576_s8 = sphi %s8602_s8, %s10821_s8   ;;  %s8572_s7 = sphi %s8600_s7, %s10820_s7   ;;  %s8568_s6 = sphi %s8598_s6, %s10819_s6  }
   0x6   : > { %s8623_s12 = sadd.s32 1, %s8580_s9   ;;  %s24_s13 = sadd.s32 1, %s8576_s8 }
   0x7   : > { %s21_s14 = ssub.s32 %s8580_s9, %s8623_s12  ;;  %p31_p0 = scmp.ne.s32.totalorder %s8576_s8, %s8572_s7 }
   0x8   : > { %p22_p1 = scmp.eq.s32.totalorder %s21_s14, 0  ;;  %p32_p2 = scmp.eq.s32.totalorder %s8580_s9, 0 }
   0x9   : > { %p37_p3 = scmp.ne.s32.totalorder %s8572_s7, %s8568_s6  ;;  %p38_p4 = scmp.eq.s32.totalorder %s8619_s10, 0 }
   0xa   : > { %s8635_s15 = scalar_select %p22_p1, %s8576_s8, %s24_s13  }
   0xb   : > { %p8637_p5 = por %p32_p2, %p31_p0  ;;  %p8641_p6 = por %p38_p4, %p37_p3 }
   0xc   : > { %p61_p7 = scmp.eq.s32.totalorder %s8619_s10, 3  ;;  %p67_p8 = scmp.eq.s32.totalorder %s6370_s11, 3 }
   0xd   : > { %s10812_s17 = scalar_select %p8641_p6, 1, 0 }
   0xe   : > { %p6402_p9 = scmp.lt.s32.totalorder %s8580_s9, 4  ;;  %p8647_p10 = por %p61_p7, %p31_p0 }
   0xf   : > { %p8651_p11 = por %p67_p8, %p37_p3  ;;  %s87_s20 = sand.u32 1, %s8576_s8  }
  0x10   : > { %s10813_s18 = scalar_select %p8647_p10, 1, 0 }
  0x11   : > { %s10814_s19 = scalar_select %p8651_p11, 1, 0 }
  0x12   : > { %s6387_s21 = sshll.u32 %s8580_s9, 17  ;;  %s6373_s22 = sshll.u32 %s87_s20, 13 }
  0x13   : > { %s8660_s25 = scalar_lea.hbm %s10807_s0, %s6387_s21  ;;  %s91_s26 = scalar_lea.vmem [#allocation2], %s6373_s22 }
  0x14   : > { %s99_s27 = sshll.u32 %s91_s26, 4  ;;  %p8664_p12 = pnand %p6402_p9, %p8637_p5  ;;  %s8668_s27 = int_to_ptr.vmem [resolvable:$true] %s99_s27 }
  0x15   : > { %s8670_s29 = scalar_lea.sflag [#allocation3], %s87_s20  ;;  %s8488_s30 = scalar_lea.hbm %s8660_s25, 131072 }
  0x16   : > { %p8489_p13 = scmp.ne.s32.totalorder %s8660_s25, %s8488_s30  ;;  %p8490_p0 = pneg %p8664_p12 }
  0x17   : > { %s8493_s4 = scalar_lea.hbm %s10807_s0, 524288  ;;  %p8494_p3 = scmp.lt.s32.totalorder %s8660_s25, %s10807_s0 }
  0x18   : > { %p8491_p1 = pnand %p8490_p0, %p8489_p13  ;;  %p8495_p4 = scmp.lt.s32.totalorder %s8493_s4, %s8488_s30 }
  0x1a   : > { %p8492_p2 = pneg %p8491_p1  ;;  %p8496_p5 = por %p8495_p4, %p8494_p3 }
  0x1c   : > { %p8497_p7 = pnand %p8496_p5, %p8492_p2 }
  0x1e   : > { %8500 = shalt.err (!%p8497_p7)
}
  0x1f   : > { %s8501_s13 = scalar_lea.vmem %s8668_s27, 131072  ;;  %s8582_s14 = smov [#allocation2]  }
  0x20   : > { %p8502_p8 = scmp.ne.s32.totalorder %s8668_s27, %s8501_s13  ;;  %s8506_s16 = sshll.u32 %s8582_s14, 4  ;;  %s8507_s16 = int_to_ptr.vmem [resolvable:$false] %s8506_s16 }
  0x21   : > { %s8508_s20 = scalar_lea.vmem %s8507_s16, 262144  ;;  %p8509_p1 = scmp.lt.s32.totalorder %s8668_s27, %s8507_s16 }
  0x22   : > { %p8504_p9 = pnand %p8502_p8, %p8490_p0  ;;  %p8510_p11 = scmp.lt.s32.totalorder %s8508_s20, %s8501_s13 }
  0x24   : > { %p8505_p13 = pneg %p8504_p9  ;;  %p8511_p10 = por %p8510_p11, %p8509_p1 }
  0x26   : > { %p8512_p6 = pnand %p8511_p10, %p8505_p13 }
  0x28   : > { %8515 = shalt.err (!%p8512_p6)
}
  0x29   : > { %s8583_s21 = smov 2048   ;;  %s8584_s22 = smov 128  }
  0x2a   : > { %6397 = dma.hbm_to_vmem [thread:$0]  (!%p8664_p12), %s8660_s25, 131072, %s8668_s27, %s8670_s29, %s8583_s21, %s8583_s21, %s8584_s22  }
  0x2b   : > { %p6377_p0 = scmp.ge.s32.totalorder %s8580_s9, 1  ;;  %p107_p2 = scmp.lt.s32.totalorder %s8580_s9, 5 }
  0x2d   : > { %p108_p3 = pnand %p6377_p0, %p107_p2 }
  0x2e   : > { %s8694_s23 = sand.u32 (!%p108_p3), 1, %s8572_s7   ;;  %p10816_p6 = scmp.ne.s32.totalorder (!%p108_p3), %s10812_s17, 0 }
  0x2f   : > { %111 = sbr.rel (%p108_p3) target bundleno = 1111 (0x457), region = 24  ;;  %s6378_s24 = sshll.u32 (!%p108_p3), %s8694_s23, 13 }
  0x30   : > { %s114_s26 = scalar_lea.sflag (!%p108_p3), [#allocation3], %s8694_s23  ;;  %s8700_s30 = scalar_lea.vmem (!%p108_p3), [#allocation2], %s6378_s24 }
  0x34   : > { %8559 = dma.done.wait (%p10816_p6), %s114_s26, 131072  }
  0x35   : > { %8561 = vsyncadd (%p10816_p6), %s114_s26, 4294836224  ;;  %v138_v0 = vld [vmem:[%s8700_s30] sm:$0xff]  ;;  %v139_v1 = vld [vmem:[%s8700_s30 + $0x8] sm:$0xff]  ;;  %s8733_s17 = scalar_lea.vmem [#allocation5], %s6378_s24  ;;  %s6389_s25 = sshll.u32 %s8619_s10, 17 }
  0x36   : > { %v140_v2 = vld [vmem:[%s8700_s30 + $0x10] sm:$0xff]  ;;  %v1162_v3 = vmul.f32 0.5, %v138_v0  ;;  %v1163_v4 = vmul.f32 0.5, %v139_v1  ;;  %v141_v6 = vld [vmem:[%s8700_s30 + $0x18] sm:$0xff]  ;;  %v142_v7 = vld [vmem:[%s8700_s30 + $0x20] sm:$0xff]  ;;  %s6297_s27 = sshll.u32 %s8733_s17, 4  ;;  %s10760_s2 = scalar_lea.hbm %s10808_s1, %s6389_s25  ;;  %s10762_s27 = int_to_ptr.vmem [resolvable:$true] %s6297_s27 }
  0x37   : > { %v1164_v5 = vmul.f32 0.5, %v140_v2  ;;  %v143_v8 = vld [vmem:[%s8700_s30 + $0x28] sm:$0xff]  ;;  %v1165_v9 = vmul.f32 0.5, %v141_v6  ;;  %v144_v10 = vld [vmem:[%s8700_s30 + $0x30] sm:$0xff]  ;;  %v1166_v11 = vmul.f32 0.5, %v142_v7  ;;  %v145_v12 = vld [vmem:[%s8700_s30 + $0x38] sm:$0xff] }
  0x38   : > { %6440 = vtanh.f32 %v1162_v3  ;;  %v1167_v13 = vmul.f32 0.5, %v143_v8  ;;  %v146_v14 = vld [vmem:[%s8700_s30 + $0x40] sm:$0xff]  ;;  %v1168_v15 = vmul.f32 0.5, %v144_v10  ;;  %v147_v16 = vld [vmem:[%s8700_s30 + $0x48] sm:$0xff]  ;;  %v1169_v17 = vmul.f32 0.5, %v145_v12  ;;  %v148_v18 = vld [vmem:[%s8700_s30 + $0x50] sm:$0xff] }
  0x39   : > { %6442 = vtanh.f32 %v1163_v4  ;;  %v1170_v19 = vmul.f32 0.5, %v146_v14  ;;  %v149_v20 = vld [vmem:[%s8700_s30 + $0x58] sm:$0xff]  ;;  %v1171_v21 = vmul.f32 0.5, %v147_v16  ;;  %v150_v22 = vld [vmem:[%s8700_s30 + $0x60] sm:$0xff]  ;;  %v1172_v23 = vmul.f32 0.5, %v148_v18  ;;  %v151_v24 = vld [vmem:[%s8700_s30 + $0x68] sm:$0xff] }
  0x3a   : > { %6444 = vtanh.f32 %v1164_v5  ;;  %v1173_v25 = vmul.f32 0.5, %v149_v20  ;;  %v152_v26 = vld [vmem:[%s8700_s30 + $0x70] sm:$0xff]  ;;  %v1174_v27 = vmul.f32 0.5, %v150_v22  ;;  %v153_v28 = vld [vmem:[%s8700_s30 + $0x78] sm:$0xff]  ;;  %v1175_v29 = vmul.f32 0.5, %v151_v24  ;;  %v154_v30 = vld [vmem:[%s8700_s30 + $0x80] sm:$0xff] }
  0x3b   : > { %6446 = vtanh.f32 %v1165_v9  ;;  %v1176_v31 = vmul.f32 0.5, %v152_v26  ;;  %v155_v32 = vld [vmem:[%s8700_s30 + $0x88] sm:$0xff]  ;;  %v1177_v33 = vmul.f32 0.5, %v153_v28  ;;  %v156_v34 = vld [vmem:[%s8700_s30 + $0x90] sm:$0xff]  ;;  %v1178_v35 = vmul.f32 0.5, %v154_v30  ;;  %v157_v36 = vld [vmem:[%s8700_s30 + $0x98] sm:$0xff] }
  0x3c   : > { %6448 = vtanh.f32 %v1166_v11  ;;  %v1179_v38 = vmul.f32 0.5, %v155_v32  ;;  %v158_v39 = vld [vmem:[%s8700_s30 + $0xa0] sm:$0xff]  ;;  %v1180_v42 = vmul.f32 0.5, %v156_v34  ;;  %v159_v43 = vld [vmem:[%s8700_s30 + $0xa8] sm:$0xff]  ;;  %v1181_v46 = vmul.f32 0.5, %v157_v36  ;;  %v160_v47 = vld [vmem:[%s8700_s30 + $0xb0] sm:$0xff] }
  0x3d   : > { %6450 = vtanh.f32 %v1167_v13  ;;  %v1182_v51 = vmul.f32 0.5, %v158_v39  ;;  %v161_v52 = vld [vmem:[%s8700_s30 + $0xb8] sm:$0xff]  ;;  %v1183_v56 = vmul.f32 0.5, %v159_v43  ;;  %v162_v57 = vld [vmem:[%s8700_s30 + $0xc0] sm:$0xff]  ;;  %v1184_v61 = vmul.f32 0.5, %v160_v47  ;;  %v163_v62 = vld [vmem:[%s8700_s30 + $0xc8] sm:$0xff] }
  0x3e   : > { %6452 = vtanh.f32 %v1168_v15  ;;  %v1185_v2 = vmul.f32 0.5, %v161_v52  ;;  %v164_v3 = vld [vmem:[%s8700_s30 + $0xd0] sm:$0xff]  ;;  %v1186_v7 = vmul.f32 0.5, %v162_v57  ;;  %v165_v8 = vld [vmem:[%s8700_s30 + $0xd8] sm:$0xff]  ;;  %v1187_v12 = vmul.f32 0.5, %v163_v62  ;;  %v166_v13 = vld [vmem:[%s8700_s30 + $0xe0] sm:$0xff] }
  0x3f   : > { %6454 = vtanh.f32 %v1169_v17  ;;  %v1188_v17 = vmul.f32 0.5, %v164_v3  ;;  %v167_v18 = vld [vmem:[%s8700_s30 + $0xe8] sm:$0xff]  ;;  %v1189_v22 = vmul.f32 0.5, %v165_v8  ;;  %v169_v28 = vld [vmem:[%s8700_s30 + $0xf8] sm:$0xff]  ;;  %v172_v43 = vld [vmem:[%s8700_s30 + $0x110] sm:$0xff]  ;;  %s6283_s10 = scalar_lea.sflag [#allocation4], %s8694_s23 }
  0x40   : > { %6456 = vtanh.f32 %v1170_v19  ;;  %v1191_v32 = vmul.f32 0.5, %v167_v18  ;;  %v1196_v57 = vmul.f32 0.5, %v172_v43  ;;  %s8516_s3 = scalar_lea.vmem %s10762_s27, 131072  ;;  %p10817_p11 = scmp.ne.s32.totalorder %s10813_s18, 0 }
  0x41   : > { %6458 = vtanh.f32 %v1171_v21  ;;  %p8517_p10 = scmp.ne.s32.totalorder %s10762_s27, %s8516_s3  ;;  %s8585_s4 = smov [#allocation5]  }
  0x42   : > { %6460 = vtanh.f32 %v1172_v23  ;;  %v168_v23 = vld [vmem:[%s8700_s30 + $0xf0] sm:$0xff]  ;;  %s8520_s5 = sshll.u32 %s8585_s4, 4  ;;  %s8521_s5 = int_to_ptr.vmem [resolvable:$false] %s8520_s5 }
  0x43   : > { %6462 = vtanh.f32 %v1173_v25  ;;  %p8518_p12 = pnand %p8517_p10, %p10817_p11  ;;  %s8522_s11 = scalar_lea.vmem %s8521_s5, 262144 }
  0x44   : > { %6464 = vtanh.f32 %v1174_v27  ;;  %v1190_v27 = vmul.f32 0.5, %v166_v13  ;;  %p8523_p5 = scmp.lt.s32.totalorder %s10762_s27, %s8521_s5  ;;  %p8524_p7 = scmp.lt.s32.totalorder %s8522_s11, %s8516_s3 }
  0x45   : > { %v6441_v37 = vpop.eup %6440  ;;  %6466 = vtanh.f32 %v1175_v29  ;;  %p8519_p4 = pneg %p8518_p12 }
  0x46   : > { %v6443_v40 = vpop.eup %6442  ;;  %v3210_v41 = vmul.f32 0.5, %v6441_v37  ;;  %6468 = vtanh.f32 %v1176_v31  ;;  %v1192_v37 = vmul.f32 0.5, %v168_v23  ;;  %p8525_p8 = por %p8524_p7, %p8523_p5 }
  0x47   : > { %v6445_v44 = vpop.eup %6444  ;;  %v3211_v45 = vmul.f32 0.5, %v6443_v40  ;;  %6470 = vtanh.f32 %v1177_v33  ;;  %v170_v33 = vld [vmem:[%s8700_s30 + $0x100] sm:$0xff] }
  0x48   : > { %v6447_v48 = vpop.eup %6446  ;;  %v4234_v49 = vadd.f32 0.5, %v3210_v41  ;;  %v3212_v50 = vmul.f32 0.5, %v6445_v44  ;;  %6472 = vtanh.f32 %v1178_v35  ;;  %v1194_v47 = vmul.f32 0.5, %v170_v33  ;;  %p8526_p9 = pnand %p8525_p8, %p8519_p4 }
  0x49   : > { %v6449_v53 = vpop.eup %6448  ;;  %v4235_v54 = vadd.f32 0.5, %v3211_v45  ;;  %v3213_v55 = vmul.f32 0.5, %v6447_v48  ;;  %6474 = vtanh.f32 %v1179_v38  ;;  %v171_v38 = vld [vmem:[%s8700_s30 + $0x108] sm:$0xff]  ;;  %v173_v48 = vld [vmem:[%s8700_s30 + $0x118] sm:$0xff] }
  0x4a   : > { %v6451_v58 = vpop.eup %6450  ;;  %5258 = vst [vmem:[%s8733_s17] sm:$0xff] %v4234_v49  ;;  %v4236_v59 = vadd.f32 0.5, %v3212_v50  ;;  %v3214_v60 = vmul.f32 0.5, %v6449_v53  ;;  %6476 = vtanh.f32 %v1180_v42  ;;  %v1193_v42 = vmul.f32 0.5, %v169_v28  ;;  %v174_v53 = vld [vmem:[%s8700_s30 + $0x120] sm:$0xff] }
  0x4b   : > { %v6453_v63 = vpop.eup %6452  ;;  %5259 = vst [vmem:[%s8733_s17 + $0x8] sm:$0xff] %v4235_v54  ;;  %v4237_v0 = vadd.f32 0.5, %v3213_v55  ;;  %v3215_v1 = vmul.f32 0.5, %v6451_v58  ;;  %6478 = vtanh.f32 %v1181_v46  ;;  %v1195_v52 = vmul.f32 0.5, %v171_v38  ;;  %v175_v58 = vld [vmem:[%s8700_s30 + $0x128] sm:$0xff] }
  0x4c   : > { %v6455_v4 = vpop.eup %6454  ;;  %5260 = vst [vmem:[%s8733_s17 + $0x10] sm:$0xff] %v4236_v59  ;;  %v4238_v5 = vadd.f32 0.5, %v3214_v60  ;;  %v3216_v6 = vmul.f32 0.5, %v6453_v63  ;;  %6480 = vtanh.f32 %v1182_v51  ;;  %v1197_v62 = vmul.f32 0.5, %v173_v48  ;;  %v176_v63 = vld [vmem:[%s8700_s30 + $0x130] sm:$0xff] }
  0x4d   : > { %v6457_v9 = vpop.eup %6456  ;;  %5261 = vst [vmem:[%s8733_s17 + $0x18] sm:$0xff] %v4237_v0  ;;  %v4239_v10 = vadd.f32 0.5, %v3215_v1  ;;  %v3217_v11 = vmul.f32 0.5, %v6455_v4  ;;  %6482 = vtanh.f32 %v1183_v56  ;;  %v1198_v3 = vmul.f32 0.5, %v174_v53  ;;  %v177_v4 = vld [vmem:[%s8700_s30 + $0x138] sm:$0xff] }
  0x4e   : > { %v6459_v14 = vpop.eup %6458  ;;  %5262 = vst [vmem:[%s8733_s17 + $0x20] sm:$0xff] %v4238_v5  ;;  %v4240_v15 = vadd.f32 0.5, %v3216_v6  ;;  %v3218_v16 = vmul.f32 0.5, %v6457_v9  ;;  %6484 = vtanh.f32 %v1184_v61  ;;  %v1199_v8 = vmul.f32 0.5, %v175_v58  ;;  %v178_v9 = vld [vmem:[%s8700_s30 + $0x140] sm:$0xff] }
  0x4f   : > { %v6461_v19 = vpop.eup %6460  ;;  %5263 = vst [vmem:[%s8733_s17 + $0x28] sm:$0xff] %v4239_v10  ;;  %v4241_v20 = vadd.f32 0.5, %v3217_v11  ;;  %v3219_v21 = vmul.f32 0.5, %v6459_v14  ;;  %6486 = vtanh.f32 %v1185_v2  ;;  %v1200_v13 = vmul.f32 0.5, %v176_v63  ;;  %v179_v14 = vld [vmem:[%s8700_s30 + $0x148] sm:$0xff] }
  0x50   : > { %v6463_v24 = vpop.eup %6462  ;;  %5264 = vst [vmem:[%s8733_s17 + $0x30] sm:$0xff] %v4240_v15  ;;  %v4242_v25 = vadd.f32 0.5, %v3218_v16  ;;  %v3220_v26 = vmul.f32 0.5, %v6461_v19  ;;  %6488 = vtanh.f32 %v1186_v7  ;;  %v1201_v18 = vmul.f32 0.5, %v177_v4  ;;  %v180_v19 = vld [vmem:[%s8700_s30 + $0x150] sm:$0xff] }
  0x51   : > { %v6465_v29 = vpop.eup %6464  ;;  %5265 = vst [vmem:[%s8733_s17 + $0x38] sm:$0xff] %v4241_v20  ;;  %v4243_v30 = vadd.f32 0.5, %v3219_v21  ;;  %v3221_v31 = vmul.f32 0.5, %v6463_v24  ;;  %6490 = vtanh.f32 %v1187_v12  ;;  %v1202_v23 = vmul.f32 0.5, %v178_v9  ;;  %v181_v24 = vld [vmem:[%s8700_s30 + $0x158] sm:$0xff] }
  0x52   : > { %v6467_v34 = vpop.eup %6466  ;;  %5266 = vst [vmem:[%s8733_s17 + $0x40] sm:$0xff] %v4242_v25  ;;  %v4244_v35 = vadd.f32 0.5, %v3220_v26  ;;  %v3222_v36 = vmul.f32 0.5, %v6465_v29  ;;  %6492 = vtanh.f32 %v1188_v17  ;;  %v1203_v28 = vmul.f32 0.5, %v179_v14  ;;  %v182_v29 = vld [vmem:[%s8700_s30 + $0x160] sm:$0xff] }
  0x53   : > { %v6469_v39 = vpop.eup %6468  ;;  %5267 = vst [vmem:[%s8733_s17 + $0x48] sm:$0xff] %v4243_v30  ;;  %v4245_v40 = vadd.f32 0.5, %v3221_v31  ;;  %v3223_v41 = vmul.f32 0.5, %v6467_v34  ;;  %6494 = vtanh.f32 %v1189_v22  ;;  %v1204_v33 = vmul.f32 0.5, %v180_v19  ;;  %v183_v34 = vld [vmem:[%s8700_s30 + $0x168] sm:$0xff] }
  0x54   : > { %v6471_v44 = vpop.eup %6470  ;;  %5268 = vst [vmem:[%s8733_s17 + $0x50] sm:$0xff] %v4244_v35  ;;  %v4246_v45 = vadd.f32 0.5, %v3222_v36  ;;  %v3224_v46 = vmul.f32 0.5, %v6469_v39  ;;  %6496 = vtanh.f32 %v1190_v27  ;;  %v1205_v38 = vmul.f32 0.5, %v181_v24  ;;  %v184_v39 = vld [vmem:[%s8700_s30 + $0x170] sm:$0xff] }
  0x55   : > { %v6473_v49 = vpop.eup %6472  ;;  %5269 = vst [vmem:[%s8733_s17 + $0x58] sm:$0xff] %v4245_v40  ;;  %v4247_v50 = vadd.f32 0.5, %v3223_v41  ;;  %v3225_v51 = vmul.f32 0.5, %v6471_v44  ;;  %6498 = vtanh.f32 %v1191_v32  ;;  %v1206_v43 = vmul.f32 0.5, %v182_v29  ;;  %v185_v44 = vld [vmem:[%s8700_s30 + $0x178] sm:$0xff] }
  0x56   : > { %v6475_v54 = vpop.eup %6474  ;;  %5270 = vst [vmem:[%s8733_s17 + $0x60] sm:$0xff] %v4246_v45  ;;  %v4248_v55 = vadd.f32 0.5, %v3224_v46  ;;  %v3226_v56 = vmul.f32 0.5, %v6473_v49  ;;  %6500 = vtanh.f32 %v1192_v37  ;;  %v1207_v48 = vmul.f32 0.5, %v183_v34  ;;  %v186_v49 = vld [vmem:[%s8700_s30 + $0x180] sm:$0xff] }
  0x57   : > { %v6477_v59 = vpop.eup %6476  ;;  %5271 = vst [vmem:[%s8733_s17 + $0x68] sm:$0xff] %v4247_v50  ;;  %v4249_v60 = vadd.f32 0.5, %v3225_v51  ;;  %v3227_v61 = vmul.f32 0.5, %v6475_v54  ;;  %6502 = vtanh.f32 %v1193_v42  ;;  %v1208_v53 = vmul.f32 0.5, %v184_v39  ;;  %v187_v54 = vld [vmem:[%s8700_s30 + $0x188] sm:$0xff] }
  0x58   : > { %v6479_v0 = vpop.eup %6478  ;;  %5272 = vst [vmem:[%s8733_s17 + $0x70] sm:$0xff] %v4248_v55  ;;  %v4250_v1 = vadd.f32 0.5, %v3226_v56  ;;  %v3228_v2 = vmul.f32 0.5, %v6477_v59  ;;  %6504 = vtanh.f32 %v1194_v47  ;;  %v1209_v58 = vmul.f32 0.5, %v185_v44  ;;  %v188_v59 = vld [vmem:[%s8700_s30 + $0x190] sm:$0xff] }
  0x59   : > { %v6481_v5 = vpop.eup %6480  ;;  %5273 = vst [vmem:[%s8733_s17 + $0x78] sm:$0xff] %v4249_v60  ;;  %v4251_v6 = vadd.f32 0.5, %v3227_v61  ;;  %v3229_v7 = vmul.f32 0.5, %v6479_v0  ;;  %6506 = vtanh.f32 %v1195_v52  ;;  %v1210_v63 = vmul.f32 0.5, %v186_v49  ;;  %v189_v0 = vld [vmem:[%s8700_s30 + $0x198] sm:$0xff] }
  0x5a   : > { %v6483_v10 = vpop.eup %6482  ;;  %5274 = vst [vmem:[%s8733_s17 + $0x80] sm:$0xff] %v4250_v1  ;;  %v4252_v11 = vadd.f32 0.5, %v3228_v2  ;;  %v3230_v12 = vmul.f32 0.5, %v6481_v5  ;;  %6508 = vtanh.f32 %v1196_v57  ;;  %v1211_v4 = vmul.f32 0.5, %v187_v54  ;;  %v190_v5 = vld [vmem:[%s8700_s30 + $0x1a0] sm:$0xff] }
  0x5b   : > { %v6485_v15 = vpop.eup %6484  ;;  %5275 = vst [vmem:[%s8733_s17 + $0x88] sm:$0xff] %v4251_v6  ;;  %v4253_v16 = vadd.f32 0.5, %v3229_v7  ;;  %v3231_v17 = vmul.f32 0.5, %v6483_v10  ;;  %6510 = vtanh.f32 %v1197_v62  ;;  %v1212_v9 = vmul.f32 0.5, %v188_v59  ;;  %v191_v10 = vld [vmem:[%s8700_s30 + $0x1a8] sm:$0xff] }
  0x5c   : > { %v6487_v20 = vpop.eup %6486  ;;  %5276 = vst [vmem:[%s8733_s17 + $0x90] sm:$0xff] %v4252_v11  ;;  %v4254_v21 = vadd.f32 0.5, %v3230_v12  ;;  %v3232_v22 = vmul.f32 0.5, %v6485_v15  ;;  %6512 = vtanh.f32 %v1198_v3  ;;  %v1213_v14 = vmul.f32 0.5, %v189_v0  ;;  %v192_v15 = vld [vmem:[%s8700_s30 + $0x1b0] sm:$0xff] }
  0x5d   : > { %v6489_v25 = vpop.eup %6488  ;;  %5277 = vst [vmem:[%s8733_s17 + $0x98] sm:$0xff] %v4253_v16  ;;  %v4255_v26 = vadd.f32 0.5, %v3231_v17  ;;  %v3233_v27 = vmul.f32 0.5, %v6487_v20  ;;  %6514 = vtanh.f32 %v1199_v8  ;;  %v1214_v19 = vmul.f32 0.5, %v190_v5  ;;  %v193_v20 = vld [vmem:[%s8700_s30 + $0x1b8] sm:$0xff] }
  0x5e   : > { %v6491_v30 = vpop.eup %6490  ;;  %5278 = vst [vmem:[%s8733_s17 + $0xa0] sm:$0xff] %v4254_v21  ;;  %v4256_v31 = vadd.f32 0.5, %v3232_v22  ;;  %v3234_v32 = vmul.f32 0.5, %v6489_v25  ;;  %6516 = vtanh.f32 %v1200_v13  ;;  %v1215_v24 = vmul.f32 0.5, %v191_v10  ;;  %v194_v25 = vld [vmem:[%s8700_s30 + $0x1c0] sm:$0xff] }
  0x5f   : > { %v6493_v35 = vpop.eup %6492  ;;  %5279 = vst [vmem:[%s8733_s17 + $0xa8] sm:$0xff] %v4255_v26  ;;  %v4257_v36 = vadd.f32 0.5, %v3233_v27  ;;  %v3235_v37 = vmul.f32 0.5, %v6491_v30  ;;  %6518 = vtanh.f32 %v1201_v18  ;;  %v1216_v29 = vmul.f32 0.5, %v192_v15  ;;  %v195_v30 = vld [vmem:[%s8700_s30 + $0x1c8] sm:$0xff] }
  0x60   : > { %v6495_v40 = vpop.eup %6494  ;;  %5280 = vst [vmem:[%s8733_s17 + $0xb0] sm:$0xff] %v4256_v31  ;;  %v4258_v41 = vadd.f32 0.5, %v3234_v32  ;;  %v3236_v42 = vmul.f32 0.5, %v6493_v35  ;;  %6520 = vtanh.f32 %v1202_v23  ;;  %v1217_v34 = vmul.f32 0.5, %v193_v20  ;;  %v196_v35 = vld [vmem:[%s8700_s30 + $0x1d0] sm:$0xff] }
  0x61   : > { %v6497_v45 = vpop.eup %6496  ;;  %5281 = vst [vmem:[%s8733_s17 + $0xb8] sm:$0xff] %v4257_v36  ;;  %v4259_v46 = vadd.f32 0.5, %v3235_v37  ;;  %v3237_v47 = vmul.f32 0.5, %v6495_v40  ;;  %6522 = vtanh.f32 %v1203_v28  ;;  %v1218_v39 = vmul.f32 0.5, %v194_v25  ;;  %v197_v40 = vld [vmem:[%s8700_s30 + $0x1d8] sm:$0xff] }
  0x62   : > { %v6499_v50 = vpop.eup %6498  ;;  %5282 = vst [vmem:[%s8733_s17 + $0xc0] sm:$0xff] %v4258_v41  ;;  %v4260_v51 = vadd.f32 0.5, %v3236_v42  ;;  %v3238_v52 = vmul.f32 0.5, %v6497_v45  ;;  %6524 = vtanh.f32 %v1204_v33  ;;  %v1219_v44 = vmul.f32 0.5, %v195_v30  ;;  %v198_v45 = vld [vmem:[%s8700_s30 + $0x1e0] sm:$0xff] }
  0x63   : > { %v6501_v55 = vpop.eup %6500  ;;  %5283 = vst [vmem:[%s8733_s17 + $0xc8] sm:$0xff] %v4259_v46  ;;  %v4261_v56 = vadd.f32 0.5, %v3237_v47  ;;  %v3239_v57 = vmul.f32 0.5, %v6499_v50  ;;  %6526 = vtanh.f32 %v1205_v38  ;;  %v1220_v49 = vmul.f32 0.5, %v196_v35  ;;  %v199_v50 = vld [vmem:[%s8700_s30 + $0x1e8] sm:$0xff] }
  0x64   : > { %v6503_v60 = vpop.eup %6502  ;;  %5284 = vst [vmem:[%s8733_s17 + $0xd0] sm:$0xff] %v4260_v51  ;;  %v4262_v61 = vadd.f32 0.5, %v3238_v52  ;;  %v3240_v62 = vmul.f32 0.5, %v6501_v55  ;;  %6528 = vtanh.f32 %v1206_v43  ;;  %v1221_v54 = vmul.f32 0.5, %v197_v40  ;;  %v200_v55 = vld [vmem:[%s8700_s30 + $0x1f0] sm:$0xff] }
  0x65   : > { %v6505_v1 = vpop.eup %6504  ;;  %5285 = vst [vmem:[%s8733_s17 + $0xd8] sm:$0xff] %v4261_v56  ;;  %v4263_v2 = vadd.f32 0.5, %v3239_v57  ;;  %v3241_v3 = vmul.f32 0.5, %v6503_v60  ;;  %6530 = vtanh.f32 %v1207_v48  ;;  %v1222_v59 = vmul.f32 0.5, %v198_v45  ;;  %v201_v60 = vld [vmem:[%s8700_s30 + $0x1f8] sm:$0xff] }
  0x66   : > { %v6507_v6 = vpop.eup %6506  ;;  %5286 = vst [vmem:[%s8733_s17 + $0xe0] sm:$0xff] %v4262_v61  ;;  %v4264_v7 = vadd.f32 0.5, %v3240_v62  ;;  %v3242_v8 = vmul.f32 0.5, %v6505_v1  ;;  %6532 = vtanh.f32 %v1208_v53  ;;  %v1223_v0 = vmul.f32 0.5, %v199_v50  ;;  %v202_v1 = vld [vmem:[%s8700_s30 + $0x200] sm:$0xff] }
  0x67   : > { %v6509_v11 = vpop.eup %6508  ;;  %5287 = vst [vmem:[%s8733_s17 + $0xe8] sm:$0xff] %v4263_v2  ;;  %v4265_v12 = vadd.f32 0.5, %v3241_v3  ;;  %v3243_v13 = vmul.f32 0.5, %v6507_v6  ;;  %6534 = vtanh.f32 %v1209_v58  ;;  %v1224_v5 = vmul.f32 0.5, %v200_v55  ;;  %v203_v6 = vld [vmem:[%s8700_s30 + $0x208] sm:$0xff] }
  0x68   : > { %v6511_v16 = vpop.eup %6510  ;;  %5288 = vst [vmem:[%s8733_s17 + $0xf0] sm:$0xff] %v4264_v7  ;;  %v4266_v17 = vadd.f32 0.5, %v3242_v8  ;;  %v3244_v18 = vmul.f32 0.5, %v6509_v11  ;;  %6536 = vtanh.f32 %v1210_v63  ;;  %v1225_v10 = vmul.f32 0.5, %v201_v60  ;;  %v204_v11 = vld [vmem:[%s8700_s30 + $0x210] sm:$0xff] }
  0x69   : > { %v6513_v21 = vpop.eup %6512  ;;  %5289 = vst [vmem:[%s8733_s17 + $0xf8] sm:$0xff] %v4265_v12  ;;  %v4267_v22 = vadd.f32 0.5, %v3243_v13  ;;  %v3245_v23 = vmul.f32 0.5, %v6511_v16  ;;  %6538 = vtanh.f32 %v1211_v4  ;;  %v1226_v15 = vmul.f32 0.5, %v202_v1  ;;  %v205_v16 = vld [vmem:[%s8700_s30 + $0x218] sm:$0xff] }
  0x6a   : > { %v6515_v26 = vpop.eup %6514  ;;  %5290 = vst [vmem:[%s8733_s17 + $0x100] sm:$0xff] %v4266_v17  ;;  %v4268_v27 = vadd.f32 0.5, %v3244_v18  ;;  %v3246_v28 = vmul.f32 0.5, %v6513_v21  ;;  %6540 = vtanh.f32 %v1212_v9  ;;  %v1227_v20 = vmul.f32 0.5, %v203_v6  ;;  %v206_v21 = vld [vmem:[%s8700_s30 + $0x220] sm:$0xff] }
  0x6b   : > { %v6517_v31 = vpop.eup %6516  ;;  %5291 = vst [vmem:[%s8733_s17 + $0x108] sm:$0xff] %v4267_v22  ;;  %v4269_v32 = vadd.f32 0.5, %v3245_v23  ;;  %v3247_v33 = vmul.f32 0.5, %v6515_v26  ;;  %6542 = vtanh.f32 %v1213_v14  ;;  %v1228_v25 = vmul.f32 0.5, %v204_v11  ;;  %v207_v26 = vld [vmem:[%s8700_s30 + $0x228] sm:$0xff] }
  0x6c   : > { %v6519_v36 = vpop.eup %6518  ;;  %5292 = vst [vmem:[%s8733_s17 + $0x110] sm:$0xff] %v4268_v27  ;;  %v4270_v37 = vadd.f32 0.5, %v3246_v28  ;;  %v3248_v38 = vmul.f32 0.5, %v6517_v31  ;;  %6544 = vtanh.f32 %v1214_v19  ;;  %v1229_v30 = vmul.f32 0.5, %v205_v16  ;;  %v208_v31 = vld [vmem:[%s8700_s30 + $0x230] sm:$0xff] }
  0x6d   : > { %v6521_v41 = vpop.eup %6520  ;;  %5293 = vst [vmem:[%s8733_s17 + $0x118] sm:$0xff] %v4269_v32  ;;  %v4271_v42 = vadd.f32 0.5, %v3247_v33  ;;  %v3249_v43 = vmul.f32 0.5, %v6519_v36  ;;  %6546 = vtanh.f32 %v1215_v24  ;;  %v1230_v35 = vmul.f32 0.5, %v206_v21  ;;  %v209_v36 = vld [vmem:[%s8700_s30 + $0x238] sm:$0xff] }
  0x6e   : > { %v6523_v46 = vpop.eup %6522  ;;  %5294 = vst [vmem:[%s8733_s17 + $0x120] sm:$0xff] %v4270_v37  ;;  %v4272_v47 = vadd.f32 0.5, %v3248_v38  ;;  %v3250_v48 = vmul.f32 0.5, %v6521_v41  ;;  %6548 = vtanh.f32 %v1216_v29  ;;  %v1231_v40 = vmul.f32 0.5, %v207_v26  ;;  %v210_v41 = vld [vmem:[%s8700_s30 + $0x240] sm:$0xff] }
  0x6f   : > { %v6525_v51 = vpop.eup %6524  ;;  %5295 = vst [vmem:[%s8733_s17 + $0x128] sm:$0xff] %v4271_v42  ;;  %v4273_v52 = vadd.f32 0.5, %v3249_v43  ;;  %v3251_v53 = vmul.f32 0.5, %v6523_v46  ;;  %6550 = vtanh.f32 %v1217_v34  ;;  %v1232_v45 = vmul.f32 0.5, %v208_v31  ;;  %v211_v46 = vld [vmem:[%s8700_s30 + $0x248] sm:$0xff] }
  0x70   : > { %v6527_v56 = vpop.eup %6526  ;;  %5296 = vst [vmem:[%s8733_s17 + $0x130] sm:$0xff] %v4272_v47  ;;  %v4274_v57 = vadd.f32 0.5, %v3250_v48  ;;  %v3252_v58 = vmul.f32 0.5, %v6525_v51  ;;  %6552 = vtanh.f32 %v1218_v39  ;;  %v1233_v50 = vmul.f32 0.5, %v209_v36  ;;  %v212_v51 = vld [vmem:[%s8700_s30 + $0x250] sm:$0xff] }
  0x71   : > { %v6529_v61 = vpop.eup %6528  ;;  %5297 = vst [vmem:[%s8733_s17 + $0x138] sm:$0xff] %v4273_v52  ;;  %v4275_v62 = vadd.f32 0.5, %v3251_v53  ;;  %v3253_v63 = vmul.f32 0.5, %v6527_v56  ;;  %6554 = vtanh.f32 %v1219_v44  ;;  %v1234_v55 = vmul.f32 0.5, %v210_v41  ;;  %v213_v56 = vld [vmem:[%s8700_s30 + $0x258] sm:$0xff] }
  0x72   : > { %v6531_v2 = vpop.eup %6530  ;;  %5298 = vst [vmem:[%s8733_s17 + $0x140] sm:$0xff] %v4274_v57  ;;  %v4276_v3 = vadd.f32 0.5, %v3252_v58  ;;  %v3254_v4 = vmul.f32 0.5, %v6529_v61  ;;  %6556 = vtanh.f32 %v1220_v49  ;;  %v1235_v60 = vmul.f32 0.5, %v211_v46  ;;  %v214_v61 = vld [vmem:[%s8700_s30 + $0x260] sm:$0xff] }
  0x73   : > { %v6533_v7 = vpop.eup %6532  ;;  %5299 = vst [vmem:[%s8733_s17 + $0x148] sm:$0xff] %v4275_v62  ;;  %v4277_v8 = vadd.f32 0.5, %v3253_v63  ;;  %v3255_v9 = vmul.f32 0.5, %v6531_v2  ;;  %6558 = vtanh.f32 %v1221_v54  ;;  %v1236_v1 = vmul.f32 0.5, %v212_v51  ;;  %v215_v2 = vld [vmem:[%s8700_s30 + $0x268] sm:$0xff] }
  0x74   : > { %v6535_v12 = vpop.eup %6534  ;;  %5300 = vst [vmem:[%s8733_s17 + $0x150] sm:$0xff] %v4276_v3  ;;  %v4278_v13 = vadd.f32 0.5, %v3254_v4  ;;  %v3256_v14 = vmul.f32 0.5, %v6533_v7  ;;  %6560 = vtanh.f32 %v1222_v59  ;;  %v1237_v6 = vmul.f32 0.5, %v213_v56  ;;  %v216_v7 = vld [vmem:[%s8700_s30 + $0x270] sm:$0xff] }
  0x75   : > { %v6537_v17 = vpop.eup %6536  ;;  %5301 = vst [vmem:[%s8733_s17 + $0x158] sm:$0xff] %v4277_v8  ;;  %v4279_v18 = vadd.f32 0.5, %v3255_v9  ;;  %v3257_v19 = vmul.f32 0.5, %v6535_v12  ;;  %6562 = vtanh.f32 %v1223_v0  ;;  %v1238_v11 = vmul.f32 0.5, %v214_v61  ;;  %v217_v12 = vld [vmem:[%s8700_s30 + $0x278] sm:$0xff] }
  0x76   : > { %v6539_v22 = vpop.eup %6538  ;;  %5302 = vst [vmem:[%s8733_s17 + $0x160] sm:$0xff] %v4278_v13  ;;  %v4280_v23 = vadd.f32 0.5, %v3256_v14  ;;  %v3258_v24 = vmul.f32 0.5, %v6537_v17  ;;  %6564 = vtanh.f32 %v1224_v5  ;;  %v1239_v16 = vmul.f32 0.5, %v215_v2  ;;  %v218_v17 = vld [vmem:[%s8700_s30 + $0x280] sm:$0xff] }
  0x77   : > { %v6541_v27 = vpop.eup %6540  ;;  %5303 = vst [vmem:[%s8733_s17 + $0x168] sm:$0xff] %v4279_v18  ;;  %v4281_v28 = vadd.f32 0.5, %v3257_v19  ;;  %v3259_v29 = vmul.f32 0.5, %v6539_v22  ;;  %6566 = vtanh.f32 %v1225_v10  ;;  %v1240_v21 = vmul.f32 0.5, %v216_v7  ;;  %v219_v22 = vld [vmem:[%s8700_s30 + $0x288] sm:$0xff] }
  0x78   : > { %v6543_v32 = vpop.eup %6542  ;;  %5304 = vst [vmem:[%s8733_s17 + $0x170] sm:$0xff] %v4280_v23  ;;  %v4282_v33 = vadd.f32 0.5, %v3258_v24  ;;  %v3260_v34 = vmul.f32 0.5, %v6541_v27  ;;  %6568 = vtanh.f32 %v1226_v15  ;;  %v1241_v26 = vmul.f32 0.5, %v217_v12  ;;  %v220_v27 = vld [vmem:[%s8700_s30 + $0x290] sm:$0xff] }
  0x79   : > { %v6545_v37 = vpop.eup %6544  ;;  %5305 = vst [vmem:[%s8733_s17 + $0x178] sm:$0xff] %v4281_v28  ;;  %v4283_v38 = vadd.f32 0.5, %v3259_v29  ;;  %v3261_v39 = vmul.f32 0.5, %v6543_v32  ;;  %6570 = vtanh.f32 %v1227_v20  ;;  %v1242_v31 = vmul.f32 0.5, %v218_v17  ;;  %v221_v32 = vld [vmem:[%s8700_s30 + $0x298] sm:$0xff] }
  0x7a   : > { %v6547_v42 = vpop.eup %6546  ;;  %5306 = vst [vmem:[%s8733_s17 + $0x180] sm:$0xff] %v4282_v33  ;;  %v4284_v43 = vadd.f32 0.5, %v3260_v34  ;;  %v3262_v44 = vmul.f32 0.5, %v6545_v37  ;;  %6572 = vtanh.f32 %v1228_v25  ;;  %v1243_v36 = vmul.f32 0.5, %v219_v22  ;;  %v222_v37 = vld [vmem:[%s8700_s30 + $0x2a0] sm:$0xff] }
  0x7b   : > { %v6549_v47 = vpop.eup %6548  ;;  %5307 = vst [vmem:[%s8733_s17 + $0x188] sm:$0xff] %v4283_v38  ;;  %v4285_v48 = vadd.f32 0.5, %v3261_v39  ;;  %v3263_v49 = vmul.f32 0.5, %v6547_v42  ;;  %6574 = vtanh.f32 %v1229_v30  ;;  %v1244_v41 = vmul.f32 0.5, %v220_v27  ;;  %v223_v42 = vld [vmem:[%s8700_s30 + $0x2a8] sm:$0xff] }
  0x7c   : > { %v6551_v52 = vpop.eup %6550  ;;  %5308 = vst [vmem:[%s8733_s17 + $0x190] sm:$0xff] %v4284_v43  ;;  %v4286_v53 = vadd.f32 0.5, %v3262_v44  ;;  %v3264_v54 = vmul.f32 0.5, %v6549_v47  ;;  %6576 = vtanh.f32 %v1230_v35  ;;  %v1245_v46 = vmul.f32 0.5, %v221_v32  ;;  %v224_v47 = vld [vmem:[%s8700_s30 + $0x2b0] sm:$0xff] }
  0x7d   : > { %v6553_v57 = vpop.eup %6552  ;;  %5309 = vst [vmem:[%s8733_s17 + $0x198] sm:$0xff] %v4285_v48  ;;  %v4287_v58 = vadd.f32 0.5, %v3263_v49  ;;  %v3265_v59 = vmul.f32 0.5, %v6551_v52  ;;  %6578 = vtanh.f32 %v1231_v40  ;;  %v1246_v51 = vmul.f32 0.5, %v222_v37  ;;  %v225_v52 = vld [vmem:[%s8700_s30 + $0x2b8] sm:$0xff] }
  0x7e   : > { %v6555_v62 = vpop.eup %6554  ;;  %5310 = vst [vmem:[%s8733_s17 + $0x1a0] sm:$0xff] %v4286_v53  ;;  %v4288_v63 = vadd.f32 0.5, %v3264_v54  ;;  %v3266_v0 = vmul.f32 0.5, %v6553_v57  ;;  %6580 = vtanh.f32 %v1232_v45  ;;  %v1247_v56 = vmul.f32 0.5, %v223_v42  ;;  %v226_v57 = vld [vmem:[%s8700_s30 + $0x2c0] sm:$0xff] }
  0x7f   : > { %v6557_v3 = vpop.eup %6556  ;;  %5311 = vst [vmem:[%s8733_s17 + $0x1a8] sm:$0xff] %v4287_v58  ;;  %v4289_v4 = vadd.f32 0.5, %v3265_v59  ;;  %v3267_v5 = vmul.f32 0.5, %v6555_v62  ;;  %6582 = vtanh.f32 %v1233_v50  ;;  %v1248_v61 = vmul.f32 0.5, %v224_v47  ;;  %v227_v62 = vld [vmem:[%s8700_s30 + $0x2c8] sm:$0xff] }
  0x80   : > { %v6559_v8 = vpop.eup %6558  ;;  %5312 = vst [vmem:[%s8733_s17 + $0x1b0] sm:$0xff] %v4288_v63  ;;  %v4290_v9 = vadd.f32 0.5, %v3266_v0  ;;  %v3268_v10 = vmul.f32 0.5, %v6557_v3  ;;  %6584 = vtanh.f32 %v1234_v55  ;;  %v1249_v2 = vmul.f32 0.5, %v225_v52  ;;  %v228_v3 = vld [vmem:[%s8700_s30 + $0x2d0] sm:$0xff] }
  0x81   : > { %v6561_v13 = vpop.eup %6560  ;;  %5313 = vst [vmem:[%s8733_s17 + $0x1b8] sm:$0xff] %v4289_v4  ;;  %v4291_v14 = vadd.f32 0.5, %v3267_v5  ;;  %v3269_v15 = vmul.f32 0.5, %v6559_v8  ;;  %6586 = vtanh.f32 %v1235_v60  ;;  %v1250_v7 = vmul.f32 0.5, %v226_v57  ;;  %v229_v8 = vld [vmem:[%s8700_s30 + $0x2d8] sm:$0xff] }
  0x82   : > { %v6563_v18 = vpop.eup %6562  ;;  %5314 = vst [vmem:[%s8733_s17 + $0x1c0] sm:$0xff] %v4290_v9  ;;  %v4292_v19 = vadd.f32 0.5, %v3268_v10  ;;  %v3270_v20 = vmul.f32 0.5, %v6561_v13  ;;  %6588 = vtanh.f32 %v1236_v1  ;;  %v1251_v12 = vmul.f32 0.5, %v227_v62  ;;  %v230_v13 = vld [vmem:[%s8700_s30 + $0x2e0] sm:$0xff] }
  0x83   : > { %v6565_v23 = vpop.eup %6564  ;;  %5315 = vst [vmem:[%s8733_s17 + $0x1c8] sm:$0xff] %v4291_v14  ;;  %v4293_v24 = vadd.f32 0.5, %v3269_v15  ;;  %v3271_v25 = vmul.f32 0.5, %v6563_v18  ;;  %6590 = vtanh.f32 %v1237_v6  ;;  %v1252_v17 = vmul.f32 0.5, %v228_v3  ;;  %v231_v18 = vld [vmem:[%s8700_s30 + $0x2e8] sm:$0xff] }
  0x84   : > { %v6567_v28 = vpop.eup %6566  ;;  %5316 = vst [vmem:[%s8733_s17 + $0x1d0] sm:$0xff] %v4292_v19  ;;  %v4294_v29 = vadd.f32 0.5, %v3270_v20  ;;  %v3272_v30 = vmul.f32 0.5, %v6565_v23  ;;  %6592 = vtanh.f32 %v1238_v11  ;;  %v1253_v22 = vmul.f32 0.5, %v229_v8  ;;  %v232_v23 = vld [vmem:[%s8700_s30 + $0x2f0] sm:$0xff] }
  0x85   : > { %v6569_v33 = vpop.eup %6568  ;;  %5317 = vst [vmem:[%s8733_s17 + $0x1d8] sm:$0xff] %v4293_v24  ;;  %v4295_v34 = vadd.f32 0.5, %v3271_v25  ;;  %v3273_v35 = vmul.f32 0.5, %v6567_v28  ;;  %6594 = vtanh.f32 %v1239_v16  ;;  %v1254_v27 = vmul.f32 0.5, %v230_v13  ;;  %v233_v28 = vld [vmem:[%s8700_s30 + $0x2f8] sm:$0xff] }
  0x86   : > { %v6571_v38 = vpop.eup %6570  ;;  %5318 = vst [vmem:[%s8733_s17 + $0x1e0] sm:$0xff] %v4294_v29  ;;  %v4296_v39 = vadd.f32 0.5, %v3272_v30  ;;  %v3274_v40 = vmul.f32 0.5, %v6569_v33  ;;  %6596 = vtanh.f32 %v1240_v21  ;;  %v1255_v32 = vmul.f32 0.5, %v231_v18  ;;  %v234_v33 = vld [vmem:[%s8700_s30 + $0x300] sm:$0xff] }
  0x87   : > { %v6573_v43 = vpop.eup %6572  ;;  %5319 = vst [vmem:[%s8733_s17 + $0x1e8] sm:$0xff] %v4295_v34  ;;  %v4297_v44 = vadd.f32 0.5, %v3273_v35  ;;  %v3275_v45 = vmul.f32 0.5, %v6571_v38  ;;  %6598 = vtanh.f32 %v1241_v26  ;;  %v1256_v37 = vmul.f32 0.5, %v232_v23  ;;  %v235_v38 = vld [vmem:[%s8700_s30 + $0x308] sm:$0xff] }
  0x88   : > { %v6575_v48 = vpop.eup %6574  ;;  %5320 = vst [vmem:[%s8733_s17 + $0x1f0] sm:$0xff] %v4296_v39  ;;  %v4298_v49 = vadd.f32 0.5, %v3274_v40  ;;  %v3276_v50 = vmul.f32 0.5, %v6573_v43  ;;  %6600 = vtanh.f32 %v1242_v31  ;;  %v1257_v42 = vmul.f32 0.5, %v233_v28  ;;  %v236_v43 = vld [vmem:[%s8700_s30 + $0x310] sm:$0xff] }
  0x89   : > { %v6577_v53 = vpop.eup %6576  ;;  %5321 = vst [vmem:[%s8733_s17 + $0x1f8] sm:$0xff] %v4297_v44  ;;  %v4299_v54 = vadd.f32 0.5, %v3275_v45  ;;  %v3277_v55 = vmul.f32 0.5, %v6575_v48  ;;  %6602 = vtanh.f32 %v1243_v36  ;;  %v1258_v47 = vmul.f32 0.5, %v234_v33  ;;  %v237_v48 = vld [vmem:[%s8700_s30 + $0x318] sm:$0xff] }
  0x8a   : > { %v6579_v58 = vpop.eup %6578  ;;  %5322 = vst [vmem:[%s8733_s17 + $0x200] sm:$0xff] %v4298_v49  ;;  %v4300_v59 = vadd.f32 0.5, %v3276_v50  ;;  %v3278_v60 = vmul.f32 0.5, %v6577_v53  ;;  %6604 = vtanh.f32 %v1244_v41  ;;  %v1259_v52 = vmul.f32 0.5, %v235_v38  ;;  %v238_v53 = vld [vmem:[%s8700_s30 + $0x320] sm:$0xff] }
  0x8b   : > { %v6581_v63 = vpop.eup %6580  ;;  %5323 = vst [vmem:[%s8733_s17 + $0x208] sm:$0xff] %v4299_v54  ;;  %v4301_v0 = vadd.f32 0.5, %v3277_v55  ;;  %v3279_v1 = vmul.f32 0.5, %v6579_v58  ;;  %6606 = vtanh.f32 %v1245_v46  ;;  %v1260_v57 = vmul.f32 0.5, %v236_v43  ;;  %v239_v58 = vld [vmem:[%s8700_s30 + $0x328] sm:$0xff] }
  0x8c   : > { %v6583_v4 = vpop.eup %6582  ;;  %5324 = vst [vmem:[%s8733_s17 + $0x210] sm:$0xff] %v4300_v59  ;;  %v4302_v5 = vadd.f32 0.5, %v3278_v60  ;;  %v3280_v6 = vmul.f32 0.5, %v6581_v63  ;;  %6608 = vtanh.f32 %v1246_v51  ;;  %v1261_v62 = vmul.f32 0.5, %v237_v48  ;;  %v240_v63 = vld [vmem:[%s8700_s30 + $0x330] sm:$0xff] }
  0x8d   : > { %v6585_v9 = vpop.eup %6584  ;;  %5325 = vst [vmem:[%s8733_s17 + $0x218] sm:$0xff] %v4301_v0  ;;  %v4303_v10 = vadd.f32 0.5, %v3279_v1  ;;  %v3281_v11 = vmul.f32 0.5, %v6583_v4  ;;  %6610 = vtanh.f32 %v1247_v56  ;;  %v1262_v3 = vmul.f32 0.5, %v238_v53  ;;  %v241_v4 = vld [vmem:[%s8700_s30 + $0x338] sm:$0xff] }
  0x8e   : > { %v6587_v14 = vpop.eup %6586  ;;  %5326 = vst [vmem:[%s8733_s17 + $0x220] sm:$0xff] %v4302_v5  ;;  %v4304_v15 = vadd.f32 0.5, %v3280_v6  ;;  %v3282_v16 = vmul.f32 0.5, %v6585_v9  ;;  %6612 = vtanh.f32 %v1248_v61  ;;  %v1263_v8 = vmul.f32 0.5, %v239_v58  ;;  %v242_v9 = vld [vmem:[%s8700_s30 + $0x340] sm:$0xff] }
  0x8f   : > { %v6589_v19 = vpop.eup %6588  ;;  %5327 = vst [vmem:[%s8733_s17 + $0x228] sm:$0xff] %v4303_v10  ;;  %v4305_v20 = vadd.f32 0.5, %v3281_v11  ;;  %v3283_v21 = vmul.f32 0.5, %v6587_v14  ;;  %6614 = vtanh.f32 %v1249_v2  ;;  %v1264_v13 = vmul.f32 0.5, %v240_v63  ;;  %v243_v14 = vld [vmem:[%s8700_s30 + $0x348] sm:$0xff] }
  0x90   : > { %v6591_v24 = vpop.eup %6590  ;;  %5328 = vst [vmem:[%s8733_s17 + $0x230] sm:$0xff] %v4304_v15  ;;  %v4306_v25 = vadd.f32 0.5, %v3282_v16  ;;  %v3284_v26 = vmul.f32 0.5, %v6589_v19  ;;  %6616 = vtanh.f32 %v1250_v7  ;;  %v1265_v18 = vmul.f32 0.5, %v241_v4  ;;  %v244_v19 = vld [vmem:[%s8700_s30 + $0x350] sm:$0xff] }
  0x91   : > { %v6593_v29 = vpop.eup %6592  ;;  %5329 = vst [vmem:[%s8733_s17 + $0x238] sm:$0xff] %v4305_v20  ;;  %v4307_v30 = vadd.f32 0.5, %v3283_v21  ;;  %v3285_v31 = vmul.f32 0.5, %v6591_v24  ;;  %6618 = vtanh.f32 %v1251_v12  ;;  %v1266_v23 = vmul.f32 0.5, %v242_v9  ;;  %v245_v24 = vld [vmem:[%s8700_s30 + $0x358] sm:$0xff] }
  0x92   : > { %v6595_v34 = vpop.eup %6594  ;;  %5330 = vst [vmem:[%s8733_s17 + $0x240] sm:$0xff] %v4306_v25  ;;  %v4308_v35 = vadd.f32 0.5, %v3284_v26  ;;  %v3286_v36 = vmul.f32 0.5, %v6593_v29  ;;  %6620 = vtanh.f32 %v1252_v17  ;;  %v1267_v28 = vmul.f32 0.5, %v243_v14  ;;  %v246_v29 = vld [vmem:[%s8700_s30 + $0x360] sm:$0xff] }
  0x93   : > { %v6597_v39 = vpop.eup %6596  ;;  %5331 = vst [vmem:[%s8733_s17 + $0x248] sm:$0xff] %v4307_v30  ;;  %v4309_v40 = vadd.f32 0.5, %v3285_v31  ;;  %v3287_v41 = vmul.f32 0.5, %v6595_v34  ;;  %6622 = vtanh.f32 %v1253_v22  ;;  %v1268_v33 = vmul.f32 0.5, %v244_v19  ;;  %v247_v34 = vld [vmem:[%s8700_s30 + $0x368] sm:$0xff] }
  0x94   : > { %v6599_v44 = vpop.eup %6598  ;;  %5332 = vst [vmem:[%s8733_s17 + $0x250] sm:$0xff] %v4308_v35  ;;  %v4310_v45 = vadd.f32 0.5, %v3286_v36  ;;  %v3288_v46 = vmul.f32 0.5, %v6597_v39  ;;  %6624 = vtanh.f32 %v1254_v27  ;;  %v1269_v38 = vmul.f32 0.5, %v245_v24  ;;  %v248_v39 = vld [vmem:[%s8700_s30 + $0x370] sm:$0xff] }
  0x95   : > { %v6601_v49 = vpop.eup %6600  ;;  %5333 = vst [vmem:[%s8733_s17 + $0x258] sm:$0xff] %v4309_v40  ;;  %v4311_v50 = vadd.f32 0.5, %v3287_v41  ;;  %v3289_v51 = vmul.f32 0.5, %v6599_v44  ;;  %6626 = vtanh.f32 %v1255_v32  ;;  %v1270_v43 = vmul.f32 0.5, %v246_v29  ;;  %v249_v44 = vld [vmem:[%s8700_s30 + $0x378] sm:$0xff] }
  0x96   : > { %v6603_v54 = vpop.eup %6602  ;;  %5334 = vst [vmem:[%s8733_s17 + $0x260] sm:$0xff] %v4310_v45  ;;  %v4312_v55 = vadd.f32 0.5, %v3288_v46  ;;  %v3290_v56 = vmul.f32 0.5, %v6601_v49  ;;  %6628 = vtanh.f32 %v1256_v37  ;;  %v1271_v48 = vmul.f32 0.5, %v247_v34  ;;  %v250_v49 = vld [vmem:[%s8700_s30 + $0x380] sm:$0xff] }
  0x97   : > { %v6605_v59 = vpop.eup %6604  ;;  %5335 = vst [vmem:[%s8733_s17 + $0x268] sm:$0xff] %v4311_v50  ;;  %v4313_v60 = vadd.f32 0.5, %v3289_v51  ;;  %v3291_v61 = vmul.f32 0.5, %v6603_v54  ;;  %6630 = vtanh.f32 %v1257_v42  ;;  %v1272_v53 = vmul.f32 0.5, %v248_v39  ;;  %v251_v54 = vld [vmem:[%s8700_s30 + $0x388] sm:$0xff] }
  0x98   : > { %v6607_v0 = vpop.eup %6606  ;;  %5336 = vst [vmem:[%s8733_s17 + $0x270] sm:$0xff] %v4312_v55  ;;  %v4314_v1 = vadd.f32 0.5, %v3290_v56  ;;  %v3292_v2 = vmul.f32 0.5, %v6605_v59  ;;  %6632 = vtanh.f32 %v1258_v47  ;;  %v1273_v58 = vmul.f32 0.5, %v249_v44  ;;  %v252_v59 = vld [vmem:[%s8700_s30 + $0x390] sm:$0xff] }
  0x99   : > { %v6609_v5 = vpop.eup %6608  ;;  %5337 = vst [vmem:[%s8733_s17 + $0x278] sm:$0xff] %v4313_v60  ;;  %v4315_v6 = vadd.f32 0.5, %v3291_v61  ;;  %v3293_v7 = vmul.f32 0.5, %v6607_v0  ;;  %6634 = vtanh.f32 %v1259_v52  ;;  %v1274_v63 = vmul.f32 0.5, %v250_v49  ;;  %v253_v0 = vld [vmem:[%s8700_s30 + $0x398] sm:$0xff] }
  0x9a   : > { %v6611_v10 = vpop.eup %6610  ;;  %5338 = vst [vmem:[%s8733_s17 + $0x280] sm:$0xff] %v4314_v1  ;;  %v4316_v11 = vadd.f32 0.5, %v3292_v2  ;;  %v3294_v12 = vmul.f32 0.5, %v6609_v5  ;;  %6636 = vtanh.f32 %v1260_v57  ;;  %v1275_v4 = vmul.f32 0.5, %v251_v54  ;;  %v254_v5 = vld [vmem:[%s8700_s30 + $0x3a0] sm:$0xff] }
  0x9b   : > { %v6613_v15 = vpop.eup %6612  ;;  %5339 = vst [vmem:[%s8733_s17 + $0x288] sm:$0xff] %v4315_v6  ;;  %v4317_v16 = vadd.f32 0.5, %v3293_v7  ;;  %v3295_v17 = vmul.f32 0.5, %v6611_v10  ;;  %6638 = vtanh.f32 %v1261_v62  ;;  %v1276_v9 = vmul.f32 0.5, %v252_v59  ;;  %v255_v10 = vld [vmem:[%s8700_s30 + $0x3a8] sm:$0xff] }
  0x9c   : > { %v6615_v20 = vpop.eup %6614  ;;  %5340 = vst [vmem:[%s8733_s17 + $0x290] sm:$0xff] %v4316_v11  ;;  %v4318_v21 = vadd.f32 0.5, %v3294_v12  ;;  %v3296_v22 = vmul.f32 0.5, %v6613_v15  ;;  %6640 = vtanh.f32 %v1262_v3  ;;  %v1277_v14 = vmul.f32 0.5, %v253_v0  ;;  %v256_v15 = vld [vmem:[%s8700_s30 + $0x3b0] sm:$0xff] }
  0x9d   : > { %v6617_v25 = vpop.eup %6616  ;;  %5341 = vst [vmem:[%s8733_s17 + $0x298] sm:$0xff] %v4317_v16  ;;  %v4319_v26 = vadd.f32 0.5, %v3295_v17  ;;  %v3297_v27 = vmul.f32 0.5, %v6615_v20  ;;  %6642 = vtanh.f32 %v1263_v8  ;;  %v1278_v19 = vmul.f32 0.5, %v254_v5  ;;  %v257_v20 = vld [vmem:[%s8700_s30 + $0x3b8] sm:$0xff] }
  0x9e   : > { %v6619_v30 = vpop.eup %6618  ;;  %5342 = vst [vmem:[%s8733_s17 + $0x2a0] sm:$0xff] %v4318_v21  ;;  %v4320_v31 = vadd.f32 0.5, %v3296_v22  ;;  %v3298_v32 = vmul.f32 0.5, %v6617_v25  ;;  %6644 = vtanh.f32 %v1264_v13  ;;  %v1279_v24 = vmul.f32 0.5, %v255_v10  ;;  %v258_v25 = vld [vmem:[%s8700_s30 + $0x3c0] sm:$0xff] }
  0x9f   : > { %v6621_v35 = vpop.eup %6620  ;;  %5343 = vst [vmem:[%s8733_s17 + $0x2a8] sm:$0xff] %v4319_v26  ;;  %v4321_v36 = vadd.f32 0.5, %v3297_v27  ;;  %v3299_v37 = vmul.f32 0.5, %v6619_v30  ;;  %6646 = vtanh.f32 %v1265_v18  ;;  %v1280_v29 = vmul.f32 0.5, %v256_v15  ;;  %v259_v30 = vld [vmem:[%s8700_s30 + $0x3c8] sm:$0xff] }
  0xa0   : > { %v6623_v40 = vpop.eup %6622  ;;  %5344 = vst [vmem:[%s8733_s17 + $0x2b0] sm:$0xff] %v4320_v31  ;;  %v4322_v41 = vadd.f32 0.5, %v3298_v32  ;;  %v3300_v42 = vmul.f32 0.5, %v6621_v35  ;;  %6648 = vtanh.f32 %v1266_v23  ;;  %v1281_v34 = vmul.f32 0.5, %v257_v20  ;;  %v260_v35 = vld [vmem:[%s8700_s30 + $0x3d0] sm:$0xff] }
  0xa1   : > { %v6625_v45 = vpop.eup %6624  ;;  %5345 = vst [vmem:[%s8733_s17 + $0x2b8] sm:$0xff] %v4321_v36  ;;  %v4323_v46 = vadd.f32 0.5, %v3299_v37  ;;  %v3301_v47 = vmul.f32 0.5, %v6623_v40  ;;  %6650 = vtanh.f32 %v1267_v28  ;;  %v1282_v39 = vmul.f32 0.5, %v258_v25  ;;  %v261_v40 = vld [vmem:[%s8700_s30 + $0x3d8] sm:$0xff] }
  0xa2   : > { %v6627_v50 = vpop.eup %6626  ;;  %5346 = vst [vmem:[%s8733_s17 + $0x2c0] sm:$0xff] %v4322_v41  ;;  %v4324_v51 = vadd.f32 0.5, %v3300_v42  ;;  %v3302_v52 = vmul.f32 0.5, %v6625_v45  ;;  %6652 = vtanh.f32 %v1268_v33  ;;  %v1283_v44 = vmul.f32 0.5, %v259_v30  ;;  %v262_v45 = vld [vmem:[%s8700_s30 + $0x3e0] sm:$0xff] }
  0xa3   : > { %v6629_v55 = vpop.eup %6628  ;;  %5347 = vst [vmem:[%s8733_s17 + $0x2c8] sm:$0xff] %v4323_v46  ;;  %v4325_v56 = vadd.f32 0.5, %v3301_v47  ;;  %v3303_v57 = vmul.f32 0.5, %v6627_v50  ;;  %6654 = vtanh.f32 %v1269_v38  ;;  %v1284_v49 = vmul.f32 0.5, %v260_v35  ;;  %v263_v50 = vld [vmem:[%s8700_s30 + $0x3e8] sm:$0xff] }
  0xa4   : > { %v6631_v60 = vpop.eup %6630  ;;  %5348 = vst [vmem:[%s8733_s17 + $0x2d0] sm:$0xff] %v4324_v51  ;;  %v4326_v61 = vadd.f32 0.5, %v3302_v52  ;;  %v3304_v62 = vmul.f32 0.5, %v6629_v55  ;;  %6656 = vtanh.f32 %v1270_v43  ;;  %v1285_v54 = vmul.f32 0.5, %v261_v40  ;;  %v264_v55 = vld [vmem:[%s8700_s30 + $0x3f0] sm:$0xff] }
  0xa5   : > { %v6633_v1 = vpop.eup %6632  ;;  %5349 = vst [vmem:[%s8733_s17 + $0x2d8] sm:$0xff] %v4325_v56  ;;  %v4327_v2 = vadd.f32 0.5, %v3303_v57  ;;  %v3305_v3 = vmul.f32 0.5, %v6631_v60  ;;  %6658 = vtanh.f32 %v1271_v48  ;;  %v1286_v59 = vmul.f32 0.5, %v262_v45  ;;  %v265_v60 = vld [vmem:[%s8700_s30 + $0x3f8] sm:$0xff] }
  0xa6   : > { %v6635_v6 = vpop.eup %6634  ;;  %5350 = vst [vmem:[%s8733_s17 + $0x2e0] sm:$0xff] %v4326_v61  ;;  %v4328_v7 = vadd.f32 0.5, %v3304_v62  ;;  %v3306_v8 = vmul.f32 0.5, %v6633_v1  ;;  %6660 = vtanh.f32 %v1272_v53  ;;  %v1287_v0 = vmul.f32 0.5, %v263_v50  ;;  %v266_v1 = vld [vmem:[%s8700_s30 + $0x400] sm:$0xff] }
  0xa7   : > { %v6637_v11 = vpop.eup %6636  ;;  %5351 = vst [vmem:[%s8733_s17 + $0x2e8] sm:$0xff] %v4327_v2  ;;  %v4329_v12 = vadd.f32 0.5, %v3305_v3  ;;  %v3307_v13 = vmul.f32 0.5, %v6635_v6  ;;  %6662 = vtanh.f32 %v1273_v58  ;;  %v1288_v5 = vmul.f32 0.5, %v264_v55  ;;  %v267_v6 = vld [vmem:[%s8700_s30 + $0x408] sm:$0xff] }
  0xa8   : > { %v6639_v16 = vpop.eup %6638  ;;  %5352 = vst [vmem:[%s8733_s17 + $0x2f0] sm:$0xff] %v4328_v7  ;;  %v4330_v17 = vadd.f32 0.5, %v3306_v8  ;;  %v3308_v18 = vmul.f32 0.5, %v6637_v11  ;;  %6664 = vtanh.f32 %v1274_v63  ;;  %v1289_v10 = vmul.f32 0.5, %v265_v60  ;;  %v268_v11 = vld [vmem:[%s8700_s30 + $0x410] sm:$0xff] }
  0xa9   : > { %v6641_v21 = vpop.eup %6640  ;;  %5353 = vst [vmem:[%s8733_s17 + $0x2f8] sm:$0xff] %v4329_v12  ;;  %v4331_v22 = vadd.f32 0.5, %v3307_v13  ;;  %v3309_v23 = vmul.f32 0.5, %v6639_v16  ;;  %6666 = vtanh.f32 %v1275_v4  ;;  %v1290_v15 = vmul.f32 0.5, %v266_v1  ;;  %v269_v16 = vld [vmem:[%s8700_s30 + $0x418] sm:$0xff] }
  0xaa   : > { %v6643_v26 = vpop.eup %6642  ;;  %5354 = vst [vmem:[%s8733_s17 + $0x300] sm:$0xff] %v4330_v17  ;;  %v4332_v27 = vadd.f32 0.5, %v3308_v18  ;;  %v3310_v28 = vmul.f32 0.5, %v6641_v21  ;;  %6668 = vtanh.f32 %v1276_v9  ;;  %v1291_v20 = vmul.f32 0.5, %v267_v6  ;;  %v270_v21 = vld [vmem:[%s8700_s30 + $0x420] sm:$0xff] }
  0xab   : > { %v6645_v31 = vpop.eup %6644  ;;  %5355 = vst [vmem:[%s8733_s17 + $0x308] sm:$0xff] %v4331_v22  ;;  %v4333_v32 = vadd.f32 0.5, %v3309_v23  ;;  %v3311_v33 = vmul.f32 0.5, %v6643_v26  ;;  %6670 = vtanh.f32 %v1277_v14  ;;  %v1292_v25 = vmul.f32 0.5, %v268_v11  ;;  %v271_v26 = vld [vmem:[%s8700_s30 + $0x428] sm:$0xff] }
  0xac   : > { %v6647_v36 = vpop.eup %6646  ;;  %5356 = vst [vmem:[%s8733_s17 + $0x310] sm:$0xff] %v4332_v27  ;;  %v4334_v37 = vadd.f32 0.5, %v3310_v28  ;;  %v3312_v38 = vmul.f32 0.5, %v6645_v31  ;;  %6672 = vtanh.f32 %v1278_v19  ;;  %v1293_v30 = vmul.f32 0.5, %v269_v16  ;;  %v272_v31 = vld [vmem:[%s8700_s30 + $0x430] sm:$0xff] }
  0xad   : > { %v6649_v41 = vpop.eup %6648  ;;  %5357 = vst [vmem:[%s8733_s17 + $0x318] sm:$0xff] %v4333_v32  ;;  %v4335_v42 = vadd.f32 0.5, %v3311_v33  ;;  %v3313_v43 = vmul.f32 0.5, %v6647_v36  ;;  %6674 = vtanh.f32 %v1279_v24  ;;  %v1294_v35 = vmul.f32 0.5, %v270_v21  ;;  %v273_v36 = vld [vmem:[%s8700_s30 + $0x438] sm:$0xff] }
  0xae   : > { %v6651_v46 = vpop.eup %6650  ;;  %5358 = vst [vmem:[%s8733_s17 + $0x320] sm:$0xff] %v4334_v37  ;;  %v4336_v47 = vadd.f32 0.5, %v3312_v38  ;;  %v3314_v48 = vmul.f32 0.5, %v6649_v41  ;;  %6676 = vtanh.f32 %v1280_v29  ;;  %v1295_v40 = vmul.f32 0.5, %v271_v26  ;;  %v274_v41 = vld [vmem:[%s8700_s30 + $0x440] sm:$0xff] }
  0xaf   : > { %v6653_v51 = vpop.eup %6652  ;;  %5359 = vst [vmem:[%s8733_s17 + $0x328] sm:$0xff] %v4335_v42  ;;  %v4337_v52 = vadd.f32 0.5, %v3313_v43  ;;  %v3315_v53 = vmul.f32 0.5, %v6651_v46  ;;  %6678 = vtanh.f32 %v1281_v34  ;;  %v1296_v45 = vmul.f32 0.5, %v272_v31  ;;  %v275_v46 = vld [vmem:[%s8700_s30 + $0x448] sm:$0xff] }
  0xb0   : > { %v6655_v56 = vpop.eup %6654  ;;  %5360 = vst [vmem:[%s8733_s17 + $0x330] sm:$0xff] %v4336_v47  ;;  %v4338_v57 = vadd.f32 0.5, %v3314_v48  ;;  %v3316_v58 = vmul.f32 0.5, %v6653_v51  ;;  %6680 = vtanh.f32 %v1282_v39  ;;  %v1297_v50 = vmul.f32 0.5, %v273_v36  ;;  %v276_v51 = vld [vmem:[%s8700_s30 + $0x450] sm:$0xff] }
  0xb1   : > { %v6657_v61 = vpop.eup %6656  ;;  %5361 = vst [vmem:[%s8733_s17 + $0x338] sm:$0xff] %v4337_v52  ;;  %v4339_v62 = vadd.f32 0.5, %v3315_v53  ;;  %v3317_v63 = vmul.f32 0.5, %v6655_v56  ;;  %6682 = vtanh.f32 %v1283_v44  ;;  %v1298_v55 = vmul.f32 0.5, %v274_v41  ;;  %v277_v56 = vld [vmem:[%s8700_s30 + $0x458] sm:$0xff] }
  0xb2   : > { %v6659_v2 = vpop.eup %6658  ;;  %5362 = vst [vmem:[%s8733_s17 + $0x340] sm:$0xff] %v4338_v57  ;;  %v4340_v3 = vadd.f32 0.5, %v3316_v58  ;;  %v3318_v4 = vmul.f32 0.5, %v6657_v61  ;;  %6684 = vtanh.f32 %v1284_v49  ;;  %v1299_v60 = vmul.f32 0.5, %v275_v46  ;;  %v278_v61 = vld [vmem:[%s8700_s30 + $0x460] sm:$0xff] }
  0xb3   : > { %v6661_v7 = vpop.eup %6660  ;;  %5363 = vst [vmem:[%s8733_s17 + $0x348] sm:$0xff] %v4339_v62  ;;  %v4341_v8 = vadd.f32 0.5, %v3317_v63  ;;  %v3319_v9 = vmul.f32 0.5, %v6659_v2  ;;  %6686 = vtanh.f32 %v1285_v54  ;;  %v1300_v1 = vmul.f32 0.5, %v276_v51  ;;  %v279_v2 = vld [vmem:[%s8700_s30 + $0x468] sm:$0xff] }
  0xb4   : > { %v6663_v12 = vpop.eup %6662  ;;  %5364 = vst [vmem:[%s8733_s17 + $0x350] sm:$0xff] %v4340_v3  ;;  %v4342_v13 = vadd.f32 0.5, %v3318_v4  ;;  %v3320_v14 = vmul.f32 0.5, %v6661_v7  ;;  %6688 = vtanh.f32 %v1286_v59  ;;  %v1301_v6 = vmul.f32 0.5, %v277_v56  ;;  %v280_v7 = vld [vmem:[%s8700_s30 + $0x470] sm:$0xff] }
  0xb5   : > { %v6665_v17 = vpop.eup %6664  ;;  %5365 = vst [vmem:[%s8733_s17 + $0x358] sm:$0xff] %v4341_v8  ;;  %v4343_v18 = vadd.f32 0.5, %v3319_v9  ;;  %v3321_v19 = vmul.f32 0.5, %v6663_v12  ;;  %6690 = vtanh.f32 %v1287_v0  ;;  %v1302_v11 = vmul.f32 0.5, %v278_v61  ;;  %v281_v12 = vld [vmem:[%s8700_s30 + $0x478] sm:$0xff] }
  0xb6   : > { %v6667_v22 = vpop.eup %6666  ;;  %5366 = vst [vmem:[%s8733_s17 + $0x360] sm:$0xff] %v4342_v13  ;;  %v4344_v23 = vadd.f32 0.5, %v3320_v14  ;;  %v3322_v24 = vmul.f32 0.5, %v6665_v17  ;;  %6692 = vtanh.f32 %v1288_v5  ;;  %v1303_v16 = vmul.f32 0.5, %v279_v2  ;;  %v282_v17 = vld [vmem:[%s8700_s30 + $0x480] sm:$0xff] }
  0xb7   : > { %v6669_v27 = vpop.eup %6668  ;;  %5367 = vst [vmem:[%s8733_s17 + $0x368] sm:$0xff] %v4343_v18  ;;  %v4345_v28 = vadd.f32 0.5, %v3321_v19  ;;  %v3323_v29 = vmul.f32 0.5, %v6667_v22  ;;  %6694 = vtanh.f32 %v1289_v10  ;;  %v1304_v21 = vmul.f32 0.5, %v280_v7  ;;  %v283_v22 = vld [vmem:[%s8700_s30 + $0x488] sm:$0xff] }
  0xb8   : > { %v6671_v32 = vpop.eup %6670  ;;  %5368 = vst [vmem:[%s8733_s17 + $0x370] sm:$0xff] %v4344_v23  ;;  %v4346_v33 = vadd.f32 0.5, %v3322_v24  ;;  %v3324_v34 = vmul.f32 0.5, %v6669_v27  ;;  %6696 = vtanh.f32 %v1290_v15  ;;  %v1305_v26 = vmul.f32 0.5, %v281_v12  ;;  %v284_v27 = vld [vmem:[%s8700_s30 + $0x490] sm:$0xff] }
  0xb9   : > { %v6673_v37 = vpop.eup %6672  ;;  %5369 = vst [vmem:[%s8733_s17 + $0x378] sm:$0xff] %v4345_v28  ;;  %v4347_v38 = vadd.f32 0.5, %v3323_v29  ;;  %v3325_v39 = vmul.f32 0.5, %v6671_v32  ;;  %6698 = vtanh.f32 %v1291_v20  ;;  %v1306_v31 = vmul.f32 0.5, %v282_v17  ;;  %v285_v32 = vld [vmem:[%s8700_s30 + $0x498] sm:$0xff] }
  0xba   : > { %v6675_v42 = vpop.eup %6674  ;;  %5370 = vst [vmem:[%s8733_s17 + $0x380] sm:$0xff] %v4346_v33  ;;  %v4348_v43 = vadd.f32 0.5, %v3324_v34  ;;  %v3326_v44 = vmul.f32 0.5, %v6673_v37  ;;  %6700 = vtanh.f32 %v1292_v25  ;;  %v1307_v36 = vmul.f32 0.5, %v283_v22  ;;  %v286_v37 = vld [vmem:[%s8700_s30 + $0x4a0] sm:$0xff] }
  0xbb   : > { %v6677_v47 = vpop.eup %6676  ;;  %5371 = vst [vmem:[%s8733_s17 + $0x388] sm:$0xff] %v4347_v38  ;;  %v4349_v48 = vadd.f32 0.5, %v3325_v39  ;;  %v3327_v49 = vmul.f32 0.5, %v6675_v42  ;;  %6702 = vtanh.f32 %v1293_v30  ;;  %v1308_v41 = vmul.f32 0.5, %v284_v27  ;;  %v287_v42 = vld [vmem:[%s8700_s30 + $0x4a8] sm:$0xff] }
  0xbc   : > { %v6679_v52 = vpop.eup %6678  ;;  %5372 = vst [vmem:[%s8733_s17 + $0x390] sm:$0xff] %v4348_v43  ;;  %v4350_v53 = vadd.f32 0.5, %v3326_v44  ;;  %v3328_v54 = vmul.f32 0.5, %v6677_v47  ;;  %6704 = vtanh.f32 %v1294_v35  ;;  %v1309_v46 = vmul.f32 0.5, %v285_v32  ;;  %v288_v47 = vld [vmem:[%s8700_s30 + $0x4b0] sm:$0xff] }
  0xbd   : > { %v6681_v57 = vpop.eup %6680  ;;  %5373 = vst [vmem:[%s8733_s17 + $0x398] sm:$0xff] %v4349_v48  ;;  %v4351_v58 = vadd.f32 0.5, %v3327_v49  ;;  %v3329_v59 = vmul.f32 0.5, %v6679_v52  ;;  %6706 = vtanh.f32 %v1295_v40  ;;  %v1310_v51 = vmul.f32 0.5, %v286_v37  ;;  %v289_v52 = vld [vmem:[%s8700_s30 + $0x4b8] sm:$0xff] }
  0xbe   : > { %v6683_v62 = vpop.eup %6682  ;;  %5374 = vst [vmem:[%s8733_s17 + $0x3a0] sm:$0xff] %v4350_v53  ;;  %v4352_v63 = vadd.f32 0.5, %v3328_v54  ;;  %v3330_v0 = vmul.f32 0.5, %v6681_v57  ;;  %6708 = vtanh.f32 %v1296_v45  ;;  %v1311_v56 = vmul.f32 0.5, %v287_v42  ;;  %v290_v57 = vld [vmem:[%s8700_s30 + $0x4c0] sm:$0xff] }
  0xbf   : > { %v6685_v3 = vpop.eup %6684  ;;  %5375 = vst [vmem:[%s8733_s17 + $0x3a8] sm:$0xff] %v4351_v58  ;;  %v4353_v4 = vadd.f32 0.5, %v3329_v59  ;;  %v3331_v5 = vmul.f32 0.5, %v6683_v62  ;;  %6710 = vtanh.f32 %v1297_v50  ;;  %v1312_v61 = vmul.f32 0.5, %v288_v47  ;;  %v291_v62 = vld [vmem:[%s8700_s30 + $0x4c8] sm:$0xff] }
  0xc0   : > { %v6687_v8 = vpop.eup %6686  ;;  %5376 = vst [vmem:[%s8733_s17 + $0x3b0] sm:$0xff] %v4352_v63  ;;  %v4354_v9 = vadd.f32 0.5, %v3330_v0  ;;  %v3332_v10 = vmul.f32 0.5, %v6685_v3  ;;  %6712 = vtanh.f32 %v1298_v55  ;;  %v1313_v2 = vmul.f32 0.5, %v289_v52  ;;  %v292_v3 = vld [vmem:[%s8700_s30 + $0x4d0] sm:$0xff] }
  0xc1   : > { %v6689_v13 = vpop.eup %6688  ;;  %5377 = vst [vmem:[%s8733_s17 + $0x3b8] sm:$0xff] %v4353_v4  ;;  %v4355_v14 = vadd.f32 0.5, %v3331_v5  ;;  %v3333_v15 = vmul.f32 0.5, %v6687_v8  ;;  %6714 = vtanh.f32 %v1299_v60  ;;  %v1314_v7 = vmul.f32 0.5, %v290_v57  ;;  %v293_v8 = vld [vmem:[%s8700_s30 + $0x4d8] sm:$0xff] }
  0xc2   : > { %v6691_v18 = vpop.eup %6690  ;;  %5378 = vst [vmem:[%s8733_s17 + $0x3c0] sm:$0xff] %v4354_v9  ;;  %v4356_v19 = vadd.f32 0.5, %v3332_v10  ;;  %v3334_v20 = vmul.f32 0.5, %v6689_v13  ;;  %6716 = vtanh.f32 %v1300_v1  ;;  %v1315_v12 = vmul.f32 0.5, %v291_v62  ;;  %v294_v13 = vld [vmem:[%s8700_s30 + $0x4e0] sm:$0xff] }
  0xc3   : > { %v6693_v23 = vpop.eup %6692  ;;  %5379 = vst [vmem:[%s8733_s17 + $0x3c8] sm:$0xff] %v4355_v14  ;;  %v4357_v24 = vadd.f32 0.5, %v3333_v15  ;;  %v3335_v25 = vmul.f32 0.5, %v6691_v18  ;;  %6718 = vtanh.f32 %v1301_v6  ;;  %v1316_v17 = vmul.f32 0.5, %v292_v3  ;;  %v295_v18 = vld [vmem:[%s8700_s30 + $0x4e8] sm:$0xff] }
  0xc4   : > { %v6695_v28 = vpop.eup %6694  ;;  %5380 = vst [vmem:[%s8733_s17 + $0x3d0] sm:$0xff] %v4356_v19  ;;  %v4358_v29 = vadd.f32 0.5, %v3334_v20  ;;  %v3336_v30 = vmul.f32 0.5, %v6693_v23  ;;  %6720 = vtanh.f32 %v1302_v11  ;;  %v1317_v22 = vmul.f32 0.5, %v293_v8  ;;  %v296_v23 = vld [vmem:[%s8700_s30 + $0x4f0] sm:$0xff] }
  0xc5   : > { %v6697_v33 = vpop.eup %6696  ;;  %5381 = vst [vmem:[%s8733_s17 + $0x3d8] sm:$0xff] %v4357_v24  ;;  %v4359_v34 = vadd.f32 0.5, %v3335_v25  ;;  %v3337_v35 = vmul.f32 0.5, %v6695_v28  ;;  %6722 = vtanh.f32 %v1303_v16  ;;  %v1318_v27 = vmul.f32 0.5, %v294_v13  ;;  %v297_v28 = vld [vmem:[%s8700_s30 + $0x4f8] sm:$0xff] }
  0xc6   : > { %v6699_v38 = vpop.eup %6698  ;;  %5382 = vst [vmem:[%s8733_s17 + $0x3e0] sm:$0xff] %v4358_v29  ;;  %v4360_v39 = vadd.f32 0.5, %v3336_v30  ;;  %v3338_v40 = vmul.f32 0.5, %v6697_v33  ;;  %6724 = vtanh.f32 %v1304_v21  ;;  %v1319_v32 = vmul.f32 0.5, %v295_v18  ;;  %v298_v33 = vld [vmem:[%s8700_s30 + $0x500] sm:$0xff] }
  0xc7   : > { %v6701_v43 = vpop.eup %6700  ;;  %5383 = vst [vmem:[%s8733_s17 + $0x3e8] sm:$0xff] %v4359_v34  ;;  %v4361_v44 = vadd.f32 0.5, %v3337_v35  ;;  %v3339_v45 = vmul.f32 0.5, %v6699_v38  ;;  %6726 = vtanh.f32 %v1305_v26  ;;  %v1320_v37 = vmul.f32 0.5, %v296_v23  ;;  %v299_v38 = vld [vmem:[%s8700_s30 + $0x508] sm:$0xff] }
  0xc8   : > { %v6703_v48 = vpop.eup %6702  ;;  %5384 = vst [vmem:[%s8733_s17 + $0x3f0] sm:$0xff] %v4360_v39  ;;  %v4362_v49 = vadd.f32 0.5, %v3338_v40  ;;  %v3340_v50 = vmul.f32 0.5, %v6701_v43  ;;  %6728 = vtanh.f32 %v1306_v31  ;;  %v1321_v42 = vmul.f32 0.5, %v297_v28  ;;  %v300_v43 = vld [vmem:[%s8700_s30 + $0x510] sm:$0xff] }
  0xc9   : > { %v6705_v53 = vpop.eup %6704  ;;  %5385 = vst [vmem:[%s8733_s17 + $0x3f8] sm:$0xff] %v4361_v44  ;;  %v4363_v54 = vadd.f32 0.5, %v3339_v45  ;;  %v3341_v55 = vmul.f32 0.5, %v6703_v48  ;;  %6730 = vtanh.f32 %v1307_v36  ;;  %v1322_v47 = vmul.f32 0.5, %v298_v33  ;;  %v301_v48 = vld [vmem:[%s8700_s30 + $0x518] sm:$0xff] }
  0xca   : > { %v6707_v58 = vpop.eup %6706  ;;  %5386 = vst [vmem:[%s8733_s17 + $0x400] sm:$0xff] %v4362_v49  ;;  %v4364_v59 = vadd.f32 0.5, %v3340_v50  ;;  %v3342_v60 = vmul.f32 0.5, %v6705_v53  ;;  %6732 = vtanh.f32 %v1308_v41  ;;  %v1323_v52 = vmul.f32 0.5, %v299_v38  ;;  %v302_v53 = vld [vmem:[%s8700_s30 + $0x520] sm:$0xff] }
  0xcb   : > { %v6709_v63 = vpop.eup %6708  ;;  %5387 = vst [vmem:[%s8733_s17 + $0x408] sm:$0xff] %v4363_v54  ;;  %v4365_v0 = vadd.f32 0.5, %v3341_v55  ;;  %v3343_v1 = vmul.f32 0.5, %v6707_v58  ;;  %6734 = vtanh.f32 %v1309_v46  ;;  %v1324_v57 = vmul.f32 0.5, %v300_v43  ;;  %v303_v58 = vld [vmem:[%s8700_s30 + $0x528] sm:$0xff] }
  0xcc   : > { %v6711_v4 = vpop.eup %6710  ;;  %5388 = vst [vmem:[%s8733_s17 + $0x410] sm:$0xff] %v4364_v59  ;;  %v4366_v5 = vadd.f32 0.5, %v3342_v60  ;;  %v3344_v6 = vmul.f32 0.5, %v6709_v63  ;;  %6736 = vtanh.f32 %v1310_v51  ;;  %v1325_v62 = vmul.f32 0.5, %v301_v48  ;;  %v304_v63 = vld [vmem:[%s8700_s30 + $0x530] sm:$0xff] }
  0xcd   : > { %v6713_v9 = vpop.eup %6712  ;;  %5389 = vst [vmem:[%s8733_s17 + $0x418] sm:$0xff] %v4365_v0  ;;  %v4367_v10 = vadd.f32 0.5, %v3343_v1  ;;  %v3345_v11 = vmul.f32 0.5, %v6711_v4  ;;  %6738 = vtanh.f32 %v1311_v56  ;;  %v1326_v3 = vmul.f32 0.5, %v302_v53  ;;  %v305_v4 = vld [vmem:[%s8700_s30 + $0x538] sm:$0xff] }
  0xce   : > { %v6715_v14 = vpop.eup %6714  ;;  %5390 = vst [vmem:[%s8733_s17 + $0x420] sm:$0xff] %v4366_v5  ;;  %v4368_v15 = vadd.f32 0.5, %v3344_v6  ;;  %v3346_v16 = vmul.f32 0.5, %v6713_v9  ;;  %6740 = vtanh.f32 %v1312_v61  ;;  %v1327_v8 = vmul.f32 0.5, %v303_v58  ;;  %v306_v9 = vld [vmem:[%s8700_s30 + $0x540] sm:$0xff] }
  0xcf   : > { %v6717_v19 = vpop.eup %6716  ;;  %5391 = vst [vmem:[%s8733_s17 + $0x428] sm:$0xff] %v4367_v10  ;;  %v4369_v20 = vadd.f32 0.5, %v3345_v11  ;;  %v3347_v21 = vmul.f32 0.5, %v6715_v14  ;;  %6742 = vtanh.f32 %v1313_v2  ;;  %v1328_v13 = vmul.f32 0.5, %v304_v63  ;;  %v307_v14 = vld [vmem:[%s8700_s30 + $0x548] sm:$0xff] }
  0xd0   : > { %v6719_v24 = vpop.eup %6718  ;;  %5392 = vst [vmem:[%s8733_s17 + $0x430] sm:$0xff] %v4368_v15  ;;  %v4370_v25 = vadd.f32 0.5, %v3346_v16  ;;  %v3348_v26 = vmul.f32 0.5, %v6717_v19  ;;  %6744 = vtanh.f32 %v1314_v7  ;;  %v1329_v18 = vmul.f32 0.5, %v305_v4  ;;  %v308_v19 = vld [vmem:[%s8700_s30 + $0x550] sm:$0xff] }
  0xd1   : > { %v6721_v29 = vpop.eup %6720  ;;  %5393 = vst [vmem:[%s8733_s17 + $0x438] sm:$0xff] %v4369_v20  ;;  %v4371_v30 = vadd.f32 0.5, %v3347_v21  ;;  %v3349_v31 = vmul.f32 0.5, %v6719_v24  ;;  %6746 = vtanh.f32 %v1315_v12  ;;  %v1330_v23 = vmul.f32 0.5, %v306_v9  ;;  %v309_v24 = vld [vmem:[%s8700_s30 + $0x558] sm:$0xff] }
  0xd2   : > { %v6723_v34 = vpop.eup %6722  ;;  %5394 = vst [vmem:[%s8733_s17 + $0x440] sm:$0xff] %v4370_v25  ;;  %v4372_v35 = vadd.f32 0.5, %v3348_v26  ;;  %v3350_v36 = vmul.f32 0.5, %v6721_v29  ;;  %6748 = vtanh.f32 %v1316_v17  ;;  %v1331_v28 = vmul.f32 0.5, %v307_v14  ;;  %v310_v29 = vld [vmem:[%s8700_s30 + $0x560] sm:$0xff] }
  0xd3   : > { %v6725_v39 = vpop.eup %6724  ;;  %5395 = vst [vmem:[%s8733_s17 + $0x448] sm:$0xff] %v4371_v30  ;;  %v4373_v40 = vadd.f32 0.5, %v3349_v31  ;;  %v3351_v41 = vmul.f32 0.5, %v6723_v34  ;;  %6750 = vtanh.f32 %v1317_v22  ;;  %v1332_v33 = vmul.f32 0.5, %v308_v19  ;;  %v311_v34 = vld [vmem:[%s8700_s30 + $0x568] sm:$0xff] }
  0xd4   : > { %v6727_v44 = vpop.eup %6726  ;;  %5396 = vst [vmem:[%s8733_s17 + $0x450] sm:$0xff] %v4372_v35  ;;  %v4374_v45 = vadd.f32 0.5, %v3350_v36  ;;  %v3352_v46 = vmul.f32 0.5, %v6725_v39  ;;  %6752 = vtanh.f32 %v1318_v27  ;;  %v1333_v38 = vmul.f32 0.5, %v309_v24  ;;  %v312_v39 = vld [vmem:[%s8700_s30 + $0x570] sm:$0xff] }
  0xd5   : > { %v6729_v49 = vpop.eup %6728  ;;  %5397 = vst [vmem:[%s8733_s17 + $0x458] sm:$0xff] %v4373_v40  ;;  %v4375_v50 = vadd.f32 0.5, %v3351_v41  ;;  %v3353_v51 = vmul.f32 0.5, %v6727_v44  ;;  %6754 = vtanh.f32 %v1319_v32  ;;  %v1334_v43 = vmul.f32 0.5, %v310_v29  ;;  %v313_v44 = vld [vmem:[%s8700_s30 + $0x578] sm:$0xff] }
  0xd6   : > { %v6731_v54 = vpop.eup %6730  ;;  %5398 = vst [vmem:[%s8733_s17 + $0x460] sm:$0xff] %v4374_v45  ;;  %v4376_v55 = vadd.f32 0.5, %v3352_v46  ;;  %v3354_v56 = vmul.f32 0.5, %v6729_v49  ;;  %6756 = vtanh.f32 %v1320_v37  ;;  %v1335_v48 = vmul.f32 0.5, %v311_v34  ;;  %v314_v49 = vld [vmem:[%s8700_s30 + $0x580] sm:$0xff] }
  0xd7   : > { %v6733_v59 = vpop.eup %6732  ;;  %5399 = vst [vmem:[%s8733_s17 + $0x468] sm:$0xff] %v4375_v50  ;;  %v4377_v60 = vadd.f32 0.5, %v3353_v51  ;;  %v3355_v61 = vmul.f32 0.5, %v6731_v54  ;;  %6758 = vtanh.f32 %v1321_v42  ;;  %v1336_v53 = vmul.f32 0.5, %v312_v39  ;;  %v315_v54 = vld [vmem:[%s8700_s30 + $0x588] sm:$0xff] }
  0xd8   : > { %v6735_v0 = vpop.eup %6734  ;;  %5400 = vst [vmem:[%s8733_s17 + $0x470] sm:$0xff] %v4376_v55  ;;  %v4378_v1 = vadd.f32 0.5, %v3354_v56  ;;  %v3356_v2 = vmul.f32 0.5, %v6733_v59  ;;  %6760 = vtanh.f32 %v1322_v47  ;;  %v1337_v58 = vmul.f32 0.5, %v313_v44  ;;  %v316_v59 = vld [vmem:[%s8700_s30 + $0x590] sm:$0xff] }
  0xd9   : > { %v6737_v5 = vpop.eup %6736  ;;  %5401 = vst [vmem:[%s8733_s17 + $0x478] sm:$0xff] %v4377_v60  ;;  %v4379_v6 = vadd.f32 0.5, %v3355_v61  ;;  %v3357_v7 = vmul.f32 0.5, %v6735_v0  ;;  %6762 = vtanh.f32 %v1323_v52  ;;  %v1338_v63 = vmul.f32 0.5, %v314_v49  ;;  %v317_v0 = vld [vmem:[%s8700_s30 + $0x598] sm:$0xff] }
  0xda   : > { %v6739_v10 = vpop.eup %6738  ;;  %5402 = vst [vmem:[%s8733_s17 + $0x480] sm:$0xff] %v4378_v1  ;;  %v4380_v11 = vadd.f32 0.5, %v3356_v2  ;;  %v3358_v12 = vmul.f32 0.5, %v6737_v5  ;;  %6764 = vtanh.f32 %v1324_v57  ;;  %v1339_v4 = vmul.f32 0.5, %v315_v54  ;;  %v318_v5 = vld [vmem:[%s8700_s30 + $0x5a0] sm:$0xff] }
  0xdb   : > { %v6741_v15 = vpop.eup %6740  ;;  %5403 = vst [vmem:[%s8733_s17 + $0x488] sm:$0xff] %v4379_v6  ;;  %v4381_v16 = vadd.f32 0.5, %v3357_v7  ;;  %v3359_v17 = vmul.f32 0.5, %v6739_v10  ;;  %6766 = vtanh.f32 %v1325_v62  ;;  %v1340_v9 = vmul.f32 0.5, %v316_v59  ;;  %v319_v10 = vld [vmem:[%s8700_s30 + $0x5a8] sm:$0xff] }
  0xdc   : > { %v6743_v20 = vpop.eup %6742  ;;  %5404 = vst [vmem:[%s8733_s17 + $0x490] sm:$0xff] %v4380_v11  ;;  %v4382_v21 = vadd.f32 0.5, %v3358_v12  ;;  %v3360_v22 = vmul.f32 0.5, %v6741_v15  ;;  %6768 = vtanh.f32 %v1326_v3  ;;  %v1341_v14 = vmul.f32 0.5, %v317_v0  ;;  %v320_v15 = vld [vmem:[%s8700_s30 + $0x5b0] sm:$0xff] }
  0xdd   : > { %v6745_v25 = vpop.eup %6744  ;;  %5405 = vst [vmem:[%s8733_s17 + $0x498] sm:$0xff] %v4381_v16  ;;  %v4383_v26 = vadd.f32 0.5, %v3359_v17  ;;  %v3361_v27 = vmul.f32 0.5, %v6743_v20  ;;  %6770 = vtanh.f32 %v1327_v8  ;;  %v1342_v19 = vmul.f32 0.5, %v318_v5  ;;  %v321_v20 = vld [vmem:[%s8700_s30 + $0x5b8] sm:$0xff] }
  0xde   : > { %v6747_v30 = vpop.eup %6746  ;;  %5406 = vst [vmem:[%s8733_s17 + $0x4a0] sm:$0xff] %v4382_v21  ;;  %v4384_v31 = vadd.f32 0.5, %v3360_v22  ;;  %v3362_v32 = vmul.f32 0.5, %v6745_v25  ;;  %6772 = vtanh.f32 %v1328_v13  ;;  %v1343_v24 = vmul.f32 0.5, %v319_v10  ;;  %v322_v25 = vld [vmem:[%s8700_s30 + $0x5c0] sm:$0xff] }
  0xdf   : > { %v6749_v35 = vpop.eup %6748  ;;  %5407 = vst [vmem:[%s8733_s17 + $0x4a8] sm:$0xff] %v4383_v26  ;;  %v4385_v36 = vadd.f32 0.5, %v3361_v27  ;;  %v3363_v37 = vmul.f32 0.5, %v6747_v30  ;;  %6774 = vtanh.f32 %v1329_v18  ;;  %v1344_v29 = vmul.f32 0.5, %v320_v15  ;;  %v323_v30 = vld [vmem:[%s8700_s30 + $0x5c8] sm:$0xff] }
  0xe0   : > { %v6751_v40 = vpop.eup %6750  ;;  %5408 = vst [vmem:[%s8733_s17 + $0x4b0] sm:$0xff] %v4384_v31  ;;  %v4386_v41 = vadd.f32 0.5, %v3362_v32  ;;  %v3364_v42 = vmul.f32 0.5, %v6749_v35  ;;  %6776 = vtanh.f32 %v1330_v23  ;;  %v1345_v34 = vmul.f32 0.5, %v321_v20  ;;  %v324_v35 = vld [vmem:[%s8700_s30 + $0x5d0] sm:$0xff] }
  0xe1   : > { %v6753_v45 = vpop.eup %6752  ;;  %5409 = vst [vmem:[%s8733_s17 + $0x4b8] sm:$0xff] %v4385_v36  ;;  %v4387_v46 = vadd.f32 0.5, %v3363_v37  ;;  %v3365_v47 = vmul.f32 0.5, %v6751_v40  ;;  %6778 = vtanh.f32 %v1331_v28  ;;  %v1346_v39 = vmul.f32 0.5, %v322_v25  ;;  %v325_v40 = vld [vmem:[%s8700_s30 + $0x5d8] sm:$0xff] }
  0xe2   : > { %v6755_v50 = vpop.eup %6754  ;;  %5410 = vst [vmem:[%s8733_s17 + $0x4c0] sm:$0xff] %v4386_v41  ;;  %v4388_v51 = vadd.f32 0.5, %v3364_v42  ;;  %v3366_v52 = vmul.f32 0.5, %v6753_v45  ;;  %6780 = vtanh.f32 %v1332_v33  ;;  %v1347_v44 = vmul.f32 0.5, %v323_v30  ;;  %v326_v45 = vld [vmem:[%s8700_s30 + $0x5e0] sm:$0xff] }
  0xe3   : > { %v6757_v55 = vpop.eup %6756  ;;  %5411 = vst [vmem:[%s8733_s17 + $0x4c8] sm:$0xff] %v4387_v46  ;;  %v4389_v56 = vadd.f32 0.5, %v3365_v47  ;;  %v3367_v57 = vmul.f32 0.5, %v6755_v50  ;;  %6782 = vtanh.f32 %v1333_v38  ;;  %v1348_v49 = vmul.f32 0.5, %v324_v35  ;;  %v327_v50 = vld [vmem:[%s8700_s30 + $0x5e8] sm:$0xff] }
  0xe4   : > { %v6759_v60 = vpop.eup %6758  ;;  %5412 = vst [vmem:[%s8733_s17 + $0x4d0] sm:$0xff] %v4388_v51  ;;  %v4390_v61 = vadd.f32 0.5, %v3366_v52  ;;  %v3368_v62 = vmul.f32 0.5, %v6757_v55  ;;  %6784 = vtanh.f32 %v1334_v43  ;;  %v1349_v54 = vmul.f32 0.5, %v325_v40  ;;  %v328_v55 = vld [vmem:[%s8700_s30 + $0x5f0] sm:$0xff] }
  0xe5   : > { %v6761_v1 = vpop.eup %6760  ;;  %5413 = vst [vmem:[%s8733_s17 + $0x4d8] sm:$0xff] %v4389_v56  ;;  %v4391_v2 = vadd.f32 0.5, %v3367_v57  ;;  %v3369_v3 = vmul.f32 0.5, %v6759_v60  ;;  %6786 = vtanh.f32 %v1335_v48  ;;  %v1350_v59 = vmul.f32 0.5, %v326_v45  ;;  %v329_v60 = vld [vmem:[%s8700_s30 + $0x5f8] sm:$0xff] }
  0xe6   : > { %v6763_v6 = vpop.eup %6762  ;;  %5414 = vst [vmem:[%s8733_s17 + $0x4e0] sm:$0xff] %v4390_v61  ;;  %v4392_v7 = vadd.f32 0.5, %v3368_v62  ;;  %v3370_v8 = vmul.f32 0.5, %v6761_v1  ;;  %6788 = vtanh.f32 %v1336_v53  ;;  %v1351_v0 = vmul.f32 0.5, %v327_v50  ;;  %v330_v1 = vld [vmem:[%s8700_s30 + $0x600] sm:$0xff] }
  0xe7   : > { %v6765_v11 = vpop.eup %6764  ;;  %5415 = vst [vmem:[%s8733_s17 + $0x4e8] sm:$0xff] %v4391_v2  ;;  %v4393_v12 = vadd.f32 0.5, %v3369_v3  ;;  %v3371_v13 = vmul.f32 0.5, %v6763_v6  ;;  %6790 = vtanh.f32 %v1337_v58  ;;  %v1352_v5 = vmul.f32 0.5, %v328_v55  ;;  %v331_v6 = vld [vmem:[%s8700_s30 + $0x608] sm:$0xff] }
  0xe8   : > { %v6767_v16 = vpop.eup %6766  ;;  %5416 = vst [vmem:[%s8733_s17 + $0x4f0] sm:$0xff] %v4392_v7  ;;  %v4394_v17 = vadd.f32 0.5, %v3370_v8  ;;  %v3372_v18 = vmul.f32 0.5, %v6765_v11  ;;  %6792 = vtanh.f32 %v1338_v63  ;;  %v1353_v10 = vmul.f32 0.5, %v329_v60  ;;  %v332_v11 = vld [vmem:[%s8700_s30 + $0x610] sm:$0xff] }
  0xe9   : > { %v6769_v21 = vpop.eup %6768  ;;  %5417 = vst [vmem:[%s8733_s17 + $0x4f8] sm:$0xff] %v4393_v12  ;;  %v4395_v22 = vadd.f32 0.5, %v3371_v13  ;;  %v3373_v23 = vmul.f32 0.5, %v6767_v16  ;;  %6794 = vtanh.f32 %v1339_v4  ;;  %v1354_v15 = vmul.f32 0.5, %v330_v1  ;;  %v333_v16 = vld [vmem:[%s8700_s30 + $0x618] sm:$0xff] }
  0xea   : > { %v6771_v26 = vpop.eup %6770  ;;  %5418 = vst [vmem:[%s8733_s17 + $0x500] sm:$0xff] %v4394_v17  ;;  %v4396_v27 = vadd.f32 0.5, %v3372_v18  ;;  %v3374_v28 = vmul.f32 0.5, %v6769_v21  ;;  %6796 = vtanh.f32 %v1340_v9  ;;  %v1355_v20 = vmul.f32 0.5, %v331_v6  ;;  %v334_v21 = vld [vmem:[%s8700_s30 + $0x620] sm:$0xff] }
  0xeb   : > { %v6773_v31 = vpop.eup %6772  ;;  %5419 = vst [vmem:[%s8733_s17 + $0x508] sm:$0xff] %v4395_v22  ;;  %v4397_v32 = vadd.f32 0.5, %v3373_v23  ;;  %v3375_v33 = vmul.f32 0.5, %v6771_v26  ;;  %6798 = vtanh.f32 %v1341_v14  ;;  %v1356_v25 = vmul.f32 0.5, %v332_v11  ;;  %v335_v26 = vld [vmem:[%s8700_s30 + $0x628] sm:$0xff] }
  0xec   : > { %v6775_v36 = vpop.eup %6774  ;;  %5420 = vst [vmem:[%s8733_s17 + $0x510] sm:$0xff] %v4396_v27  ;;  %v4398_v37 = vadd.f32 0.5, %v3374_v28  ;;  %v3376_v38 = vmul.f32 0.5, %v6773_v31  ;;  %6800 = vtanh.f32 %v1342_v19  ;;  %v1357_v30 = vmul.f32 0.5, %v333_v16  ;;  %v336_v31 = vld [vmem:[%s8700_s30 + $0x630] sm:$0xff] }
  0xed   : > { %v6777_v41 = vpop.eup %6776  ;;  %5421 = vst [vmem:[%s8733_s17 + $0x518] sm:$0xff] %v4397_v32  ;;  %v4399_v42 = vadd.f32 0.5, %v3375_v33  ;;  %v3377_v43 = vmul.f32 0.5, %v6775_v36  ;;  %6802 = vtanh.f32 %v1343_v24  ;;  %v1358_v35 = vmul.f32 0.5, %v334_v21  ;;  %v337_v36 = vld [vmem:[%s8700_s30 + $0x638] sm:$0xff] }
  0xee   : > { %v6779_v46 = vpop.eup %6778  ;;  %5422 = vst [vmem:[%s8733_s17 + $0x520] sm:$0xff] %v4398_v37  ;;  %v4400_v47 = vadd.f32 0.5, %v3376_v38  ;;  %v3378_v48 = vmul.f32 0.5, %v6777_v41  ;;  %6804 = vtanh.f32 %v1344_v29  ;;  %v1359_v40 = vmul.f32 0.5, %v335_v26  ;;  %v338_v41 = vld [vmem:[%s8700_s30 + $0x640] sm:$0xff] }
  0xef   : > { %v6781_v51 = vpop.eup %6780  ;;  %5423 = vst [vmem:[%s8733_s17 + $0x528] sm:$0xff] %v4399_v42  ;;  %v4401_v52 = vadd.f32 0.5, %v3377_v43  ;;  %v3379_v53 = vmul.f32 0.5, %v6779_v46  ;;  %6806 = vtanh.f32 %v1345_v34  ;;  %v1360_v45 = vmul.f32 0.5, %v336_v31  ;;  %v339_v46 = vld [vmem:[%s8700_s30 + $0x648] sm:$0xff] }
  0xf0   : > { %v6783_v56 = vpop.eup %6782  ;;  %5424 = vst [vmem:[%s8733_s17 + $0x530] sm:$0xff] %v4400_v47  ;;  %v4402_v57 = vadd.f32 0.5, %v3378_v48  ;;  %v3380_v58 = vmul.f32 0.5, %v6781_v51  ;;  %6808 = vtanh.f32 %v1346_v39  ;;  %v1361_v50 = vmul.f32 0.5, %v337_v36  ;;  %v340_v51 = vld [vmem:[%s8700_s30 + $0x650] sm:$0xff] }
  0xf1   : > { %v6785_v61 = vpop.eup %6784  ;;  %5425 = vst [vmem:[%s8733_s17 + $0x538] sm:$0xff] %v4401_v52  ;;  %v4403_v62 = vadd.f32 0.5, %v3379_v53  ;;  %v3381_v63 = vmul.f32 0.5, %v6783_v56  ;;  %6810 = vtanh.f32 %v1347_v44  ;;  %v1362_v55 = vmul.f32 0.5, %v338_v41  ;;  %v341_v56 = vld [vmem:[%s8700_s30 + $0x658] sm:$0xff] }
  0xf2   : > { %v6787_v2 = vpop.eup %6786  ;;  %5426 = vst [vmem:[%s8733_s17 + $0x540] sm:$0xff] %v4402_v57  ;;  %v4404_v3 = vadd.f32 0.5, %v3380_v58  ;;  %v3382_v4 = vmul.f32 0.5, %v6785_v61  ;;  %6812 = vtanh.f32 %v1348_v49  ;;  %v1363_v60 = vmul.f32 0.5, %v339_v46  ;;  %v342_v61 = vld [vmem:[%s8700_s30 + $0x660] sm:$0xff] }
  0xf3   : > { %v6789_v7 = vpop.eup %6788  ;;  %5427 = vst [vmem:[%s8733_s17 + $0x548] sm:$0xff] %v4403_v62  ;;  %v4405_v8 = vadd.f32 0.5, %v3381_v63  ;;  %v3383_v9 = vmul.f32 0.5, %v6787_v2  ;;  %6814 = vtanh.f32 %v1349_v54  ;;  %v1364_v1 = vmul.f32 0.5, %v340_v51  ;;  %v343_v2 = vld [vmem:[%s8700_s30 + $0x668] sm:$0xff] }
  0xf4   : > { %v6791_v12 = vpop.eup %6790  ;;  %5428 = vst [vmem:[%s8733_s17 + $0x550] sm:$0xff] %v4404_v3  ;;  %v4406_v13 = vadd.f32 0.5, %v3382_v4  ;;  %v3384_v14 = vmul.f32 0.5, %v6789_v7  ;;  %6816 = vtanh.f32 %v1350_v59  ;;  %v1365_v6 = vmul.f32 0.5, %v341_v56  ;;  %v344_v7 = vld [vmem:[%s8700_s30 + $0x670] sm:$0xff] }
  0xf5   : > { %v6793_v17 = vpop.eup %6792  ;;  %5429 = vst [vmem:[%s8733_s17 + $0x558] sm:$0xff] %v4405_v8  ;;  %v4407_v18 = vadd.f32 0.5, %v3383_v9  ;;  %v3385_v19 = vmul.f32 0.5, %v6791_v12  ;;  %6818 = vtanh.f32 %v1351_v0  ;;  %v1366_v11 = vmul.f32 0.5, %v342_v61  ;;  %v345_v12 = vld [vmem:[%s8700_s30 + $0x678] sm:$0xff] }
  0xf6   : > { %v6795_v22 = vpop.eup %6794  ;;  %5430 = vst [vmem:[%s8733_s17 + $0x560] sm:$0xff] %v4406_v13  ;;  %v4408_v23 = vadd.f32 0.5, %v3384_v14  ;;  %v3386_v24 = vmul.f32 0.5, %v6793_v17  ;;  %6820 = vtanh.f32 %v1352_v5  ;;  %v1367_v16 = vmul.f32 0.5, %v343_v2  ;;  %v346_v17 = vld [vmem:[%s8700_s30 + $0x680] sm:$0xff] }
  0xf7   : > { %v6797_v27 = vpop.eup %6796  ;;  %5431 = vst [vmem:[%s8733_s17 + $0x568] sm:$0xff] %v4407_v18  ;;  %v4409_v28 = vadd.f32 0.5, %v3385_v19  ;;  %v3387_v29 = vmul.f32 0.5, %v6795_v22  ;;  %6822 = vtanh.f32 %v1353_v10  ;;  %v1368_v21 = vmul.f32 0.5, %v344_v7  ;;  %v347_v22 = vld [vmem:[%s8700_s30 + $0x688] sm:$0xff] }
  0xf8   : > { %v6799_v32 = vpop.eup %6798  ;;  %5432 = vst [vmem:[%s8733_s17 + $0x570] sm:$0xff] %v4408_v23  ;;  %v4410_v33 = vadd.f32 0.5, %v3386_v24  ;;  %v3388_v34 = vmul.f32 0.5, %v6797_v27  ;;  %6824 = vtanh.f32 %v1354_v15  ;;  %v1369_v26 = vmul.f32 0.5, %v345_v12  ;;  %v348_v27 = vld [vmem:[%s8700_s30 + $0x690] sm:$0xff] }
  0xf9   : > { %v6801_v37 = vpop.eup %6800  ;;  %5433 = vst [vmem:[%s8733_s17 + $0x578] sm:$0xff] %v4409_v28  ;;  %v4411_v38 = vadd.f32 0.5, %v3387_v29  ;;  %v3389_v39 = vmul.f32 0.5, %v6799_v32  ;;  %6826 = vtanh.f32 %v1355_v20  ;;  %v1370_v31 = vmul.f32 0.5, %v346_v17  ;;  %v349_v32 = vld [vmem:[%s8700_s30 + $0x698] sm:$0xff] }
  0xfa   : > { %v6803_v42 = vpop.eup %6802  ;;  %5434 = vst [vmem:[%s8733_s17 + $0x580] sm:$0xff] %v4410_v33  ;;  %v4412_v43 = vadd.f32 0.5, %v3388_v34  ;;  %v3390_v44 = vmul.f32 0.5, %v6801_v37  ;;  %6828 = vtanh.f32 %v1356_v25  ;;  %v1371_v36 = vmul.f32 0.5, %v347_v22  ;;  %v350_v37 = vld [vmem:[%s8700_s30 + $0x6a0] sm:$0xff] }
  0xfb   : > { %v6805_v47 = vpop.eup %6804  ;;  %5435 = vst [vmem:[%s8733_s17 + $0x588] sm:$0xff] %v4411_v38  ;;  %v4413_v48 = vadd.f32 0.5, %v3389_v39  ;;  %v3391_v49 = vmul.f32 0.5, %v6803_v42  ;;  %6830 = vtanh.f32 %v1357_v30  ;;  %v1372_v41 = vmul.f32 0.5, %v348_v27  ;;  %v351_v42 = vld [vmem:[%s8700_s30 + $0x6a8] sm:$0xff] }
  0xfc   : > { %v6807_v52 = vpop.eup %6806  ;;  %5436 = vst [vmem:[%s8733_s17 + $0x590] sm:$0xff] %v4412_v43  ;;  %v4414_v53 = vadd.f32 0.5, %v3390_v44  ;;  %v3392_v54 = vmul.f32 0.5, %v6805_v47  ;;  %6832 = vtanh.f32 %v1358_v35  ;;  %v1373_v46 = vmul.f32 0.5, %v349_v32  ;;  %v352_v47 = vld [vmem:[%s8700_s30 + $0x6b0] sm:$0xff] }
  0xfd   : > { %v6809_v57 = vpop.eup %6808  ;;  %5437 = vst [vmem:[%s8733_s17 + $0x598] sm:$0xff] %v4413_v48  ;;  %v4415_v58 = vadd.f32 0.5, %v3391_v49  ;;  %v3393_v59 = vmul.f32 0.5, %v6807_v52  ;;  %6834 = vtanh.f32 %v1359_v40  ;;  %v1374_v51 = vmul.f32 0.5, %v350_v37  ;;  %v353_v52 = vld [vmem:[%s8700_s30 + $0x6b8] sm:$0xff] }
  0xfe   : > { %v6811_v62 = vpop.eup %6810  ;;  %5438 = vst [vmem:[%s8733_s17 + $0x5a0] sm:$0xff] %v4414_v53  ;;  %v4416_v63 = vadd.f32 0.5, %v3392_v54  ;;  %v3394_v0 = vmul.f32 0.5, %v6809_v57  ;;  %6836 = vtanh.f32 %v1360_v45  ;;  %v1375_v56 = vmul.f32 0.5, %v351_v42  ;;  %v354_v57 = vld [vmem:[%s8700_s30 + $0x6c0] sm:$0xff] }
  0xff   : > { %v6813_v3 = vpop.eup %6812  ;;  %5439 = vst [vmem:[%s8733_s17 + $0x5a8] sm:$0xff] %v4415_v58  ;;  %v4417_v4 = vadd.f32 0.5, %v3393_v59  ;;  %v3395_v5 = vmul.f32 0.5, %v6811_v62  ;;  %6838 = vtanh.f32 %v1361_v50  ;;  %v1376_v61 = vmul.f32 0.5, %v352_v47  ;;  %v355_v62 = vld [vmem:[%s8700_s30 + $0x6c8] sm:$0xff] }
 0x100   : > { %v6815_v8 = vpop.eup %6814  ;;  %5440 = vst [vmem:[%s8733_s17 + $0x5b0] sm:$0xff] %v4416_v63  ;;  %v4418_v9 = vadd.f32 0.5, %v3394_v0  ;;  %v3396_v10 = vmul.f32 0.5, %v6813_v3  ;;  %6840 = vtanh.f32 %v1362_v55  ;;  %v1377_v2 = vmul.f32 0.5, %v353_v52  ;;  %v356_v3 = vld [vmem:[%s8700_s30 + $0x6d0] sm:$0xff] }
 0x101   : > { %v6817_v13 = vpop.eup %6816  ;;  %5441 = vst [vmem:[%s8733_s17 + $0x5b8] sm:$0xff] %v4417_v4  ;;  %v4419_v14 = vadd.f32 0.5, %v3395_v5  ;;  %v3397_v15 = vmul.f32 0.5, %v6815_v8  ;;  %6842 = vtanh.f32 %v1363_v60  ;;  %v1378_v7 = vmul.f32 0.5, %v354_v57  ;;  %v357_v8 = vld [vmem:[%s8700_s30 + $0x6d8] sm:$0xff] }
 0x102   : > { %v6819_v18 = vpop.eup %6818  ;;  %5442 = vst [vmem:[%s8733_s17 + $0x5c0] sm:$0xff] %v4418_v9  ;;  %v4420_v19 = vadd.f32 0.5, %v3396_v10  ;;  %v3398_v20 = vmul.f32 0.5, %v6817_v13  ;;  %6844 = vtanh.f32 %v1364_v1  ;;  %v1379_v12 = vmul.f32 0.5, %v355_v62  ;;  %v358_v13 = vld [vmem:[%s8700_s30 + $0x6e0] sm:$0xff] }
 0x103   : > { %v6821_v23 = vpop.eup %6820  ;;  %5443 = vst [vmem:[%s8733_s17 + $0x5c8] sm:$0xff] %v4419_v14  ;;  %v4421_v24 = vadd.f32 0.5, %v3397_v15  ;;  %v3399_v25 = vmul.f32 0.5, %v6819_v18  ;;  %6846 = vtanh.f32 %v1365_v6  ;;  %v1380_v17 = vmul.f32 0.5, %v356_v3  ;;  %v359_v18 = vld [vmem:[%s8700_s30 + $0x6e8] sm:$0xff] }
 0x104   : > { %v6823_v28 = vpop.eup %6822  ;;  %5444 = vst [vmem:[%s8733_s17 + $0x5d0] sm:$0xff] %v4420_v19  ;;  %v4422_v29 = vadd.f32 0.5, %v3398_v20  ;;  %v3400_v30 = vmul.f32 0.5, %v6821_v23  ;;  %6848 = vtanh.f32 %v1366_v11  ;;  %v1381_v22 = vmul.f32 0.5, %v357_v8  ;;  %v360_v23 = vld [vmem:[%s8700_s30 + $0x6f0] sm:$0xff] }
 0x105   : > { %v6825_v33 = vpop.eup %6824  ;;  %5445 = vst [vmem:[%s8733_s17 + $0x5d8] sm:$0xff] %v4421_v24  ;;  %v4423_v34 = vadd.f32 0.5, %v3399_v25  ;;  %v3401_v35 = vmul.f32 0.5, %v6823_v28  ;;  %6850 = vtanh.f32 %v1367_v16  ;;  %v1382_v27 = vmul.f32 0.5, %v358_v13  ;;  %v361_v28 = vld [vmem:[%s8700_s30 + $0x6f8] sm:$0xff] }
 0x106   : > { %v6827_v38 = vpop.eup %6826  ;;  %5446 = vst [vmem:[%s8733_s17 + $0x5e0] sm:$0xff] %v4422_v29  ;;  %v4424_v39 = vadd.f32 0.5, %v3400_v30  ;;  %v3402_v40 = vmul.f32 0.5, %v6825_v33  ;;  %6852 = vtanh.f32 %v1368_v21  ;;  %v1383_v32 = vmul.f32 0.5, %v359_v18  ;;  %v362_v33 = vld [vmem:[%s8700_s30 + $0x700] sm:$0xff] }
 0x107   : > { %v6829_v43 = vpop.eup %6828  ;;  %5447 = vst [vmem:[%s8733_s17 + $0x5e8] sm:$0xff] %v4423_v34  ;;  %v4425_v44 = vadd.f32 0.5, %v3401_v35  ;;  %v3403_v45 = vmul.f32 0.5, %v6827_v38  ;;  %6854 = vtanh.f32 %v1369_v26  ;;  %v1384_v37 = vmul.f32 0.5, %v360_v23  ;;  %v363_v38 = vld [vmem:[%s8700_s30 + $0x708] sm:$0xff] }
 0x108   : > { %v6831_v48 = vpop.eup %6830  ;;  %5448 = vst [vmem:[%s8733_s17 + $0x5f0] sm:$0xff] %v4424_v39  ;;  %v4426_v49 = vadd.f32 0.5, %v3402_v40  ;;  %v3404_v50 = vmul.f32 0.5, %v6829_v43  ;;  %6856 = vtanh.f32 %v1370_v31  ;;  %v1385_v42 = vmul.f32 0.5, %v361_v28  ;;  %v364_v43 = vld [vmem:[%s8700_s30 + $0x710] sm:$0xff] }
 0x109   : > { %v6833_v53 = vpop.eup %6832  ;;  %5449 = vst [vmem:[%s8733_s17 + $0x5f8] sm:$0xff] %v4425_v44  ;;  %v4427_v54 = vadd.f32 0.5, %v3403_v45  ;;  %v3405_v55 = vmul.f32 0.5, %v6831_v48  ;;  %6858 = vtanh.f32 %v1371_v36  ;;  %v1386_v47 = vmul.f32 0.5, %v362_v33  ;;  %v365_v48 = vld [vmem:[%s8700_s30 + $0x718] sm:$0xff] }
 0x10a   : > { %v6835_v58 = vpop.eup %6834  ;;  %5450 = vst [vmem:[%s8733_s17 + $0x600] sm:$0xff] %v4426_v49  ;;  %v4428_v59 = vadd.f32 0.5, %v3404_v50  ;;  %v3406_v60 = vmul.f32 0.5, %v6833_v53  ;;  %6860 = vtanh.f32 %v1372_v41  ;;  %v1387_v52 = vmul.f32 0.5, %v363_v38  ;;  %v366_v53 = vld [vmem:[%s8700_s30 + $0x720] sm:$0xff] }
 0x10b   : > { %v6837_v63 = vpop.eup %6836  ;;  %5451 = vst [vmem:[%s8733_s17 + $0x608] sm:$0xff] %v4427_v54  ;;  %v4429_v0 = vadd.f32 0.5, %v3405_v55  ;;  %v3407_v1 = vmul.f32 0.5, %v6835_v58  ;;  %6862 = vtanh.f32 %v1373_v46  ;;  %v1388_v57 = vmul.f32 0.5, %v364_v43  ;;  %v367_v58 = vld [vmem:[%s8700_s30 + $0x728] sm:$0xff] }
 0x10c   : > { %v6839_v4 = vpop.eup %6838  ;;  %5452 = vst [vmem:[%s8733_s17 + $0x610] sm:$0xff] %v4428_v59  ;;  %v4430_v5 = vadd.f32 0.5, %v3406_v60  ;;  %v3408_v6 = vmul.f32 0.5, %v6837_v63  ;;  %6864 = vtanh.f32 %v1374_v51  ;;  %v1389_v62 = vmul.f32 0.5, %v365_v48  ;;  %v368_v63 = vld [vmem:[%s8700_s30 + $0x730] sm:$0xff] }
 0x10d   : > { %v6841_v9 = vpop.eup %6840  ;;  %5453 = vst [vmem:[%s8733_s17 + $0x618] sm:$0xff] %v4429_v0  ;;  %v4431_v10 = vadd.f32 0.5, %v3407_v1  ;;  %v3409_v11 = vmul.f32 0.5, %v6839_v4  ;;  %6866 = vtanh.f32 %v1375_v56  ;;  %v1390_v3 = vmul.f32 0.5, %v366_v53  ;;  %v369_v4 = vld [vmem:[%s8700_s30 + $0x738] sm:$0xff] }
 0x10e   : > { %v6843_v14 = vpop.eup %6842  ;;  %5454 = vst [vmem:[%s8733_s17 + $0x620] sm:$0xff] %v4430_v5  ;;  %v4432_v15 = vadd.f32 0.5, %v3408_v6  ;;  %v3410_v16 = vmul.f32 0.5, %v6841_v9  ;;  %6868 = vtanh.f32 %v1376_v61  ;;  %v1391_v8 = vmul.f32 0.5, %v367_v58  ;;  %v370_v9 = vld [vmem:[%s8700_s30 + $0x740] sm:$0xff] }
 0x10f   : > { %v6845_v19 = vpop.eup %6844  ;;  %5455 = vst [vmem:[%s8733_s17 + $0x628] sm:$0xff] %v4431_v10  ;;  %v4433_v20 = vadd.f32 0.5, %v3409_v11  ;;  %v3411_v21 = vmul.f32 0.5, %v6843_v14  ;;  %6870 = vtanh.f32 %v1377_v2  ;;  %v1392_v13 = vmul.f32 0.5, %v368_v63  ;;  %v371_v14 = vld [vmem:[%s8700_s30 + $0x748] sm:$0xff] }
 0x110   : > { %v6847_v24 = vpop.eup %6846  ;;  %5456 = vst [vmem:[%s8733_s17 + $0x630] sm:$0xff] %v4432_v15  ;;  %v4434_v25 = vadd.f32 0.5, %v3410_v16  ;;  %v3412_v26 = vmul.f32 0.5, %v6845_v19  ;;  %6872 = vtanh.f32 %v1378_v7  ;;  %v1393_v18 = vmul.f32 0.5, %v369_v4  ;;  %v372_v19 = vld [vmem:[%s8700_s30 + $0x750] sm:$0xff] }
 0x111   : > { %v6849_v29 = vpop.eup %6848  ;;  %5457 = vst [vmem:[%s8733_s17 + $0x638] sm:$0xff] %v4433_v20  ;;  %v4435_v30 = vadd.f32 0.5, %v3411_v21  ;;  %v3413_v31 = vmul.f32 0.5, %v6847_v24  ;;  %6874 = vtanh.f32 %v1379_v12  ;;  %v1394_v23 = vmul.f32 0.5, %v370_v9  ;;  %v373_v24 = vld [vmem:[%s8700_s30 + $0x758] sm:$0xff] }
 0x112   : > { %v6851_v34 = vpop.eup %6850  ;;  %5458 = vst [vmem:[%s8733_s17 + $0x640] sm:$0xff] %v4434_v25  ;;  %v4436_v35 = vadd.f32 0.5, %v3412_v26  ;;  %v3414_v36 = vmul.f32 0.5, %v6849_v29  ;;  %6876 = vtanh.f32 %v1380_v17  ;;  %v1395_v28 = vmul.f32 0.5, %v371_v14  ;;  %v374_v29 = vld [vmem:[%s8700_s30 + $0x760] sm:$0xff] }
 0x113   : > { %v6853_v39 = vpop.eup %6852  ;;  %5459 = vst [vmem:[%s8733_s17 + $0x648] sm:$0xff] %v4435_v30  ;;  %v4437_v40 = vadd.f32 0.5, %v3413_v31  ;;  %v3415_v41 = vmul.f32 0.5, %v6851_v34  ;;  %6878 = vtanh.f32 %v1381_v22  ;;  %v1396_v33 = vmul.f32 0.5, %v372_v19  ;;  %v375_v34 = vld [vmem:[%s8700_s30 + $0x768] sm:$0xff] }
 0x114   : > { %v6855_v44 = vpop.eup %6854  ;;  %5460 = vst [vmem:[%s8733_s17 + $0x650] sm:$0xff] %v4436_v35  ;;  %v4438_v45 = vadd.f32 0.5, %v3414_v36  ;;  %v3416_v46 = vmul.f32 0.5, %v6853_v39  ;;  %6880 = vtanh.f32 %v1382_v27  ;;  %v1397_v38 = vmul.f32 0.5, %v373_v24  ;;  %v376_v39 = vld [vmem:[%s8700_s30 + $0x770] sm:$0xff] }
 0x115   : > { %v6857_v49 = vpop.eup %6856  ;;  %5461 = vst [vmem:[%s8733_s17 + $0x658] sm:$0xff] %v4437_v40  ;;  %v4439_v50 = vadd.f32 0.5, %v3415_v41  ;;  %v3417_v51 = vmul.f32 0.5, %v6855_v44  ;;  %6882 = vtanh.f32 %v1383_v32  ;;  %v1398_v43 = vmul.f32 0.5, %v374_v29  ;;  %v377_v44 = vld [vmem:[%s8700_s30 + $0x778] sm:$0xff] }
 0x116   : > { %v6859_v54 = vpop.eup %6858  ;;  %5462 = vst [vmem:[%s8733_s17 + $0x660] sm:$0xff] %v4438_v45  ;;  %v4440_v55 = vadd.f32 0.5, %v3416_v46  ;;  %v3418_v56 = vmul.f32 0.5, %v6857_v49  ;;  %6884 = vtanh.f32 %v1384_v37  ;;  %v1399_v48 = vmul.f32 0.5, %v375_v34  ;;  %v378_v49 = vld [vmem:[%s8700_s30 + $0x780] sm:$0xff] }
 0x117   : > { %v6861_v59 = vpop.eup %6860  ;;  %5463 = vst [vmem:[%s8733_s17 + $0x668] sm:$0xff] %v4439_v50  ;;  %v4441_v60 = vadd.f32 0.5, %v3417_v51  ;;  %v3419_v61 = vmul.f32 0.5, %v6859_v54  ;;  %6886 = vtanh.f32 %v1385_v42  ;;  %v1400_v53 = vmul.f32 0.5, %v376_v39  ;;  %v379_v54 = vld [vmem:[%s8700_s30 + $0x788] sm:$0xff] }
 0x118   : > { %v6863_v0 = vpop.eup %6862  ;;  %5464 = vst [vmem:[%s8733_s17 + $0x670] sm:$0xff] %v4440_v55  ;;  %v4442_v1 = vadd.f32 0.5, %v3418_v56  ;;  %v3420_v2 = vmul.f32 0.5, %v6861_v59  ;;  %6888 = vtanh.f32 %v1386_v47  ;;  %v1401_v58 = vmul.f32 0.5, %v377_v44  ;;  %v380_v59 = vld [vmem:[%s8700_s30 + $0x790] sm:$0xff] }
 0x119   : > { %v6865_v5 = vpop.eup %6864  ;;  %5465 = vst [vmem:[%s8733_s17 + $0x678] sm:$0xff] %v4441_v60  ;;  %v4443_v6 = vadd.f32 0.5, %v3419_v61  ;;  %v3421_v7 = vmul.f32 0.5, %v6863_v0  ;;  %6890 = vtanh.f32 %v1387_v52  ;;  %v1402_v63 = vmul.f32 0.5, %v378_v49  ;;  %v381_v0 = vld [vmem:[%s8700_s30 + $0x798] sm:$0xff] }
 0x11a   : > { %v6867_v10 = vpop.eup %6866  ;;  %5466 = vst [vmem:[%s8733_s17 + $0x680] sm:$0xff] %v4442_v1  ;;  %v4444_v11 = vadd.f32 0.5, %v3420_v2  ;;  %v3422_v12 = vmul.f32 0.5, %v6865_v5  ;;  %6892 = vtanh.f32 %v1388_v57  ;;  %v1403_v4 = vmul.f32 0.5, %v379_v54  ;;  %v382_v5 = vld [vmem:[%s8700_s30 + $0x7a0] sm:$0xff] }
 0x11b   : > { %v6869_v15 = vpop.eup %6868  ;;  %5467 = vst [vmem:[%s8733_s17 + $0x688] sm:$0xff] %v4443_v6  ;;  %v4445_v16 = vadd.f32 0.5, %v3421_v7  ;;  %v3423_v17 = vmul.f32 0.5, %v6867_v10  ;;  %6894 = vtanh.f32 %v1389_v62  ;;  %v1404_v9 = vmul.f32 0.5, %v380_v59  ;;  %v383_v10 = vld [vmem:[%s8700_s30 + $0x7a8] sm:$0xff] }
 0x11c   : > { %v6871_v20 = vpop.eup %6870  ;;  %5468 = vst [vmem:[%s8733_s17 + $0x690] sm:$0xff] %v4444_v11  ;;  %v4446_v21 = vadd.f32 0.5, %v3422_v12  ;;  %v3424_v22 = vmul.f32 0.5, %v6869_v15  ;;  %6896 = vtanh.f32 %v1390_v3  ;;  %v1405_v14 = vmul.f32 0.5, %v381_v0  ;;  %v384_v15 = vld [vmem:[%s8700_s30 + $0x7b0] sm:$0xff] }
 0x11d   : > { %v6873_v25 = vpop.eup %6872  ;;  %5469 = vst [vmem:[%s8733_s17 + $0x698] sm:$0xff] %v4445_v16  ;;  %v4447_v26 = vadd.f32 0.5, %v3423_v17  ;;  %v3425_v27 = vmul.f32 0.5, %v6871_v20  ;;  %6898 = vtanh.f32 %v1391_v8  ;;  %v1406_v19 = vmul.f32 0.5, %v382_v5  ;;  %v385_v20 = vld [vmem:[%s8700_s30 + $0x7b8] sm:$0xff] }
 0x11e   : > { %v6875_v30 = vpop.eup %6874  ;;  %5470 = vst [vmem:[%s8733_s17 + $0x6a0] sm:$0xff] %v4446_v21  ;;  %v4448_v31 = vadd.f32 0.5, %v3424_v22  ;;  %v3426_v32 = vmul.f32 0.5, %v6873_v25  ;;  %6900 = vtanh.f32 %v1392_v13  ;;  %v1407_v24 = vmul.f32 0.5, %v383_v10  ;;  %v386_v25 = vld [vmem:[%s8700_s30 + $0x7c0] sm:$0xff] }
 0x11f   : > { %v6877_v35 = vpop.eup %6876  ;;  %5471 = vst [vmem:[%s8733_s17 + $0x6a8] sm:$0xff] %v4447_v26  ;;  %v4449_v36 = vadd.f32 0.5, %v3425_v27  ;;  %v3427_v37 = vmul.f32 0.5, %v6875_v30  ;;  %6902 = vtanh.f32 %v1393_v18  ;;  %v1408_v29 = vmul.f32 0.5, %v384_v15  ;;  %v387_v30 = vld [vmem:[%s8700_s30 + $0x7c8] sm:$0xff] }
 0x120   : > { %v6879_v40 = vpop.eup %6878  ;;  %5472 = vst [vmem:[%s8733_s17 + $0x6b0] sm:$0xff] %v4448_v31  ;;  %v4450_v41 = vadd.f32 0.5, %v3426_v32  ;;  %v3428_v42 = vmul.f32 0.5, %v6877_v35  ;;  %6904 = vtanh.f32 %v1394_v23  ;;  %v1409_v34 = vmul.f32 0.5, %v385_v20  ;;  %v388_v35 = vld [vmem:[%s8700_s30 + $0x7d0] sm:$0xff] }
 0x121   : > { %v6881_v45 = vpop.eup %6880  ;;  %5473 = vst [vmem:[%s8733_s17 + $0x6b8] sm:$0xff] %v4449_v36  ;;  %v4451_v46 = vadd.f32 0.5, %v3427_v37  ;;  %v3429_v47 = vmul.f32 0.5, %v6879_v40  ;;  %6906 = vtanh.f32 %v1395_v28  ;;  %v1410_v39 = vmul.f32 0.5, %v386_v25  ;;  %v389_v40 = vld [vmem:[%s8700_s30 + $0x7d8] sm:$0xff] }
 0x122   : > { %v6883_v50 = vpop.eup %6882  ;;  %5474 = vst [vmem:[%s8733_s17 + $0x6c0] sm:$0xff] %v4450_v41  ;;  %v4452_v51 = vadd.f32 0.5, %v3428_v42  ;;  %v3430_v52 = vmul.f32 0.5, %v6881_v45  ;;  %6908 = vtanh.f32 %v1396_v33  ;;  %v1411_v44 = vmul.f32 0.5, %v387_v30  ;;  %v390_v45 = vld [vmem:[%s8700_s30 + $0x7e0] sm:$0xff] }
 0x123   : > { %v6885_v55 = vpop.eup %6884  ;;  %5475 = vst [vmem:[%s8733_s17 + $0x6c8] sm:$0xff] %v4451_v46  ;;  %v4453_v56 = vadd.f32 0.5, %v3429_v47  ;;  %v3431_v57 = vmul.f32 0.5, %v6883_v50  ;;  %6910 = vtanh.f32 %v1397_v38  ;;  %v1412_v49 = vmul.f32 0.5, %v388_v35  ;;  %v391_v50 = vld [vmem:[%s8700_s30 + $0x7e8] sm:$0xff] }
 0x124   : > { %v6887_v60 = vpop.eup %6886  ;;  %5476 = vst [vmem:[%s8733_s17 + $0x6d0] sm:$0xff] %v4452_v51  ;;  %v4454_v61 = vadd.f32 0.5, %v3430_v52  ;;  %v3432_v62 = vmul.f32 0.5, %v6885_v55  ;;  %6912 = vtanh.f32 %v1398_v43  ;;  %v1413_v54 = vmul.f32 0.5, %v389_v40  ;;  %v392_v55 = vld [vmem:[%s8700_s30 + $0x7f0] sm:$0xff] }
 0x125   : > { %v6889_v1 = vpop.eup %6888  ;;  %5477 = vst [vmem:[%s8733_s17 + $0x6d8] sm:$0xff] %v4453_v56  ;;  %v4455_v2 = vadd.f32 0.5, %v3431_v57  ;;  %v3433_v3 = vmul.f32 0.5, %v6887_v60  ;;  %6914 = vtanh.f32 %v1399_v48  ;;  %v1414_v59 = vmul.f32 0.5, %v390_v45  ;;  %v393_v60 = vld [vmem:[%s8700_s30 + $0x7f8] sm:$0xff] }
 0x126   : > { %v6891_v6 = vpop.eup %6890  ;;  %5478 = vst [vmem:[%s8733_s17 + $0x6e0] sm:$0xff] %v4454_v61  ;;  %v4456_v7 = vadd.f32 0.5, %v3432_v62  ;;  %v3434_v8 = vmul.f32 0.5, %v6889_v1  ;;  %6916 = vtanh.f32 %v1400_v53  ;;  %v1415_v0 = vmul.f32 0.5, %v391_v50  ;;  %v394_v1 = vld [vmem:[%s8700_s30 + $0x800] sm:$0xff] }
 0x127   : > { %v6893_v11 = vpop.eup %6892  ;;  %5479 = vst [vmem:[%s8733_s17 + $0x6e8] sm:$0xff] %v4455_v2  ;;  %v4457_v12 = vadd.f32 0.5, %v3433_v3  ;;  %v3435_v13 = vmul.f32 0.5, %v6891_v6  ;;  %6918 = vtanh.f32 %v1401_v58  ;;  %v1416_v5 = vmul.f32 0.5, %v392_v55  ;;  %v395_v6 = vld [vmem:[%s8700_s30 + $0x808] sm:$0xff] }
 0x128   : > { %v6895_v16 = vpop.eup %6894  ;;  %5480 = vst [vmem:[%s8733_s17 + $0x6f0] sm:$0xff] %v4456_v7  ;;  %v4458_v17 = vadd.f32 0.5, %v3434_v8  ;;  %v3436_v18 = vmul.f32 0.5, %v6893_v11  ;;  %6920 = vtanh.f32 %v1402_v63  ;;  %v1417_v10 = vmul.f32 0.5, %v393_v60  ;;  %v396_v11 = vld [vmem:[%s8700_s30 + $0x810] sm:$0xff] }
 0x129   : > { %v6897_v21 = vpop.eup %6896  ;;  %5481 = vst [vmem:[%s8733_s17 + $0x6f8] sm:$0xff] %v4457_v12  ;;  %v4459_v22 = vadd.f32 0.5, %v3435_v13  ;;  %v3437_v23 = vmul.f32 0.5, %v6895_v16  ;;  %6922 = vtanh.f32 %v1403_v4  ;;  %v1418_v15 = vmul.f32 0.5, %v394_v1  ;;  %v397_v16 = vld [vmem:[%s8700_s30 + $0x818] sm:$0xff] }
 0x12a   : > { %v6899_v26 = vpop.eup %6898  ;;  %5482 = vst [vmem:[%s8733_s17 + $0x700] sm:$0xff] %v4458_v17  ;;  %v4460_v27 = vadd.f32 0.5, %v3436_v18  ;;  %v3438_v28 = vmul.f32 0.5, %v6897_v21  ;;  %6924 = vtanh.f32 %v1404_v9  ;;  %v1419_v20 = vmul.f32 0.5, %v395_v6  ;;  %v398_v21 = vld [vmem:[%s8700_s30 + $0x820] sm:$0xff] }
 0x12b   : > { %v6901_v31 = vpop.eup %6900  ;;  %5483 = vst [vmem:[%s8733_s17 + $0x708] sm:$0xff] %v4459_v22  ;;  %v4461_v32 = vadd.f32 0.5, %v3437_v23  ;;  %v3439_v33 = vmul.f32 0.5, %v6899_v26  ;;  %6926 = vtanh.f32 %v1405_v14  ;;  %v1420_v25 = vmul.f32 0.5, %v396_v11  ;;  %v399_v26 = vld [vmem:[%s8700_s30 + $0x828] sm:$0xff] }
 0x12c   : > { %v6903_v36 = vpop.eup %6902  ;;  %5484 = vst [vmem:[%s8733_s17 + $0x710] sm:$0xff] %v4460_v27  ;;  %v4462_v37 = vadd.f32 0.5, %v3438_v28  ;;  %v3440_v38 = vmul.f32 0.5, %v6901_v31  ;;  %6928 = vtanh.f32 %v1406_v19  ;;  %v1421_v30 = vmul.f32 0.5, %v397_v16  ;;  %v400_v31 = vld [vmem:[%s8700_s30 + $0x830] sm:$0xff] }
 0x12d   : > { %v6905_v41 = vpop.eup %6904  ;;  %5485 = vst [vmem:[%s8733_s17 + $0x718] sm:$0xff] %v4461_v32  ;;  %v4463_v42 = vadd.f32 0.5, %v3439_v33  ;;  %v3441_v43 = vmul.f32 0.5, %v6903_v36  ;;  %6930 = vtanh.f32 %v1407_v24  ;;  %v1422_v35 = vmul.f32 0.5, %v398_v21  ;;  %v401_v36 = vld [vmem:[%s8700_s30 + $0x838] sm:$0xff] }
 0x12e   : > { %v6907_v46 = vpop.eup %6906  ;;  %5486 = vst [vmem:[%s8733_s17 + $0x720] sm:$0xff] %v4462_v37  ;;  %v4464_v47 = vadd.f32 0.5, %v3440_v38  ;;  %v3442_v48 = vmul.f32 0.5, %v6905_v41  ;;  %6932 = vtanh.f32 %v1408_v29  ;;  %v1423_v40 = vmul.f32 0.5, %v399_v26  ;;  %v402_v41 = vld [vmem:[%s8700_s30 + $0x840] sm:$0xff] }
 0x12f   : > { %v6909_v51 = vpop.eup %6908  ;;  %5487 = vst [vmem:[%s8733_s17 + $0x728] sm:$0xff] %v4463_v42  ;;  %v4465_v52 = vadd.f32 0.5, %v3441_v43  ;;  %v3443_v53 = vmul.f32 0.5, %v6907_v46  ;;  %6934 = vtanh.f32 %v1409_v34  ;;  %v1424_v45 = vmul.f32 0.5, %v400_v31  ;;  %v403_v46 = vld [vmem:[%s8700_s30 + $0x848] sm:$0xff] }
 0x130   : > { %v6911_v56 = vpop.eup %6910  ;;  %5488 = vst [vmem:[%s8733_s17 + $0x730] sm:$0xff] %v4464_v47  ;;  %v4466_v57 = vadd.f32 0.5, %v3442_v48  ;;  %v3444_v58 = vmul.f32 0.5, %v6909_v51  ;;  %6936 = vtanh.f32 %v1410_v39  ;;  %v1425_v50 = vmul.f32 0.5, %v401_v36  ;;  %v404_v51 = vld [vmem:[%s8700_s30 + $0x850] sm:$0xff] }
 0x131   : > { %v6913_v61 = vpop.eup %6912  ;;  %5489 = vst [vmem:[%s8733_s17 + $0x738] sm:$0xff] %v4465_v52  ;;  %v4467_v62 = vadd.f32 0.5, %v3443_v53  ;;  %v3445_v63 = vmul.f32 0.5, %v6911_v56  ;;  %6938 = vtanh.f32 %v1411_v44  ;;  %v1426_v55 = vmul.f32 0.5, %v402_v41  ;;  %v405_v56 = vld [vmem:[%s8700_s30 + $0x858] sm:$0xff] }
 0x132   : > { %v6915_v2 = vpop.eup %6914  ;;  %5490 = vst [vmem:[%s8733_s17 + $0x740] sm:$0xff] %v4466_v57  ;;  %v4468_v3 = vadd.f32 0.5, %v3444_v58  ;;  %v3446_v4 = vmul.f32 0.5, %v6913_v61  ;;  %6940 = vtanh.f32 %v1412_v49  ;;  %v1427_v60 = vmul.f32 0.5, %v403_v46  ;;  %v406_v61 = vld [vmem:[%s8700_s30 + $0x860] sm:$0xff] }
 0x133   : > { %v6917_v7 = vpop.eup %6916  ;;  %5491 = vst [vmem:[%s8733_s17 + $0x748] sm:$0xff] %v4467_v62  ;;  %v4469_v8 = vadd.f32 0.5, %v3445_v63  ;;  %v3447_v9 = vmul.f32 0.5, %v6915_v2  ;;  %6942 = vtanh.f32 %v1413_v54  ;;  %v1428_v1 = vmul.f32 0.5, %v404_v51  ;;  %v407_v2 = vld [vmem:[%s8700_s30 + $0x868] sm:$0xff] }
 0x134   : > { %v6919_v12 = vpop.eup %6918  ;;  %5492 = vst [vmem:[%s8733_s17 + $0x750] sm:$0xff] %v4468_v3  ;;  %v4470_v13 = vadd.f32 0.5, %v3446_v4  ;;  %v3448_v14 = vmul.f32 0.5, %v6917_v7  ;;  %6944 = vtanh.f32 %v1414_v59  ;;  %v1429_v6 = vmul.f32 0.5, %v405_v56  ;;  %v408_v7 = vld [vmem:[%s8700_s30 + $0x870] sm:$0xff] }
 0x135   : > { %v6921_v17 = vpop.eup %6920  ;;  %5493 = vst [vmem:[%s8733_s17 + $0x758] sm:$0xff] %v4469_v8  ;;  %v4471_v18 = vadd.f32 0.5, %v3447_v9  ;;  %v3449_v19 = vmul.f32 0.5, %v6919_v12  ;;  %6946 = vtanh.f32 %v1415_v0  ;;  %v1430_v11 = vmul.f32 0.5, %v406_v61  ;;  %v409_v12 = vld [vmem:[%s8700_s30 + $0x878] sm:$0xff] }
 0x136   : > { %v6923_v22 = vpop.eup %6922  ;;  %5494 = vst [vmem:[%s8733_s17 + $0x760] sm:$0xff] %v4470_v13  ;;  %v4472_v23 = vadd.f32 0.5, %v3448_v14  ;;  %v3450_v24 = vmul.f32 0.5, %v6921_v17  ;;  %6948 = vtanh.f32 %v1416_v5  ;;  %v1431_v16 = vmul.f32 0.5, %v407_v2  ;;  %v410_v17 = vld [vmem:[%s8700_s30 + $0x880] sm:$0xff] }
 0x137   : > { %v6925_v27 = vpop.eup %6924  ;;  %5495 = vst [vmem:[%s8733_s17 + $0x768] sm:$0xff] %v4471_v18  ;;  %v4473_v28 = vadd.f32 0.5, %v3449_v19  ;;  %v3451_v29 = vmul.f32 0.5, %v6923_v22  ;;  %6950 = vtanh.f32 %v1417_v10  ;;  %v1432_v21 = vmul.f32 0.5, %v408_v7  ;;  %v411_v22 = vld [vmem:[%s8700_s30 + $0x888] sm:$0xff] }
 0x138   : > { %v6927_v32 = vpop.eup %6926  ;;  %5496 = vst [vmem:[%s8733_s17 + $0x770] sm:$0xff] %v4472_v23  ;;  %v4474_v33 = vadd.f32 0.5, %v3450_v24  ;;  %v3452_v34 = vmul.f32 0.5, %v6925_v27  ;;  %6952 = vtanh.f32 %v1418_v15  ;;  %v1433_v26 = vmul.f32 0.5, %v409_v12  ;;  %v412_v27 = vld [vmem:[%s8700_s30 + $0x890] sm:$0xff] }
 0x139   : > { %v6929_v37 = vpop.eup %6928  ;;  %5497 = vst [vmem:[%s8733_s17 + $0x778] sm:$0xff] %v4473_v28  ;;  %v4475_v38 = vadd.f32 0.5, %v3451_v29  ;;  %v3453_v39 = vmul.f32 0.5, %v6927_v32  ;;  %6954 = vtanh.f32 %v1419_v20  ;;  %v1434_v31 = vmul.f32 0.5, %v410_v17  ;;  %v413_v32 = vld [vmem:[%s8700_s30 + $0x898] sm:$0xff] }
 0x13a   : > { %v6931_v42 = vpop.eup %6930  ;;  %5498 = vst [vmem:[%s8733_s17 + $0x780] sm:$0xff] %v4474_v33  ;;  %v4476_v43 = vadd.f32 0.5, %v3452_v34  ;;  %v3454_v44 = vmul.f32 0.5, %v6929_v37  ;;  %6956 = vtanh.f32 %v1420_v25  ;;  %v1435_v36 = vmul.f32 0.5, %v411_v22  ;;  %v414_v37 = vld [vmem:[%s8700_s30 + $0x8a0] sm:$0xff] }
 0x13b   : > { %v6933_v47 = vpop.eup %6932  ;;  %5499 = vst [vmem:[%s8733_s17 + $0x788] sm:$0xff] %v4475_v38  ;;  %v4477_v48 = vadd.f32 0.5, %v3453_v39  ;;  %v3455_v49 = vmul.f32 0.5, %v6931_v42  ;;  %6958 = vtanh.f32 %v1421_v30  ;;  %v1436_v41 = vmul.f32 0.5, %v412_v27  ;;  %v415_v42 = vld [vmem:[%s8700_s30 + $0x8a8] sm:$0xff] }
 0x13c   : > { %v6935_v52 = vpop.eup %6934  ;;  %5500 = vst [vmem:[%s8733_s17 + $0x790] sm:$0xff] %v4476_v43  ;;  %v4478_v53 = vadd.f32 0.5, %v3454_v44  ;;  %v3456_v54 = vmul.f32 0.5, %v6933_v47  ;;  %6960 = vtanh.f32 %v1422_v35  ;;  %v1437_v46 = vmul.f32 0.5, %v413_v32  ;;  %v416_v47 = vld [vmem:[%s8700_s30 + $0x8b0] sm:$0xff] }
 0x13d   : > { %v6937_v57 = vpop.eup %6936  ;;  %5501 = vst [vmem:[%s8733_s17 + $0x798] sm:$0xff] %v4477_v48  ;;  %v4479_v58 = vadd.f32 0.5, %v3455_v49  ;;  %v3457_v59 = vmul.f32 0.5, %v6935_v52  ;;  %6962 = vtanh.f32 %v1423_v40  ;;  %v1438_v51 = vmul.f32 0.5, %v414_v37  ;;  %v417_v52 = vld [vmem:[%s8700_s30 + $0x8b8] sm:$0xff] }
 0x13e   : > { %v6939_v62 = vpop.eup %6938  ;;  %5502 = vst [vmem:[%s8733_s17 + $0x7a0] sm:$0xff] %v4478_v53  ;;  %v4480_v63 = vadd.f32 0.5, %v3456_v54  ;;  %v3458_v0 = vmul.f32 0.5, %v6937_v57  ;;  %6964 = vtanh.f32 %v1424_v45  ;;  %v1439_v56 = vmul.f32 0.5, %v415_v42  ;;  %v418_v57 = vld [vmem:[%s8700_s30 + $0x8c0] sm:$0xff] }
 0x13f   : > { %v6941_v3 = vpop.eup %6940  ;;  %5503 = vst [vmem:[%s8733_s17 + $0x7a8] sm:$0xff] %v4479_v58  ;;  %v4481_v4 = vadd.f32 0.5, %v3457_v59  ;;  %v3459_v5 = vmul.f32 0.5, %v6939_v62  ;;  %6966 = vtanh.f32 %v1425_v50  ;;  %v1440_v61 = vmul.f32 0.5, %v416_v47  ;;  %v419_v62 = vld [vmem:[%s8700_s30 + $0x8c8] sm:$0xff] }
 0x140   : > { %v6943_v8 = vpop.eup %6942  ;;  %5504 = vst [vmem:[%s8733_s17 + $0x7b0] sm:$0xff] %v4480_v63  ;;  %v4482_v9 = vadd.f32 0.5, %v3458_v0  ;;  %v3460_v10 = vmul.f32 0.5, %v6941_v3  ;;  %6968 = vtanh.f32 %v1426_v55  ;;  %v1441_v2 = vmul.f32 0.5, %v417_v52  ;;  %v420_v3 = vld [vmem:[%s8700_s30 + $0x8d0] sm:$0xff] }
 0x141   : > { %v6945_v13 = vpop.eup %6944  ;;  %5505 = vst [vmem:[%s8733_s17 + $0x7b8] sm:$0xff] %v4481_v4  ;;  %v4483_v14 = vadd.f32 0.5, %v3459_v5  ;;  %v3461_v15 = vmul.f32 0.5, %v6943_v8  ;;  %6970 = vtanh.f32 %v1427_v60  ;;  %v1442_v7 = vmul.f32 0.5, %v418_v57  ;;  %v421_v8 = vld [vmem:[%s8700_s30 + $0x8d8] sm:$0xff] }
 0x142   : > { %v6947_v18 = vpop.eup %6946  ;;  %5506 = vst [vmem:[%s8733_s17 + $0x7c0] sm:$0xff] %v4482_v9  ;;  %v4484_v19 = vadd.f32 0.5, %v3460_v10  ;;  %v3462_v20 = vmul.f32 0.5, %v6945_v13  ;;  %6972 = vtanh.f32 %v1428_v1  ;;  %v1443_v12 = vmul.f32 0.5, %v419_v62  ;;  %v422_v13 = vld [vmem:[%s8700_s30 + $0x8e0] sm:$0xff] }
 0x143   : > { %v6949_v23 = vpop.eup %6948  ;;  %5507 = vst [vmem:[%s8733_s17 + $0x7c8] sm:$0xff] %v4483_v14  ;;  %v4485_v24 = vadd.f32 0.5, %v3461_v15  ;;  %v3463_v25 = vmul.f32 0.5, %v6947_v18  ;;  %6974 = vtanh.f32 %v1429_v6  ;;  %v1444_v17 = vmul.f32 0.5, %v420_v3  ;;  %v423_v18 = vld [vmem:[%s8700_s30 + $0x8e8] sm:$0xff] }
 0x144   : > { %v6951_v28 = vpop.eup %6950  ;;  %5508 = vst [vmem:[%s8733_s17 + $0x7d0] sm:$0xff] %v4484_v19  ;;  %v4486_v29 = vadd.f32 0.5, %v3462_v20  ;;  %v3464_v30 = vmul.f32 0.5, %v6949_v23  ;;  %6976 = vtanh.f32 %v1430_v11  ;;  %v1445_v22 = vmul.f32 0.5, %v421_v8  ;;  %v424_v23 = vld [vmem:[%s8700_s30 + $0x8f0] sm:$0xff] }
 0x145   : > { %v6953_v33 = vpop.eup %6952  ;;  %5509 = vst [vmem:[%s8733_s17 + $0x7d8] sm:$0xff] %v4485_v24  ;;  %v4487_v34 = vadd.f32 0.5, %v3463_v25  ;;  %v3465_v35 = vmul.f32 0.5, %v6951_v28  ;;  %6978 = vtanh.f32 %v1431_v16  ;;  %v1446_v27 = vmul.f32 0.5, %v422_v13  ;;  %v425_v28 = vld [vmem:[%s8700_s30 + $0x8f8] sm:$0xff] }
 0x146   : > { %v6955_v38 = vpop.eup %6954  ;;  %5510 = vst [vmem:[%s8733_s17 + $0x7e0] sm:$0xff] %v4486_v29  ;;  %v4488_v39 = vadd.f32 0.5, %v3464_v30  ;;  %v3466_v40 = vmul.f32 0.5, %v6953_v33  ;;  %6980 = vtanh.f32 %v1432_v21  ;;  %v1447_v32 = vmul.f32 0.5, %v423_v18  ;;  %v426_v33 = vld [vmem:[%s8700_s30 + $0x900] sm:$0xff] }
 0x147   : > { %v6957_v43 = vpop.eup %6956  ;;  %5511 = vst [vmem:[%s8733_s17 + $0x7e8] sm:$0xff] %v4487_v34  ;;  %v4489_v44 = vadd.f32 0.5, %v3465_v35  ;;  %v3467_v45 = vmul.f32 0.5, %v6955_v38  ;;  %6982 = vtanh.f32 %v1433_v26  ;;  %v1448_v37 = vmul.f32 0.5, %v424_v23  ;;  %v427_v38 = vld [vmem:[%s8700_s30 + $0x908] sm:$0xff] }
 0x148   : > { %v6959_v48 = vpop.eup %6958  ;;  %5512 = vst [vmem:[%s8733_s17 + $0x7f0] sm:$0xff] %v4488_v39  ;;  %v4490_v49 = vadd.f32 0.5, %v3466_v40  ;;  %v3468_v50 = vmul.f32 0.5, %v6957_v43  ;;  %6984 = vtanh.f32 %v1434_v31  ;;  %v1449_v42 = vmul.f32 0.5, %v425_v28  ;;  %v428_v43 = vld [vmem:[%s8700_s30 + $0x910] sm:$0xff] }
 0x149   : > { %v6961_v53 = vpop.eup %6960  ;;  %5513 = vst [vmem:[%s8733_s17 + $0x7f8] sm:$0xff] %v4489_v44  ;;  %v4491_v54 = vadd.f32 0.5, %v3467_v45  ;;  %v3469_v55 = vmul.f32 0.5, %v6959_v48  ;;  %6986 = vtanh.f32 %v1435_v36  ;;  %v1450_v47 = vmul.f32 0.5, %v426_v33  ;;  %v429_v48 = vld [vmem:[%s8700_s30 + $0x918] sm:$0xff] }
 0x14a   : > { %v6963_v58 = vpop.eup %6962  ;;  %5514 = vst [vmem:[%s8733_s17 + $0x800] sm:$0xff] %v4490_v49  ;;  %v4492_v59 = vadd.f32 0.5, %v3468_v50  ;;  %v3470_v60 = vmul.f32 0.5, %v6961_v53  ;;  %6988 = vtanh.f32 %v1436_v41  ;;  %v1451_v52 = vmul.f32 0.5, %v427_v38  ;;  %v430_v53 = vld [vmem:[%s8700_s30 + $0x920] sm:$0xff] }
 0x14b   : > { %v6965_v63 = vpop.eup %6964  ;;  %5515 = vst [vmem:[%s8733_s17 + $0x808] sm:$0xff] %v4491_v54  ;;  %v4493_v0 = vadd.f32 0.5, %v3469_v55  ;;  %v3471_v1 = vmul.f32 0.5, %v6963_v58  ;;  %6990 = vtanh.f32 %v1437_v46  ;;  %v1452_v57 = vmul.f32 0.5, %v428_v43  ;;  %v431_v58 = vld [vmem:[%s8700_s30 + $0x928] sm:$0xff] }
 0x14c   : > { %v6967_v4 = vpop.eup %6966  ;;  %5516 = vst [vmem:[%s8733_s17 + $0x810] sm:$0xff] %v4492_v59  ;;  %v4494_v5 = vadd.f32 0.5, %v3470_v60  ;;  %v3472_v6 = vmul.f32 0.5, %v6965_v63  ;;  %6992 = vtanh.f32 %v1438_v51  ;;  %v1453_v62 = vmul.f32 0.5, %v429_v48  ;;  %v432_v63 = vld [vmem:[%s8700_s30 + $0x930] sm:$0xff] }
 0x14d   : > { %v6969_v9 = vpop.eup %6968  ;;  %5517 = vst [vmem:[%s8733_s17 + $0x818] sm:$0xff] %v4493_v0  ;;  %v4495_v10 = vadd.f32 0.5, %v3471_v1  ;;  %v3473_v11 = vmul.f32 0.5, %v6967_v4  ;;  %6994 = vtanh.f32 %v1439_v56  ;;  %v1454_v3 = vmul.f32 0.5, %v430_v53  ;;  %v433_v4 = vld [vmem:[%s8700_s30 + $0x938] sm:$0xff] }
 0x14e   : > { %v6971_v14 = vpop.eup %6970  ;;  %5518 = vst [vmem:[%s8733_s17 + $0x820] sm:$0xff] %v4494_v5  ;;  %v4496_v15 = vadd.f32 0.5, %v3472_v6  ;;  %v3474_v16 = vmul.f32 0.5, %v6969_v9  ;;  %6996 = vtanh.f32 %v1440_v61  ;;  %v1455_v8 = vmul.f32 0.5, %v431_v58  ;;  %v434_v9 = vld [vmem:[%s8700_s30 + $0x940] sm:$0xff] }
 0x14f   : > { %v6973_v19 = vpop.eup %6972  ;;  %5519 = vst [vmem:[%s8733_s17 + $0x828] sm:$0xff] %v4495_v10  ;;  %v4497_v20 = vadd.f32 0.5, %v3473_v11  ;;  %v3475_v21 = vmul.f32 0.5, %v6971_v14  ;;  %6998 = vtanh.f32 %v1441_v2  ;;  %v1456_v13 = vmul.f32 0.5, %v432_v63  ;;  %v435_v14 = vld [vmem:[%s8700_s30 + $0x948] sm:$0xff] }
 0x150   : > { %v6975_v24 = vpop.eup %6974  ;;  %5520 = vst [vmem:[%s8733_s17 + $0x830] sm:$0xff] %v4496_v15  ;;  %v4498_v25 = vadd.f32 0.5, %v3474_v16  ;;  %v3476_v26 = vmul.f32 0.5, %v6973_v19  ;;  %7000 = vtanh.f32 %v1442_v7  ;;  %v1457_v18 = vmul.f32 0.5, %v433_v4  ;;  %v436_v19 = vld [vmem:[%s8700_s30 + $0x950] sm:$0xff] }
 0x151   : > { %v6977_v29 = vpop.eup %6976  ;;  %5521 = vst [vmem:[%s8733_s17 + $0x838] sm:$0xff] %v4497_v20  ;;  %v4499_v30 = vadd.f32 0.5, %v3475_v21  ;;  %v3477_v31 = vmul.f32 0.5, %v6975_v24  ;;  %7002 = vtanh.f32 %v1443_v12  ;;  %v1458_v23 = vmul.f32 0.5, %v434_v9  ;;  %v437_v24 = vld [vmem:[%s8700_s30 + $0x958] sm:$0xff] }
 0x152   : > { %v6979_v34 = vpop.eup %6978  ;;  %5522 = vst [vmem:[%s8733_s17 + $0x840] sm:$0xff] %v4498_v25  ;;  %v4500_v35 = vadd.f32 0.5, %v3476_v26  ;;  %v3478_v36 = vmul.f32 0.5, %v6977_v29  ;;  %7004 = vtanh.f32 %v1444_v17  ;;  %v1459_v28 = vmul.f32 0.5, %v435_v14  ;;  %v438_v29 = vld [vmem:[%s8700_s30 + $0x960] sm:$0xff] }
 0x153   : > { %v6981_v39 = vpop.eup %6980  ;;  %5523 = vst [vmem:[%s8733_s17 + $0x848] sm:$0xff] %v4499_v30  ;;  %v4501_v40 = vadd.f32 0.5, %v3477_v31  ;;  %v3479_v41 = vmul.f32 0.5, %v6979_v34  ;;  %7006 = vtanh.f32 %v1445_v22  ;;  %v1460_v33 = vmul.f32 0.5, %v436_v19  ;;  %v439_v34 = vld [vmem:[%s8700_s30 + $0x968] sm:$0xff] }
 0x154   : > { %v6983_v44 = vpop.eup %6982  ;;  %5524 = vst [vmem:[%s8733_s17 + $0x850] sm:$0xff] %v4500_v35  ;;  %v4502_v45 = vadd.f32 0.5, %v3478_v36  ;;  %v3480_v46 = vmul.f32 0.5, %v6981_v39  ;;  %7008 = vtanh.f32 %v1446_v27  ;;  %v1461_v38 = vmul.f32 0.5, %v437_v24  ;;  %v440_v39 = vld [vmem:[%s8700_s30 + $0x970] sm:$0xff] }
 0x155   : > { %v6985_v49 = vpop.eup %6984  ;;  %5525 = vst [vmem:[%s8733_s17 + $0x858] sm:$0xff] %v4501_v40  ;;  %v4503_v50 = vadd.f32 0.5, %v3479_v41  ;;  %v3481_v51 = vmul.f32 0.5, %v6983_v44  ;;  %7010 = vtanh.f32 %v1447_v32  ;;  %v1462_v43 = vmul.f32 0.5, %v438_v29  ;;  %v441_v44 = vld [vmem:[%s8700_s30 + $0x978] sm:$0xff] }
 0x156   : > { %v6987_v54 = vpop.eup %6986  ;;  %5526 = vst [vmem:[%s8733_s17 + $0x860] sm:$0xff] %v4502_v45  ;;  %v4504_v55 = vadd.f32 0.5, %v3480_v46  ;;  %v3482_v56 = vmul.f32 0.5, %v6985_v49  ;;  %7012 = vtanh.f32 %v1448_v37  ;;  %v1463_v48 = vmul.f32 0.5, %v439_v34  ;;  %v442_v49 = vld [vmem:[%s8700_s30 + $0x980] sm:$0xff] }
 0x157   : > { %v6989_v59 = vpop.eup %6988  ;;  %5527 = vst [vmem:[%s8733_s17 + $0x868] sm:$0xff] %v4503_v50  ;;  %v4505_v60 = vadd.f32 0.5, %v3481_v51  ;;  %v3483_v61 = vmul.f32 0.5, %v6987_v54  ;;  %7014 = vtanh.f32 %v1449_v42  ;;  %v1464_v53 = vmul.f32 0.5, %v440_v39  ;;  %v443_v54 = vld [vmem:[%s8700_s30 + $0x988] sm:$0xff] }
 0x158   : > { %v6991_v0 = vpop.eup %6990  ;;  %5528 = vst [vmem:[%s8733_s17 + $0x870] sm:$0xff] %v4504_v55  ;;  %v4506_v1 = vadd.f32 0.5, %v3482_v56  ;;  %v3484_v2 = vmul.f32 0.5, %v6989_v59  ;;  %7016 = vtanh.f32 %v1450_v47  ;;  %v1465_v58 = vmul.f32 0.5, %v441_v44  ;;  %v444_v59 = vld [vmem:[%s8700_s30 + $0x990] sm:$0xff] }
 0x159   : > { %v6993_v5 = vpop.eup %6992  ;;  %5529 = vst [vmem:[%s8733_s17 + $0x878] sm:$0xff] %v4505_v60  ;;  %v4507_v6 = vadd.f32 0.5, %v3483_v61  ;;  %v3485_v7 = vmul.f32 0.5, %v6991_v0  ;;  %7018 = vtanh.f32 %v1451_v52  ;;  %v1466_v63 = vmul.f32 0.5, %v442_v49  ;;  %v445_v0 = vld [vmem:[%s8700_s30 + $0x998] sm:$0xff] }
 0x15a   : > { %v6995_v10 = vpop.eup %6994  ;;  %5530 = vst [vmem:[%s8733_s17 + $0x880] sm:$0xff] %v4506_v1  ;;  %v4508_v11 = vadd.f32 0.5, %v3484_v2  ;;  %v3486_v12 = vmul.f32 0.5, %v6993_v5  ;;  %7020 = vtanh.f32 %v1452_v57  ;;  %v1467_v4 = vmul.f32 0.5, %v443_v54  ;;  %v446_v5 = vld [vmem:[%s8700_s30 + $0x9a0] sm:$0xff] }
 0x15b   : > { %v6997_v15 = vpop.eup %6996  ;;  %5531 = vst [vmem:[%s8733_s17 + $0x888] sm:$0xff] %v4507_v6  ;;  %v4509_v16 = vadd.f32 0.5, %v3485_v7  ;;  %v3487_v17 = vmul.f32 0.5, %v6995_v10  ;;  %7022 = vtanh.f32 %v1453_v62  ;;  %v1468_v9 = vmul.f32 0.5, %v444_v59  ;;  %v447_v10 = vld [vmem:[%s8700_s30 + $0x9a8] sm:$0xff] }
 0x15c   : > { %v6999_v20 = vpop.eup %6998  ;;  %5532 = vst [vmem:[%s8733_s17 + $0x890] sm:$0xff] %v4508_v11  ;;  %v4510_v21 = vadd.f32 0.5, %v3486_v12  ;;  %v3488_v22 = vmul.f32 0.5, %v6997_v15  ;;  %7024 = vtanh.f32 %v1454_v3  ;;  %v1469_v14 = vmul.f32 0.5, %v445_v0  ;;  %v448_v15 = vld [vmem:[%s8700_s30 + $0x9b0] sm:$0xff] }
 0x15d   : > { %v7001_v25 = vpop.eup %7000  ;;  %5533 = vst [vmem:[%s8733_s17 + $0x898] sm:$0xff] %v4509_v16  ;;  %v4511_v26 = vadd.f32 0.5, %v3487_v17  ;;  %v3489_v27 = vmul.f32 0.5, %v6999_v20  ;;  %7026 = vtanh.f32 %v1455_v8  ;;  %v1470_v19 = vmul.f32 0.5, %v446_v5  ;;  %v449_v20 = vld [vmem:[%s8700_s30 + $0x9b8] sm:$0xff] }
 0x15e   : > { %v7003_v30 = vpop.eup %7002  ;;  %5534 = vst [vmem:[%s8733_s17 + $0x8a0] sm:$0xff] %v4510_v21  ;;  %v4512_v31 = vadd.f32 0.5, %v3488_v22  ;;  %v3490_v32 = vmul.f32 0.5, %v7001_v25  ;;  %7028 = vtanh.f32 %v1456_v13  ;;  %v1471_v24 = vmul.f32 0.5, %v447_v10  ;;  %v450_v25 = vld [vmem:[%s8700_s30 + $0x9c0] sm:$0xff] }
 0x15f   : > { %v7005_v35 = vpop.eup %7004  ;;  %5535 = vst [vmem:[%s8733_s17 + $0x8a8] sm:$0xff] %v4511_v26  ;;  %v4513_v36 = vadd.f32 0.5, %v3489_v27  ;;  %v3491_v37 = vmul.f32 0.5, %v7003_v30  ;;  %7030 = vtanh.f32 %v1457_v18  ;;  %v1472_v29 = vmul.f32 0.5, %v448_v15  ;;  %v451_v30 = vld [vmem:[%s8700_s30 + $0x9c8] sm:$0xff] }
 0x160   : > { %v7007_v40 = vpop.eup %7006  ;;  %5536 = vst [vmem:[%s8733_s17 + $0x8b0] sm:$0xff] %v4512_v31  ;;  %v4514_v41 = vadd.f32 0.5, %v3490_v32  ;;  %v3492_v42 = vmul.f32 0.5, %v7005_v35  ;;  %7032 = vtanh.f32 %v1458_v23  ;;  %v1473_v34 = vmul.f32 0.5, %v449_v20  ;;  %v452_v35 = vld [vmem:[%s8700_s30 + $0x9d0] sm:$0xff] }
 0x161   : > { %v7009_v45 = vpop.eup %7008  ;;  %5537 = vst [vmem:[%s8733_s17 + $0x8b8] sm:$0xff] %v4513_v36  ;;  %v4515_v46 = vadd.f32 0.5, %v3491_v37  ;;  %v3493_v47 = vmul.f32 0.5, %v7007_v40  ;;  %7034 = vtanh.f32 %v1459_v28  ;;  %v1474_v39 = vmul.f32 0.5, %v450_v25  ;;  %v453_v40 = vld [vmem:[%s8700_s30 + $0x9d8] sm:$0xff] }
 0x162   : > { %v7011_v50 = vpop.eup %7010  ;;  %5538 = vst [vmem:[%s8733_s17 + $0x8c0] sm:$0xff] %v4514_v41  ;;  %v4516_v51 = vadd.f32 0.5, %v3492_v42  ;;  %v3494_v52 = vmul.f32 0.5, %v7009_v45  ;;  %7036 = vtanh.f32 %v1460_v33  ;;  %v1475_v44 = vmul.f32 0.5, %v451_v30  ;;  %v454_v45 = vld [vmem:[%s8700_s30 + $0x9e0] sm:$0xff] }
 0x163   : > { %v7013_v55 = vpop.eup %7012  ;;  %5539 = vst [vmem:[%s8733_s17 + $0x8c8] sm:$0xff] %v4515_v46  ;;  %v4517_v56 = vadd.f32 0.5, %v3493_v47  ;;  %v3495_v57 = vmul.f32 0.5, %v7011_v50  ;;  %7038 = vtanh.f32 %v1461_v38  ;;  %v1476_v49 = vmul.f32 0.5, %v452_v35  ;;  %v455_v50 = vld [vmem:[%s8700_s30 + $0x9e8] sm:$0xff] }
 0x164   : > { %v7015_v60 = vpop.eup %7014  ;;  %5540 = vst [vmem:[%s8733_s17 + $0x8d0] sm:$0xff] %v4516_v51  ;;  %v4518_v61 = vadd.f32 0.5, %v3494_v52  ;;  %v3496_v62 = vmul.f32 0.5, %v7013_v55  ;;  %7040 = vtanh.f32 %v1462_v43  ;;  %v1477_v54 = vmul.f32 0.5, %v453_v40  ;;  %v456_v55 = vld [vmem:[%s8700_s30 + $0x9f0] sm:$0xff] }
 0x165   : > { %v7017_v1 = vpop.eup %7016  ;;  %5541 = vst [vmem:[%s8733_s17 + $0x8d8] sm:$0xff] %v4517_v56  ;;  %v4519_v2 = vadd.f32 0.5, %v3495_v57  ;;  %v3497_v3 = vmul.f32 0.5, %v7015_v60  ;;  %7042 = vtanh.f32 %v1463_v48  ;;  %v1478_v59 = vmul.f32 0.5, %v454_v45  ;;  %v457_v60 = vld [vmem:[%s8700_s30 + $0x9f8] sm:$0xff] }
 0x166   : > { %v7019_v6 = vpop.eup %7018  ;;  %5542 = vst [vmem:[%s8733_s17 + $0x8e0] sm:$0xff] %v4518_v61  ;;  %v4520_v7 = vadd.f32 0.5, %v3496_v62  ;;  %v3498_v8 = vmul.f32 0.5, %v7017_v1  ;;  %7044 = vtanh.f32 %v1464_v53  ;;  %v1479_v0 = vmul.f32 0.5, %v455_v50  ;;  %v458_v1 = vld [vmem:[%s8700_s30 + $0xa00] sm:$0xff] }
 0x167   : > { %v7021_v11 = vpop.eup %7020  ;;  %5543 = vst [vmem:[%s8733_s17 + $0x8e8] sm:$0xff] %v4519_v2  ;;  %v4521_v12 = vadd.f32 0.5, %v3497_v3  ;;  %v3499_v13 = vmul.f32 0.5, %v7019_v6  ;;  %7046 = vtanh.f32 %v1465_v58  ;;  %v1480_v5 = vmul.f32 0.5, %v456_v55  ;;  %v459_v6 = vld [vmem:[%s8700_s30 + $0xa08] sm:$0xff] }
 0x168   : > { %v7023_v16 = vpop.eup %7022  ;;  %5544 = vst [vmem:[%s8733_s17 + $0x8f0] sm:$0xff] %v4520_v7  ;;  %v4522_v17 = vadd.f32 0.5, %v3498_v8  ;;  %v3500_v18 = vmul.f32 0.5, %v7021_v11  ;;  %7048 = vtanh.f32 %v1466_v63  ;;  %v1481_v10 = vmul.f32 0.5, %v457_v60  ;;  %v460_v11 = vld [vmem:[%s8700_s30 + $0xa10] sm:$0xff] }
 0x169   : > { %v7025_v21 = vpop.eup %7024  ;;  %5545 = vst [vmem:[%s8733_s17 + $0x8f8] sm:$0xff] %v4521_v12  ;;  %v4523_v22 = vadd.f32 0.5, %v3499_v13  ;;  %v3501_v23 = vmul.f32 0.5, %v7023_v16  ;;  %7050 = vtanh.f32 %v1467_v4  ;;  %v1482_v15 = vmul.f32 0.5, %v458_v1  ;;  %v461_v16 = vld [vmem:[%s8700_s30 + $0xa18] sm:$0xff] }
 0x16a   : > { %v7027_v26 = vpop.eup %7026  ;;  %5546 = vst [vmem:[%s8733_s17 + $0x900] sm:$0xff] %v4522_v17  ;;  %v4524_v27 = vadd.f32 0.5, %v3500_v18  ;;  %v3502_v28 = vmul.f32 0.5, %v7025_v21  ;;  %7052 = vtanh.f32 %v1468_v9  ;;  %v1483_v20 = vmul.f32 0.5, %v459_v6  ;;  %v462_v21 = vld [vmem:[%s8700_s30 + $0xa20] sm:$0xff] }
 0x16b   : > { %v7029_v31 = vpop.eup %7028  ;;  %5547 = vst [vmem:[%s8733_s17 + $0x908] sm:$0xff] %v4523_v22  ;;  %v4525_v32 = vadd.f32 0.5, %v3501_v23  ;;  %v3503_v33 = vmul.f32 0.5, %v7027_v26  ;;  %7054 = vtanh.f32 %v1469_v14  ;;  %v1484_v25 = vmul.f32 0.5, %v460_v11  ;;  %v463_v26 = vld [vmem:[%s8700_s30 + $0xa28] sm:$0xff] }
 0x16c   : > { %v7031_v36 = vpop.eup %7030  ;;  %5548 = vst [vmem:[%s8733_s17 + $0x910] sm:$0xff] %v4524_v27  ;;  %v4526_v37 = vadd.f32 0.5, %v3502_v28  ;;  %v3504_v38 = vmul.f32 0.5, %v7029_v31  ;;  %7056 = vtanh.f32 %v1470_v19  ;;  %v1485_v30 = vmul.f32 0.5, %v461_v16  ;;  %v464_v31 = vld [vmem:[%s8700_s30 + $0xa30] sm:$0xff] }
 0x16d   : > { %v7033_v41 = vpop.eup %7032  ;;  %5549 = vst [vmem:[%s8733_s17 + $0x918] sm:$0xff] %v4525_v32  ;;  %v4527_v42 = vadd.f32 0.5, %v3503_v33  ;;  %v3505_v43 = vmul.f32 0.5, %v7031_v36  ;;  %7058 = vtanh.f32 %v1471_v24  ;;  %v1486_v35 = vmul.f32 0.5, %v462_v21  ;;  %v465_v36 = vld [vmem:[%s8700_s30 + $0xa38] sm:$0xff] }
 0x16e   : > { %v7035_v46 = vpop.eup %7034  ;;  %5550 = vst [vmem:[%s8733_s17 + $0x920] sm:$0xff] %v4526_v37  ;;  %v4528_v47 = vadd.f32 0.5, %v3504_v38  ;;  %v3506_v48 = vmul.f32 0.5, %v7033_v41  ;;  %7060 = vtanh.f32 %v1472_v29  ;;  %v1487_v40 = vmul.f32 0.5, %v463_v26  ;;  %v466_v41 = vld [vmem:[%s8700_s30 + $0xa40] sm:$0xff] }
 0x16f   : > { %v7037_v51 = vpop.eup %7036  ;;  %5551 = vst [vmem:[%s8733_s17 + $0x928] sm:$0xff] %v4527_v42  ;;  %v4529_v52 = vadd.f32 0.5, %v3505_v43  ;;  %v3507_v53 = vmul.f32 0.5, %v7035_v46  ;;  %7062 = vtanh.f32 %v1473_v34  ;;  %v1488_v45 = vmul.f32 0.5, %v464_v31  ;;  %v467_v46 = vld [vmem:[%s8700_s30 + $0xa48] sm:$0xff] }
 0x170   : > { %v7039_v56 = vpop.eup %7038  ;;  %5552 = vst [vmem:[%s8733_s17 + $0x930] sm:$0xff] %v4528_v47  ;;  %v4530_v57 = vadd.f32 0.5, %v3506_v48  ;;  %v3508_v58 = vmul.f32 0.5, %v7037_v51  ;;  %7064 = vtanh.f32 %v1474_v39  ;;  %v1489_v50 = vmul.f32 0.5, %v465_v36  ;;  %v468_v51 = vld [vmem:[%s8700_s30 + $0xa50] sm:$0xff] }
 0x171   : > { %v7041_v61 = vpop.eup %7040  ;;  %5553 = vst [vmem:[%s8733_s17 + $0x938] sm:$0xff] %v4529_v52  ;;  %v4531_v62 = vadd.f32 0.5, %v3507_v53  ;;  %v3509_v63 = vmul.f32 0.5, %v7039_v56  ;;  %7066 = vtanh.f32 %v1475_v44  ;;  %v1490_v55 = vmul.f32 0.5, %v466_v41  ;;  %v469_v56 = vld [vmem:[%s8700_s30 + $0xa58] sm:$0xff] }
 0x172   : > { %v7043_v2 = vpop.eup %7042  ;;  %5554 = vst [vmem:[%s8733_s17 + $0x940] sm:$0xff] %v4530_v57  ;;  %v4532_v3 = vadd.f32 0.5, %v3508_v58  ;;  %v3510_v4 = vmul.f32 0.5, %v7041_v61  ;;  %7068 = vtanh.f32 %v1476_v49  ;;  %v1491_v60 = vmul.f32 0.5, %v467_v46  ;;  %v470_v61 = vld [vmem:[%s8700_s30 + $0xa60] sm:$0xff] }
 0x173   : > { %v7045_v7 = vpop.eup %7044  ;;  %5555 = vst [vmem:[%s8733_s17 + $0x948] sm:$0xff] %v4531_v62  ;;  %v4533_v8 = vadd.f32 0.5, %v3509_v63  ;;  %v3511_v9 = vmul.f32 0.5, %v7043_v2  ;;  %7070 = vtanh.f32 %v1477_v54  ;;  %v1492_v1 = vmul.f32 0.5, %v468_v51  ;;  %v471_v2 = vld [vmem:[%s8700_s30 + $0xa68] sm:$0xff] }
 0x174   : > { %v7047_v12 = vpop.eup %7046  ;;  %5556 = vst [vmem:[%s8733_s17 + $0x950] sm:$0xff] %v4532_v3  ;;  %v4534_v13 = vadd.f32 0.5, %v3510_v4  ;;  %v3512_v14 = vmul.f32 0.5, %v7045_v7  ;;  %7072 = vtanh.f32 %v1478_v59  ;;  %v1493_v6 = vmul.f32 0.5, %v469_v56  ;;  %v472_v7 = vld [vmem:[%s8700_s30 + $0xa70] sm:$0xff] }
 0x175   : > { %v7049_v17 = vpop.eup %7048  ;;  %5557 = vst [vmem:[%s8733_s17 + $0x958] sm:$0xff] %v4533_v8  ;;  %v4535_v18 = vadd.f32 0.5, %v3511_v9  ;;  %v3513_v19 = vmul.f32 0.5, %v7047_v12  ;;  %7074 = vtanh.f32 %v1479_v0  ;;  %v1494_v11 = vmul.f32 0.5, %v470_v61  ;;  %v473_v12 = vld [vmem:[%s8700_s30 + $0xa78] sm:$0xff] }
 0x176   : > { %v7051_v22 = vpop.eup %7050  ;;  %5558 = vst [vmem:[%s8733_s17 + $0x960] sm:$0xff] %v4534_v13  ;;  %v4536_v23 = vadd.f32 0.5, %v3512_v14  ;;  %v3514_v24 = vmul.f32 0.5, %v7049_v17  ;;  %7076 = vtanh.f32 %v1480_v5  ;;  %v1495_v16 = vmul.f32 0.5, %v471_v2  ;;  %v474_v17 = vld [vmem:[%s8700_s30 + $0xa80] sm:$0xff] }
 0x177   : > { %v7053_v27 = vpop.eup %7052  ;;  %5559 = vst [vmem:[%s8733_s17 + $0x968] sm:$0xff] %v4535_v18  ;;  %v4537_v28 = vadd.f32 0.5, %v3513_v19  ;;  %v3515_v29 = vmul.f32 0.5, %v7051_v22  ;;  %7078 = vtanh.f32 %v1481_v10  ;;  %v1496_v21 = vmul.f32 0.5, %v472_v7  ;;  %v475_v22 = vld [vmem:[%s8700_s30 + $0xa88] sm:$0xff] }
 0x178   : > { %v7055_v32 = vpop.eup %7054  ;;  %5560 = vst [vmem:[%s8733_s17 + $0x970] sm:$0xff] %v4536_v23  ;;  %v4538_v33 = vadd.f32 0.5, %v3514_v24  ;;  %v3516_v34 = vmul.f32 0.5, %v7053_v27  ;;  %7080 = vtanh.f32 %v1482_v15  ;;  %v1497_v26 = vmul.f32 0.5, %v473_v12  ;;  %v476_v27 = vld [vmem:[%s8700_s30 + $0xa90] sm:$0xff] }
 0x179   : > { %v7057_v37 = vpop.eup %7056  ;;  %5561 = vst [vmem:[%s8733_s17 + $0x978] sm:$0xff] %v4537_v28  ;;  %v4539_v38 = vadd.f32 0.5, %v3515_v29  ;;  %v3517_v39 = vmul.f32 0.5, %v7055_v32  ;;  %7082 = vtanh.f32 %v1483_v20  ;;  %v1498_v31 = vmul.f32 0.5, %v474_v17  ;;  %v477_v32 = vld [vmem:[%s8700_s30 + $0xa98] sm:$0xff] }
 0x17a   : > { %v7059_v42 = vpop.eup %7058  ;;  %5562 = vst [vmem:[%s8733_s17 + $0x980] sm:$0xff] %v4538_v33  ;;  %v4540_v43 = vadd.f32 0.5, %v3516_v34  ;;  %v3518_v44 = vmul.f32 0.5, %v7057_v37  ;;  %7084 = vtanh.f32 %v1484_v25  ;;  %v1499_v36 = vmul.f32 0.5, %v475_v22  ;;  %v478_v37 = vld [vmem:[%s8700_s30 + $0xaa0] sm:$0xff] }
 0x17b   : > { %v7061_v47 = vpop.eup %7060  ;;  %5563 = vst [vmem:[%s8733_s17 + $0x988] sm:$0xff] %v4539_v38  ;;  %v4541_v48 = vadd.f32 0.5, %v3517_v39  ;;  %v3519_v49 = vmul.f32 0.5, %v7059_v42  ;;  %7086 = vtanh.f32 %v1485_v30  ;;  %v1500_v41 = vmul.f32 0.5, %v476_v27  ;;  %v479_v42 = vld [vmem:[%s8700_s30 + $0xaa8] sm:$0xff] }
 0x17c   : > { %v7063_v52 = vpop.eup %7062  ;;  %5564 = vst [vmem:[%s8733_s17 + $0x990] sm:$0xff] %v4540_v43  ;;  %v4542_v53 = vadd.f32 0.5, %v3518_v44  ;;  %v3520_v54 = vmul.f32 0.5, %v7061_v47  ;;  %7088 = vtanh.f32 %v1486_v35  ;;  %v1501_v46 = vmul.f32 0.5, %v477_v32  ;;  %v480_v47 = vld [vmem:[%s8700_s30 + $0xab0] sm:$0xff] }
 0x17d   : > { %v7065_v57 = vpop.eup %7064  ;;  %5565 = vst [vmem:[%s8733_s17 + $0x998] sm:$0xff] %v4541_v48  ;;  %v4543_v58 = vadd.f32 0.5, %v3519_v49  ;;  %v3521_v59 = vmul.f32 0.5, %v7063_v52  ;;  %7090 = vtanh.f32 %v1487_v40  ;;  %v1502_v51 = vmul.f32 0.5, %v478_v37  ;;  %v481_v52 = vld [vmem:[%s8700_s30 + $0xab8] sm:$0xff] }
 0x17e   : > { %v7067_v62 = vpop.eup %7066  ;;  %5566 = vst [vmem:[%s8733_s17 + $0x9a0] sm:$0xff] %v4542_v53  ;;  %v4544_v63 = vadd.f32 0.5, %v3520_v54  ;;  %v3522_v0 = vmul.f32 0.5, %v7065_v57  ;;  %7092 = vtanh.f32 %v1488_v45  ;;  %v1503_v56 = vmul.f32 0.5, %v479_v42  ;;  %v482_v57 = vld [vmem:[%s8700_s30 + $0xac0] sm:$0xff] }
 0x17f   : > { %v7069_v3 = vpop.eup %7068  ;;  %5567 = vst [vmem:[%s8733_s17 + $0x9a8] sm:$0xff] %v4543_v58  ;;  %v4545_v4 = vadd.f32 0.5, %v3521_v59  ;;  %v3523_v5 = vmul.f32 0.5, %v7067_v62  ;;  %7094 = vtanh.f32 %v1489_v50  ;;  %v1504_v61 = vmul.f32 0.5, %v480_v47  ;;  %v483_v62 = vld [vmem:[%s8700_s30 + $0xac8] sm:$0xff] }
 0x180   : > { %v7071_v8 = vpop.eup %7070  ;;  %5568 = vst [vmem:[%s8733_s17 + $0x9b0] sm:$0xff] %v4544_v63  ;;  %v4546_v9 = vadd.f32 0.5, %v3522_v0  ;;  %v3524_v10 = vmul.f32 0.5, %v7069_v3  ;;  %7096 = vtanh.f32 %v1490_v55  ;;  %v1505_v2 = vmul.f32 0.5, %v481_v52  ;;  %v484_v3 = vld [vmem:[%s8700_s30 + $0xad0] sm:$0xff] }
 0x181   : > { %v7073_v13 = vpop.eup %7072  ;;  %5569 = vst [vmem:[%s8733_s17 + $0x9b8] sm:$0xff] %v4545_v4  ;;  %v4547_v14 = vadd.f32 0.5, %v3523_v5  ;;  %v3525_v15 = vmul.f32 0.5, %v7071_v8  ;;  %7098 = vtanh.f32 %v1491_v60  ;;  %v1506_v7 = vmul.f32 0.5, %v482_v57  ;;  %v485_v8 = vld [vmem:[%s8700_s30 + $0xad8] sm:$0xff] }
 0x182   : > { %v7075_v18 = vpop.eup %7074  ;;  %5570 = vst [vmem:[%s8733_s17 + $0x9c0] sm:$0xff] %v4546_v9  ;;  %v4548_v19 = vadd.f32 0.5, %v3524_v10  ;;  %v3526_v20 = vmul.f32 0.5, %v7073_v13  ;;  %7100 = vtanh.f32 %v1492_v1  ;;  %v1507_v12 = vmul.f32 0.5, %v483_v62  ;;  %v486_v13 = vld [vmem:[%s8700_s30 + $0xae0] sm:$0xff] }
 0x183   : > { %v7077_v23 = vpop.eup %7076  ;;  %5571 = vst [vmem:[%s8733_s17 + $0x9c8] sm:$0xff] %v4547_v14  ;;  %v4549_v24 = vadd.f32 0.5, %v3525_v15  ;;  %v3527_v25 = vmul.f32 0.5, %v7075_v18  ;;  %7102 = vtanh.f32 %v1493_v6  ;;  %v1508_v17 = vmul.f32 0.5, %v484_v3  ;;  %v487_v18 = vld [vmem:[%s8700_s30 + $0xae8] sm:$0xff] }
 0x184   : > { %v7079_v28 = vpop.eup %7078  ;;  %5572 = vst [vmem:[%s8733_s17 + $0x9d0] sm:$0xff] %v4548_v19  ;;  %v4550_v29 = vadd.f32 0.5, %v3526_v20  ;;  %v3528_v30 = vmul.f32 0.5, %v7077_v23  ;;  %7104 = vtanh.f32 %v1494_v11  ;;  %v1509_v22 = vmul.f32 0.5, %v485_v8  ;;  %v488_v23 = vld [vmem:[%s8700_s30 + $0xaf0] sm:$0xff] }
 0x185   : > { %v7081_v33 = vpop.eup %7080  ;;  %5573 = vst [vmem:[%s8733_s17 + $0x9d8] sm:$0xff] %v4549_v24  ;;  %v4551_v34 = vadd.f32 0.5, %v3527_v25  ;;  %v3529_v35 = vmul.f32 0.5, %v7079_v28  ;;  %7106 = vtanh.f32 %v1495_v16  ;;  %v1510_v27 = vmul.f32 0.5, %v486_v13  ;;  %v489_v28 = vld [vmem:[%s8700_s30 + $0xaf8] sm:$0xff] }
 0x186   : > { %v7083_v38 = vpop.eup %7082  ;;  %5574 = vst [vmem:[%s8733_s17 + $0x9e0] sm:$0xff] %v4550_v29  ;;  %v4552_v39 = vadd.f32 0.5, %v3528_v30  ;;  %v3530_v40 = vmul.f32 0.5, %v7081_v33  ;;  %7108 = vtanh.f32 %v1496_v21  ;;  %v1511_v32 = vmul.f32 0.5, %v487_v18  ;;  %v490_v33 = vld [vmem:[%s8700_s30 + $0xb00] sm:$0xff] }
 0x187   : > { %v7085_v43 = vpop.eup %7084  ;;  %5575 = vst [vmem:[%s8733_s17 + $0x9e8] sm:$0xff] %v4551_v34  ;;  %v4553_v44 = vadd.f32 0.5, %v3529_v35  ;;  %v3531_v45 = vmul.f32 0.5, %v7083_v38  ;;  %7110 = vtanh.f32 %v1497_v26  ;;  %v1512_v37 = vmul.f32 0.5, %v488_v23  ;;  %v491_v38 = vld [vmem:[%s8700_s30 + $0xb08] sm:$0xff] }
 0x188   : > { %v7087_v48 = vpop.eup %7086  ;;  %5576 = vst [vmem:[%s8733_s17 + $0x9f0] sm:$0xff] %v4552_v39  ;;  %v4554_v49 = vadd.f32 0.5, %v3530_v40  ;;  %v3532_v50 = vmul.f32 0.5, %v7085_v43  ;;  %7112 = vtanh.f32 %v1498_v31  ;;  %v1513_v42 = vmul.f32 0.5, %v489_v28  ;;  %v492_v43 = vld [vmem:[%s8700_s30 + $0xb10] sm:$0xff] }
 0x189   : > { %v7089_v53 = vpop.eup %7088  ;;  %5577 = vst [vmem:[%s8733_s17 + $0x9f8] sm:$0xff] %v4553_v44  ;;  %v4555_v54 = vadd.f32 0.5, %v3531_v45  ;;  %v3533_v55 = vmul.f32 0.5, %v7087_v48  ;;  %7114 = vtanh.f32 %v1499_v36  ;;  %v1514_v47 = vmul.f32 0.5, %v490_v33  ;;  %v493_v48 = vld [vmem:[%s8700_s30 + $0xb18] sm:$0xff] }
 0x18a   : > { %v7091_v58 = vpop.eup %7090  ;;  %5578 = vst [vmem:[%s8733_s17 + $0xa00] sm:$0xff] %v4554_v49  ;;  %v4556_v59 = vadd.f32 0.5, %v3532_v50  ;;  %v3534_v60 = vmul.f32 0.5, %v7089_v53  ;;  %7116 = vtanh.f32 %v1500_v41  ;;  %v1515_v52 = vmul.f32 0.5, %v491_v38  ;;  %v494_v53 = vld [vmem:[%s8700_s30 + $0xb20] sm:$0xff] }
 0x18b   : > { %v7093_v63 = vpop.eup %7092  ;;  %5579 = vst [vmem:[%s8733_s17 + $0xa08] sm:$0xff] %v4555_v54  ;;  %v4557_v0 = vadd.f32 0.5, %v3533_v55  ;;  %v3535_v1 = vmul.f32 0.5, %v7091_v58  ;;  %7118 = vtanh.f32 %v1501_v46  ;;  %v1516_v57 = vmul.f32 0.5, %v492_v43  ;;  %v495_v58 = vld [vmem:[%s8700_s30 + $0xb28] sm:$0xff] }
 0x18c   : > { %v7095_v4 = vpop.eup %7094  ;;  %5580 = vst [vmem:[%s8733_s17 + $0xa10] sm:$0xff] %v4556_v59  ;;  %v4558_v5 = vadd.f32 0.5, %v3534_v60  ;;  %v3536_v6 = vmul.f32 0.5, %v7093_v63  ;;  %7120 = vtanh.f32 %v1502_v51  ;;  %v1517_v62 = vmul.f32 0.5, %v493_v48  ;;  %v496_v63 = vld [vmem:[%s8700_s30 + $0xb30] sm:$0xff] }
 0x18d   : > { %v7097_v9 = vpop.eup %7096  ;;  %5581 = vst [vmem:[%s8733_s17 + $0xa18] sm:$0xff] %v4557_v0  ;;  %v4559_v10 = vadd.f32 0.5, %v3535_v1  ;;  %v3537_v11 = vmul.f32 0.5, %v7095_v4  ;;  %7122 = vtanh.f32 %v1503_v56  ;;  %v1518_v3 = vmul.f32 0.5, %v494_v53  ;;  %v497_v4 = vld [vmem:[%s8700_s30 + $0xb38] sm:$0xff] }
 0x18e   : > { %v7099_v14 = vpop.eup %7098  ;;  %5582 = vst [vmem:[%s8733_s17 + $0xa20] sm:$0xff] %v4558_v5  ;;  %v4560_v15 = vadd.f32 0.5, %v3536_v6  ;;  %v3538_v16 = vmul.f32 0.5, %v7097_v9  ;;  %7124 = vtanh.f32 %v1504_v61  ;;  %v1519_v8 = vmul.f32 0.5, %v495_v58  ;;  %v498_v9 = vld [vmem:[%s8700_s30 + $0xb40] sm:$0xff] }
 0x18f   : > { %v7101_v19 = vpop.eup %7100  ;;  %5583 = vst [vmem:[%s8733_s17 + $0xa28] sm:$0xff] %v4559_v10  ;;  %v4561_v20 = vadd.f32 0.5, %v3537_v11  ;;  %v3539_v21 = vmul.f32 0.5, %v7099_v14  ;;  %7126 = vtanh.f32 %v1505_v2  ;;  %v1520_v13 = vmul.f32 0.5, %v496_v63  ;;  %v499_v14 = vld [vmem:[%s8700_s30 + $0xb48] sm:$0xff] }
 0x190   : > { %v7103_v24 = vpop.eup %7102  ;;  %5584 = vst [vmem:[%s8733_s17 + $0xa30] sm:$0xff] %v4560_v15  ;;  %v4562_v25 = vadd.f32 0.5, %v3538_v16  ;;  %v3540_v26 = vmul.f32 0.5, %v7101_v19  ;;  %7128 = vtanh.f32 %v1506_v7  ;;  %v1521_v18 = vmul.f32 0.5, %v497_v4  ;;  %v500_v19 = vld [vmem:[%s8700_s30 + $0xb50] sm:$0xff] }
 0x191   : > { %v7105_v29 = vpop.eup %7104  ;;  %5585 = vst [vmem:[%s8733_s17 + $0xa38] sm:$0xff] %v4561_v20  ;;  %v4563_v30 = vadd.f32 0.5, %v3539_v21  ;;  %v3541_v31 = vmul.f32 0.5, %v7103_v24  ;;  %7130 = vtanh.f32 %v1507_v12  ;;  %v1522_v23 = vmul.f32 0.5, %v498_v9  ;;  %v501_v24 = vld [vmem:[%s8700_s30 + $0xb58] sm:$0xff] }
 0x192   : > { %v7107_v34 = vpop.eup %7106  ;;  %5586 = vst [vmem:[%s8733_s17 + $0xa40] sm:$0xff] %v4562_v25  ;;  %v4564_v35 = vadd.f32 0.5, %v3540_v26  ;;  %v3542_v36 = vmul.f32 0.5, %v7105_v29  ;;  %7132 = vtanh.f32 %v1508_v17  ;;  %v1523_v28 = vmul.f32 0.5, %v499_v14  ;;  %v502_v29 = vld [vmem:[%s8700_s30 + $0xb60] sm:$0xff] }
 0x193   : > { %v7109_v39 = vpop.eup %7108  ;;  %5587 = vst [vmem:[%s8733_s17 + $0xa48] sm:$0xff] %v4563_v30  ;;  %v4565_v40 = vadd.f32 0.5, %v3541_v31  ;;  %v3543_v41 = vmul.f32 0.5, %v7107_v34  ;;  %7134 = vtanh.f32 %v1509_v22  ;;  %v1524_v33 = vmul.f32 0.5, %v500_v19  ;;  %v503_v34 = vld [vmem:[%s8700_s30 + $0xb68] sm:$0xff] }
 0x194   : > { %v7111_v44 = vpop.eup %7110  ;;  %5588 = vst [vmem:[%s8733_s17 + $0xa50] sm:$0xff] %v4564_v35  ;;  %v4566_v45 = vadd.f32 0.5, %v3542_v36  ;;  %v3544_v46 = vmul.f32 0.5, %v7109_v39  ;;  %7136 = vtanh.f32 %v1510_v27  ;;  %v1525_v38 = vmul.f32 0.5, %v501_v24  ;;  %v504_v39 = vld [vmem:[%s8700_s30 + $0xb70] sm:$0xff] }
 0x195   : > { %v7113_v49 = vpop.eup %7112  ;;  %5589 = vst [vmem:[%s8733_s17 + $0xa58] sm:$0xff] %v4565_v40  ;;  %v4567_v50 = vadd.f32 0.5, %v3543_v41  ;;  %v3545_v51 = vmul.f32 0.5, %v7111_v44  ;;  %7138 = vtanh.f32 %v1511_v32  ;;  %v1526_v43 = vmul.f32 0.5, %v502_v29  ;;  %v505_v44 = vld [vmem:[%s8700_s30 + $0xb78] sm:$0xff] }
 0x196   : > { %v7115_v54 = vpop.eup %7114  ;;  %5590 = vst [vmem:[%s8733_s17 + $0xa60] sm:$0xff] %v4566_v45  ;;  %v4568_v55 = vadd.f32 0.5, %v3544_v46  ;;  %v3546_v56 = vmul.f32 0.5, %v7113_v49  ;;  %7140 = vtanh.f32 %v1512_v37  ;;  %v1527_v48 = vmul.f32 0.5, %v503_v34  ;;  %v506_v49 = vld [vmem:[%s8700_s30 + $0xb80] sm:$0xff] }
 0x197   : > { %v7117_v59 = vpop.eup %7116  ;;  %5591 = vst [vmem:[%s8733_s17 + $0xa68] sm:$0xff] %v4567_v50  ;;  %v4569_v60 = vadd.f32 0.5, %v3545_v51  ;;  %v3547_v61 = vmul.f32 0.5, %v7115_v54  ;;  %7142 = vtanh.f32 %v1513_v42  ;;  %v1528_v53 = vmul.f32 0.5, %v504_v39  ;;  %v507_v54 = vld [vmem:[%s8700_s30 + $0xb88] sm:$0xff] }
 0x198   : > { %v7119_v0 = vpop.eup %7118  ;;  %5592 = vst [vmem:[%s8733_s17 + $0xa70] sm:$0xff] %v4568_v55  ;;  %v4570_v1 = vadd.f32 0.5, %v3546_v56  ;;  %v3548_v2 = vmul.f32 0.5, %v7117_v59  ;;  %7144 = vtanh.f32 %v1514_v47  ;;  %v1529_v58 = vmul.f32 0.5, %v505_v44  ;;  %v508_v59 = vld [vmem:[%s8700_s30 + $0xb90] sm:$0xff] }
 0x199   : > { %v7121_v5 = vpop.eup %7120  ;;  %5593 = vst [vmem:[%s8733_s17 + $0xa78] sm:$0xff] %v4569_v60  ;;  %v4571_v6 = vadd.f32 0.5, %v3547_v61  ;;  %v3549_v7 = vmul.f32 0.5, %v7119_v0  ;;  %7146 = vtanh.f32 %v1515_v52  ;;  %v1530_v63 = vmul.f32 0.5, %v506_v49  ;;  %v509_v0 = vld [vmem:[%s8700_s30 + $0xb98] sm:$0xff] }
 0x19a   : > { %v7123_v10 = vpop.eup %7122  ;;  %5594 = vst [vmem:[%s8733_s17 + $0xa80] sm:$0xff] %v4570_v1  ;;  %v4572_v11 = vadd.f32 0.5, %v3548_v2  ;;  %v3550_v12 = vmul.f32 0.5, %v7121_v5  ;;  %7148 = vtanh.f32 %v1516_v57  ;;  %v1531_v4 = vmul.f32 0.5, %v507_v54  ;;  %v510_v5 = vld [vmem:[%s8700_s30 + $0xba0] sm:$0xff] }
 0x19b   : > { %v7125_v15 = vpop.eup %7124  ;;  %5595 = vst [vmem:[%s8733_s17 + $0xa88] sm:$0xff] %v4571_v6  ;;  %v4573_v16 = vadd.f32 0.5, %v3549_v7  ;;  %v3551_v17 = vmul.f32 0.5, %v7123_v10  ;;  %7150 = vtanh.f32 %v1517_v62  ;;  %v1532_v9 = vmul.f32 0.5, %v508_v59  ;;  %v511_v10 = vld [vmem:[%s8700_s30 + $0xba8] sm:$0xff] }
 0x19c   : > { %v7127_v20 = vpop.eup %7126  ;;  %5596 = vst [vmem:[%s8733_s17 + $0xa90] sm:$0xff] %v4572_v11  ;;  %v4574_v21 = vadd.f32 0.5, %v3550_v12  ;;  %v3552_v22 = vmul.f32 0.5, %v7125_v15  ;;  %7152 = vtanh.f32 %v1518_v3  ;;  %v1533_v14 = vmul.f32 0.5, %v509_v0  ;;  %v512_v15 = vld [vmem:[%s8700_s30 + $0xbb0] sm:$0xff] }
 0x19d   : > { %v7129_v25 = vpop.eup %7128  ;;  %5597 = vst [vmem:[%s8733_s17 + $0xa98] sm:$0xff] %v4573_v16  ;;  %v4575_v26 = vadd.f32 0.5, %v3551_v17  ;;  %v3553_v27 = vmul.f32 0.5, %v7127_v20  ;;  %7154 = vtanh.f32 %v1519_v8  ;;  %v1534_v19 = vmul.f32 0.5, %v510_v5  ;;  %v513_v20 = vld [vmem:[%s8700_s30 + $0xbb8] sm:$0xff] }
 0x19e   : > { %v7131_v30 = vpop.eup %7130  ;;  %5598 = vst [vmem:[%s8733_s17 + $0xaa0] sm:$0xff] %v4574_v21  ;;  %v4576_v31 = vadd.f32 0.5, %v3552_v22  ;;  %v3554_v32 = vmul.f32 0.5, %v7129_v25  ;;  %7156 = vtanh.f32 %v1520_v13  ;;  %v1535_v24 = vmul.f32 0.5, %v511_v10  ;;  %v514_v25 = vld [vmem:[%s8700_s30 + $0xbc0] sm:$0xff] }
 0x19f   : > { %v7133_v35 = vpop.eup %7132  ;;  %5599 = vst [vmem:[%s8733_s17 + $0xaa8] sm:$0xff] %v4575_v26  ;;  %v4577_v36 = vadd.f32 0.5, %v3553_v27  ;;  %v3555_v37 = vmul.f32 0.5, %v7131_v30  ;;  %7158 = vtanh.f32 %v1521_v18  ;;  %v1536_v29 = vmul.f32 0.5, %v512_v15  ;;  %v515_v30 = vld [vmem:[%s8700_s30 + $0xbc8] sm:$0xff] }
 0x1a0   : > { %v7135_v40 = vpop.eup %7134  ;;  %5600 = vst [vmem:[%s8733_s17 + $0xab0] sm:$0xff] %v4576_v31  ;;  %v4578_v41 = vadd.f32 0.5, %v3554_v32  ;;  %v3556_v42 = vmul.f32 0.5, %v7133_v35  ;;  %7160 = vtanh.f32 %v1522_v23  ;;  %v1537_v34 = vmul.f32 0.5, %v513_v20  ;;  %v516_v35 = vld [vmem:[%s8700_s30 + $0xbd0] sm:$0xff] }
 0x1a1   : > { %v7137_v45 = vpop.eup %7136  ;;  %5601 = vst [vmem:[%s8733_s17 + $0xab8] sm:$0xff] %v4577_v36  ;;  %v4579_v46 = vadd.f32 0.5, %v3555_v37  ;;  %v3557_v47 = vmul.f32 0.5, %v7135_v40  ;;  %7162 = vtanh.f32 %v1523_v28  ;;  %v1538_v39 = vmul.f32 0.5, %v514_v25  ;;  %v517_v40 = vld [vmem:[%s8700_s30 + $0xbd8] sm:$0xff] }
 0x1a2   : > { %v7139_v50 = vpop.eup %7138  ;;  %5602 = vst [vmem:[%s8733_s17 + $0xac0] sm:$0xff] %v4578_v41  ;;  %v4580_v51 = vadd.f32 0.5, %v3556_v42  ;;  %v3558_v52 = vmul.f32 0.5, %v7137_v45  ;;  %7164 = vtanh.f32 %v1524_v33  ;;  %v1539_v44 = vmul.f32 0.5, %v515_v30  ;;  %v518_v45 = vld [vmem:[%s8700_s30 + $0xbe0] sm:$0xff] }
 0x1a3   : > { %v7141_v55 = vpop.eup %7140  ;;  %5603 = vst [vmem:[%s8733_s17 + $0xac8] sm:$0xff] %v4579_v46  ;;  %v4581_v56 = vadd.f32 0.5, %v3557_v47  ;;  %v3559_v57 = vmul.f32 0.5, %v7139_v50  ;;  %7166 = vtanh.f32 %v1525_v38  ;;  %v1540_v49 = vmul.f32 0.5, %v516_v35  ;;  %v519_v50 = vld [vmem:[%s8700_s30 + $0xbe8] sm:$0xff] }
 0x1a4   : > { %v7143_v60 = vpop.eup %7142  ;;  %5604 = vst [vmem:[%s8733_s17 + $0xad0] sm:$0xff] %v4580_v51  ;;  %v4582_v61 = vadd.f32 0.5, %v3558_v52  ;;  %v3560_v62 = vmul.f32 0.5, %v7141_v55  ;;  %7168 = vtanh.f32 %v1526_v43  ;;  %v1541_v54 = vmul.f32 0.5, %v517_v40  ;;  %v520_v55 = vld [vmem:[%s8700_s30 + $0xbf0] sm:$0xff] }
 0x1a5   : > { %v7145_v1 = vpop.eup %7144  ;;  %5605 = vst [vmem:[%s8733_s17 + $0xad8] sm:$0xff] %v4581_v56  ;;  %v4583_v2 = vadd.f32 0.5, %v3559_v57  ;;  %v3561_v3 = vmul.f32 0.5, %v7143_v60  ;;  %7170 = vtanh.f32 %v1527_v48  ;;  %v1542_v59 = vmul.f32 0.5, %v518_v45  ;;  %v521_v60 = vld [vmem:[%s8700_s30 + $0xbf8] sm:$0xff] }
 0x1a6   : > { %v7147_v6 = vpop.eup %7146  ;;  %5606 = vst [vmem:[%s8733_s17 + $0xae0] sm:$0xff] %v4582_v61  ;;  %v4584_v7 = vadd.f32 0.5, %v3560_v62  ;;  %v3562_v8 = vmul.f32 0.5, %v7145_v1  ;;  %7172 = vtanh.f32 %v1528_v53  ;;  %v1543_v0 = vmul.f32 0.5, %v519_v50  ;;  %v522_v1 = vld [vmem:[%s8700_s30 + $0xc00] sm:$0xff] }
 0x1a7   : > { %v7149_v11 = vpop.eup %7148  ;;  %5607 = vst [vmem:[%s8733_s17 + $0xae8] sm:$0xff] %v4583_v2  ;;  %v4585_v12 = vadd.f32 0.5, %v3561_v3  ;;  %v3563_v13 = vmul.f32 0.5, %v7147_v6  ;;  %7174 = vtanh.f32 %v1529_v58  ;;  %v1544_v5 = vmul.f32 0.5, %v520_v55  ;;  %v523_v6 = vld [vmem:[%s8700_s30 + $0xc08] sm:$0xff] }
 0x1a8   : > { %v7151_v16 = vpop.eup %7150  ;;  %5608 = vst [vmem:[%s8733_s17 + $0xaf0] sm:$0xff] %v4584_v7  ;;  %v4586_v17 = vadd.f32 0.5, %v3562_v8  ;;  %v3564_v18 = vmul.f32 0.5, %v7149_v11  ;;  %7176 = vtanh.f32 %v1530_v63  ;;  %v1545_v10 = vmul.f32 0.5, %v521_v60  ;;  %v524_v11 = vld [vmem:[%s8700_s30 + $0xc10] sm:$0xff] }
 0x1a9   : > { %v7153_v21 = vpop.eup %7152  ;;  %5609 = vst [vmem:[%s8733_s17 + $0xaf8] sm:$0xff] %v4585_v12  ;;  %v4587_v22 = vadd.f32 0.5, %v3563_v13  ;;  %v3565_v23 = vmul.f32 0.5, %v7151_v16  ;;  %7178 = vtanh.f32 %v1531_v4  ;;  %v1546_v15 = vmul.f32 0.5, %v522_v1  ;;  %v525_v16 = vld [vmem:[%s8700_s30 + $0xc18] sm:$0xff] }
 0x1aa   : > { %v7155_v26 = vpop.eup %7154  ;;  %5610 = vst [vmem:[%s8733_s17 + $0xb00] sm:$0xff] %v4586_v17  ;;  %v4588_v27 = vadd.f32 0.5, %v3564_v18  ;;  %v3566_v28 = vmul.f32 0.5, %v7153_v21  ;;  %7180 = vtanh.f32 %v1532_v9  ;;  %v1547_v20 = vmul.f32 0.5, %v523_v6  ;;  %v526_v21 = vld [vmem:[%s8700_s30 + $0xc20] sm:$0xff] }
 0x1ab   : > { %v7157_v31 = vpop.eup %7156  ;;  %5611 = vst [vmem:[%s8733_s17 + $0xb08] sm:$0xff] %v4587_v22  ;;  %v4589_v32 = vadd.f32 0.5, %v3565_v23  ;;  %v3567_v33 = vmul.f32 0.5, %v7155_v26  ;;  %7182 = vtanh.f32 %v1533_v14  ;;  %v1548_v25 = vmul.f32 0.5, %v524_v11  ;;  %v527_v26 = vld [vmem:[%s8700_s30 + $0xc28] sm:$0xff] }
 0x1ac   : > { %v7159_v36 = vpop.eup %7158  ;;  %5612 = vst [vmem:[%s8733_s17 + $0xb10] sm:$0xff] %v4588_v27  ;;  %v4590_v37 = vadd.f32 0.5, %v3566_v28  ;;  %v3568_v38 = vmul.f32 0.5, %v7157_v31  ;;  %7184 = vtanh.f32 %v1534_v19  ;;  %v1549_v30 = vmul.f32 0.5, %v525_v16  ;;  %v528_v31 = vld [vmem:[%s8700_s30 + $0xc30] sm:$0xff] }
 0x1ad   : > { %v7161_v41 = vpop.eup %7160  ;;  %5613 = vst [vmem:[%s8733_s17 + $0xb18] sm:$0xff] %v4589_v32  ;;  %v4591_v42 = vadd.f32 0.5, %v3567_v33  ;;  %v3569_v43 = vmul.f32 0.5, %v7159_v36  ;;  %7186 = vtanh.f32 %v1535_v24  ;;  %v1550_v35 = vmul.f32 0.5, %v526_v21  ;;  %v529_v36 = vld [vmem:[%s8700_s30 + $0xc38] sm:$0xff] }
 0x1ae   : > { %v7163_v46 = vpop.eup %7162  ;;  %5614 = vst [vmem:[%s8733_s17 + $0xb20] sm:$0xff] %v4590_v37  ;;  %v4592_v47 = vadd.f32 0.5, %v3568_v38  ;;  %v3570_v48 = vmul.f32 0.5, %v7161_v41  ;;  %7188 = vtanh.f32 %v1536_v29  ;;  %v1551_v40 = vmul.f32 0.5, %v527_v26  ;;  %v530_v41 = vld [vmem:[%s8700_s30 + $0xc40] sm:$0xff] }
 0x1af   : > { %v7165_v51 = vpop.eup %7164  ;;  %5615 = vst [vmem:[%s8733_s17 + $0xb28] sm:$0xff] %v4591_v42  ;;  %v4593_v52 = vadd.f32 0.5, %v3569_v43  ;;  %v3571_v53 = vmul.f32 0.5, %v7163_v46  ;;  %7190 = vtanh.f32 %v1537_v34  ;;  %v1552_v45 = vmul.f32 0.5, %v528_v31  ;;  %v531_v46 = vld [vmem:[%s8700_s30 + $0xc48] sm:$0xff] }
 0x1b0   : > { %v7167_v56 = vpop.eup %7166  ;;  %5616 = vst [vmem:[%s8733_s17 + $0xb30] sm:$0xff] %v4592_v47  ;;  %v4594_v57 = vadd.f32 0.5, %v3570_v48  ;;  %v3572_v58 = vmul.f32 0.5, %v7165_v51  ;;  %7192 = vtanh.f32 %v1538_v39  ;;  %v1553_v50 = vmul.f32 0.5, %v529_v36  ;;  %v532_v51 = vld [vmem:[%s8700_s30 + $0xc50] sm:$0xff] }
 0x1b1   : > { %v7169_v61 = vpop.eup %7168  ;;  %5617 = vst [vmem:[%s8733_s17 + $0xb38] sm:$0xff] %v4593_v52  ;;  %v4595_v62 = vadd.f32 0.5, %v3571_v53  ;;  %v3573_v63 = vmul.f32 0.5, %v7167_v56  ;;  %7194 = vtanh.f32 %v1539_v44  ;;  %v1554_v55 = vmul.f32 0.5, %v530_v41  ;;  %v533_v56 = vld [vmem:[%s8700_s30 + $0xc58] sm:$0xff] }
 0x1b2   : > { %v7171_v2 = vpop.eup %7170  ;;  %5618 = vst [vmem:[%s8733_s17 + $0xb40] sm:$0xff] %v4594_v57  ;;  %v4596_v3 = vadd.f32 0.5, %v3572_v58  ;;  %v3574_v4 = vmul.f32 0.5, %v7169_v61  ;;  %7196 = vtanh.f32 %v1540_v49  ;;  %v1555_v60 = vmul.f32 0.5, %v531_v46  ;;  %v534_v61 = vld [vmem:[%s8700_s30 + $0xc60] sm:$0xff] }
 0x1b3   : > { %v7173_v7 = vpop.eup %7172  ;;  %5619 = vst [vmem:[%s8733_s17 + $0xb48] sm:$0xff] %v4595_v62  ;;  %v4597_v8 = vadd.f32 0.5, %v3573_v63  ;;  %v3575_v9 = vmul.f32 0.5, %v7171_v2  ;;  %7198 = vtanh.f32 %v1541_v54  ;;  %v1556_v1 = vmul.f32 0.5, %v532_v51  ;;  %v535_v2 = vld [vmem:[%s8700_s30 + $0xc68] sm:$0xff] }
 0x1b4   : > { %v7175_v12 = vpop.eup %7174  ;;  %5620 = vst [vmem:[%s8733_s17 + $0xb50] sm:$0xff] %v4596_v3  ;;  %v4598_v13 = vadd.f32 0.5, %v3574_v4  ;;  %v3576_v14 = vmul.f32 0.5, %v7173_v7  ;;  %7200 = vtanh.f32 %v1542_v59  ;;  %v1557_v6 = vmul.f32 0.5, %v533_v56  ;;  %v536_v7 = vld [vmem:[%s8700_s30 + $0xc70] sm:$0xff] }
 0x1b5   : > { %v7177_v17 = vpop.eup %7176  ;;  %5621 = vst [vmem:[%s8733_s17 + $0xb58] sm:$0xff] %v4597_v8  ;;  %v4599_v18 = vadd.f32 0.5, %v3575_v9  ;;  %v3577_v19 = vmul.f32 0.5, %v7175_v12  ;;  %7202 = vtanh.f32 %v1543_v0  ;;  %v1558_v11 = vmul.f32 0.5, %v534_v61  ;;  %v537_v12 = vld [vmem:[%s8700_s30 + $0xc78] sm:$0xff] }
 0x1b6   : > { %v7179_v22 = vpop.eup %7178  ;;  %5622 = vst [vmem:[%s8733_s17 + $0xb60] sm:$0xff] %v4598_v13  ;;  %v4600_v23 = vadd.f32 0.5, %v3576_v14  ;;  %v3578_v24 = vmul.f32 0.5, %v7177_v17  ;;  %7204 = vtanh.f32 %v1544_v5  ;;  %v1559_v16 = vmul.f32 0.5, %v535_v2  ;;  %v538_v17 = vld [vmem:[%s8700_s30 + $0xc80] sm:$0xff] }
 0x1b7   : > { %v7181_v27 = vpop.eup %7180  ;;  %5623 = vst [vmem:[%s8733_s17 + $0xb68] sm:$0xff] %v4599_v18  ;;  %v4601_v28 = vadd.f32 0.5, %v3577_v19  ;;  %v3579_v29 = vmul.f32 0.5, %v7179_v22  ;;  %7206 = vtanh.f32 %v1545_v10  ;;  %v1560_v21 = vmul.f32 0.5, %v536_v7  ;;  %v539_v22 = vld [vmem:[%s8700_s30 + $0xc88] sm:$0xff] }
 0x1b8   : > { %v7183_v32 = vpop.eup %7182  ;;  %5624 = vst [vmem:[%s8733_s17 + $0xb70] sm:$0xff] %v4600_v23  ;;  %v4602_v33 = vadd.f32 0.5, %v3578_v24  ;;  %v3580_v34 = vmul.f32 0.5, %v7181_v27  ;;  %7208 = vtanh.f32 %v1546_v15  ;;  %v1561_v26 = vmul.f32 0.5, %v537_v12  ;;  %v540_v27 = vld [vmem:[%s8700_s30 + $0xc90] sm:$0xff] }
 0x1b9   : > { %v7185_v37 = vpop.eup %7184  ;;  %5625 = vst [vmem:[%s8733_s17 + $0xb78] sm:$0xff] %v4601_v28  ;;  %v4603_v38 = vadd.f32 0.5, %v3579_v29  ;;  %v3581_v39 = vmul.f32 0.5, %v7183_v32  ;;  %7210 = vtanh.f32 %v1547_v20  ;;  %v1562_v31 = vmul.f32 0.5, %v538_v17  ;;  %v541_v32 = vld [vmem:[%s8700_s30 + $0xc98] sm:$0xff] }
 0x1ba   : > { %v7187_v42 = vpop.eup %7186  ;;  %5626 = vst [vmem:[%s8733_s17 + $0xb80] sm:$0xff] %v4602_v33  ;;  %v4604_v43 = vadd.f32 0.5, %v3580_v34  ;;  %v3582_v44 = vmul.f32 0.5, %v7185_v37  ;;  %7212 = vtanh.f32 %v1548_v25  ;;  %v1563_v36 = vmul.f32 0.5, %v539_v22  ;;  %v542_v37 = vld [vmem:[%s8700_s30 + $0xca0] sm:$0xff] }
 0x1bb   : > { %v7189_v47 = vpop.eup %7188  ;;  %5627 = vst [vmem:[%s8733_s17 + $0xb88] sm:$0xff] %v4603_v38  ;;  %v4605_v48 = vadd.f32 0.5, %v3581_v39  ;;  %v3583_v49 = vmul.f32 0.5, %v7187_v42  ;;  %7214 = vtanh.f32 %v1549_v30  ;;  %v1564_v41 = vmul.f32 0.5, %v540_v27  ;;  %v543_v42 = vld [vmem:[%s8700_s30 + $0xca8] sm:$0xff] }
 0x1bc   : > { %v7191_v52 = vpop.eup %7190  ;;  %5628 = vst [vmem:[%s8733_s17 + $0xb90] sm:$0xff] %v4604_v43  ;;  %v4606_v53 = vadd.f32 0.5, %v3582_v44  ;;  %v3584_v54 = vmul.f32 0.5, %v7189_v47  ;;  %7216 = vtanh.f32 %v1550_v35  ;;  %v1565_v46 = vmul.f32 0.5, %v541_v32  ;;  %v544_v47 = vld [vmem:[%s8700_s30 + $0xcb0] sm:$0xff] }
 0x1bd   : > { %v7193_v57 = vpop.eup %7192  ;;  %5629 = vst [vmem:[%s8733_s17 + $0xb98] sm:$0xff] %v4605_v48  ;;  %v4607_v58 = vadd.f32 0.5, %v3583_v49  ;;  %v3585_v59 = vmul.f32 0.5, %v7191_v52  ;;  %7218 = vtanh.f32 %v1551_v40  ;;  %v1566_v51 = vmul.f32 0.5, %v542_v37  ;;  %v545_v52 = vld [vmem:[%s8700_s30 + $0xcb8] sm:$0xff] }
 0x1be   : > { %v7195_v62 = vpop.eup %7194  ;;  %5630 = vst [vmem:[%s8733_s17 + $0xba0] sm:$0xff] %v4606_v53  ;;  %v4608_v63 = vadd.f32 0.5, %v3584_v54  ;;  %v3586_v0 = vmul.f32 0.5, %v7193_v57  ;;  %7220 = vtanh.f32 %v1552_v45  ;;  %v1567_v56 = vmul.f32 0.5, %v543_v42  ;;  %v546_v57 = vld [vmem:[%s8700_s30 + $0xcc0] sm:$0xff] }
 0x1bf   : > { %v7197_v3 = vpop.eup %7196  ;;  %5631 = vst [vmem:[%s8733_s17 + $0xba8] sm:$0xff] %v4607_v58  ;;  %v4609_v4 = vadd.f32 0.5, %v3585_v59  ;;  %v3587_v5 = vmul.f32 0.5, %v7195_v62  ;;  %7222 = vtanh.f32 %v1553_v50  ;;  %v1568_v61 = vmul.f32 0.5, %v544_v47  ;;  %v547_v62 = vld [vmem:[%s8700_s30 + $0xcc8] sm:$0xff] }
 0x1c0   : > { %v7199_v8 = vpop.eup %7198  ;;  %5632 = vst [vmem:[%s8733_s17 + $0xbb0] sm:$0xff] %v4608_v63  ;;  %v4610_v9 = vadd.f32 0.5, %v3586_v0  ;;  %v3588_v10 = vmul.f32 0.5, %v7197_v3  ;;  %7224 = vtanh.f32 %v1554_v55  ;;  %v1569_v2 = vmul.f32 0.5, %v545_v52  ;;  %v548_v3 = vld [vmem:[%s8700_s30 + $0xcd0] sm:$0xff] }
 0x1c1   : > { %v7201_v13 = vpop.eup %7200  ;;  %5633 = vst [vmem:[%s8733_s17 + $0xbb8] sm:$0xff] %v4609_v4  ;;  %v4611_v14 = vadd.f32 0.5, %v3587_v5  ;;  %v3589_v15 = vmul.f32 0.5, %v7199_v8  ;;  %7226 = vtanh.f32 %v1555_v60  ;;  %v1570_v7 = vmul.f32 0.5, %v546_v57  ;;  %v549_v8 = vld [vmem:[%s8700_s30 + $0xcd8] sm:$0xff] }
 0x1c2   : > { %v7203_v18 = vpop.eup %7202  ;;  %5634 = vst [vmem:[%s8733_s17 + $0xbc0] sm:$0xff] %v4610_v9  ;;  %v4612_v19 = vadd.f32 0.5, %v3588_v10  ;;  %v3590_v20 = vmul.f32 0.5, %v7201_v13  ;;  %7228 = vtanh.f32 %v1556_v1  ;;  %v1571_v12 = vmul.f32 0.5, %v547_v62  ;;  %v550_v13 = vld [vmem:[%s8700_s30 + $0xce0] sm:$0xff] }
 0x1c3   : > { %v7205_v23 = vpop.eup %7204  ;;  %5635 = vst [vmem:[%s8733_s17 + $0xbc8] sm:$0xff] %v4611_v14  ;;  %v4613_v24 = vadd.f32 0.5, %v3589_v15  ;;  %v3591_v25 = vmul.f32 0.5, %v7203_v18  ;;  %7230 = vtanh.f32 %v1557_v6  ;;  %v1572_v17 = vmul.f32 0.5, %v548_v3  ;;  %v551_v18 = vld [vmem:[%s8700_s30 + $0xce8] sm:$0xff] }
 0x1c4   : > { %v7207_v28 = vpop.eup %7206  ;;  %5636 = vst [vmem:[%s8733_s17 + $0xbd0] sm:$0xff] %v4612_v19  ;;  %v4614_v29 = vadd.f32 0.5, %v3590_v20  ;;  %v3592_v30 = vmul.f32 0.5, %v7205_v23  ;;  %7232 = vtanh.f32 %v1558_v11  ;;  %v1573_v22 = vmul.f32 0.5, %v549_v8  ;;  %v552_v23 = vld [vmem:[%s8700_s30 + $0xcf0] sm:$0xff] }
 0x1c5   : > { %v7209_v33 = vpop.eup %7208  ;;  %5637 = vst [vmem:[%s8733_s17 + $0xbd8] sm:$0xff] %v4613_v24  ;;  %v4615_v34 = vadd.f32 0.5, %v3591_v25  ;;  %v3593_v35 = vmul.f32 0.5, %v7207_v28  ;;  %7234 = vtanh.f32 %v1559_v16  ;;  %v1574_v27 = vmul.f32 0.5, %v550_v13  ;;  %v553_v28 = vld [vmem:[%s8700_s30 + $0xcf8] sm:$0xff] }
 0x1c6   : > { %v7211_v38 = vpop.eup %7210  ;;  %5638 = vst [vmem:[%s8733_s17 + $0xbe0] sm:$0xff] %v4614_v29  ;;  %v4616_v39 = vadd.f32 0.5, %v3592_v30  ;;  %v3594_v40 = vmul.f32 0.5, %v7209_v33  ;;  %7236 = vtanh.f32 %v1560_v21  ;;  %v1575_v32 = vmul.f32 0.5, %v551_v18  ;;  %v554_v33 = vld [vmem:[%s8700_s30 + $0xd00] sm:$0xff] }
 0x1c7   : > { %v7213_v43 = vpop.eup %7212  ;;  %5639 = vst [vmem:[%s8733_s17 + $0xbe8] sm:$0xff] %v4615_v34  ;;  %v4617_v44 = vadd.f32 0.5, %v3593_v35  ;;  %v3595_v45 = vmul.f32 0.5, %v7211_v38  ;;  %7238 = vtanh.f32 %v1561_v26  ;;  %v1576_v37 = vmul.f32 0.5, %v552_v23  ;;  %v555_v38 = vld [vmem:[%s8700_s30 + $0xd08] sm:$0xff] }
 0x1c8   : > { %v7215_v48 = vpop.eup %7214  ;;  %5640 = vst [vmem:[%s8733_s17 + $0xbf0] sm:$0xff] %v4616_v39  ;;  %v4618_v49 = vadd.f32 0.5, %v3594_v40  ;;  %v3596_v50 = vmul.f32 0.5, %v7213_v43  ;;  %7240 = vtanh.f32 %v1562_v31  ;;  %v1577_v42 = vmul.f32 0.5, %v553_v28  ;;  %v556_v43 = vld [vmem:[%s8700_s30 + $0xd10] sm:$0xff] }
 0x1c9   : > { %v7217_v53 = vpop.eup %7216  ;;  %5641 = vst [vmem:[%s8733_s17 + $0xbf8] sm:$0xff] %v4617_v44  ;;  %v4619_v54 = vadd.f32 0.5, %v3595_v45  ;;  %v3597_v55 = vmul.f32 0.5, %v7215_v48  ;;  %7242 = vtanh.f32 %v1563_v36  ;;  %v1578_v47 = vmul.f32 0.5, %v554_v33  ;;  %v557_v48 = vld [vmem:[%s8700_s30 + $0xd18] sm:$0xff] }
 0x1ca   : > { %v7219_v58 = vpop.eup %7218  ;;  %5642 = vst [vmem:[%s8733_s17 + $0xc00] sm:$0xff] %v4618_v49  ;;  %v4620_v59 = vadd.f32 0.5, %v3596_v50  ;;  %v3598_v60 = vmul.f32 0.5, %v7217_v53  ;;  %7244 = vtanh.f32 %v1564_v41  ;;  %v1579_v52 = vmul.f32 0.5, %v555_v38  ;;  %v558_v53 = vld [vmem:[%s8700_s30 + $0xd20] sm:$0xff] }
 0x1cb   : > { %v7221_v63 = vpop.eup %7220  ;;  %5643 = vst [vmem:[%s8733_s17 + $0xc08] sm:$0xff] %v4619_v54  ;;  %v4621_v0 = vadd.f32 0.5, %v3597_v55  ;;  %v3599_v1 = vmul.f32 0.5, %v7219_v58  ;;  %7246 = vtanh.f32 %v1565_v46  ;;  %v1580_v57 = vmul.f32 0.5, %v556_v43  ;;  %v559_v58 = vld [vmem:[%s8700_s30 + $0xd28] sm:$0xff] }
 0x1cc   : > { %v7223_v4 = vpop.eup %7222  ;;  %5644 = vst [vmem:[%s8733_s17 + $0xc10] sm:$0xff] %v4620_v59  ;;  %v4622_v5 = vadd.f32 0.5, %v3598_v60  ;;  %v3600_v6 = vmul.f32 0.5, %v7221_v63  ;;  %7248 = vtanh.f32 %v1566_v51  ;;  %v1581_v62 = vmul.f32 0.5, %v557_v48  ;;  %v560_v63 = vld [vmem:[%s8700_s30 + $0xd30] sm:$0xff] }
 0x1cd   : > { %v7225_v9 = vpop.eup %7224  ;;  %5645 = vst [vmem:[%s8733_s17 + $0xc18] sm:$0xff] %v4621_v0  ;;  %v4623_v10 = vadd.f32 0.5, %v3599_v1  ;;  %v3601_v11 = vmul.f32 0.5, %v7223_v4  ;;  %7250 = vtanh.f32 %v1567_v56  ;;  %v1582_v3 = vmul.f32 0.5, %v558_v53  ;;  %v561_v4 = vld [vmem:[%s8700_s30 + $0xd38] sm:$0xff] }
 0x1ce   : > { %v7227_v14 = vpop.eup %7226  ;;  %5646 = vst [vmem:[%s8733_s17 + $0xc20] sm:$0xff] %v4622_v5  ;;  %v4624_v15 = vadd.f32 0.5, %v3600_v6  ;;  %v3602_v16 = vmul.f32 0.5, %v7225_v9  ;;  %7252 = vtanh.f32 %v1568_v61  ;;  %v1583_v8 = vmul.f32 0.5, %v559_v58  ;;  %v562_v9 = vld [vmem:[%s8700_s30 + $0xd40] sm:$0xff] }
 0x1cf   : > { %v7229_v19 = vpop.eup %7228  ;;  %5647 = vst [vmem:[%s8733_s17 + $0xc28] sm:$0xff] %v4623_v10  ;;  %v4625_v20 = vadd.f32 0.5, %v3601_v11  ;;  %v3603_v21 = vmul.f32 0.5, %v7227_v14  ;;  %7254 = vtanh.f32 %v1569_v2  ;;  %v1584_v13 = vmul.f32 0.5, %v560_v63  ;;  %v563_v14 = vld [vmem:[%s8700_s30 + $0xd48] sm:$0xff] }
 0x1d0   : > { %v7231_v24 = vpop.eup %7230  ;;  %5648 = vst [vmem:[%s8733_s17 + $0xc30] sm:$0xff] %v4624_v15  ;;  %v4626_v25 = vadd.f32 0.5, %v3602_v16  ;;  %v3604_v26 = vmul.f32 0.5, %v7229_v19  ;;  %7256 = vtanh.f32 %v1570_v7  ;;  %v1585_v18 = vmul.f32 0.5, %v561_v4  ;;  %v564_v19 = vld [vmem:[%s8700_s30 + $0xd50] sm:$0xff] }
 0x1d1   : > { %v7233_v29 = vpop.eup %7232  ;;  %5649 = vst [vmem:[%s8733_s17 + $0xc38] sm:$0xff] %v4625_v20  ;;  %v4627_v30 = vadd.f32 0.5, %v3603_v21  ;;  %v3605_v31 = vmul.f32 0.5, %v7231_v24  ;;  %7258 = vtanh.f32 %v1571_v12  ;;  %v1586_v23 = vmul.f32 0.5, %v562_v9  ;;  %v565_v24 = vld [vmem:[%s8700_s30 + $0xd58] sm:$0xff] }
 0x1d2   : > { %v7235_v34 = vpop.eup %7234  ;;  %5650 = vst [vmem:[%s8733_s17 + $0xc40] sm:$0xff] %v4626_v25  ;;  %v4628_v35 = vadd.f32 0.5, %v3604_v26  ;;  %v3606_v36 = vmul.f32 0.5, %v7233_v29  ;;  %7260 = vtanh.f32 %v1572_v17  ;;  %v1587_v28 = vmul.f32 0.5, %v563_v14  ;;  %v566_v29 = vld [vmem:[%s8700_s30 + $0xd60] sm:$0xff] }
 0x1d3   : > { %v7237_v39 = vpop.eup %7236  ;;  %5651 = vst [vmem:[%s8733_s17 + $0xc48] sm:$0xff] %v4627_v30  ;;  %v4629_v40 = vadd.f32 0.5, %v3605_v31  ;;  %v3607_v41 = vmul.f32 0.5, %v7235_v34  ;;  %7262 = vtanh.f32 %v1573_v22  ;;  %v1588_v33 = vmul.f32 0.5, %v564_v19  ;;  %v567_v34 = vld [vmem:[%s8700_s30 + $0xd68] sm:$0xff] }
 0x1d4   : > { %v7239_v44 = vpop.eup %7238  ;;  %5652 = vst [vmem:[%s8733_s17 + $0xc50] sm:$0xff] %v4628_v35  ;;  %v4630_v45 = vadd.f32 0.5, %v3606_v36  ;;  %v3608_v46 = vmul.f32 0.5, %v7237_v39  ;;  %7264 = vtanh.f32 %v1574_v27  ;;  %v1589_v38 = vmul.f32 0.5, %v565_v24  ;;  %v568_v39 = vld [vmem:[%s8700_s30 + $0xd70] sm:$0xff] }
 0x1d5   : > { %v7241_v49 = vpop.eup %7240  ;;  %5653 = vst [vmem:[%s8733_s17 + $0xc58] sm:$0xff] %v4629_v40  ;;  %v4631_v50 = vadd.f32 0.5, %v3607_v41  ;;  %v3609_v51 = vmul.f32 0.5, %v7239_v44  ;;  %7266 = vtanh.f32 %v1575_v32  ;;  %v1590_v43 = vmul.f32 0.5, %v566_v29  ;;  %v569_v44 = vld [vmem:[%s8700_s30 + $0xd78] sm:$0xff] }
 0x1d6   : > { %v7243_v54 = vpop.eup %7242  ;;  %5654 = vst [vmem:[%s8733_s17 + $0xc60] sm:$0xff] %v4630_v45  ;;  %v4632_v55 = vadd.f32 0.5, %v3608_v46  ;;  %v3610_v56 = vmul.f32 0.5, %v7241_v49  ;;  %7268 = vtanh.f32 %v1576_v37  ;;  %v1591_v48 = vmul.f32 0.5, %v567_v34  ;;  %v570_v49 = vld [vmem:[%s8700_s30 + $0xd80] sm:$0xff] }
 0x1d7   : > { %v7245_v59 = vpop.eup %7244  ;;  %5655 = vst [vmem:[%s8733_s17 + $0xc68] sm:$0xff] %v4631_v50  ;;  %v4633_v60 = vadd.f32 0.5, %v3609_v51  ;;  %v3611_v61 = vmul.f32 0.5, %v7243_v54  ;;  %7270 = vtanh.f32 %v1577_v42  ;;  %v1592_v53 = vmul.f32 0.5, %v568_v39  ;;  %v571_v54 = vld [vmem:[%s8700_s30 + $0xd88] sm:$0xff] }
 0x1d8   : > { %v7247_v0 = vpop.eup %7246  ;;  %5656 = vst [vmem:[%s8733_s17 + $0xc70] sm:$0xff] %v4632_v55  ;;  %v4634_v1 = vadd.f32 0.5, %v3610_v56  ;;  %v3612_v2 = vmul.f32 0.5, %v7245_v59  ;;  %7272 = vtanh.f32 %v1578_v47  ;;  %v1593_v58 = vmul.f32 0.5, %v569_v44  ;;  %v572_v59 = vld [vmem:[%s8700_s30 + $0xd90] sm:$0xff] }
 0x1d9   : > { %v7249_v5 = vpop.eup %7248  ;;  %5657 = vst [vmem:[%s8733_s17 + $0xc78] sm:$0xff] %v4633_v60  ;;  %v4635_v6 = vadd.f32 0.5, %v3611_v61  ;;  %v3613_v7 = vmul.f32 0.5, %v7247_v0  ;;  %7274 = vtanh.f32 %v1579_v52  ;;  %v1594_v63 = vmul.f32 0.5, %v570_v49  ;;  %v573_v0 = vld [vmem:[%s8700_s30 + $0xd98] sm:$0xff] }
 0x1da   : > { %v7251_v10 = vpop.eup %7250  ;;  %5658 = vst [vmem:[%s8733_s17 + $0xc80] sm:$0xff] %v4634_v1  ;;  %v4636_v11 = vadd.f32 0.5, %v3612_v2  ;;  %v3614_v12 = vmul.f32 0.5, %v7249_v5  ;;  %7276 = vtanh.f32 %v1580_v57  ;;  %v1595_v4 = vmul.f32 0.5, %v571_v54  ;;  %v574_v5 = vld [vmem:[%s8700_s30 + $0xda0] sm:$0xff] }
 0x1db   : > { %v7253_v15 = vpop.eup %7252  ;;  %5659 = vst [vmem:[%s8733_s17 + $0xc88] sm:$0xff] %v4635_v6  ;;  %v4637_v16 = vadd.f32 0.5, %v3613_v7  ;;  %v3615_v17 = vmul.f32 0.5, %v7251_v10  ;;  %7278 = vtanh.f32 %v1581_v62  ;;  %v1596_v9 = vmul.f32 0.5, %v572_v59  ;;  %v575_v10 = vld [vmem:[%s8700_s30 + $0xda8] sm:$0xff] }
 0x1dc   : > { %v7255_v20 = vpop.eup %7254  ;;  %5660 = vst [vmem:[%s8733_s17 + $0xc90] sm:$0xff] %v4636_v11  ;;  %v4638_v21 = vadd.f32 0.5, %v3614_v12  ;;  %v3616_v22 = vmul.f32 0.5, %v7253_v15  ;;  %7280 = vtanh.f32 %v1582_v3  ;;  %v1597_v14 = vmul.f32 0.5, %v573_v0  ;;  %v576_v15 = vld [vmem:[%s8700_s30 + $0xdb0] sm:$0xff] }
 0x1dd   : > { %v7257_v25 = vpop.eup %7256  ;;  %5661 = vst [vmem:[%s8733_s17 + $0xc98] sm:$0xff] %v4637_v16  ;;  %v4639_v26 = vadd.f32 0.5, %v3615_v17  ;;  %v3617_v27 = vmul.f32 0.5, %v7255_v20  ;;  %7282 = vtanh.f32 %v1583_v8  ;;  %v1598_v19 = vmul.f32 0.5, %v574_v5  ;;  %v577_v20 = vld [vmem:[%s8700_s30 + $0xdb8] sm:$0xff] }
 0x1de   : > { %v7259_v30 = vpop.eup %7258  ;;  %5662 = vst [vmem:[%s8733_s17 + $0xca0] sm:$0xff] %v4638_v21  ;;  %v4640_v31 = vadd.f32 0.5, %v3616_v22  ;;  %v3618_v32 = vmul.f32 0.5, %v7257_v25  ;;  %7284 = vtanh.f32 %v1584_v13  ;;  %v1599_v24 = vmul.f32 0.5, %v575_v10  ;;  %v578_v25 = vld [vmem:[%s8700_s30 + $0xdc0] sm:$0xff] }
 0x1df   : > { %v7261_v35 = vpop.eup %7260  ;;  %5663 = vst [vmem:[%s8733_s17 + $0xca8] sm:$0xff] %v4639_v26  ;;  %v4641_v36 = vadd.f32 0.5, %v3617_v27  ;;  %v3619_v37 = vmul.f32 0.5, %v7259_v30  ;;  %7286 = vtanh.f32 %v1585_v18  ;;  %v1600_v29 = vmul.f32 0.5, %v576_v15  ;;  %v579_v30 = vld [vmem:[%s8700_s30 + $0xdc8] sm:$0xff] }
 0x1e0   : > { %v7263_v40 = vpop.eup %7262  ;;  %5664 = vst [vmem:[%s8733_s17 + $0xcb0] sm:$0xff] %v4640_v31  ;;  %v4642_v41 = vadd.f32 0.5, %v3618_v32  ;;  %v3620_v42 = vmul.f32 0.5, %v7261_v35  ;;  %7288 = vtanh.f32 %v1586_v23  ;;  %v1601_v34 = vmul.f32 0.5, %v577_v20  ;;  %v580_v35 = vld [vmem:[%s8700_s30 + $0xdd0] sm:$0xff] }
 0x1e1   : > { %v7265_v45 = vpop.eup %7264  ;;  %5665 = vst [vmem:[%s8733_s17 + $0xcb8] sm:$0xff] %v4641_v36  ;;  %v4643_v46 = vadd.f32 0.5, %v3619_v37  ;;  %v3621_v47 = vmul.f32 0.5, %v7263_v40  ;;  %7290 = vtanh.f32 %v1587_v28  ;;  %v1602_v39 = vmul.f32 0.5, %v578_v25  ;;  %v581_v40 = vld [vmem:[%s8700_s30 + $0xdd8] sm:$0xff] }
 0x1e2   : > { %v7267_v50 = vpop.eup %7266  ;;  %5666 = vst [vmem:[%s8733_s17 + $0xcc0] sm:$0xff] %v4642_v41  ;;  %v4644_v51 = vadd.f32 0.5, %v3620_v42  ;;  %v3622_v52 = vmul.f32 0.5, %v7265_v45  ;;  %7292 = vtanh.f32 %v1588_v33  ;;  %v1603_v44 = vmul.f32 0.5, %v579_v30  ;;  %v582_v45 = vld [vmem:[%s8700_s30 + $0xde0] sm:$0xff] }
 0x1e3   : > { %v7269_v55 = vpop.eup %7268  ;;  %5667 = vst [vmem:[%s8733_s17 + $0xcc8] sm:$0xff] %v4643_v46  ;;  %v4645_v56 = vadd.f32 0.5, %v3621_v47  ;;  %v3623_v57 = vmul.f32 0.5, %v7267_v50  ;;  %7294 = vtanh.f32 %v1589_v38  ;;  %v1604_v49 = vmul.f32 0.5, %v580_v35  ;;  %v583_v50 = vld [vmem:[%s8700_s30 + $0xde8] sm:$0xff] }
 0x1e4   : > { %v7271_v60 = vpop.eup %7270  ;;  %5668 = vst [vmem:[%s8733_s17 + $0xcd0] sm:$0xff] %v4644_v51  ;;  %v4646_v61 = vadd.f32 0.5, %v3622_v52  ;;  %v3624_v62 = vmul.f32 0.5, %v7269_v55  ;;  %7296 = vtanh.f32 %v1590_v43  ;;  %v1605_v54 = vmul.f32 0.5, %v581_v40  ;;  %v584_v55 = vld [vmem:[%s8700_s30 + $0xdf0] sm:$0xff] }
 0x1e5   : > { %v7273_v1 = vpop.eup %7272  ;;  %5669 = vst [vmem:[%s8733_s17 + $0xcd8] sm:$0xff] %v4645_v56  ;;  %v4647_v2 = vadd.f32 0.5, %v3623_v57  ;;  %v3625_v3 = vmul.f32 0.5, %v7271_v60  ;;  %7298 = vtanh.f32 %v1591_v48  ;;  %v1606_v59 = vmul.f32 0.5, %v582_v45  ;;  %v585_v60 = vld [vmem:[%s8700_s30 + $0xdf8] sm:$0xff] }
 0x1e6   : > { %v7275_v6 = vpop.eup %7274  ;;  %5670 = vst [vmem:[%s8733_s17 + $0xce0] sm:$0xff] %v4646_v61  ;;  %v4648_v7 = vadd.f32 0.5, %v3624_v62  ;;  %v3626_v8 = vmul.f32 0.5, %v7273_v1  ;;  %7300 = vtanh.f32 %v1592_v53  ;;  %v1607_v0 = vmul.f32 0.5, %v583_v50  ;;  %v586_v1 = vld [vmem:[%s8700_s30 + $0xe00] sm:$0xff] }
 0x1e7   : > { %v7277_v11 = vpop.eup %7276  ;;  %5671 = vst [vmem:[%s8733_s17 + $0xce8] sm:$0xff] %v4647_v2  ;;  %v4649_v12 = vadd.f32 0.5, %v3625_v3  ;;  %v3627_v13 = vmul.f32 0.5, %v7275_v6  ;;  %7302 = vtanh.f32 %v1593_v58  ;;  %v1608_v5 = vmul.f32 0.5, %v584_v55  ;;  %v587_v6 = vld [vmem:[%s8700_s30 + $0xe08] sm:$0xff] }
 0x1e8   : > { %v7279_v16 = vpop.eup %7278  ;;  %5672 = vst [vmem:[%s8733_s17 + $0xcf0] sm:$0xff] %v4648_v7  ;;  %v4650_v17 = vadd.f32 0.5, %v3626_v8  ;;  %v3628_v18 = vmul.f32 0.5, %v7277_v11  ;;  %7304 = vtanh.f32 %v1594_v63  ;;  %v1609_v10 = vmul.f32 0.5, %v585_v60  ;;  %v588_v11 = vld [vmem:[%s8700_s30 + $0xe10] sm:$0xff] }
 0x1e9   : > { %v7281_v21 = vpop.eup %7280  ;;  %5673 = vst [vmem:[%s8733_s17 + $0xcf8] sm:$0xff] %v4649_v12  ;;  %v4651_v22 = vadd.f32 0.5, %v3627_v13  ;;  %v3629_v23 = vmul.f32 0.5, %v7279_v16  ;;  %7306 = vtanh.f32 %v1595_v4  ;;  %v1610_v15 = vmul.f32 0.5, %v586_v1  ;;  %v589_v16 = vld [vmem:[%s8700_s30 + $0xe18] sm:$0xff] }
 0x1ea   : > { %v7283_v26 = vpop.eup %7282  ;;  %5674 = vst [vmem:[%s8733_s17 + $0xd00] sm:$0xff] %v4650_v17  ;;  %v4652_v27 = vadd.f32 0.5, %v3628_v18  ;;  %v3630_v28 = vmul.f32 0.5, %v7281_v21  ;;  %7308 = vtanh.f32 %v1596_v9  ;;  %v1611_v20 = vmul.f32 0.5, %v587_v6  ;;  %v590_v21 = vld [vmem:[%s8700_s30 + $0xe20] sm:$0xff] }
 0x1eb   : > { %v7285_v31 = vpop.eup %7284  ;;  %5675 = vst [vmem:[%s8733_s17 + $0xd08] sm:$0xff] %v4651_v22  ;;  %v4653_v32 = vadd.f32 0.5, %v3629_v23  ;;  %v3631_v33 = vmul.f32 0.5, %v7283_v26  ;;  %7310 = vtanh.f32 %v1597_v14  ;;  %v1612_v25 = vmul.f32 0.5, %v588_v11  ;;  %v591_v26 = vld [vmem:[%s8700_s30 + $0xe28] sm:$0xff] }
 0x1ec   : > { %v7287_v36 = vpop.eup %7286  ;;  %5676 = vst [vmem:[%s8733_s17 + $0xd10] sm:$0xff] %v4652_v27  ;;  %v4654_v37 = vadd.f32 0.5, %v3630_v28  ;;  %v3632_v38 = vmul.f32 0.5, %v7285_v31  ;;  %7312 = vtanh.f32 %v1598_v19  ;;  %v1613_v30 = vmul.f32 0.5, %v589_v16  ;;  %v592_v31 = vld [vmem:[%s8700_s30 + $0xe30] sm:$0xff] }
 0x1ed   : > { %v7289_v41 = vpop.eup %7288  ;;  %5677 = vst [vmem:[%s8733_s17 + $0xd18] sm:$0xff] %v4653_v32  ;;  %v4655_v42 = vadd.f32 0.5, %v3631_v33  ;;  %v3633_v43 = vmul.f32 0.5, %v7287_v36  ;;  %7314 = vtanh.f32 %v1599_v24  ;;  %v1614_v35 = vmul.f32 0.5, %v590_v21  ;;  %v593_v36 = vld [vmem:[%s8700_s30 + $0xe38] sm:$0xff] }
 0x1ee   : > { %v7291_v46 = vpop.eup %7290  ;;  %5678 = vst [vmem:[%s8733_s17 + $0xd20] sm:$0xff] %v4654_v37  ;;  %v4656_v47 = vadd.f32 0.5, %v3632_v38  ;;  %v3634_v48 = vmul.f32 0.5, %v7289_v41  ;;  %7316 = vtanh.f32 %v1600_v29  ;;  %v1615_v40 = vmul.f32 0.5, %v591_v26  ;;  %v594_v41 = vld [vmem:[%s8700_s30 + $0xe40] sm:$0xff] }
 0x1ef   : > { %v7293_v51 = vpop.eup %7292  ;;  %5679 = vst [vmem:[%s8733_s17 + $0xd28] sm:$0xff] %v4655_v42  ;;  %v4657_v52 = vadd.f32 0.5, %v3633_v43  ;;  %v3635_v53 = vmul.f32 0.5, %v7291_v46  ;;  %7318 = vtanh.f32 %v1601_v34  ;;  %v1616_v45 = vmul.f32 0.5, %v592_v31  ;;  %v595_v46 = vld [vmem:[%s8700_s30 + $0xe48] sm:$0xff] }
 0x1f0   : > { %v7295_v56 = vpop.eup %7294  ;;  %5680 = vst [vmem:[%s8733_s17 + $0xd30] sm:$0xff] %v4656_v47  ;;  %v4658_v57 = vadd.f32 0.5, %v3634_v48  ;;  %v3636_v58 = vmul.f32 0.5, %v7293_v51  ;;  %7320 = vtanh.f32 %v1602_v39  ;;  %v1617_v50 = vmul.f32 0.5, %v593_v36  ;;  %v596_v51 = vld [vmem:[%s8700_s30 + $0xe50] sm:$0xff] }
 0x1f1   : > { %v7297_v61 = vpop.eup %7296  ;;  %5681 = vst [vmem:[%s8733_s17 + $0xd38] sm:$0xff] %v4657_v52  ;;  %v4659_v62 = vadd.f32 0.5, %v3635_v53  ;;  %v3637_v63 = vmul.f32 0.5, %v7295_v56  ;;  %7322 = vtanh.f32 %v1603_v44  ;;  %v1618_v55 = vmul.f32 0.5, %v594_v41  ;;  %v597_v56 = vld [vmem:[%s8700_s30 + $0xe58] sm:$0xff] }
 0x1f2   : > { %v7299_v2 = vpop.eup %7298  ;;  %5682 = vst [vmem:[%s8733_s17 + $0xd40] sm:$0xff] %v4658_v57  ;;  %v4660_v3 = vadd.f32 0.5, %v3636_v58  ;;  %v3638_v4 = vmul.f32 0.5, %v7297_v61  ;;  %7324 = vtanh.f32 %v1604_v49  ;;  %v1619_v60 = vmul.f32 0.5, %v595_v46  ;;  %v598_v61 = vld [vmem:[%s8700_s30 + $0xe60] sm:$0xff] }
 0x1f3   : > { %v7301_v7 = vpop.eup %7300  ;;  %5683 = vst [vmem:[%s8733_s17 + $0xd48] sm:$0xff] %v4659_v62  ;;  %v4661_v8 = vadd.f32 0.5, %v3637_v63  ;;  %v3639_v9 = vmul.f32 0.5, %v7299_v2  ;;  %7326 = vtanh.f32 %v1605_v54  ;;  %v1620_v1 = vmul.f32 0.5, %v596_v51  ;;  %v599_v2 = vld [vmem:[%s8700_s30 + $0xe68] sm:$0xff] }
 0x1f4   : > { %v7303_v12 = vpop.eup %7302  ;;  %5684 = vst [vmem:[%s8733_s17 + $0xd50] sm:$0xff] %v4660_v3  ;;  %v4662_v13 = vadd.f32 0.5, %v3638_v4  ;;  %v3640_v14 = vmul.f32 0.5, %v7301_v7  ;;  %7328 = vtanh.f32 %v1606_v59  ;;  %v1621_v6 = vmul.f32 0.5, %v597_v56  ;;  %v600_v7 = vld [vmem:[%s8700_s30 + $0xe70] sm:$0xff] }
 0x1f5   : > { %v7305_v17 = vpop.eup %7304  ;;  %5685 = vst [vmem:[%s8733_s17 + $0xd58] sm:$0xff] %v4661_v8  ;;  %v4663_v18 = vadd.f32 0.5, %v3639_v9  ;;  %v3641_v19 = vmul.f32 0.5, %v7303_v12  ;;  %7330 = vtanh.f32 %v1607_v0  ;;  %v1622_v11 = vmul.f32 0.5, %v598_v61  ;;  %v601_v12 = vld [vmem:[%s8700_s30 + $0xe78] sm:$0xff] }
 0x1f6   : > { %v7307_v22 = vpop.eup %7306  ;;  %5686 = vst [vmem:[%s8733_s17 + $0xd60] sm:$0xff] %v4662_v13  ;;  %v4664_v23 = vadd.f32 0.5, %v3640_v14  ;;  %v3642_v24 = vmul.f32 0.5, %v7305_v17  ;;  %7332 = vtanh.f32 %v1608_v5  ;;  %v1623_v16 = vmul.f32 0.5, %v599_v2  ;;  %v602_v17 = vld [vmem:[%s8700_s30 + $0xe80] sm:$0xff] }
 0x1f7   : > { %v7309_v27 = vpop.eup %7308  ;;  %5687 = vst [vmem:[%s8733_s17 + $0xd68] sm:$0xff] %v4663_v18  ;;  %v4665_v28 = vadd.f32 0.5, %v3641_v19  ;;  %v3643_v29 = vmul.f32 0.5, %v7307_v22  ;;  %7334 = vtanh.f32 %v1609_v10  ;;  %v1624_v21 = vmul.f32 0.5, %v600_v7  ;;  %v603_v22 = vld [vmem:[%s8700_s30 + $0xe88] sm:$0xff] }
 0x1f8   : > { %v7311_v32 = vpop.eup %7310  ;;  %5688 = vst [vmem:[%s8733_s17 + $0xd70] sm:$0xff] %v4664_v23  ;;  %v4666_v33 = vadd.f32 0.5, %v3642_v24  ;;  %v3644_v34 = vmul.f32 0.5, %v7309_v27  ;;  %7336 = vtanh.f32 %v1610_v15  ;;  %v1625_v26 = vmul.f32 0.5, %v601_v12  ;;  %v604_v27 = vld [vmem:[%s8700_s30 + $0xe90] sm:$0xff] }
 0x1f9   : > { %v7313_v37 = vpop.eup %7312  ;;  %5689 = vst [vmem:[%s8733_s17 + $0xd78] sm:$0xff] %v4665_v28  ;;  %v4667_v38 = vadd.f32 0.5, %v3643_v29  ;;  %v3645_v39 = vmul.f32 0.5, %v7311_v32  ;;  %7338 = vtanh.f32 %v1611_v20  ;;  %v1626_v31 = vmul.f32 0.5, %v602_v17  ;;  %v605_v32 = vld [vmem:[%s8700_s30 + $0xe98] sm:$0xff] }
 0x1fa   : > { %v7315_v42 = vpop.eup %7314  ;;  %5690 = vst [vmem:[%s8733_s17 + $0xd80] sm:$0xff] %v4666_v33  ;;  %v4668_v43 = vadd.f32 0.5, %v3644_v34  ;;  %v3646_v44 = vmul.f32 0.5, %v7313_v37  ;;  %7340 = vtanh.f32 %v1612_v25  ;;  %v1627_v36 = vmul.f32 0.5, %v603_v22  ;;  %v606_v37 = vld [vmem:[%s8700_s30 + $0xea0] sm:$0xff] }
 0x1fb   : > { %v7317_v47 = vpop.eup %7316  ;;  %5691 = vst [vmem:[%s8733_s17 + $0xd88] sm:$0xff] %v4667_v38  ;;  %v4669_v48 = vadd.f32 0.5, %v3645_v39  ;;  %v3647_v49 = vmul.f32 0.5, %v7315_v42  ;;  %7342 = vtanh.f32 %v1613_v30  ;;  %v1628_v41 = vmul.f32 0.5, %v604_v27  ;;  %v607_v42 = vld [vmem:[%s8700_s30 + $0xea8] sm:$0xff] }
 0x1fc   : > { %v7319_v52 = vpop.eup %7318  ;;  %5692 = vst [vmem:[%s8733_s17 + $0xd90] sm:$0xff] %v4668_v43  ;;  %v4670_v53 = vadd.f32 0.5, %v3646_v44  ;;  %v3648_v54 = vmul.f32 0.5, %v7317_v47  ;;  %7344 = vtanh.f32 %v1614_v35  ;;  %v1629_v46 = vmul.f32 0.5, %v605_v32  ;;  %v608_v47 = vld [vmem:[%s8700_s30 + $0xeb0] sm:$0xff] }
 0x1fd   : > { %v7321_v57 = vpop.eup %7320  ;;  %5693 = vst [vmem:[%s8733_s17 + $0xd98] sm:$0xff] %v4669_v48  ;;  %v4671_v58 = vadd.f32 0.5, %v3647_v49  ;;  %v3649_v59 = vmul.f32 0.5, %v7319_v52  ;;  %7346 = vtanh.f32 %v1615_v40  ;;  %v1630_v51 = vmul.f32 0.5, %v606_v37  ;;  %v609_v52 = vld [vmem:[%s8700_s30 + $0xeb8] sm:$0xff] }
 0x1fe   : > { %v7323_v62 = vpop.eup %7322  ;;  %5694 = vst [vmem:[%s8733_s17 + $0xda0] sm:$0xff] %v4670_v53  ;;  %v4672_v63 = vadd.f32 0.5, %v3648_v54  ;;  %v3650_v0 = vmul.f32 0.5, %v7321_v57  ;;  %7348 = vtanh.f32 %v1616_v45  ;;  %v1631_v56 = vmul.f32 0.5, %v607_v42  ;;  %v610_v57 = vld [vmem:[%s8700_s30 + $0xec0] sm:$0xff] }
 0x1ff   : > { %v7325_v3 = vpop.eup %7324  ;;  %5695 = vst [vmem:[%s8733_s17 + $0xda8] sm:$0xff] %v4671_v58  ;;  %v4673_v4 = vadd.f32 0.5, %v3649_v59  ;;  %v3651_v5 = vmul.f32 0.5, %v7323_v62  ;;  %7350 = vtanh.f32 %v1617_v50  ;;  %v1632_v61 = vmul.f32 0.5, %v608_v47  ;;  %v611_v62 = vld [vmem:[%s8700_s30 + $0xec8] sm:$0xff] }
 0x200   : > { %v7327_v8 = vpop.eup %7326  ;;  %5696 = vst [vmem:[%s8733_s17 + $0xdb0] sm:$0xff] %v4672_v63  ;;  %v4674_v9 = vadd.f32 0.5, %v3650_v0  ;;  %v3652_v10 = vmul.f32 0.5, %v7325_v3  ;;  %7352 = vtanh.f32 %v1618_v55  ;;  %v1633_v2 = vmul.f32 0.5, %v609_v52  ;;  %v612_v3 = vld [vmem:[%s8700_s30 + $0xed0] sm:$0xff] }
 0x201   : > { %v7329_v13 = vpop.eup %7328  ;;  %5697 = vst [vmem:[%s8733_s17 + $0xdb8] sm:$0xff] %v4673_v4  ;;  %v4675_v14 = vadd.f32 0.5, %v3651_v5  ;;  %v3653_v15 = vmul.f32 0.5, %v7327_v8  ;;  %7354 = vtanh.f32 %v1619_v60  ;;  %v1634_v7 = vmul.f32 0.5, %v610_v57  ;;  %v613_v8 = vld [vmem:[%s8700_s30 + $0xed8] sm:$0xff] }
 0x202   : > { %v7331_v18 = vpop.eup %7330  ;;  %5698 = vst [vmem:[%s8733_s17 + $0xdc0] sm:$0xff] %v4674_v9  ;;  %v4676_v19 = vadd.f32 0.5, %v3652_v10  ;;  %v3654_v20 = vmul.f32 0.5, %v7329_v13  ;;  %7356 = vtanh.f32 %v1620_v1  ;;  %v1635_v12 = vmul.f32 0.5, %v611_v62  ;;  %v614_v13 = vld [vmem:[%s8700_s30 + $0xee0] sm:$0xff] }
 0x203   : > { %v7333_v23 = vpop.eup %7332  ;;  %5699 = vst [vmem:[%s8733_s17 + $0xdc8] sm:$0xff] %v4675_v14  ;;  %v4677_v24 = vadd.f32 0.5, %v3653_v15  ;;  %v3655_v25 = vmul.f32 0.5, %v7331_v18  ;;  %7358 = vtanh.f32 %v1621_v6  ;;  %v1636_v17 = vmul.f32 0.5, %v612_v3  ;;  %v615_v18 = vld [vmem:[%s8700_s30 + $0xee8] sm:$0xff] }
 0x204   : > { %v7335_v28 = vpop.eup %7334  ;;  %5700 = vst [vmem:[%s8733_s17 + $0xdd0] sm:$0xff] %v4676_v19  ;;  %v4678_v29 = vadd.f32 0.5, %v3654_v20  ;;  %v3656_v30 = vmul.f32 0.5, %v7333_v23  ;;  %7360 = vtanh.f32 %v1622_v11  ;;  %v1637_v22 = vmul.f32 0.5, %v613_v8  ;;  %v616_v23 = vld [vmem:[%s8700_s30 + $0xef0] sm:$0xff] }
 0x205   : > { %v7337_v33 = vpop.eup %7336  ;;  %5701 = vst [vmem:[%s8733_s17 + $0xdd8] sm:$0xff] %v4677_v24  ;;  %v4679_v34 = vadd.f32 0.5, %v3655_v25  ;;  %v3657_v35 = vmul.f32 0.5, %v7335_v28  ;;  %7362 = vtanh.f32 %v1623_v16  ;;  %v1638_v27 = vmul.f32 0.5, %v614_v13  ;;  %v617_v28 = vld [vmem:[%s8700_s30 + $0xef8] sm:$0xff] }
 0x206   : > { %v7339_v38 = vpop.eup %7338  ;;  %5702 = vst [vmem:[%s8733_s17 + $0xde0] sm:$0xff] %v4678_v29  ;;  %v4680_v39 = vadd.f32 0.5, %v3656_v30  ;;  %v3658_v40 = vmul.f32 0.5, %v7337_v33  ;;  %7364 = vtanh.f32 %v1624_v21  ;;  %v1639_v32 = vmul.f32 0.5, %v615_v18  ;;  %v618_v33 = vld [vmem:[%s8700_s30 + $0xf00] sm:$0xff] }
 0x207   : > { %v7341_v43 = vpop.eup %7340  ;;  %5703 = vst [vmem:[%s8733_s17 + $0xde8] sm:$0xff] %v4679_v34  ;;  %v4681_v44 = vadd.f32 0.5, %v3657_v35  ;;  %v3659_v45 = vmul.f32 0.5, %v7339_v38  ;;  %7366 = vtanh.f32 %v1625_v26  ;;  %v1640_v37 = vmul.f32 0.5, %v616_v23  ;;  %v619_v38 = vld [vmem:[%s8700_s30 + $0xf08] sm:$0xff] }
 0x208   : > { %v7343_v48 = vpop.eup %7342  ;;  %5704 = vst [vmem:[%s8733_s17 + $0xdf0] sm:$0xff] %v4680_v39  ;;  %v4682_v49 = vadd.f32 0.5, %v3658_v40  ;;  %v3660_v50 = vmul.f32 0.5, %v7341_v43  ;;  %7368 = vtanh.f32 %v1626_v31  ;;  %v1641_v42 = vmul.f32 0.5, %v617_v28  ;;  %v620_v43 = vld [vmem:[%s8700_s30 + $0xf10] sm:$0xff] }
 0x209   : > { %v7345_v53 = vpop.eup %7344  ;;  %5705 = vst [vmem:[%s8733_s17 + $0xdf8] sm:$0xff] %v4681_v44  ;;  %v4683_v54 = vadd.f32 0.5, %v3659_v45  ;;  %v3661_v55 = vmul.f32 0.5, %v7343_v48  ;;  %7370 = vtanh.f32 %v1627_v36  ;;  %v1642_v47 = vmul.f32 0.5, %v618_v33  ;;  %v621_v48 = vld [vmem:[%s8700_s30 + $0xf18] sm:$0xff] }
 0x20a   : > { %v7347_v58 = vpop.eup %7346  ;;  %5706 = vst [vmem:[%s8733_s17 + $0xe00] sm:$0xff] %v4682_v49  ;;  %v4684_v59 = vadd.f32 0.5, %v3660_v50  ;;  %v3662_v60 = vmul.f32 0.5, %v7345_v53  ;;  %7372 = vtanh.f32 %v1628_v41  ;;  %v1643_v52 = vmul.f32 0.5, %v619_v38  ;;  %v622_v53 = vld [vmem:[%s8700_s30 + $0xf20] sm:$0xff] }
 0x20b   : > { %v7349_v63 = vpop.eup %7348  ;;  %5707 = vst [vmem:[%s8733_s17 + $0xe08] sm:$0xff] %v4683_v54  ;;  %v4685_v0 = vadd.f32 0.5, %v3661_v55  ;;  %v3663_v1 = vmul.f32 0.5, %v7347_v58  ;;  %7374 = vtanh.f32 %v1629_v46  ;;  %v1644_v57 = vmul.f32 0.5, %v620_v43  ;;  %v623_v58 = vld [vmem:[%s8700_s30 + $0xf28] sm:$0xff] }
 0x20c   : > { %v7351_v4 = vpop.eup %7350  ;;  %5708 = vst [vmem:[%s8733_s17 + $0xe10] sm:$0xff] %v4684_v59  ;;  %v4686_v5 = vadd.f32 0.5, %v3662_v60  ;;  %v3664_v6 = vmul.f32 0.5, %v7349_v63  ;;  %7376 = vtanh.f32 %v1630_v51  ;;  %v1645_v62 = vmul.f32 0.5, %v621_v48  ;;  %v624_v63 = vld [vmem:[%s8700_s30 + $0xf30] sm:$0xff] }
 0x20d   : > { %v7353_v9 = vpop.eup %7352  ;;  %5709 = vst [vmem:[%s8733_s17 + $0xe18] sm:$0xff] %v4685_v0  ;;  %v4687_v10 = vadd.f32 0.5, %v3663_v1  ;;  %v3665_v11 = vmul.f32 0.5, %v7351_v4  ;;  %7378 = vtanh.f32 %v1631_v56  ;;  %v1646_v3 = vmul.f32 0.5, %v622_v53  ;;  %v625_v4 = vld [vmem:[%s8700_s30 + $0xf38] sm:$0xff] }
 0x20e   : > { %v7355_v14 = vpop.eup %7354  ;;  %5710 = vst [vmem:[%s8733_s17 + $0xe20] sm:$0xff] %v4686_v5  ;;  %v4688_v15 = vadd.f32 0.5, %v3664_v6  ;;  %v3666_v16 = vmul.f32 0.5, %v7353_v9  ;;  %7380 = vtanh.f32 %v1632_v61  ;;  %v1647_v8 = vmul.f32 0.5, %v623_v58  ;;  %v626_v9 = vld [vmem:[%s8700_s30 + $0xf40] sm:$0xff] }
 0x20f   : > { %v7357_v19 = vpop.eup %7356  ;;  %5711 = vst [vmem:[%s8733_s17 + $0xe28] sm:$0xff] %v4687_v10  ;;  %v4689_v20 = vadd.f32 0.5, %v3665_v11  ;;  %v3667_v21 = vmul.f32 0.5, %v7355_v14  ;;  %7382 = vtanh.f32 %v1633_v2  ;;  %v1648_v13 = vmul.f32 0.5, %v624_v63  ;;  %v627_v14 = vld [vmem:[%s8700_s30 + $0xf48] sm:$0xff] }
 0x210   : > { %v7359_v24 = vpop.eup %7358  ;;  %5712 = vst [vmem:[%s8733_s17 + $0xe30] sm:$0xff] %v4688_v15  ;;  %v4690_v25 = vadd.f32 0.5, %v3666_v16  ;;  %v3668_v26 = vmul.f32 0.5, %v7357_v19  ;;  %7384 = vtanh.f32 %v1634_v7  ;;  %v1649_v18 = vmul.f32 0.5, %v625_v4  ;;  %v628_v19 = vld [vmem:[%s8700_s30 + $0xf50] sm:$0xff] }
 0x211   : > { %v7361_v29 = vpop.eup %7360  ;;  %5713 = vst [vmem:[%s8733_s17 + $0xe38] sm:$0xff] %v4689_v20  ;;  %v4691_v30 = vadd.f32 0.5, %v3667_v21  ;;  %v3669_v31 = vmul.f32 0.5, %v7359_v24  ;;  %7386 = vtanh.f32 %v1635_v12  ;;  %v1650_v23 = vmul.f32 0.5, %v626_v9  ;;  %v629_v24 = vld [vmem:[%s8700_s30 + $0xf58] sm:$0xff] }
 0x212   : > { %v7363_v34 = vpop.eup %7362  ;;  %5714 = vst [vmem:[%s8733_s17 + $0xe40] sm:$0xff] %v4690_v25  ;;  %v4692_v35 = vadd.f32 0.5, %v3668_v26  ;;  %v3670_v36 = vmul.f32 0.5, %v7361_v29  ;;  %7388 = vtanh.f32 %v1636_v17  ;;  %v1651_v28 = vmul.f32 0.5, %v627_v14  ;;  %v630_v29 = vld [vmem:[%s8700_s30 + $0xf60] sm:$0xff] }
 0x213   : > { %v7365_v39 = vpop.eup %7364  ;;  %5715 = vst [vmem:[%s8733_s17 + $0xe48] sm:$0xff] %v4691_v30  ;;  %v4693_v40 = vadd.f32 0.5, %v3669_v31  ;;  %v3671_v41 = vmul.f32 0.5, %v7363_v34  ;;  %7390 = vtanh.f32 %v1637_v22  ;;  %v1652_v33 = vmul.f32 0.5, %v628_v19  ;;  %v631_v34 = vld [vmem:[%s8700_s30 + $0xf68] sm:$0xff] }
 0x214   : > { %v7367_v44 = vpop.eup %7366  ;;  %5716 = vst [vmem:[%s8733_s17 + $0xe50] sm:$0xff] %v4692_v35  ;;  %v4694_v45 = vadd.f32 0.5, %v3670_v36  ;;  %v3672_v46 = vmul.f32 0.5, %v7365_v39  ;;  %7392 = vtanh.f32 %v1638_v27  ;;  %v1653_v38 = vmul.f32 0.5, %v629_v24  ;;  %v632_v39 = vld [vmem:[%s8700_s30 + $0xf70] sm:$0xff] }
 0x215   : > { %v7369_v49 = vpop.eup %7368  ;;  %5717 = vst [vmem:[%s8733_s17 + $0xe58] sm:$0xff] %v4693_v40  ;;  %v4695_v50 = vadd.f32 0.5, %v3671_v41  ;;  %v3673_v51 = vmul.f32 0.5, %v7367_v44  ;;  %7394 = vtanh.f32 %v1639_v32  ;;  %v1654_v43 = vmul.f32 0.5, %v630_v29  ;;  %v633_v44 = vld [vmem:[%s8700_s30 + $0xf78] sm:$0xff] }
 0x216   : > { %v7371_v54 = vpop.eup %7370  ;;  %5718 = vst [vmem:[%s8733_s17 + $0xe60] sm:$0xff] %v4694_v45  ;;  %v4696_v55 = vadd.f32 0.5, %v3672_v46  ;;  %v3674_v56 = vmul.f32 0.5, %v7369_v49  ;;  %7396 = vtanh.f32 %v1640_v37  ;;  %v1655_v48 = vmul.f32 0.5, %v631_v34  ;;  %v634_v49 = vld [vmem:[%s8700_s30 + $0xf80] sm:$0xff] }
 0x217   : > { %v7373_v59 = vpop.eup %7372  ;;  %5719 = vst [vmem:[%s8733_s17 + $0xe68] sm:$0xff] %v4695_v50  ;;  %v4697_v60 = vadd.f32 0.5, %v3673_v51  ;;  %v3675_v61 = vmul.f32 0.5, %v7371_v54  ;;  %7398 = vtanh.f32 %v1641_v42  ;;  %v1656_v53 = vmul.f32 0.5, %v632_v39  ;;  %v635_v54 = vld [vmem:[%s8700_s30 + $0xf88] sm:$0xff] }
 0x218   : > { %v7375_v0 = vpop.eup %7374  ;;  %5720 = vst [vmem:[%s8733_s17 + $0xe70] sm:$0xff] %v4696_v55  ;;  %v4698_v1 = vadd.f32 0.5, %v3674_v56  ;;  %v3676_v2 = vmul.f32 0.5, %v7373_v59  ;;  %7400 = vtanh.f32 %v1642_v47  ;;  %v1657_v58 = vmul.f32 0.5, %v633_v44  ;;  %v636_v59 = vld [vmem:[%s8700_s30 + $0xf90] sm:$0xff] }
 0x219   : > { %v7377_v5 = vpop.eup %7376  ;;  %5721 = vst [vmem:[%s8733_s17 + $0xe78] sm:$0xff] %v4697_v60  ;;  %v4699_v6 = vadd.f32 0.5, %v3675_v61  ;;  %v3677_v7 = vmul.f32 0.5, %v7375_v0  ;;  %7402 = vtanh.f32 %v1643_v52  ;;  %v1658_v63 = vmul.f32 0.5, %v634_v49  ;;  %v637_v0 = vld [vmem:[%s8700_s30 + $0xf98] sm:$0xff] }
 0x21a   : > { %v7379_v10 = vpop.eup %7378  ;;  %5722 = vst [vmem:[%s8733_s17 + $0xe80] sm:$0xff] %v4698_v1  ;;  %v4700_v11 = vadd.f32 0.5, %v3676_v2  ;;  %v3678_v12 = vmul.f32 0.5, %v7377_v5  ;;  %7404 = vtanh.f32 %v1644_v57  ;;  %v1659_v4 = vmul.f32 0.5, %v635_v54  ;;  %v638_v5 = vld [vmem:[%s8700_s30 + $0xfa0] sm:$0xff] }
 0x21b   : > { %v7381_v15 = vpop.eup %7380  ;;  %5723 = vst [vmem:[%s8733_s17 + $0xe88] sm:$0xff] %v4699_v6  ;;  %v4701_v16 = vadd.f32 0.5, %v3677_v7  ;;  %v3679_v17 = vmul.f32 0.5, %v7379_v10  ;;  %7406 = vtanh.f32 %v1645_v62  ;;  %v1660_v9 = vmul.f32 0.5, %v636_v59  ;;  %v639_v10 = vld [vmem:[%s8700_s30 + $0xfa8] sm:$0xff] }
 0x21c   : > { %v7383_v20 = vpop.eup %7382  ;;  %5724 = vst [vmem:[%s8733_s17 + $0xe90] sm:$0xff] %v4700_v11  ;;  %v4702_v21 = vadd.f32 0.5, %v3678_v12  ;;  %v3680_v22 = vmul.f32 0.5, %v7381_v15  ;;  %7408 = vtanh.f32 %v1646_v3  ;;  %v1661_v14 = vmul.f32 0.5, %v637_v0  ;;  %v640_v15 = vld [vmem:[%s8700_s30 + $0xfb0] sm:$0xff] }
 0x21d   : > { %v7385_v25 = vpop.eup %7384  ;;  %5725 = vst [vmem:[%s8733_s17 + $0xe98] sm:$0xff] %v4701_v16  ;;  %v4703_v26 = vadd.f32 0.5, %v3679_v17  ;;  %v3681_v27 = vmul.f32 0.5, %v7383_v20  ;;  %7410 = vtanh.f32 %v1647_v8  ;;  %v1662_v19 = vmul.f32 0.5, %v638_v5  ;;  %v641_v20 = vld [vmem:[%s8700_s30 + $0xfb8] sm:$0xff] }
 0x21e   : > { %v7387_v30 = vpop.eup %7386  ;;  %5726 = vst [vmem:[%s8733_s17 + $0xea0] sm:$0xff] %v4702_v21  ;;  %v4704_v31 = vadd.f32 0.5, %v3680_v22  ;;  %v3682_v32 = vmul.f32 0.5, %v7385_v25  ;;  %7412 = vtanh.f32 %v1648_v13  ;;  %v1663_v24 = vmul.f32 0.5, %v639_v10  ;;  %v642_v25 = vld [vmem:[%s8700_s30 + $0xfc0] sm:$0xff] }
 0x21f   : > { %v7389_v35 = vpop.eup %7388  ;;  %5727 = vst [vmem:[%s8733_s17 + $0xea8] sm:$0xff] %v4703_v26  ;;  %v4705_v36 = vadd.f32 0.5, %v3681_v27  ;;  %v3683_v37 = vmul.f32 0.5, %v7387_v30  ;;  %7414 = vtanh.f32 %v1649_v18  ;;  %v1664_v29 = vmul.f32 0.5, %v640_v15  ;;  %v643_v30 = vld [vmem:[%s8700_s30 + $0xfc8] sm:$0xff] }
 0x220   : > { %v7391_v40 = vpop.eup %7390  ;;  %5728 = vst [vmem:[%s8733_s17 + $0xeb0] sm:$0xff] %v4704_v31  ;;  %v4706_v41 = vadd.f32 0.5, %v3682_v32  ;;  %v3684_v42 = vmul.f32 0.5, %v7389_v35  ;;  %7416 = vtanh.f32 %v1650_v23  ;;  %v1665_v34 = vmul.f32 0.5, %v641_v20  ;;  %v644_v35 = vld [vmem:[%s8700_s30 + $0xfd0] sm:$0xff] }
 0x221   : > { %v7393_v45 = vpop.eup %7392  ;;  %5729 = vst [vmem:[%s8733_s17 + $0xeb8] sm:$0xff] %v4705_v36  ;;  %v4707_v46 = vadd.f32 0.5, %v3683_v37  ;;  %v3685_v47 = vmul.f32 0.5, %v7391_v40  ;;  %7418 = vtanh.f32 %v1651_v28  ;;  %v1666_v39 = vmul.f32 0.5, %v642_v25  ;;  %v645_v40 = vld [vmem:[%s8700_s30 + $0xfd8] sm:$0xff] }
 0x222   : > { %v7395_v50 = vpop.eup %7394  ;;  %5730 = vst [vmem:[%s8733_s17 + $0xec0] sm:$0xff] %v4706_v41  ;;  %v4708_v51 = vadd.f32 0.5, %v3684_v42  ;;  %v3686_v52 = vmul.f32 0.5, %v7393_v45  ;;  %7420 = vtanh.f32 %v1652_v33  ;;  %v1667_v44 = vmul.f32 0.5, %v643_v30  ;;  %v646_v45 = vld [vmem:[%s8700_s30 + $0xfe0] sm:$0xff] }
 0x223   : > { %v7397_v55 = vpop.eup %7396  ;;  %5731 = vst [vmem:[%s8733_s17 + $0xec8] sm:$0xff] %v4707_v46  ;;  %v4709_v56 = vadd.f32 0.5, %v3685_v47  ;;  %v3687_v57 = vmul.f32 0.5, %v7395_v50  ;;  %7422 = vtanh.f32 %v1653_v38  ;;  %v1668_v49 = vmul.f32 0.5, %v644_v35  ;;  %v647_v50 = vld [vmem:[%s8700_s30 + $0xfe8] sm:$0xff] }
 0x224   : > { %v7399_v60 = vpop.eup %7398  ;;  %5732 = vst [vmem:[%s8733_s17 + $0xed0] sm:$0xff] %v4708_v51  ;;  %v4710_v61 = vadd.f32 0.5, %v3686_v52  ;;  %v3688_v62 = vmul.f32 0.5, %v7397_v55  ;;  %7424 = vtanh.f32 %v1654_v43  ;;  %v1669_v54 = vmul.f32 0.5, %v645_v40  ;;  %v648_v55 = vld [vmem:[%s8700_s30 + $0xff0] sm:$0xff] }
 0x225   : > { %v7401_v1 = vpop.eup %7400  ;;  %5733 = vst [vmem:[%s8733_s17 + $0xed8] sm:$0xff] %v4709_v56  ;;  %v4711_v2 = vadd.f32 0.5, %v3687_v57  ;;  %v3689_v3 = vmul.f32 0.5, %v7399_v60  ;;  %7426 = vtanh.f32 %v1655_v48  ;;  %v1670_v59 = vmul.f32 0.5, %v646_v45  ;;  %v649_v60 = vld [vmem:[%s8700_s30 + $0xff8] sm:$0xff] }
 0x226   : > { %v7403_v6 = vpop.eup %7402  ;;  %5734 = vst [vmem:[%s8733_s17 + $0xee0] sm:$0xff] %v4710_v61  ;;  %v4712_v7 = vadd.f32 0.5, %v3688_v62  ;;  %v3690_v8 = vmul.f32 0.5, %v7401_v1  ;;  %7428 = vtanh.f32 %v1656_v53  ;;  %v1671_v0 = vmul.f32 0.5, %v647_v50  ;;  %v650_v1 = vld [vmem:[%s8700_s30 + $0x1000] sm:$0xff] }
 0x227   : > { %v7405_v11 = vpop.eup %7404  ;;  %5735 = vst [vmem:[%s8733_s17 + $0xee8] sm:$0xff] %v4711_v2  ;;  %v4713_v12 = vadd.f32 0.5, %v3689_v3  ;;  %v3691_v13 = vmul.f32 0.5, %v7403_v6  ;;  %7430 = vtanh.f32 %v1657_v58  ;;  %v1672_v5 = vmul.f32 0.5, %v648_v55  ;;  %v651_v6 = vld [vmem:[%s8700_s30 + $0x1008] sm:$0xff] }
 0x228   : > { %v7407_v16 = vpop.eup %7406  ;;  %5736 = vst [vmem:[%s8733_s17 + $0xef0] sm:$0xff] %v4712_v7  ;;  %v4714_v17 = vadd.f32 0.5, %v3690_v8  ;;  %v3692_v18 = vmul.f32 0.5, %v7405_v11  ;;  %7432 = vtanh.f32 %v1658_v63  ;;  %v1673_v10 = vmul.f32 0.5, %v649_v60  ;;  %v652_v11 = vld [vmem:[%s8700_s30 + $0x1010] sm:$0xff] }
 0x229   : > { %v7409_v21 = vpop.eup %7408  ;;  %5737 = vst [vmem:[%s8733_s17 + $0xef8] sm:$0xff] %v4713_v12  ;;  %v4715_v22 = vadd.f32 0.5, %v3691_v13  ;;  %v3693_v23 = vmul.f32 0.5, %v7407_v16  ;;  %7434 = vtanh.f32 %v1659_v4  ;;  %v1674_v15 = vmul.f32 0.5, %v650_v1  ;;  %v653_v16 = vld [vmem:[%s8700_s30 + $0x1018] sm:$0xff] }
 0x22a   : > { %v7411_v26 = vpop.eup %7410  ;;  %5738 = vst [vmem:[%s8733_s17 + $0xf00] sm:$0xff] %v4714_v17  ;;  %v4716_v27 = vadd.f32 0.5, %v3692_v18  ;;  %v3694_v28 = vmul.f32 0.5, %v7409_v21  ;;  %7436 = vtanh.f32 %v1660_v9  ;;  %v1675_v20 = vmul.f32 0.5, %v651_v6  ;;  %v654_v21 = vld [vmem:[%s8700_s30 + $0x1020] sm:$0xff] }
 0x22b   : > { %v7413_v31 = vpop.eup %7412  ;;  %5739 = vst [vmem:[%s8733_s17 + $0xf08] sm:$0xff] %v4715_v22  ;;  %v4717_v32 = vadd.f32 0.5, %v3693_v23  ;;  %v3695_v33 = vmul.f32 0.5, %v7411_v26  ;;  %7438 = vtanh.f32 %v1661_v14  ;;  %v1676_v25 = vmul.f32 0.5, %v652_v11  ;;  %v655_v26 = vld [vmem:[%s8700_s30 + $0x1028] sm:$0xff] }
 0x22c   : > { %v7415_v36 = vpop.eup %7414  ;;  %5740 = vst [vmem:[%s8733_s17 + $0xf10] sm:$0xff] %v4716_v27  ;;  %v4718_v37 = vadd.f32 0.5, %v3694_v28  ;;  %v3696_v38 = vmul.f32 0.5, %v7413_v31  ;;  %7440 = vtanh.f32 %v1662_v19  ;;  %v1677_v30 = vmul.f32 0.5, %v653_v16  ;;  %v656_v31 = vld [vmem:[%s8700_s30 + $0x1030] sm:$0xff] }
 0x22d   : > { %v7417_v41 = vpop.eup %7416  ;;  %5741 = vst [vmem:[%s8733_s17 + $0xf18] sm:$0xff] %v4717_v32  ;;  %v4719_v42 = vadd.f32 0.5, %v3695_v33  ;;  %v3697_v43 = vmul.f32 0.5, %v7415_v36  ;;  %7442 = vtanh.f32 %v1663_v24  ;;  %v1678_v35 = vmul.f32 0.5, %v654_v21  ;;  %v657_v36 = vld [vmem:[%s8700_s30 + $0x1038] sm:$0xff] }
 0x22e   : > { %v7419_v46 = vpop.eup %7418  ;;  %5742 = vst [vmem:[%s8733_s17 + $0xf20] sm:$0xff] %v4718_v37  ;;  %v4720_v47 = vadd.f32 0.5, %v3696_v38  ;;  %v3698_v48 = vmul.f32 0.5, %v7417_v41  ;;  %7444 = vtanh.f32 %v1664_v29  ;;  %v1679_v40 = vmul.f32 0.5, %v655_v26  ;;  %v658_v41 = vld [vmem:[%s8700_s30 + $0x1040] sm:$0xff] }
 0x22f   : > { %v7421_v51 = vpop.eup %7420  ;;  %5743 = vst [vmem:[%s8733_s17 + $0xf28] sm:$0xff] %v4719_v42  ;;  %v4721_v52 = vadd.f32 0.5, %v3697_v43  ;;  %v3699_v53 = vmul.f32 0.5, %v7419_v46  ;;  %7446 = vtanh.f32 %v1665_v34  ;;  %v1680_v45 = vmul.f32 0.5, %v656_v31  ;;  %v659_v46 = vld [vmem:[%s8700_s30 + $0x1048] sm:$0xff] }
 0x230   : > { %v7423_v56 = vpop.eup %7422  ;;  %5744 = vst [vmem:[%s8733_s17 + $0xf30] sm:$0xff] %v4720_v47  ;;  %v4722_v57 = vadd.f32 0.5, %v3698_v48  ;;  %v3700_v58 = vmul.f32 0.5, %v7421_v51  ;;  %7448 = vtanh.f32 %v1666_v39  ;;  %v1681_v50 = vmul.f32 0.5, %v657_v36  ;;  %v660_v51 = vld [vmem:[%s8700_s30 + $0x1050] sm:$0xff] }
 0x231   : > { %v7425_v61 = vpop.eup %7424  ;;  %5745 = vst [vmem:[%s8733_s17 + $0xf38] sm:$0xff] %v4721_v52  ;;  %v4723_v62 = vadd.f32 0.5, %v3699_v53  ;;  %v3701_v63 = vmul.f32 0.5, %v7423_v56  ;;  %7450 = vtanh.f32 %v1667_v44  ;;  %v1682_v55 = vmul.f32 0.5, %v658_v41  ;;  %v661_v56 = vld [vmem:[%s8700_s30 + $0x1058] sm:$0xff] }
 0x232   : > { %v7427_v2 = vpop.eup %7426  ;;  %5746 = vst [vmem:[%s8733_s17 + $0xf40] sm:$0xff] %v4722_v57  ;;  %v4724_v3 = vadd.f32 0.5, %v3700_v58  ;;  %v3702_v4 = vmul.f32 0.5, %v7425_v61  ;;  %7452 = vtanh.f32 %v1668_v49  ;;  %v1683_v60 = vmul.f32 0.5, %v659_v46  ;;  %v662_v61 = vld [vmem:[%s8700_s30 + $0x1060] sm:$0xff] }
 0x233   : > { %v7429_v7 = vpop.eup %7428  ;;  %5747 = vst [vmem:[%s8733_s17 + $0xf48] sm:$0xff] %v4723_v62  ;;  %v4725_v8 = vadd.f32 0.5, %v3701_v63  ;;  %v3703_v9 = vmul.f32 0.5, %v7427_v2  ;;  %7454 = vtanh.f32 %v1669_v54  ;;  %v1684_v1 = vmul.f32 0.5, %v660_v51  ;;  %v663_v2 = vld [vmem:[%s8700_s30 + $0x1068] sm:$0xff] }
 0x234   : > { %v7431_v12 = vpop.eup %7430  ;;  %5748 = vst [vmem:[%s8733_s17 + $0xf50] sm:$0xff] %v4724_v3  ;;  %v4726_v13 = vadd.f32 0.5, %v3702_v4  ;;  %v3704_v14 = vmul.f32 0.5, %v7429_v7  ;;  %7456 = vtanh.f32 %v1670_v59  ;;  %v1685_v6 = vmul.f32 0.5, %v661_v56  ;;  %v664_v7 = vld [vmem:[%s8700_s30 + $0x1070] sm:$0xff] }
 0x235   : > { %v7433_v17 = vpop.eup %7432  ;;  %5749 = vst [vmem:[%s8733_s17 + $0xf58] sm:$0xff] %v4725_v8  ;;  %v4727_v18 = vadd.f32 0.5, %v3703_v9  ;;  %v3705_v19 = vmul.f32 0.5, %v7431_v12  ;;  %7458 = vtanh.f32 %v1671_v0  ;;  %v1686_v11 = vmul.f32 0.5, %v662_v61  ;;  %v665_v12 = vld [vmem:[%s8700_s30 + $0x1078] sm:$0xff] }
 0x236   : > { %v7435_v22 = vpop.eup %7434  ;;  %5750 = vst [vmem:[%s8733_s17 + $0xf60] sm:$0xff] %v4726_v13  ;;  %v4728_v23 = vadd.f32 0.5, %v3704_v14  ;;  %v3706_v24 = vmul.f32 0.5, %v7433_v17  ;;  %7460 = vtanh.f32 %v1672_v5  ;;  %v1687_v16 = vmul.f32 0.5, %v663_v2  ;;  %v666_v17 = vld [vmem:[%s8700_s30 + $0x1080] sm:$0xff] }
 0x237   : > { %v7437_v27 = vpop.eup %7436  ;;  %5751 = vst [vmem:[%s8733_s17 + $0xf68] sm:$0xff] %v4727_v18  ;;  %v4729_v28 = vadd.f32 0.5, %v3705_v19  ;;  %v3707_v29 = vmul.f32 0.5, %v7435_v22  ;;  %7462 = vtanh.f32 %v1673_v10  ;;  %v1688_v21 = vmul.f32 0.5, %v664_v7  ;;  %v667_v22 = vld [vmem:[%s8700_s30 + $0x1088] sm:$0xff] }
 0x238   : > { %v7439_v32 = vpop.eup %7438  ;;  %5752 = vst [vmem:[%s8733_s17 + $0xf70] sm:$0xff] %v4728_v23  ;;  %v4730_v33 = vadd.f32 0.5, %v3706_v24  ;;  %v3708_v34 = vmul.f32 0.5, %v7437_v27  ;;  %7464 = vtanh.f32 %v1674_v15  ;;  %v1689_v26 = vmul.f32 0.5, %v665_v12  ;;  %v668_v27 = vld [vmem:[%s8700_s30 + $0x1090] sm:$0xff] }
 0x239   : > { %v7441_v37 = vpop.eup %7440  ;;  %5753 = vst [vmem:[%s8733_s17 + $0xf78] sm:$0xff] %v4729_v28  ;;  %v4731_v38 = vadd.f32 0.5, %v3707_v29  ;;  %v3709_v39 = vmul.f32 0.5, %v7439_v32  ;;  %7466 = vtanh.f32 %v1675_v20  ;;  %v1690_v31 = vmul.f32 0.5, %v666_v17  ;;  %v669_v32 = vld [vmem:[%s8700_s30 + $0x1098] sm:$0xff] }
 0x23a   : > { %v7443_v42 = vpop.eup %7442  ;;  %5754 = vst [vmem:[%s8733_s17 + $0xf80] sm:$0xff] %v4730_v33  ;;  %v4732_v43 = vadd.f32 0.5, %v3708_v34  ;;  %v3710_v44 = vmul.f32 0.5, %v7441_v37  ;;  %7468 = vtanh.f32 %v1676_v25  ;;  %v1691_v36 = vmul.f32 0.5, %v667_v22  ;;  %v670_v37 = vld [vmem:[%s8700_s30 + $0x10a0] sm:$0xff] }
 0x23b   : > { %v7445_v47 = vpop.eup %7444  ;;  %5755 = vst [vmem:[%s8733_s17 + $0xf88] sm:$0xff] %v4731_v38  ;;  %v4733_v48 = vadd.f32 0.5, %v3709_v39  ;;  %v3711_v49 = vmul.f32 0.5, %v7443_v42  ;;  %7470 = vtanh.f32 %v1677_v30  ;;  %v1692_v41 = vmul.f32 0.5, %v668_v27  ;;  %v671_v42 = vld [vmem:[%s8700_s30 + $0x10a8] sm:$0xff] }
 0x23c   : > { %v7447_v52 = vpop.eup %7446  ;;  %5756 = vst [vmem:[%s8733_s17 + $0xf90] sm:$0xff] %v4732_v43  ;;  %v4734_v53 = vadd.f32 0.5, %v3710_v44  ;;  %v3712_v54 = vmul.f32 0.5, %v7445_v47  ;;  %7472 = vtanh.f32 %v1678_v35  ;;  %v1693_v46 = vmul.f32 0.5, %v669_v32  ;;  %v672_v47 = vld [vmem:[%s8700_s30 + $0x10b0] sm:$0xff] }
 0x23d   : > { %v7449_v57 = vpop.eup %7448  ;;  %5757 = vst [vmem:[%s8733_s17 + $0xf98] sm:$0xff] %v4733_v48  ;;  %v4735_v58 = vadd.f32 0.5, %v3711_v49  ;;  %v3713_v59 = vmul.f32 0.5, %v7447_v52  ;;  %7474 = vtanh.f32 %v1679_v40  ;;  %v1694_v51 = vmul.f32 0.5, %v670_v37  ;;  %v673_v52 = vld [vmem:[%s8700_s30 + $0x10b8] sm:$0xff] }
 0x23e   : > { %v7451_v62 = vpop.eup %7450  ;;  %5758 = vst [vmem:[%s8733_s17 + $0xfa0] sm:$0xff] %v4734_v53  ;;  %v4736_v63 = vadd.f32 0.5, %v3712_v54  ;;  %v3714_v0 = vmul.f32 0.5, %v7449_v57  ;;  %7476 = vtanh.f32 %v1680_v45  ;;  %v1695_v56 = vmul.f32 0.5, %v671_v42  ;;  %v674_v57 = vld [vmem:[%s8700_s30 + $0x10c0] sm:$0xff] }
 0x23f   : > { %v7453_v3 = vpop.eup %7452  ;;  %5759 = vst [vmem:[%s8733_s17 + $0xfa8] sm:$0xff] %v4735_v58  ;;  %v4737_v4 = vadd.f32 0.5, %v3713_v59  ;;  %v3715_v5 = vmul.f32 0.5, %v7451_v62  ;;  %7478 = vtanh.f32 %v1681_v50  ;;  %v1696_v61 = vmul.f32 0.5, %v672_v47  ;;  %v675_v62 = vld [vmem:[%s8700_s30 + $0x10c8] sm:$0xff] }
 0x240   : > { %v7455_v8 = vpop.eup %7454  ;;  %5760 = vst [vmem:[%s8733_s17 + $0xfb0] sm:$0xff] %v4736_v63  ;;  %v4738_v9 = vadd.f32 0.5, %v3714_v0  ;;  %v3716_v10 = vmul.f32 0.5, %v7453_v3  ;;  %7480 = vtanh.f32 %v1682_v55  ;;  %v1697_v2 = vmul.f32 0.5, %v673_v52  ;;  %v676_v3 = vld [vmem:[%s8700_s30 + $0x10d0] sm:$0xff] }
 0x241   : > { %v7457_v13 = vpop.eup %7456  ;;  %5761 = vst [vmem:[%s8733_s17 + $0xfb8] sm:$0xff] %v4737_v4  ;;  %v4739_v14 = vadd.f32 0.5, %v3715_v5  ;;  %v3717_v15 = vmul.f32 0.5, %v7455_v8  ;;  %7482 = vtanh.f32 %v1683_v60  ;;  %v1698_v7 = vmul.f32 0.5, %v674_v57  ;;  %v677_v8 = vld [vmem:[%s8700_s30 + $0x10d8] sm:$0xff] }
 0x242   : > { %v7459_v18 = vpop.eup %7458  ;;  %5762 = vst [vmem:[%s8733_s17 + $0xfc0] sm:$0xff] %v4738_v9  ;;  %v4740_v19 = vadd.f32 0.5, %v3716_v10  ;;  %v3718_v20 = vmul.f32 0.5, %v7457_v13  ;;  %7484 = vtanh.f32 %v1684_v1  ;;  %v1699_v12 = vmul.f32 0.5, %v675_v62  ;;  %v678_v13 = vld [vmem:[%s8700_s30 + $0x10e0] sm:$0xff] }
 0x243   : > { %v7461_v23 = vpop.eup %7460  ;;  %5763 = vst [vmem:[%s8733_s17 + $0xfc8] sm:$0xff] %v4739_v14  ;;  %v4741_v24 = vadd.f32 0.5, %v3717_v15  ;;  %v3719_v25 = vmul.f32 0.5, %v7459_v18  ;;  %7486 = vtanh.f32 %v1685_v6  ;;  %v1700_v17 = vmul.f32 0.5, %v676_v3  ;;  %v679_v18 = vld [vmem:[%s8700_s30 + $0x10e8] sm:$0xff] }
 0x244   : > { %v7463_v28 = vpop.eup %7462  ;;  %5764 = vst [vmem:[%s8733_s17 + $0xfd0] sm:$0xff] %v4740_v19  ;;  %v4742_v29 = vadd.f32 0.5, %v3718_v20  ;;  %v3720_v30 = vmul.f32 0.5, %v7461_v23  ;;  %7488 = vtanh.f32 %v1686_v11  ;;  %v1701_v22 = vmul.f32 0.5, %v677_v8  ;;  %v680_v23 = vld [vmem:[%s8700_s30 + $0x10f0] sm:$0xff] }
 0x245   : > { %v7465_v33 = vpop.eup %7464  ;;  %5765 = vst [vmem:[%s8733_s17 + $0xfd8] sm:$0xff] %v4741_v24  ;;  %v4743_v34 = vadd.f32 0.5, %v3719_v25  ;;  %v3721_v35 = vmul.f32 0.5, %v7463_v28  ;;  %7490 = vtanh.f32 %v1687_v16  ;;  %v1702_v27 = vmul.f32 0.5, %v678_v13  ;;  %v681_v28 = vld [vmem:[%s8700_s30 + $0x10f8] sm:$0xff] }
 0x246   : > { %v7467_v38 = vpop.eup %7466  ;;  %5766 = vst [vmem:[%s8733_s17 + $0xfe0] sm:$0xff] %v4742_v29  ;;  %v4744_v39 = vadd.f32 0.5, %v3720_v30  ;;  %v3722_v40 = vmul.f32 0.5, %v7465_v33  ;;  %7492 = vtanh.f32 %v1688_v21  ;;  %v1703_v32 = vmul.f32 0.5, %v679_v18  ;;  %v682_v33 = vld [vmem:[%s8700_s30 + $0x1100] sm:$0xff] }
 0x247   : > { %v7469_v43 = vpop.eup %7468  ;;  %5767 = vst [vmem:[%s8733_s17 + $0xfe8] sm:$0xff] %v4743_v34  ;;  %v4745_v44 = vadd.f32 0.5, %v3721_v35  ;;  %v3723_v45 = vmul.f32 0.5, %v7467_v38  ;;  %7494 = vtanh.f32 %v1689_v26  ;;  %v1704_v37 = vmul.f32 0.5, %v680_v23  ;;  %v683_v38 = vld [vmem:[%s8700_s30 + $0x1108] sm:$0xff] }
 0x248   : > { %v7471_v48 = vpop.eup %7470  ;;  %5768 = vst [vmem:[%s8733_s17 + $0xff0] sm:$0xff] %v4744_v39  ;;  %v4746_v49 = vadd.f32 0.5, %v3722_v40  ;;  %v3724_v50 = vmul.f32 0.5, %v7469_v43  ;;  %7496 = vtanh.f32 %v1690_v31  ;;  %v1705_v42 = vmul.f32 0.5, %v681_v28  ;;  %v684_v43 = vld [vmem:[%s8700_s30 + $0x1110] sm:$0xff] }
 0x249   : > { %v7473_v53 = vpop.eup %7472  ;;  %5769 = vst [vmem:[%s8733_s17 + $0xff8] sm:$0xff] %v4745_v44  ;;  %v4747_v54 = vadd.f32 0.5, %v3723_v45  ;;  %v3725_v55 = vmul.f32 0.5, %v7471_v48  ;;  %7498 = vtanh.f32 %v1691_v36  ;;  %v1706_v47 = vmul.f32 0.5, %v682_v33  ;;  %v685_v48 = vld [vmem:[%s8700_s30 + $0x1118] sm:$0xff] }
 0x24a   : > { %v7475_v58 = vpop.eup %7474  ;;  %5770 = vst [vmem:[%s8733_s17 + $0x1000] sm:$0xff] %v4746_v49  ;;  %v4748_v59 = vadd.f32 0.5, %v3724_v50  ;;  %v3726_v60 = vmul.f32 0.5, %v7473_v53  ;;  %7500 = vtanh.f32 %v1692_v41  ;;  %v1707_v52 = vmul.f32 0.5, %v683_v38  ;;  %v686_v53 = vld [vmem:[%s8700_s30 + $0x1120] sm:$0xff] }
 0x24b   : > { %v7477_v63 = vpop.eup %7476  ;;  %5771 = vst [vmem:[%s8733_s17 + $0x1008] sm:$0xff] %v4747_v54  ;;  %v4749_v0 = vadd.f32 0.5, %v3725_v55  ;;  %v3727_v1 = vmul.f32 0.5, %v7475_v58  ;;  %7502 = vtanh.f32 %v1693_v46  ;;  %v1708_v57 = vmul.f32 0.5, %v684_v43  ;;  %v687_v58 = vld [vmem:[%s8700_s30 + $0x1128] sm:$0xff] }
 0x24c   : > { %v7479_v4 = vpop.eup %7478  ;;  %5772 = vst [vmem:[%s8733_s17 + $0x1010] sm:$0xff] %v4748_v59  ;;  %v4750_v5 = vadd.f32 0.5, %v3726_v60  ;;  %v3728_v6 = vmul.f32 0.5, %v7477_v63  ;;  %7504 = vtanh.f32 %v1694_v51  ;;  %v1709_v62 = vmul.f32 0.5, %v685_v48  ;;  %v688_v63 = vld [vmem:[%s8700_s30 + $0x1130] sm:$0xff] }
 0x24d   : > { %v7481_v9 = vpop.eup %7480  ;;  %5773 = vst [vmem:[%s8733_s17 + $0x1018] sm:$0xff] %v4749_v0  ;;  %v4751_v10 = vadd.f32 0.5, %v3727_v1  ;;  %v3729_v11 = vmul.f32 0.5, %v7479_v4  ;;  %7506 = vtanh.f32 %v1695_v56  ;;  %v1710_v3 = vmul.f32 0.5, %v686_v53  ;;  %v689_v4 = vld [vmem:[%s8700_s30 + $0x1138] sm:$0xff] }
 0x24e   : > { %v7483_v14 = vpop.eup %7482  ;;  %5774 = vst [vmem:[%s8733_s17 + $0x1020] sm:$0xff] %v4750_v5  ;;  %v4752_v15 = vadd.f32 0.5, %v3728_v6  ;;  %v3730_v16 = vmul.f32 0.5, %v7481_v9  ;;  %7508 = vtanh.f32 %v1696_v61  ;;  %v1711_v8 = vmul.f32 0.5, %v687_v58  ;;  %v690_v9 = vld [vmem:[%s8700_s30 + $0x1140] sm:$0xff] }
 0x24f   : > { %v7485_v19 = vpop.eup %7484  ;;  %5775 = vst [vmem:[%s8733_s17 + $0x1028] sm:$0xff] %v4751_v10  ;;  %v4753_v20 = vadd.f32 0.5, %v3729_v11  ;;  %v3731_v21 = vmul.f32 0.5, %v7483_v14  ;;  %7510 = vtanh.f32 %v1697_v2  ;;  %v1712_v13 = vmul.f32 0.5, %v688_v63  ;;  %v691_v14 = vld [vmem:[%s8700_s30 + $0x1148] sm:$0xff] }
 0x250   : > { %v7487_v24 = vpop.eup %7486  ;;  %5776 = vst [vmem:[%s8733_s17 + $0x1030] sm:$0xff] %v4752_v15  ;;  %v4754_v25 = vadd.f32 0.5, %v3730_v16  ;;  %v3732_v26 = vmul.f32 0.5, %v7485_v19  ;;  %7512 = vtanh.f32 %v1698_v7  ;;  %v1713_v18 = vmul.f32 0.5, %v689_v4  ;;  %v692_v19 = vld [vmem:[%s8700_s30 + $0x1150] sm:$0xff] }
 0x251   : > { %v7489_v29 = vpop.eup %7488  ;;  %5777 = vst [vmem:[%s8733_s17 + $0x1038] sm:$0xff] %v4753_v20  ;;  %v4755_v30 = vadd.f32 0.5, %v3731_v21  ;;  %v3733_v31 = vmul.f32 0.5, %v7487_v24  ;;  %7514 = vtanh.f32 %v1699_v12  ;;  %v1714_v23 = vmul.f32 0.5, %v690_v9  ;;  %v693_v24 = vld [vmem:[%s8700_s30 + $0x1158] sm:$0xff] }
 0x252   : > { %v7491_v34 = vpop.eup %7490  ;;  %5778 = vst [vmem:[%s8733_s17 + $0x1040] sm:$0xff] %v4754_v25  ;;  %v4756_v35 = vadd.f32 0.5, %v3732_v26  ;;  %v3734_v36 = vmul.f32 0.5, %v7489_v29  ;;  %7516 = vtanh.f32 %v1700_v17  ;;  %v1715_v28 = vmul.f32 0.5, %v691_v14  ;;  %v694_v29 = vld [vmem:[%s8700_s30 + $0x1160] sm:$0xff] }
 0x253   : > { %v7493_v39 = vpop.eup %7492  ;;  %5779 = vst [vmem:[%s8733_s17 + $0x1048] sm:$0xff] %v4755_v30  ;;  %v4757_v40 = vadd.f32 0.5, %v3733_v31  ;;  %v3735_v41 = vmul.f32 0.5, %v7491_v34  ;;  %7518 = vtanh.f32 %v1701_v22  ;;  %v1716_v33 = vmul.f32 0.5, %v692_v19  ;;  %v695_v34 = vld [vmem:[%s8700_s30 + $0x1168] sm:$0xff] }
 0x254   : > { %v7495_v44 = vpop.eup %7494  ;;  %5780 = vst [vmem:[%s8733_s17 + $0x1050] sm:$0xff] %v4756_v35  ;;  %v4758_v45 = vadd.f32 0.5, %v3734_v36  ;;  %v3736_v46 = vmul.f32 0.5, %v7493_v39  ;;  %7520 = vtanh.f32 %v1702_v27  ;;  %v1717_v38 = vmul.f32 0.5, %v693_v24  ;;  %v696_v39 = vld [vmem:[%s8700_s30 + $0x1170] sm:$0xff] }
 0x255   : > { %v7497_v49 = vpop.eup %7496  ;;  %5781 = vst [vmem:[%s8733_s17 + $0x1058] sm:$0xff] %v4757_v40  ;;  %v4759_v50 = vadd.f32 0.5, %v3735_v41  ;;  %v3737_v51 = vmul.f32 0.5, %v7495_v44  ;;  %7522 = vtanh.f32 %v1703_v32  ;;  %v1718_v43 = vmul.f32 0.5, %v694_v29  ;;  %v697_v44 = vld [vmem:[%s8700_s30 + $0x1178] sm:$0xff] }
 0x256   : > { %v7499_v54 = vpop.eup %7498  ;;  %5782 = vst [vmem:[%s8733_s17 + $0x1060] sm:$0xff] %v4758_v45  ;;  %v4760_v55 = vadd.f32 0.5, %v3736_v46  ;;  %v3738_v56 = vmul.f32 0.5, %v7497_v49  ;;  %7524 = vtanh.f32 %v1704_v37  ;;  %v1719_v48 = vmul.f32 0.5, %v695_v34  ;;  %v698_v49 = vld [vmem:[%s8700_s30 + $0x1180] sm:$0xff] }
 0x257   : > { %v7501_v59 = vpop.eup %7500  ;;  %5783 = vst [vmem:[%s8733_s17 + $0x1068] sm:$0xff] %v4759_v50  ;;  %v4761_v60 = vadd.f32 0.5, %v3737_v51  ;;  %v3739_v61 = vmul.f32 0.5, %v7499_v54  ;;  %7526 = vtanh.f32 %v1705_v42  ;;  %v1720_v53 = vmul.f32 0.5, %v696_v39  ;;  %v699_v54 = vld [vmem:[%s8700_s30 + $0x1188] sm:$0xff] }
 0x258   : > { %v7503_v0 = vpop.eup %7502  ;;  %5784 = vst [vmem:[%s8733_s17 + $0x1070] sm:$0xff] %v4760_v55  ;;  %v4762_v1 = vadd.f32 0.5, %v3738_v56  ;;  %v3740_v2 = vmul.f32 0.5, %v7501_v59  ;;  %7528 = vtanh.f32 %v1706_v47  ;;  %v1721_v58 = vmul.f32 0.5, %v697_v44  ;;  %v700_v59 = vld [vmem:[%s8700_s30 + $0x1190] sm:$0xff] }
 0x259   : > { %v7505_v5 = vpop.eup %7504  ;;  %5785 = vst [vmem:[%s8733_s17 + $0x1078] sm:$0xff] %v4761_v60  ;;  %v4763_v6 = vadd.f32 0.5, %v3739_v61  ;;  %v3741_v7 = vmul.f32 0.5, %v7503_v0  ;;  %7530 = vtanh.f32 %v1707_v52  ;;  %v1722_v63 = vmul.f32 0.5, %v698_v49  ;;  %v701_v0 = vld [vmem:[%s8700_s30 + $0x1198] sm:$0xff] }
 0x25a   : > { %v7507_v10 = vpop.eup %7506  ;;  %5786 = vst [vmem:[%s8733_s17 + $0x1080] sm:$0xff] %v4762_v1  ;;  %v4764_v11 = vadd.f32 0.5, %v3740_v2  ;;  %v3742_v12 = vmul.f32 0.5, %v7505_v5  ;;  %7532 = vtanh.f32 %v1708_v57  ;;  %v1723_v4 = vmul.f32 0.5, %v699_v54  ;;  %v702_v5 = vld [vmem:[%s8700_s30 + $0x11a0] sm:$0xff] }
 0x25b   : > { %v7509_v15 = vpop.eup %7508  ;;  %5787 = vst [vmem:[%s8733_s17 + $0x1088] sm:$0xff] %v4763_v6  ;;  %v4765_v16 = vadd.f32 0.5, %v3741_v7  ;;  %v3743_v17 = vmul.f32 0.5, %v7507_v10  ;;  %7534 = vtanh.f32 %v1709_v62  ;;  %v1724_v9 = vmul.f32 0.5, %v700_v59  ;;  %v703_v10 = vld [vmem:[%s8700_s30 + $0x11a8] sm:$0xff] }
 0x25c   : > { %v7511_v20 = vpop.eup %7510  ;;  %5788 = vst [vmem:[%s8733_s17 + $0x1090] sm:$0xff] %v4764_v11  ;;  %v4766_v21 = vadd.f32 0.5, %v3742_v12  ;;  %v3744_v22 = vmul.f32 0.5, %v7509_v15  ;;  %7536 = vtanh.f32 %v1710_v3  ;;  %v1725_v14 = vmul.f32 0.5, %v701_v0  ;;  %v704_v15 = vld [vmem:[%s8700_s30 + $0x11b0] sm:$0xff] }
 0x25d   : > { %v7513_v25 = vpop.eup %7512  ;;  %5789 = vst [vmem:[%s8733_s17 + $0x1098] sm:$0xff] %v4765_v16  ;;  %v4767_v26 = vadd.f32 0.5, %v3743_v17  ;;  %v3745_v27 = vmul.f32 0.5, %v7511_v20  ;;  %7538 = vtanh.f32 %v1711_v8  ;;  %v1726_v19 = vmul.f32 0.5, %v702_v5  ;;  %v705_v20 = vld [vmem:[%s8700_s30 + $0x11b8] sm:$0xff] }
 0x25e   : > { %v7515_v30 = vpop.eup %7514  ;;  %5790 = vst [vmem:[%s8733_s17 + $0x10a0] sm:$0xff] %v4766_v21  ;;  %v4768_v31 = vadd.f32 0.5, %v3744_v22  ;;  %v3746_v32 = vmul.f32 0.5, %v7513_v25  ;;  %7540 = vtanh.f32 %v1712_v13  ;;  %v1727_v24 = vmul.f32 0.5, %v703_v10  ;;  %v706_v25 = vld [vmem:[%s8700_s30 + $0x11c0] sm:$0xff] }
 0x25f   : > { %v7517_v35 = vpop.eup %7516  ;;  %5791 = vst [vmem:[%s8733_s17 + $0x10a8] sm:$0xff] %v4767_v26  ;;  %v4769_v36 = vadd.f32 0.5, %v3745_v27  ;;  %v3747_v37 = vmul.f32 0.5, %v7515_v30  ;;  %7542 = vtanh.f32 %v1713_v18  ;;  %v1728_v29 = vmul.f32 0.5, %v704_v15  ;;  %v707_v30 = vld [vmem:[%s8700_s30 + $0x11c8] sm:$0xff] }
 0x260   : > { %v7519_v40 = vpop.eup %7518  ;;  %5792 = vst [vmem:[%s8733_s17 + $0x10b0] sm:$0xff] %v4768_v31  ;;  %v4770_v41 = vadd.f32 0.5, %v3746_v32  ;;  %v3748_v42 = vmul.f32 0.5, %v7517_v35  ;;  %7544 = vtanh.f32 %v1714_v23  ;;  %v1729_v34 = vmul.f32 0.5, %v705_v20  ;;  %v708_v35 = vld [vmem:[%s8700_s30 + $0x11d0] sm:$0xff] }
 0x261   : > { %v7521_v45 = vpop.eup %7520  ;;  %5793 = vst [vmem:[%s8733_s17 + $0x10b8] sm:$0xff] %v4769_v36  ;;  %v4771_v46 = vadd.f32 0.5, %v3747_v37  ;;  %v3749_v47 = vmul.f32 0.5, %v7519_v40  ;;  %7546 = vtanh.f32 %v1715_v28  ;;  %v1730_v39 = vmul.f32 0.5, %v706_v25  ;;  %v709_v40 = vld [vmem:[%s8700_s30 + $0x11d8] sm:$0xff] }
 0x262   : > { %v7523_v50 = vpop.eup %7522  ;;  %5794 = vst [vmem:[%s8733_s17 + $0x10c0] sm:$0xff] %v4770_v41  ;;  %v4772_v51 = vadd.f32 0.5, %v3748_v42  ;;  %v3750_v52 = vmul.f32 0.5, %v7521_v45  ;;  %7548 = vtanh.f32 %v1716_v33  ;;  %v1731_v44 = vmul.f32 0.5, %v707_v30  ;;  %v710_v45 = vld [vmem:[%s8700_s30 + $0x11e0] sm:$0xff] }
 0x263   : > { %v7525_v55 = vpop.eup %7524  ;;  %5795 = vst [vmem:[%s8733_s17 + $0x10c8] sm:$0xff] %v4771_v46  ;;  %v4773_v56 = vadd.f32 0.5, %v3749_v47  ;;  %v3751_v57 = vmul.f32 0.5, %v7523_v50  ;;  %7550 = vtanh.f32 %v1717_v38  ;;  %v1732_v49 = vmul.f32 0.5, %v708_v35  ;;  %v711_v50 = vld [vmem:[%s8700_s30 + $0x11e8] sm:$0xff] }
 0x264   : > { %v7527_v60 = vpop.eup %7526  ;;  %5796 = vst [vmem:[%s8733_s17 + $0x10d0] sm:$0xff] %v4772_v51  ;;  %v4774_v61 = vadd.f32 0.5, %v3750_v52  ;;  %v3752_v62 = vmul.f32 0.5, %v7525_v55  ;;  %7552 = vtanh.f32 %v1718_v43  ;;  %v1733_v54 = vmul.f32 0.5, %v709_v40  ;;  %v712_v55 = vld [vmem:[%s8700_s30 + $0x11f0] sm:$0xff] }
 0x265   : > { %v7529_v1 = vpop.eup %7528  ;;  %5797 = vst [vmem:[%s8733_s17 + $0x10d8] sm:$0xff] %v4773_v56  ;;  %v4775_v2 = vadd.f32 0.5, %v3751_v57  ;;  %v3753_v3 = vmul.f32 0.5, %v7527_v60  ;;  %7554 = vtanh.f32 %v1719_v48  ;;  %v1734_v59 = vmul.f32 0.5, %v710_v45  ;;  %v713_v60 = vld [vmem:[%s8700_s30 + $0x11f8] sm:$0xff] }
 0x266   : > { %v7531_v6 = vpop.eup %7530  ;;  %5798 = vst [vmem:[%s8733_s17 + $0x10e0] sm:$0xff] %v4774_v61  ;;  %v4776_v7 = vadd.f32 0.5, %v3752_v62  ;;  %v3754_v8 = vmul.f32 0.5, %v7529_v1  ;;  %7556 = vtanh.f32 %v1720_v53  ;;  %v1735_v0 = vmul.f32 0.5, %v711_v50  ;;  %v714_v1 = vld [vmem:[%s8700_s30 + $0x1200] sm:$0xff] }
 0x267   : > { %v7533_v11 = vpop.eup %7532  ;;  %5799 = vst [vmem:[%s8733_s17 + $0x10e8] sm:$0xff] %v4775_v2  ;;  %v4777_v12 = vadd.f32 0.5, %v3753_v3  ;;  %v3755_v13 = vmul.f32 0.5, %v7531_v6  ;;  %7558 = vtanh.f32 %v1721_v58  ;;  %v1736_v5 = vmul.f32 0.5, %v712_v55  ;;  %v715_v6 = vld [vmem:[%s8700_s30 + $0x1208] sm:$0xff] }
 0x268   : > { %v7535_v16 = vpop.eup %7534  ;;  %5800 = vst [vmem:[%s8733_s17 + $0x10f0] sm:$0xff] %v4776_v7  ;;  %v4778_v17 = vadd.f32 0.5, %v3754_v8  ;;  %v3756_v18 = vmul.f32 0.5, %v7533_v11  ;;  %7560 = vtanh.f32 %v1722_v63  ;;  %v1737_v10 = vmul.f32 0.5, %v713_v60  ;;  %v716_v11 = vld [vmem:[%s8700_s30 + $0x1210] sm:$0xff] }
 0x269   : > { %v7537_v21 = vpop.eup %7536  ;;  %5801 = vst [vmem:[%s8733_s17 + $0x10f8] sm:$0xff] %v4777_v12  ;;  %v4779_v22 = vadd.f32 0.5, %v3755_v13  ;;  %v3757_v23 = vmul.f32 0.5, %v7535_v16  ;;  %7562 = vtanh.f32 %v1723_v4  ;;  %v1738_v15 = vmul.f32 0.5, %v714_v1  ;;  %v717_v16 = vld [vmem:[%s8700_s30 + $0x1218] sm:$0xff] }
 0x26a   : > { %v7539_v26 = vpop.eup %7538  ;;  %5802 = vst [vmem:[%s8733_s17 + $0x1100] sm:$0xff] %v4778_v17  ;;  %v4780_v27 = vadd.f32 0.5, %v3756_v18  ;;  %v3758_v28 = vmul.f32 0.5, %v7537_v21  ;;  %7564 = vtanh.f32 %v1724_v9  ;;  %v1739_v20 = vmul.f32 0.5, %v715_v6  ;;  %v718_v21 = vld [vmem:[%s8700_s30 + $0x1220] sm:$0xff] }
 0x26b   : > { %v7541_v31 = vpop.eup %7540  ;;  %5803 = vst [vmem:[%s8733_s17 + $0x1108] sm:$0xff] %v4779_v22  ;;  %v4781_v32 = vadd.f32 0.5, %v3757_v23  ;;  %v3759_v33 = vmul.f32 0.5, %v7539_v26  ;;  %7566 = vtanh.f32 %v1725_v14  ;;  %v1740_v25 = vmul.f32 0.5, %v716_v11  ;;  %v719_v26 = vld [vmem:[%s8700_s30 + $0x1228] sm:$0xff] }
 0x26c   : > { %v7543_v36 = vpop.eup %7542  ;;  %5804 = vst [vmem:[%s8733_s17 + $0x1110] sm:$0xff] %v4780_v27  ;;  %v4782_v37 = vadd.f32 0.5, %v3758_v28  ;;  %v3760_v38 = vmul.f32 0.5, %v7541_v31  ;;  %7568 = vtanh.f32 %v1726_v19  ;;  %v1741_v30 = vmul.f32 0.5, %v717_v16  ;;  %v720_v31 = vld [vmem:[%s8700_s30 + $0x1230] sm:$0xff] }
 0x26d   : > { %v7545_v41 = vpop.eup %7544  ;;  %5805 = vst [vmem:[%s8733_s17 + $0x1118] sm:$0xff] %v4781_v32  ;;  %v4783_v42 = vadd.f32 0.5, %v3759_v33  ;;  %v3761_v43 = vmul.f32 0.5, %v7543_v36  ;;  %7570 = vtanh.f32 %v1727_v24  ;;  %v1742_v35 = vmul.f32 0.5, %v718_v21  ;;  %v721_v36 = vld [vmem:[%s8700_s30 + $0x1238] sm:$0xff] }
 0x26e   : > { %v7547_v46 = vpop.eup %7546  ;;  %5806 = vst [vmem:[%s8733_s17 + $0x1120] sm:$0xff] %v4782_v37  ;;  %v4784_v47 = vadd.f32 0.5, %v3760_v38  ;;  %v3762_v48 = vmul.f32 0.5, %v7545_v41  ;;  %7572 = vtanh.f32 %v1728_v29  ;;  %v1743_v40 = vmul.f32 0.5, %v719_v26  ;;  %v722_v41 = vld [vmem:[%s8700_s30 + $0x1240] sm:$0xff] }
 0x26f   : > { %v7549_v51 = vpop.eup %7548  ;;  %5807 = vst [vmem:[%s8733_s17 + $0x1128] sm:$0xff] %v4783_v42  ;;  %v4785_v52 = vadd.f32 0.5, %v3761_v43  ;;  %v3763_v53 = vmul.f32 0.5, %v7547_v46  ;;  %7574 = vtanh.f32 %v1729_v34  ;;  %v1744_v45 = vmul.f32 0.5, %v720_v31  ;;  %v723_v46 = vld [vmem:[%s8700_s30 + $0x1248] sm:$0xff] }
 0x270   : > { %v7551_v56 = vpop.eup %7550  ;;  %5808 = vst [vmem:[%s8733_s17 + $0x1130] sm:$0xff] %v4784_v47  ;;  %v4786_v57 = vadd.f32 0.5, %v3762_v48  ;;  %v3764_v58 = vmul.f32 0.5, %v7549_v51  ;;  %7576 = vtanh.f32 %v1730_v39  ;;  %v1745_v50 = vmul.f32 0.5, %v721_v36  ;;  %v724_v51 = vld [vmem:[%s8700_s30 + $0x1250] sm:$0xff] }
 0x271   : > { %v7553_v61 = vpop.eup %7552  ;;  %5809 = vst [vmem:[%s8733_s17 + $0x1138] sm:$0xff] %v4785_v52  ;;  %v4787_v62 = vadd.f32 0.5, %v3763_v53  ;;  %v3765_v63 = vmul.f32 0.5, %v7551_v56  ;;  %7578 = vtanh.f32 %v1731_v44  ;;  %v1746_v55 = vmul.f32 0.5, %v722_v41  ;;  %v725_v56 = vld [vmem:[%s8700_s30 + $0x1258] sm:$0xff] }
 0x272   : > { %v7555_v2 = vpop.eup %7554  ;;  %5810 = vst [vmem:[%s8733_s17 + $0x1140] sm:$0xff] %v4786_v57  ;;  %v4788_v3 = vadd.f32 0.5, %v3764_v58  ;;  %v3766_v4 = vmul.f32 0.5, %v7553_v61  ;;  %7580 = vtanh.f32 %v1732_v49  ;;  %v1747_v60 = vmul.f32 0.5, %v723_v46  ;;  %v726_v61 = vld [vmem:[%s8700_s30 + $0x1260] sm:$0xff] }
 0x273   : > { %v7557_v7 = vpop.eup %7556  ;;  %5811 = vst [vmem:[%s8733_s17 + $0x1148] sm:$0xff] %v4787_v62  ;;  %v4789_v8 = vadd.f32 0.5, %v3765_v63  ;;  %v3767_v9 = vmul.f32 0.5, %v7555_v2  ;;  %7582 = vtanh.f32 %v1733_v54  ;;  %v1748_v1 = vmul.f32 0.5, %v724_v51  ;;  %v727_v2 = vld [vmem:[%s8700_s30 + $0x1268] sm:$0xff] }
 0x274   : > { %v7559_v12 = vpop.eup %7558  ;;  %5812 = vst [vmem:[%s8733_s17 + $0x1150] sm:$0xff] %v4788_v3  ;;  %v4790_v13 = vadd.f32 0.5, %v3766_v4  ;;  %v3768_v14 = vmul.f32 0.5, %v7557_v7  ;;  %7584 = vtanh.f32 %v1734_v59  ;;  %v1749_v6 = vmul.f32 0.5, %v725_v56  ;;  %v728_v7 = vld [vmem:[%s8700_s30 + $0x1270] sm:$0xff] }
 0x275   : > { %v7561_v17 = vpop.eup %7560  ;;  %5813 = vst [vmem:[%s8733_s17 + $0x1158] sm:$0xff] %v4789_v8  ;;  %v4791_v18 = vadd.f32 0.5, %v3767_v9  ;;  %v3769_v19 = vmul.f32 0.5, %v7559_v12  ;;  %7586 = vtanh.f32 %v1735_v0  ;;  %v1750_v11 = vmul.f32 0.5, %v726_v61  ;;  %v729_v12 = vld [vmem:[%s8700_s30 + $0x1278] sm:$0xff] }
 0x276   : > { %v7563_v22 = vpop.eup %7562  ;;  %5814 = vst [vmem:[%s8733_s17 + $0x1160] sm:$0xff] %v4790_v13  ;;  %v4792_v23 = vadd.f32 0.5, %v3768_v14  ;;  %v3770_v24 = vmul.f32 0.5, %v7561_v17  ;;  %7588 = vtanh.f32 %v1736_v5  ;;  %v1751_v16 = vmul.f32 0.5, %v727_v2  ;;  %v730_v17 = vld [vmem:[%s8700_s30 + $0x1280] sm:$0xff] }
 0x277   : > { %v7565_v27 = vpop.eup %7564  ;;  %5815 = vst [vmem:[%s8733_s17 + $0x1168] sm:$0xff] %v4791_v18  ;;  %v4793_v28 = vadd.f32 0.5, %v3769_v19  ;;  %v3771_v29 = vmul.f32 0.5, %v7563_v22  ;;  %7590 = vtanh.f32 %v1737_v10  ;;  %v1752_v21 = vmul.f32 0.5, %v728_v7  ;;  %v731_v22 = vld [vmem:[%s8700_s30 + $0x1288] sm:$0xff] }
 0x278   : > { %v7567_v32 = vpop.eup %7566  ;;  %5816 = vst [vmem:[%s8733_s17 + $0x1170] sm:$0xff] %v4792_v23  ;;  %v4794_v33 = vadd.f32 0.5, %v3770_v24  ;;  %v3772_v34 = vmul.f32 0.5, %v7565_v27  ;;  %7592 = vtanh.f32 %v1738_v15  ;;  %v1753_v26 = vmul.f32 0.5, %v729_v12  ;;  %v732_v27 = vld [vmem:[%s8700_s30 + $0x1290] sm:$0xff] }
 0x279   : > { %v7569_v37 = vpop.eup %7568  ;;  %5817 = vst [vmem:[%s8733_s17 + $0x1178] sm:$0xff] %v4793_v28  ;;  %v4795_v38 = vadd.f32 0.5, %v3771_v29  ;;  %v3773_v39 = vmul.f32 0.5, %v7567_v32  ;;  %7594 = vtanh.f32 %v1739_v20  ;;  %v1754_v31 = vmul.f32 0.5, %v730_v17  ;;  %v733_v32 = vld [vmem:[%s8700_s30 + $0x1298] sm:$0xff] }
 0x27a   : > { %v7571_v42 = vpop.eup %7570  ;;  %5818 = vst [vmem:[%s8733_s17 + $0x1180] sm:$0xff] %v4794_v33  ;;  %v4796_v43 = vadd.f32 0.5, %v3772_v34  ;;  %v3774_v44 = vmul.f32 0.5, %v7569_v37  ;;  %7596 = vtanh.f32 %v1740_v25  ;;  %v1755_v36 = vmul.f32 0.5, %v731_v22  ;;  %v734_v37 = vld [vmem:[%s8700_s30 + $0x12a0] sm:$0xff] }
 0x27b   : > { %v7573_v47 = vpop.eup %7572  ;;  %5819 = vst [vmem:[%s8733_s17 + $0x1188] sm:$0xff] %v4795_v38  ;;  %v4797_v48 = vadd.f32 0.5, %v3773_v39  ;;  %v3775_v49 = vmul.f32 0.5, %v7571_v42  ;;  %7598 = vtanh.f32 %v1741_v30  ;;  %v1756_v41 = vmul.f32 0.5, %v732_v27  ;;  %v735_v42 = vld [vmem:[%s8700_s30 + $0x12a8] sm:$0xff] }
 0x27c   : > { %v7575_v52 = vpop.eup %7574  ;;  %5820 = vst [vmem:[%s8733_s17 + $0x1190] sm:$0xff] %v4796_v43  ;;  %v4798_v53 = vadd.f32 0.5, %v3774_v44  ;;  %v3776_v54 = vmul.f32 0.5, %v7573_v47  ;;  %7600 = vtanh.f32 %v1742_v35  ;;  %v1757_v46 = vmul.f32 0.5, %v733_v32  ;;  %v736_v47 = vld [vmem:[%s8700_s30 + $0x12b0] sm:$0xff] }
 0x27d   : > { %v7577_v57 = vpop.eup %7576  ;;  %5821 = vst [vmem:[%s8733_s17 + $0x1198] sm:$0xff] %v4797_v48  ;;  %v4799_v58 = vadd.f32 0.5, %v3775_v49  ;;  %v3777_v59 = vmul.f32 0.5, %v7575_v52  ;;  %7602 = vtanh.f32 %v1743_v40  ;;  %v1758_v51 = vmul.f32 0.5, %v734_v37  ;;  %v737_v52 = vld [vmem:[%s8700_s30 + $0x12b8] sm:$0xff] }
 0x27e   : > { %v7579_v62 = vpop.eup %7578  ;;  %5822 = vst [vmem:[%s8733_s17 + $0x11a0] sm:$0xff] %v4798_v53  ;;  %v4800_v63 = vadd.f32 0.5, %v3776_v54  ;;  %v3778_v0 = vmul.f32 0.5, %v7577_v57  ;;  %7604 = vtanh.f32 %v1744_v45  ;;  %v1759_v56 = vmul.f32 0.5, %v735_v42  ;;  %v738_v57 = vld [vmem:[%s8700_s30 + $0x12c0] sm:$0xff] }
 0x27f   : > { %v7581_v3 = vpop.eup %7580  ;;  %5823 = vst [vmem:[%s8733_s17 + $0x11a8] sm:$0xff] %v4799_v58  ;;  %v4801_v4 = vadd.f32 0.5, %v3777_v59  ;;  %v3779_v5 = vmul.f32 0.5, %v7579_v62  ;;  %7606 = vtanh.f32 %v1745_v50  ;;  %v1760_v61 = vmul.f32 0.5, %v736_v47  ;;  %v739_v62 = vld [vmem:[%s8700_s30 + $0x12c8] sm:$0xff] }
 0x280   : > { %v7583_v8 = vpop.eup %7582  ;;  %5824 = vst [vmem:[%s8733_s17 + $0x11b0] sm:$0xff] %v4800_v63  ;;  %v4802_v9 = vadd.f32 0.5, %v3778_v0  ;;  %v3780_v10 = vmul.f32 0.5, %v7581_v3  ;;  %7608 = vtanh.f32 %v1746_v55  ;;  %v1761_v2 = vmul.f32 0.5, %v737_v52  ;;  %v740_v3 = vld [vmem:[%s8700_s30 + $0x12d0] sm:$0xff] }
 0x281   : > { %v7585_v13 = vpop.eup %7584  ;;  %5825 = vst [vmem:[%s8733_s17 + $0x11b8] sm:$0xff] %v4801_v4  ;;  %v4803_v14 = vadd.f32 0.5, %v3779_v5  ;;  %v3781_v15 = vmul.f32 0.5, %v7583_v8  ;;  %7610 = vtanh.f32 %v1747_v60  ;;  %v1762_v7 = vmul.f32 0.5, %v738_v57  ;;  %v741_v8 = vld [vmem:[%s8700_s30 + $0x12d8] sm:$0xff] }
 0x282   : > { %v7587_v18 = vpop.eup %7586  ;;  %5826 = vst [vmem:[%s8733_s17 + $0x11c0] sm:$0xff] %v4802_v9  ;;  %v4804_v19 = vadd.f32 0.5, %v3780_v10  ;;  %v3782_v20 = vmul.f32 0.5, %v7585_v13  ;;  %7612 = vtanh.f32 %v1748_v1  ;;  %v1763_v12 = vmul.f32 0.5, %v739_v62  ;;  %v742_v13 = vld [vmem:[%s8700_s30 + $0x12e0] sm:$0xff] }
 0x283   : > { %v7589_v23 = vpop.eup %7588  ;;  %5827 = vst [vmem:[%s8733_s17 + $0x11c8] sm:$0xff] %v4803_v14  ;;  %v4805_v24 = vadd.f32 0.5, %v3781_v15  ;;  %v3783_v25 = vmul.f32 0.5, %v7587_v18  ;;  %7614 = vtanh.f32 %v1749_v6  ;;  %v1764_v17 = vmul.f32 0.5, %v740_v3  ;;  %v743_v18 = vld [vmem:[%s8700_s30 + $0x12e8] sm:$0xff] }
 0x284   : > { %v7591_v28 = vpop.eup %7590  ;;  %5828 = vst [vmem:[%s8733_s17 + $0x11d0] sm:$0xff] %v4804_v19  ;;  %v4806_v29 = vadd.f32 0.5, %v3782_v20  ;;  %v3784_v30 = vmul.f32 0.5, %v7589_v23  ;;  %7616 = vtanh.f32 %v1750_v11  ;;  %v1765_v22 = vmul.f32 0.5, %v741_v8  ;;  %v744_v23 = vld [vmem:[%s8700_s30 + $0x12f0] sm:$0xff] }
 0x285   : > { %v7593_v33 = vpop.eup %7592  ;;  %5829 = vst [vmem:[%s8733_s17 + $0x11d8] sm:$0xff] %v4805_v24  ;;  %v4807_v34 = vadd.f32 0.5, %v3783_v25  ;;  %v3785_v35 = vmul.f32 0.5, %v7591_v28  ;;  %7618 = vtanh.f32 %v1751_v16  ;;  %v1766_v27 = vmul.f32 0.5, %v742_v13  ;;  %v745_v28 = vld [vmem:[%s8700_s30 + $0x12f8] sm:$0xff] }
 0x286   : > { %v7595_v38 = vpop.eup %7594  ;;  %5830 = vst [vmem:[%s8733_s17 + $0x11e0] sm:$0xff] %v4806_v29  ;;  %v4808_v39 = vadd.f32 0.5, %v3784_v30  ;;  %v3786_v40 = vmul.f32 0.5, %v7593_v33  ;;  %7620 = vtanh.f32 %v1752_v21  ;;  %v1767_v32 = vmul.f32 0.5, %v743_v18  ;;  %v746_v33 = vld [vmem:[%s8700_s30 + $0x1300] sm:$0xff] }
 0x287   : > { %v7597_v43 = vpop.eup %7596  ;;  %5831 = vst [vmem:[%s8733_s17 + $0x11e8] sm:$0xff] %v4807_v34  ;;  %v4809_v44 = vadd.f32 0.5, %v3785_v35  ;;  %v3787_v45 = vmul.f32 0.5, %v7595_v38  ;;  %7622 = vtanh.f32 %v1753_v26  ;;  %v1768_v37 = vmul.f32 0.5, %v744_v23  ;;  %v747_v38 = vld [vmem:[%s8700_s30 + $0x1308] sm:$0xff] }
 0x288   : > { %v7599_v48 = vpop.eup %7598  ;;  %5832 = vst [vmem:[%s8733_s17 + $0x11f0] sm:$0xff] %v4808_v39  ;;  %v4810_v49 = vadd.f32 0.5, %v3786_v40  ;;  %v3788_v50 = vmul.f32 0.5, %v7597_v43  ;;  %7624 = vtanh.f32 %v1754_v31  ;;  %v1769_v42 = vmul.f32 0.5, %v745_v28  ;;  %v748_v43 = vld [vmem:[%s8700_s30 + $0x1310] sm:$0xff] }
 0x289   : > { %v7601_v53 = vpop.eup %7600  ;;  %5833 = vst [vmem:[%s8733_s17 + $0x11f8] sm:$0xff] %v4809_v44  ;;  %v4811_v54 = vadd.f32 0.5, %v3787_v45  ;;  %v3789_v55 = vmul.f32 0.5, %v7599_v48  ;;  %7626 = vtanh.f32 %v1755_v36  ;;  %v1770_v47 = vmul.f32 0.5, %v746_v33  ;;  %v749_v48 = vld [vmem:[%s8700_s30 + $0x1318] sm:$0xff] }
 0x28a   : > { %v7603_v58 = vpop.eup %7602  ;;  %5834 = vst [vmem:[%s8733_s17 + $0x1200] sm:$0xff] %v4810_v49  ;;  %v4812_v59 = vadd.f32 0.5, %v3788_v50  ;;  %v3790_v60 = vmul.f32 0.5, %v7601_v53  ;;  %7628 = vtanh.f32 %v1756_v41  ;;  %v1771_v52 = vmul.f32 0.5, %v747_v38  ;;  %v750_v53 = vld [vmem:[%s8700_s30 + $0x1320] sm:$0xff] }
 0x28b   : > { %v7605_v63 = vpop.eup %7604  ;;  %5835 = vst [vmem:[%s8733_s17 + $0x1208] sm:$0xff] %v4811_v54  ;;  %v4813_v0 = vadd.f32 0.5, %v3789_v55  ;;  %v3791_v1 = vmul.f32 0.5, %v7603_v58  ;;  %7630 = vtanh.f32 %v1757_v46  ;;  %v1772_v57 = vmul.f32 0.5, %v748_v43  ;;  %v751_v58 = vld [vmem:[%s8700_s30 + $0x1328] sm:$0xff] }
 0x28c   : > { %v7607_v4 = vpop.eup %7606  ;;  %5836 = vst [vmem:[%s8733_s17 + $0x1210] sm:$0xff] %v4812_v59  ;;  %v4814_v5 = vadd.f32 0.5, %v3790_v60  ;;  %v3792_v6 = vmul.f32 0.5, %v7605_v63  ;;  %7632 = vtanh.f32 %v1758_v51  ;;  %v1773_v62 = vmul.f32 0.5, %v749_v48  ;;  %v752_v63 = vld [vmem:[%s8700_s30 + $0x1330] sm:$0xff] }
 0x28d   : > { %v7609_v9 = vpop.eup %7608  ;;  %5837 = vst [vmem:[%s8733_s17 + $0x1218] sm:$0xff] %v4813_v0  ;;  %v4815_v10 = vadd.f32 0.5, %v3791_v1  ;;  %v3793_v11 = vmul.f32 0.5, %v7607_v4  ;;  %7634 = vtanh.f32 %v1759_v56  ;;  %v1774_v3 = vmul.f32 0.5, %v750_v53  ;;  %v753_v4 = vld [vmem:[%s8700_s30 + $0x1338] sm:$0xff] }
 0x28e   : > { %v7611_v14 = vpop.eup %7610  ;;  %5838 = vst [vmem:[%s8733_s17 + $0x1220] sm:$0xff] %v4814_v5  ;;  %v4816_v15 = vadd.f32 0.5, %v3792_v6  ;;  %v3794_v16 = vmul.f32 0.5, %v7609_v9  ;;  %7636 = vtanh.f32 %v1760_v61  ;;  %v1775_v8 = vmul.f32 0.5, %v751_v58  ;;  %v754_v9 = vld [vmem:[%s8700_s30 + $0x1340] sm:$0xff] }
 0x28f   : > { %v7613_v19 = vpop.eup %7612  ;;  %5839 = vst [vmem:[%s8733_s17 + $0x1228] sm:$0xff] %v4815_v10  ;;  %v4817_v20 = vadd.f32 0.5, %v3793_v11  ;;  %v3795_v21 = vmul.f32 0.5, %v7611_v14  ;;  %7638 = vtanh.f32 %v1761_v2  ;;  %v1776_v13 = vmul.f32 0.5, %v752_v63  ;;  %v755_v14 = vld [vmem:[%s8700_s30 + $0x1348] sm:$0xff] }
 0x290   : > { %v7615_v24 = vpop.eup %7614  ;;  %5840 = vst [vmem:[%s8733_s17 + $0x1230] sm:$0xff] %v4816_v15  ;;  %v4818_v25 = vadd.f32 0.5, %v3794_v16  ;;  %v3796_v26 = vmul.f32 0.5, %v7613_v19  ;;  %7640 = vtanh.f32 %v1762_v7  ;;  %v1777_v18 = vmul.f32 0.5, %v753_v4  ;;  %v756_v19 = vld [vmem:[%s8700_s30 + $0x1350] sm:$0xff] }
 0x291   : > { %v7617_v29 = vpop.eup %7616  ;;  %5841 = vst [vmem:[%s8733_s17 + $0x1238] sm:$0xff] %v4817_v20  ;;  %v4819_v30 = vadd.f32 0.5, %v3795_v21  ;;  %v3797_v31 = vmul.f32 0.5, %v7615_v24  ;;  %7642 = vtanh.f32 %v1763_v12  ;;  %v1778_v23 = vmul.f32 0.5, %v754_v9  ;;  %v757_v24 = vld [vmem:[%s8700_s30 + $0x1358] sm:$0xff] }
 0x292   : > { %v7619_v34 = vpop.eup %7618  ;;  %5842 = vst [vmem:[%s8733_s17 + $0x1240] sm:$0xff] %v4818_v25  ;;  %v4820_v35 = vadd.f32 0.5, %v3796_v26  ;;  %v3798_v36 = vmul.f32 0.5, %v7617_v29  ;;  %7644 = vtanh.f32 %v1764_v17  ;;  %v1779_v28 = vmul.f32 0.5, %v755_v14  ;;  %v758_v29 = vld [vmem:[%s8700_s30 + $0x1360] sm:$0xff] }
 0x293   : > { %v7621_v39 = vpop.eup %7620  ;;  %5843 = vst [vmem:[%s8733_s17 + $0x1248] sm:$0xff] %v4819_v30  ;;  %v4821_v40 = vadd.f32 0.5, %v3797_v31  ;;  %v3799_v41 = vmul.f32 0.5, %v7619_v34  ;;  %7646 = vtanh.f32 %v1765_v22  ;;  %v1780_v33 = vmul.f32 0.5, %v756_v19  ;;  %v759_v34 = vld [vmem:[%s8700_s30 + $0x1368] sm:$0xff] }
 0x294   : > { %v7623_v44 = vpop.eup %7622  ;;  %5844 = vst [vmem:[%s8733_s17 + $0x1250] sm:$0xff] %v4820_v35  ;;  %v4822_v45 = vadd.f32 0.5, %v3798_v36  ;;  %v3800_v46 = vmul.f32 0.5, %v7621_v39  ;;  %7648 = vtanh.f32 %v1766_v27  ;;  %v1781_v38 = vmul.f32 0.5, %v757_v24  ;;  %v760_v39 = vld [vmem:[%s8700_s30 + $0x1370] sm:$0xff] }
 0x295   : > { %v7625_v49 = vpop.eup %7624  ;;  %5845 = vst [vmem:[%s8733_s17 + $0x1258] sm:$0xff] %v4821_v40  ;;  %v4823_v50 = vadd.f32 0.5, %v3799_v41  ;;  %v3801_v51 = vmul.f32 0.5, %v7623_v44  ;;  %7650 = vtanh.f32 %v1767_v32  ;;  %v1782_v43 = vmul.f32 0.5, %v758_v29  ;;  %v761_v44 = vld [vmem:[%s8700_s30 + $0x1378] sm:$0xff] }
 0x296   : > { %v7627_v54 = vpop.eup %7626  ;;  %5846 = vst [vmem:[%s8733_s17 + $0x1260] sm:$0xff] %v4822_v45  ;;  %v4824_v55 = vadd.f32 0.5, %v3800_v46  ;;  %v3802_v56 = vmul.f32 0.5, %v7625_v49  ;;  %7652 = vtanh.f32 %v1768_v37  ;;  %v1783_v48 = vmul.f32 0.5, %v759_v34  ;;  %v762_v49 = vld [vmem:[%s8700_s30 + $0x1380] sm:$0xff] }
 0x297   : > { %v7629_v59 = vpop.eup %7628  ;;  %5847 = vst [vmem:[%s8733_s17 + $0x1268] sm:$0xff] %v4823_v50  ;;  %v4825_v60 = vadd.f32 0.5, %v3801_v51  ;;  %v3803_v61 = vmul.f32 0.5, %v7627_v54  ;;  %7654 = vtanh.f32 %v1769_v42  ;;  %v1784_v53 = vmul.f32 0.5, %v760_v39  ;;  %v763_v54 = vld [vmem:[%s8700_s30 + $0x1388] sm:$0xff] }
 0x298   : > { %v7631_v0 = vpop.eup %7630  ;;  %5848 = vst [vmem:[%s8733_s17 + $0x1270] sm:$0xff] %v4824_v55  ;;  %v4826_v1 = vadd.f32 0.5, %v3802_v56  ;;  %v3804_v2 = vmul.f32 0.5, %v7629_v59  ;;  %7656 = vtanh.f32 %v1770_v47  ;;  %v1785_v58 = vmul.f32 0.5, %v761_v44  ;;  %v764_v59 = vld [vmem:[%s8700_s30 + $0x1390] sm:$0xff] }
 0x299   : > { %v7633_v5 = vpop.eup %7632  ;;  %5849 = vst [vmem:[%s8733_s17 + $0x1278] sm:$0xff] %v4825_v60  ;;  %v4827_v6 = vadd.f32 0.5, %v3803_v61  ;;  %v3805_v7 = vmul.f32 0.5, %v7631_v0  ;;  %7658 = vtanh.f32 %v1771_v52  ;;  %v1786_v63 = vmul.f32 0.5, %v762_v49  ;;  %v765_v0 = vld [vmem:[%s8700_s30 + $0x1398] sm:$0xff] }
 0x29a   : > { %v7635_v10 = vpop.eup %7634  ;;  %5850 = vst [vmem:[%s8733_s17 + $0x1280] sm:$0xff] %v4826_v1  ;;  %v4828_v11 = vadd.f32 0.5, %v3804_v2  ;;  %v3806_v12 = vmul.f32 0.5, %v7633_v5  ;;  %7660 = vtanh.f32 %v1772_v57  ;;  %v1787_v4 = vmul.f32 0.5, %v763_v54  ;;  %v766_v5 = vld [vmem:[%s8700_s30 + $0x13a0] sm:$0xff] }
 0x29b   : > { %v7637_v15 = vpop.eup %7636  ;;  %5851 = vst [vmem:[%s8733_s17 + $0x1288] sm:$0xff] %v4827_v6  ;;  %v4829_v16 = vadd.f32 0.5, %v3805_v7  ;;  %v3807_v17 = vmul.f32 0.5, %v7635_v10  ;;  %7662 = vtanh.f32 %v1773_v62  ;;  %v1788_v9 = vmul.f32 0.5, %v764_v59  ;;  %v767_v10 = vld [vmem:[%s8700_s30 + $0x13a8] sm:$0xff] }
 0x29c   : > { %v7639_v20 = vpop.eup %7638  ;;  %5852 = vst [vmem:[%s8733_s17 + $0x1290] sm:$0xff] %v4828_v11  ;;  %v4830_v21 = vadd.f32 0.5, %v3806_v12  ;;  %v3808_v22 = vmul.f32 0.5, %v7637_v15  ;;  %7664 = vtanh.f32 %v1774_v3  ;;  %v1789_v14 = vmul.f32 0.5, %v765_v0  ;;  %v768_v15 = vld [vmem:[%s8700_s30 + $0x13b0] sm:$0xff] }
 0x29d   : > { %v7641_v25 = vpop.eup %7640  ;;  %5853 = vst [vmem:[%s8733_s17 + $0x1298] sm:$0xff] %v4829_v16  ;;  %v4831_v26 = vadd.f32 0.5, %v3807_v17  ;;  %v3809_v27 = vmul.f32 0.5, %v7639_v20  ;;  %7666 = vtanh.f32 %v1775_v8  ;;  %v1790_v19 = vmul.f32 0.5, %v766_v5  ;;  %v769_v20 = vld [vmem:[%s8700_s30 + $0x13b8] sm:$0xff] }
 0x29e   : > { %v7643_v30 = vpop.eup %7642  ;;  %5854 = vst [vmem:[%s8733_s17 + $0x12a0] sm:$0xff] %v4830_v21  ;;  %v4832_v31 = vadd.f32 0.5, %v3808_v22  ;;  %v3810_v32 = vmul.f32 0.5, %v7641_v25  ;;  %7668 = vtanh.f32 %v1776_v13  ;;  %v1791_v24 = vmul.f32 0.5, %v767_v10  ;;  %v770_v25 = vld [vmem:[%s8700_s30 + $0x13c0] sm:$0xff] }
 0x29f   : > { %v7645_v35 = vpop.eup %7644  ;;  %5855 = vst [vmem:[%s8733_s17 + $0x12a8] sm:$0xff] %v4831_v26  ;;  %v4833_v36 = vadd.f32 0.5, %v3809_v27  ;;  %v3811_v37 = vmul.f32 0.5, %v7643_v30  ;;  %7670 = vtanh.f32 %v1777_v18  ;;  %v1792_v29 = vmul.f32 0.5, %v768_v15  ;;  %v771_v30 = vld [vmem:[%s8700_s30 + $0x13c8] sm:$0xff] }
 0x2a0   : > { %v7647_v40 = vpop.eup %7646  ;;  %5856 = vst [vmem:[%s8733_s17 + $0x12b0] sm:$0xff] %v4832_v31  ;;  %v4834_v41 = vadd.f32 0.5, %v3810_v32  ;;  %v3812_v42 = vmul.f32 0.5, %v7645_v35  ;;  %7672 = vtanh.f32 %v1778_v23  ;;  %v1793_v34 = vmul.f32 0.5, %v769_v20  ;;  %v772_v35 = vld [vmem:[%s8700_s30 + $0x13d0] sm:$0xff] }
 0x2a1   : > { %v7649_v45 = vpop.eup %7648  ;;  %5857 = vst [vmem:[%s8733_s17 + $0x12b8] sm:$0xff] %v4833_v36  ;;  %v4835_v46 = vadd.f32 0.5, %v3811_v37  ;;  %v3813_v47 = vmul.f32 0.5, %v7647_v40  ;;  %7674 = vtanh.f32 %v1779_v28  ;;  %v1794_v39 = vmul.f32 0.5, %v770_v25  ;;  %v773_v40 = vld [vmem:[%s8700_s30 + $0x13d8] sm:$0xff] }
 0x2a2   : > { %v7651_v50 = vpop.eup %7650  ;;  %5858 = vst [vmem:[%s8733_s17 + $0x12c0] sm:$0xff] %v4834_v41  ;;  %v4836_v51 = vadd.f32 0.5, %v3812_v42  ;;  %v3814_v52 = vmul.f32 0.5, %v7649_v45  ;;  %7676 = vtanh.f32 %v1780_v33  ;;  %v1795_v44 = vmul.f32 0.5, %v771_v30  ;;  %v774_v45 = vld [vmem:[%s8700_s30 + $0x13e0] sm:$0xff] }
 0x2a3   : > { %v7653_v55 = vpop.eup %7652  ;;  %5859 = vst [vmem:[%s8733_s17 + $0x12c8] sm:$0xff] %v4835_v46  ;;  %v4837_v56 = vadd.f32 0.5, %v3813_v47  ;;  %v3815_v57 = vmul.f32 0.5, %v7651_v50  ;;  %7678 = vtanh.f32 %v1781_v38  ;;  %v1796_v49 = vmul.f32 0.5, %v772_v35  ;;  %v775_v50 = vld [vmem:[%s8700_s30 + $0x13e8] sm:$0xff] }
 0x2a4   : > { %v7655_v60 = vpop.eup %7654  ;;  %5860 = vst [vmem:[%s8733_s17 + $0x12d0] sm:$0xff] %v4836_v51  ;;  %v4838_v61 = vadd.f32 0.5, %v3814_v52  ;;  %v3816_v62 = vmul.f32 0.5, %v7653_v55  ;;  %7680 = vtanh.f32 %v1782_v43  ;;  %v1797_v54 = vmul.f32 0.5, %v773_v40  ;;  %v776_v55 = vld [vmem:[%s8700_s30 + $0x13f0] sm:$0xff] }
 0x2a5   : > { %v7657_v1 = vpop.eup %7656  ;;  %5861 = vst [vmem:[%s8733_s17 + $0x12d8] sm:$0xff] %v4837_v56  ;;  %v4839_v2 = vadd.f32 0.5, %v3815_v57  ;;  %v3817_v3 = vmul.f32 0.5, %v7655_v60  ;;  %7682 = vtanh.f32 %v1783_v48  ;;  %v1798_v59 = vmul.f32 0.5, %v774_v45  ;;  %v777_v60 = vld [vmem:[%s8700_s30 + $0x13f8] sm:$0xff] }
 0x2a6   : > { %v7659_v6 = vpop.eup %7658  ;;  %5862 = vst [vmem:[%s8733_s17 + $0x12e0] sm:$0xff] %v4838_v61  ;;  %v4840_v7 = vadd.f32 0.5, %v3816_v62  ;;  %v3818_v8 = vmul.f32 0.5, %v7657_v1  ;;  %7684 = vtanh.f32 %v1784_v53  ;;  %v1799_v0 = vmul.f32 0.5, %v775_v50  ;;  %v778_v1 = vld [vmem:[%s8700_s30 + $0x1400] sm:$0xff] }
 0x2a7   : > { %v7661_v11 = vpop.eup %7660  ;;  %5863 = vst [vmem:[%s8733_s17 + $0x12e8] sm:$0xff] %v4839_v2  ;;  %v4841_v12 = vadd.f32 0.5, %v3817_v3  ;;  %v3819_v13 = vmul.f32 0.5, %v7659_v6  ;;  %7686 = vtanh.f32 %v1785_v58  ;;  %v1800_v5 = vmul.f32 0.5, %v776_v55  ;;  %v779_v6 = vld [vmem:[%s8700_s30 + $0x1408] sm:$0xff] }
 0x2a8   : > { %v7663_v16 = vpop.eup %7662  ;;  %5864 = vst [vmem:[%s8733_s17 + $0x12f0] sm:$0xff] %v4840_v7  ;;  %v4842_v17 = vadd.f32 0.5, %v3818_v8  ;;  %v3820_v18 = vmul.f32 0.5, %v7661_v11  ;;  %7688 = vtanh.f32 %v1786_v63  ;;  %v1801_v10 = vmul.f32 0.5, %v777_v60  ;;  %v780_v11 = vld [vmem:[%s8700_s30 + $0x1410] sm:$0xff] }
 0x2a9   : > { %v7665_v21 = vpop.eup %7664  ;;  %5865 = vst [vmem:[%s8733_s17 + $0x12f8] sm:$0xff] %v4841_v12  ;;  %v4843_v22 = vadd.f32 0.5, %v3819_v13  ;;  %v3821_v23 = vmul.f32 0.5, %v7663_v16  ;;  %7690 = vtanh.f32 %v1787_v4  ;;  %v1802_v15 = vmul.f32 0.5, %v778_v1  ;;  %v781_v16 = vld [vmem:[%s8700_s30 + $0x1418] sm:$0xff] }
 0x2aa   : > { %v7667_v26 = vpop.eup %7666  ;;  %5866 = vst [vmem:[%s8733_s17 + $0x1300] sm:$0xff] %v4842_v17  ;;  %v4844_v27 = vadd.f32 0.5, %v3820_v18  ;;  %v3822_v28 = vmul.f32 0.5, %v7665_v21  ;;  %7692 = vtanh.f32 %v1788_v9  ;;  %v1803_v20 = vmul.f32 0.5, %v779_v6  ;;  %v782_v21 = vld [vmem:[%s8700_s30 + $0x1420] sm:$0xff] }
 0x2ab   : > { %v7669_v31 = vpop.eup %7668  ;;  %5867 = vst [vmem:[%s8733_s17 + $0x1308] sm:$0xff] %v4843_v22  ;;  %v4845_v32 = vadd.f32 0.5, %v3821_v23  ;;  %v3823_v33 = vmul.f32 0.5, %v7667_v26  ;;  %7694 = vtanh.f32 %v1789_v14  ;;  %v1804_v25 = vmul.f32 0.5, %v780_v11  ;;  %v783_v26 = vld [vmem:[%s8700_s30 + $0x1428] sm:$0xff] }
 0x2ac   : > { %v7671_v36 = vpop.eup %7670  ;;  %5868 = vst [vmem:[%s8733_s17 + $0x1310] sm:$0xff] %v4844_v27  ;;  %v4846_v37 = vadd.f32 0.5, %v3822_v28  ;;  %v3824_v38 = vmul.f32 0.5, %v7669_v31  ;;  %7696 = vtanh.f32 %v1790_v19  ;;  %v1805_v30 = vmul.f32 0.5, %v781_v16  ;;  %v784_v31 = vld [vmem:[%s8700_s30 + $0x1430] sm:$0xff] }
 0x2ad   : > { %v7673_v41 = vpop.eup %7672  ;;  %5869 = vst [vmem:[%s8733_s17 + $0x1318] sm:$0xff] %v4845_v32  ;;  %v4847_v42 = vadd.f32 0.5, %v3823_v33  ;;  %v3825_v43 = vmul.f32 0.5, %v7671_v36  ;;  %7698 = vtanh.f32 %v1791_v24  ;;  %v1806_v35 = vmul.f32 0.5, %v782_v21  ;;  %v785_v36 = vld [vmem:[%s8700_s30 + $0x1438] sm:$0xff] }
 0x2ae   : > { %v7675_v46 = vpop.eup %7674  ;;  %5870 = vst [vmem:[%s8733_s17 + $0x1320] sm:$0xff] %v4846_v37  ;;  %v4848_v47 = vadd.f32 0.5, %v3824_v38  ;;  %v3826_v48 = vmul.f32 0.5, %v7673_v41  ;;  %7700 = vtanh.f32 %v1792_v29  ;;  %v1807_v40 = vmul.f32 0.5, %v783_v26  ;;  %v786_v41 = vld [vmem:[%s8700_s30 + $0x1440] sm:$0xff] }
 0x2af   : > { %v7677_v51 = vpop.eup %7676  ;;  %5871 = vst [vmem:[%s8733_s17 + $0x1328] sm:$0xff] %v4847_v42  ;;  %v4849_v52 = vadd.f32 0.5, %v3825_v43  ;;  %v3827_v53 = vmul.f32 0.5, %v7675_v46  ;;  %7702 = vtanh.f32 %v1793_v34  ;;  %v1808_v45 = vmul.f32 0.5, %v784_v31  ;;  %v787_v46 = vld [vmem:[%s8700_s30 + $0x1448] sm:$0xff] }
 0x2b0   : > { %v7679_v56 = vpop.eup %7678  ;;  %5872 = vst [vmem:[%s8733_s17 + $0x1330] sm:$0xff] %v4848_v47  ;;  %v4850_v57 = vadd.f32 0.5, %v3826_v48  ;;  %v3828_v58 = vmul.f32 0.5, %v7677_v51  ;;  %7704 = vtanh.f32 %v1794_v39  ;;  %v1809_v50 = vmul.f32 0.5, %v785_v36  ;;  %v788_v51 = vld [vmem:[%s8700_s30 + $0x1450] sm:$0xff] }
 0x2b1   : > { %v7681_v61 = vpop.eup %7680  ;;  %5873 = vst [vmem:[%s8733_s17 + $0x1338] sm:$0xff] %v4849_v52  ;;  %v4851_v62 = vadd.f32 0.5, %v3827_v53  ;;  %v3829_v63 = vmul.f32 0.5, %v7679_v56  ;;  %7706 = vtanh.f32 %v1795_v44  ;;  %v1810_v55 = vmul.f32 0.5, %v786_v41  ;;  %v789_v56 = vld [vmem:[%s8700_s30 + $0x1458] sm:$0xff] }
 0x2b2   : > { %v7683_v2 = vpop.eup %7682  ;;  %5874 = vst [vmem:[%s8733_s17 + $0x1340] sm:$0xff] %v4850_v57  ;;  %v4852_v3 = vadd.f32 0.5, %v3828_v58  ;;  %v3830_v4 = vmul.f32 0.5, %v7681_v61  ;;  %7708 = vtanh.f32 %v1796_v49  ;;  %v1811_v60 = vmul.f32 0.5, %v787_v46  ;;  %v790_v61 = vld [vmem:[%s8700_s30 + $0x1460] sm:$0xff] }
 0x2b3   : > { %v7685_v7 = vpop.eup %7684  ;;  %5875 = vst [vmem:[%s8733_s17 + $0x1348] sm:$0xff] %v4851_v62  ;;  %v4853_v8 = vadd.f32 0.5, %v3829_v63  ;;  %v3831_v9 = vmul.f32 0.5, %v7683_v2  ;;  %7710 = vtanh.f32 %v1797_v54  ;;  %v1812_v1 = vmul.f32 0.5, %v788_v51  ;;  %v791_v2 = vld [vmem:[%s8700_s30 + $0x1468] sm:$0xff] }
 0x2b4   : > { %v7687_v12 = vpop.eup %7686  ;;  %5876 = vst [vmem:[%s8733_s17 + $0x1350] sm:$0xff] %v4852_v3  ;;  %v4854_v13 = vadd.f32 0.5, %v3830_v4  ;;  %v3832_v14 = vmul.f32 0.5, %v7685_v7  ;;  %7712 = vtanh.f32 %v1798_v59  ;;  %v1813_v6 = vmul.f32 0.5, %v789_v56  ;;  %v792_v7 = vld [vmem:[%s8700_s30 + $0x1470] sm:$0xff] }
 0x2b5   : > { %v7689_v17 = vpop.eup %7688  ;;  %5877 = vst [vmem:[%s8733_s17 + $0x1358] sm:$0xff] %v4853_v8  ;;  %v4855_v18 = vadd.f32 0.5, %v3831_v9  ;;  %v3833_v19 = vmul.f32 0.5, %v7687_v12  ;;  %7714 = vtanh.f32 %v1799_v0  ;;  %v1814_v11 = vmul.f32 0.5, %v790_v61  ;;  %v793_v12 = vld [vmem:[%s8700_s30 + $0x1478] sm:$0xff] }
 0x2b6   : > { %v7691_v22 = vpop.eup %7690  ;;  %5878 = vst [vmem:[%s8733_s17 + $0x1360] sm:$0xff] %v4854_v13  ;;  %v4856_v23 = vadd.f32 0.5, %v3832_v14  ;;  %v3834_v24 = vmul.f32 0.5, %v7689_v17  ;;  %7716 = vtanh.f32 %v1800_v5  ;;  %v1815_v16 = vmul.f32 0.5, %v791_v2  ;;  %v794_v17 = vld [vmem:[%s8700_s30 + $0x1480] sm:$0xff] }
 0x2b7   : > { %v7693_v27 = vpop.eup %7692  ;;  %5879 = vst [vmem:[%s8733_s17 + $0x1368] sm:$0xff] %v4855_v18  ;;  %v4857_v28 = vadd.f32 0.5, %v3833_v19  ;;  %v3835_v29 = vmul.f32 0.5, %v7691_v22  ;;  %7718 = vtanh.f32 %v1801_v10  ;;  %v1816_v21 = vmul.f32 0.5, %v792_v7  ;;  %v795_v22 = vld [vmem:[%s8700_s30 + $0x1488] sm:$0xff] }
 0x2b8   : > { %v7695_v32 = vpop.eup %7694  ;;  %5880 = vst [vmem:[%s8733_s17 + $0x1370] sm:$0xff] %v4856_v23  ;;  %v4858_v33 = vadd.f32 0.5, %v3834_v24  ;;  %v3836_v34 = vmul.f32 0.5, %v7693_v27  ;;  %7720 = vtanh.f32 %v1802_v15  ;;  %v1817_v26 = vmul.f32 0.5, %v793_v12  ;;  %v796_v27 = vld [vmem:[%s8700_s30 + $0x1490] sm:$0xff] }
 0x2b9   : > { %v7697_v37 = vpop.eup %7696  ;;  %5881 = vst [vmem:[%s8733_s17 + $0x1378] sm:$0xff] %v4857_v28  ;;  %v4859_v38 = vadd.f32 0.5, %v3835_v29  ;;  %v3837_v39 = vmul.f32 0.5, %v7695_v32  ;;  %7722 = vtanh.f32 %v1803_v20  ;;  %v1818_v31 = vmul.f32 0.5, %v794_v17  ;;  %v797_v32 = vld [vmem:[%s8700_s30 + $0x1498] sm:$0xff] }
 0x2ba   : > { %v7699_v42 = vpop.eup %7698  ;;  %5882 = vst [vmem:[%s8733_s17 + $0x1380] sm:$0xff] %v4858_v33  ;;  %v4860_v43 = vadd.f32 0.5, %v3836_v34  ;;  %v3838_v44 = vmul.f32 0.5, %v7697_v37  ;;  %7724 = vtanh.f32 %v1804_v25  ;;  %v1819_v36 = vmul.f32 0.5, %v795_v22  ;;  %v798_v37 = vld [vmem:[%s8700_s30 + $0x14a0] sm:$0xff] }
 0x2bb   : > { %v7701_v47 = vpop.eup %7700  ;;  %5883 = vst [vmem:[%s8733_s17 + $0x1388] sm:$0xff] %v4859_v38  ;;  %v4861_v48 = vadd.f32 0.5, %v3837_v39  ;;  %v3839_v49 = vmul.f32 0.5, %v7699_v42  ;;  %7726 = vtanh.f32 %v1805_v30  ;;  %v1820_v41 = vmul.f32 0.5, %v796_v27  ;;  %v799_v42 = vld [vmem:[%s8700_s30 + $0x14a8] sm:$0xff] }
 0x2bc   : > { %v7703_v52 = vpop.eup %7702  ;;  %5884 = vst [vmem:[%s8733_s17 + $0x1390] sm:$0xff] %v4860_v43  ;;  %v4862_v53 = vadd.f32 0.5, %v3838_v44  ;;  %v3840_v54 = vmul.f32 0.5, %v7701_v47  ;;  %7728 = vtanh.f32 %v1806_v35  ;;  %v1821_v46 = vmul.f32 0.5, %v797_v32  ;;  %v800_v47 = vld [vmem:[%s8700_s30 + $0x14b0] sm:$0xff] }
 0x2bd   : > { %v7705_v57 = vpop.eup %7704  ;;  %5885 = vst [vmem:[%s8733_s17 + $0x1398] sm:$0xff] %v4861_v48  ;;  %v4863_v58 = vadd.f32 0.5, %v3839_v49  ;;  %v3841_v59 = vmul.f32 0.5, %v7703_v52  ;;  %7730 = vtanh.f32 %v1807_v40  ;;  %v1822_v51 = vmul.f32 0.5, %v798_v37  ;;  %v801_v52 = vld [vmem:[%s8700_s30 + $0x14b8] sm:$0xff] }
 0x2be   : > { %v7707_v62 = vpop.eup %7706  ;;  %5886 = vst [vmem:[%s8733_s17 + $0x13a0] sm:$0xff] %v4862_v53  ;;  %v4864_v63 = vadd.f32 0.5, %v3840_v54  ;;  %v3842_v0 = vmul.f32 0.5, %v7705_v57  ;;  %7732 = vtanh.f32 %v1808_v45  ;;  %v1823_v56 = vmul.f32 0.5, %v799_v42  ;;  %v802_v57 = vld [vmem:[%s8700_s30 + $0x14c0] sm:$0xff] }
 0x2bf   : > { %v7709_v3 = vpop.eup %7708  ;;  %5887 = vst [vmem:[%s8733_s17 + $0x13a8] sm:$0xff] %v4863_v58  ;;  %v4865_v4 = vadd.f32 0.5, %v3841_v59  ;;  %v3843_v5 = vmul.f32 0.5, %v7707_v62  ;;  %7734 = vtanh.f32 %v1809_v50  ;;  %v1824_v61 = vmul.f32 0.5, %v800_v47  ;;  %v803_v62 = vld [vmem:[%s8700_s30 + $0x14c8] sm:$0xff] }
 0x2c0   : > { %v7711_v8 = vpop.eup %7710  ;;  %5888 = vst [vmem:[%s8733_s17 + $0x13b0] sm:$0xff] %v4864_v63  ;;  %v4866_v9 = vadd.f32 0.5, %v3842_v0  ;;  %v3844_v10 = vmul.f32 0.5, %v7709_v3  ;;  %7736 = vtanh.f32 %v1810_v55  ;;  %v1825_v2 = vmul.f32 0.5, %v801_v52  ;;  %v804_v3 = vld [vmem:[%s8700_s30 + $0x14d0] sm:$0xff] }
 0x2c1   : > { %v7713_v13 = vpop.eup %7712  ;;  %5889 = vst [vmem:[%s8733_s17 + $0x13b8] sm:$0xff] %v4865_v4  ;;  %v4867_v14 = vadd.f32 0.5, %v3843_v5  ;;  %v3845_v15 = vmul.f32 0.5, %v7711_v8  ;;  %7738 = vtanh.f32 %v1811_v60  ;;  %v1826_v7 = vmul.f32 0.5, %v802_v57  ;;  %v805_v8 = vld [vmem:[%s8700_s30 + $0x14d8] sm:$0xff] }
 0x2c2   : > { %v7715_v18 = vpop.eup %7714  ;;  %5890 = vst [vmem:[%s8733_s17 + $0x13c0] sm:$0xff] %v4866_v9  ;;  %v4868_v19 = vadd.f32 0.5, %v3844_v10  ;;  %v3846_v20 = vmul.f32 0.5, %v7713_v13  ;;  %7740 = vtanh.f32 %v1812_v1  ;;  %v1827_v12 = vmul.f32 0.5, %v803_v62  ;;  %v806_v13 = vld [vmem:[%s8700_s30 + $0x14e0] sm:$0xff] }
 0x2c3   : > { %v7717_v23 = vpop.eup %7716  ;;  %5891 = vst [vmem:[%s8733_s17 + $0x13c8] sm:$0xff] %v4867_v14  ;;  %v4869_v24 = vadd.f32 0.5, %v3845_v15  ;;  %v3847_v25 = vmul.f32 0.5, %v7715_v18  ;;  %7742 = vtanh.f32 %v1813_v6  ;;  %v1828_v17 = vmul.f32 0.5, %v804_v3  ;;  %v807_v18 = vld [vmem:[%s8700_s30 + $0x14e8] sm:$0xff] }
 0x2c4   : > { %v7719_v28 = vpop.eup %7718  ;;  %5892 = vst [vmem:[%s8733_s17 + $0x13d0] sm:$0xff] %v4868_v19  ;;  %v4870_v29 = vadd.f32 0.5, %v3846_v20  ;;  %v3848_v30 = vmul.f32 0.5, %v7717_v23  ;;  %7744 = vtanh.f32 %v1814_v11  ;;  %v1829_v22 = vmul.f32 0.5, %v805_v8  ;;  %v808_v23 = vld [vmem:[%s8700_s30 + $0x14f0] sm:$0xff] }
 0x2c5   : > { %v7721_v33 = vpop.eup %7720  ;;  %5893 = vst [vmem:[%s8733_s17 + $0x13d8] sm:$0xff] %v4869_v24  ;;  %v4871_v34 = vadd.f32 0.5, %v3847_v25  ;;  %v3849_v35 = vmul.f32 0.5, %v7719_v28  ;;  %7746 = vtanh.f32 %v1815_v16  ;;  %v1830_v27 = vmul.f32 0.5, %v806_v13  ;;  %v809_v28 = vld [vmem:[%s8700_s30 + $0x14f8] sm:$0xff] }
 0x2c6   : > { %v7723_v38 = vpop.eup %7722  ;;  %5894 = vst [vmem:[%s8733_s17 + $0x13e0] sm:$0xff] %v4870_v29  ;;  %v4872_v39 = vadd.f32 0.5, %v3848_v30  ;;  %v3850_v40 = vmul.f32 0.5, %v7721_v33  ;;  %7748 = vtanh.f32 %v1816_v21  ;;  %v1831_v32 = vmul.f32 0.5, %v807_v18  ;;  %v810_v33 = vld [vmem:[%s8700_s30 + $0x1500] sm:$0xff] }
 0x2c7   : > { %v7725_v43 = vpop.eup %7724  ;;  %5895 = vst [vmem:[%s8733_s17 + $0x13e8] sm:$0xff] %v4871_v34  ;;  %v4873_v44 = vadd.f32 0.5, %v3849_v35  ;;  %v3851_v45 = vmul.f32 0.5, %v7723_v38  ;;  %7750 = vtanh.f32 %v1817_v26  ;;  %v1832_v37 = vmul.f32 0.5, %v808_v23  ;;  %v811_v38 = vld [vmem:[%s8700_s30 + $0x1508] sm:$0xff] }
 0x2c8   : > { %v7727_v48 = vpop.eup %7726  ;;  %5896 = vst [vmem:[%s8733_s17 + $0x13f0] sm:$0xff] %v4872_v39  ;;  %v4874_v49 = vadd.f32 0.5, %v3850_v40  ;;  %v3852_v50 = vmul.f32 0.5, %v7725_v43  ;;  %7752 = vtanh.f32 %v1818_v31  ;;  %v1833_v42 = vmul.f32 0.5, %v809_v28  ;;  %v812_v43 = vld [vmem:[%s8700_s30 + $0x1510] sm:$0xff] }
 0x2c9   : > { %v7729_v53 = vpop.eup %7728  ;;  %5897 = vst [vmem:[%s8733_s17 + $0x13f8] sm:$0xff] %v4873_v44  ;;  %v4875_v54 = vadd.f32 0.5, %v3851_v45  ;;  %v3853_v55 = vmul.f32 0.5, %v7727_v48  ;;  %7754 = vtanh.f32 %v1819_v36  ;;  %v1834_v47 = vmul.f32 0.5, %v810_v33  ;;  %v813_v48 = vld [vmem:[%s8700_s30 + $0x1518] sm:$0xff] }
 0x2ca   : > { %v7731_v58 = vpop.eup %7730  ;;  %5898 = vst [vmem:[%s8733_s17 + $0x1400] sm:$0xff] %v4874_v49  ;;  %v4876_v59 = vadd.f32 0.5, %v3852_v50  ;;  %v3854_v60 = vmul.f32 0.5, %v7729_v53  ;;  %7756 = vtanh.f32 %v1820_v41  ;;  %v1835_v52 = vmul.f32 0.5, %v811_v38  ;;  %v814_v53 = vld [vmem:[%s8700_s30 + $0x1520] sm:$0xff] }
 0x2cb   : > { %v7733_v63 = vpop.eup %7732  ;;  %5899 = vst [vmem:[%s8733_s17 + $0x1408] sm:$0xff] %v4875_v54  ;;  %v4877_v0 = vadd.f32 0.5, %v3853_v55  ;;  %v3855_v1 = vmul.f32 0.5, %v7731_v58  ;;  %7758 = vtanh.f32 %v1821_v46  ;;  %v1836_v57 = vmul.f32 0.5, %v812_v43  ;;  %v815_v58 = vld [vmem:[%s8700_s30 + $0x1528] sm:$0xff] }
 0x2cc   : > { %v7735_v4 = vpop.eup %7734  ;;  %5900 = vst [vmem:[%s8733_s17 + $0x1410] sm:$0xff] %v4876_v59  ;;  %v4878_v5 = vadd.f32 0.5, %v3854_v60  ;;  %v3856_v6 = vmul.f32 0.5, %v7733_v63  ;;  %7760 = vtanh.f32 %v1822_v51  ;;  %v1837_v62 = vmul.f32 0.5, %v813_v48  ;;  %v816_v63 = vld [vmem:[%s8700_s30 + $0x1530] sm:$0xff] }
 0x2cd   : > { %v7737_v9 = vpop.eup %7736  ;;  %5901 = vst [vmem:[%s8733_s17 + $0x1418] sm:$0xff] %v4877_v0  ;;  %v4879_v10 = vadd.f32 0.5, %v3855_v1  ;;  %v3857_v11 = vmul.f32 0.5, %v7735_v4  ;;  %7762 = vtanh.f32 %v1823_v56  ;;  %v1838_v3 = vmul.f32 0.5, %v814_v53  ;;  %v817_v4 = vld [vmem:[%s8700_s30 + $0x1538] sm:$0xff] }
 0x2ce   : > { %v7739_v14 = vpop.eup %7738  ;;  %5902 = vst [vmem:[%s8733_s17 + $0x1420] sm:$0xff] %v4878_v5  ;;  %v4880_v15 = vadd.f32 0.5, %v3856_v6  ;;  %v3858_v16 = vmul.f32 0.5, %v7737_v9  ;;  %7764 = vtanh.f32 %v1824_v61  ;;  %v1839_v8 = vmul.f32 0.5, %v815_v58  ;;  %v818_v9 = vld [vmem:[%s8700_s30 + $0x1540] sm:$0xff] }
 0x2cf   : > { %v7741_v19 = vpop.eup %7740  ;;  %5903 = vst [vmem:[%s8733_s17 + $0x1428] sm:$0xff] %v4879_v10  ;;  %v4881_v20 = vadd.f32 0.5, %v3857_v11  ;;  %v3859_v21 = vmul.f32 0.5, %v7739_v14  ;;  %7766 = vtanh.f32 %v1825_v2  ;;  %v1840_v13 = vmul.f32 0.5, %v816_v63  ;;  %v819_v14 = vld [vmem:[%s8700_s30 + $0x1548] sm:$0xff] }
 0x2d0   : > { %v7743_v24 = vpop.eup %7742  ;;  %5904 = vst [vmem:[%s8733_s17 + $0x1430] sm:$0xff] %v4880_v15  ;;  %v4882_v25 = vadd.f32 0.5, %v3858_v16  ;;  %v3860_v26 = vmul.f32 0.5, %v7741_v19  ;;  %7768 = vtanh.f32 %v1826_v7  ;;  %v1841_v18 = vmul.f32 0.5, %v817_v4  ;;  %v820_v19 = vld [vmem:[%s8700_s30 + $0x1550] sm:$0xff] }
 0x2d1   : > { %v7745_v29 = vpop.eup %7744  ;;  %5905 = vst [vmem:[%s8733_s17 + $0x1438] sm:$0xff] %v4881_v20  ;;  %v4883_v30 = vadd.f32 0.5, %v3859_v21  ;;  %v3861_v31 = vmul.f32 0.5, %v7743_v24  ;;  %7770 = vtanh.f32 %v1827_v12  ;;  %v1842_v23 = vmul.f32 0.5, %v818_v9  ;;  %v821_v24 = vld [vmem:[%s8700_s30 + $0x1558] sm:$0xff] }
 0x2d2   : > { %v7747_v34 = vpop.eup %7746  ;;  %5906 = vst [vmem:[%s8733_s17 + $0x1440] sm:$0xff] %v4882_v25  ;;  %v4884_v35 = vadd.f32 0.5, %v3860_v26  ;;  %v3862_v36 = vmul.f32 0.5, %v7745_v29  ;;  %7772 = vtanh.f32 %v1828_v17  ;;  %v1843_v28 = vmul.f32 0.5, %v819_v14  ;;  %v822_v29 = vld [vmem:[%s8700_s30 + $0x1560] sm:$0xff] }
 0x2d3   : > { %v7749_v39 = vpop.eup %7748  ;;  %5907 = vst [vmem:[%s8733_s17 + $0x1448] sm:$0xff] %v4883_v30  ;;  %v4885_v40 = vadd.f32 0.5, %v3861_v31  ;;  %v3863_v41 = vmul.f32 0.5, %v7747_v34  ;;  %7774 = vtanh.f32 %v1829_v22  ;;  %v1844_v33 = vmul.f32 0.5, %v820_v19  ;;  %v823_v34 = vld [vmem:[%s8700_s30 + $0x1568] sm:$0xff] }
 0x2d4   : > { %v7751_v44 = vpop.eup %7750  ;;  %5908 = vst [vmem:[%s8733_s17 + $0x1450] sm:$0xff] %v4884_v35  ;;  %v4886_v45 = vadd.f32 0.5, %v3862_v36  ;;  %v3864_v46 = vmul.f32 0.5, %v7749_v39  ;;  %7776 = vtanh.f32 %v1830_v27  ;;  %v1845_v38 = vmul.f32 0.5, %v821_v24  ;;  %v824_v39 = vld [vmem:[%s8700_s30 + $0x1570] sm:$0xff] }
 0x2d5   : > { %v7753_v49 = vpop.eup %7752  ;;  %5909 = vst [vmem:[%s8733_s17 + $0x1458] sm:$0xff] %v4885_v40  ;;  %v4887_v50 = vadd.f32 0.5, %v3863_v41  ;;  %v3865_v51 = vmul.f32 0.5, %v7751_v44  ;;  %7778 = vtanh.f32 %v1831_v32  ;;  %v1846_v43 = vmul.f32 0.5, %v822_v29  ;;  %v825_v44 = vld [vmem:[%s8700_s30 + $0x1578] sm:$0xff] }
 0x2d6   : > { %v7755_v54 = vpop.eup %7754  ;;  %5910 = vst [vmem:[%s8733_s17 + $0x1460] sm:$0xff] %v4886_v45  ;;  %v4888_v55 = vadd.f32 0.5, %v3864_v46  ;;  %v3866_v56 = vmul.f32 0.5, %v7753_v49  ;;  %7780 = vtanh.f32 %v1832_v37  ;;  %v1847_v48 = vmul.f32 0.5, %v823_v34  ;;  %v826_v49 = vld [vmem:[%s8700_s30 + $0x1580] sm:$0xff] }
 0x2d7   : > { %v7757_v59 = vpop.eup %7756  ;;  %5911 = vst [vmem:[%s8733_s17 + $0x1468] sm:$0xff] %v4887_v50  ;;  %v4889_v60 = vadd.f32 0.5, %v3865_v51  ;;  %v3867_v61 = vmul.f32 0.5, %v7755_v54  ;;  %7782 = vtanh.f32 %v1833_v42  ;;  %v1848_v53 = vmul.f32 0.5, %v824_v39  ;;  %v827_v54 = vld [vmem:[%s8700_s30 + $0x1588] sm:$0xff] }
 0x2d8   : > { %v7759_v0 = vpop.eup %7758  ;;  %5912 = vst [vmem:[%s8733_s17 + $0x1470] sm:$0xff] %v4888_v55  ;;  %v4890_v1 = vadd.f32 0.5, %v3866_v56  ;;  %v3868_v2 = vmul.f32 0.5, %v7757_v59  ;;  %7784 = vtanh.f32 %v1834_v47  ;;  %v1849_v58 = vmul.f32 0.5, %v825_v44  ;;  %v828_v59 = vld [vmem:[%s8700_s30 + $0x1590] sm:$0xff] }
 0x2d9   : > { %v7761_v5 = vpop.eup %7760  ;;  %5913 = vst [vmem:[%s8733_s17 + $0x1478] sm:$0xff] %v4889_v60  ;;  %v4891_v6 = vadd.f32 0.5, %v3867_v61  ;;  %v3869_v7 = vmul.f32 0.5, %v7759_v0  ;;  %7786 = vtanh.f32 %v1835_v52  ;;  %v1850_v63 = vmul.f32 0.5, %v826_v49  ;;  %v829_v0 = vld [vmem:[%s8700_s30 + $0x1598] sm:$0xff] }
 0x2da   : > { %v7763_v10 = vpop.eup %7762  ;;  %5914 = vst [vmem:[%s8733_s17 + $0x1480] sm:$0xff] %v4890_v1  ;;  %v4892_v11 = vadd.f32 0.5, %v3868_v2  ;;  %v3870_v12 = vmul.f32 0.5, %v7761_v5  ;;  %7788 = vtanh.f32 %v1836_v57  ;;  %v1851_v4 = vmul.f32 0.5, %v827_v54  ;;  %v830_v5 = vld [vmem:[%s8700_s30 + $0x15a0] sm:$0xff] }
 0x2db   : > { %v7765_v15 = vpop.eup %7764  ;;  %5915 = vst [vmem:[%s8733_s17 + $0x1488] sm:$0xff] %v4891_v6  ;;  %v4893_v16 = vadd.f32 0.5, %v3869_v7  ;;  %v3871_v17 = vmul.f32 0.5, %v7763_v10  ;;  %7790 = vtanh.f32 %v1837_v62  ;;  %v1852_v9 = vmul.f32 0.5, %v828_v59  ;;  %v831_v10 = vld [vmem:[%s8700_s30 + $0x15a8] sm:$0xff] }
 0x2dc   : > { %v7767_v20 = vpop.eup %7766  ;;  %5916 = vst [vmem:[%s8733_s17 + $0x1490] sm:$0xff] %v4892_v11  ;;  %v4894_v21 = vadd.f32 0.5, %v3870_v12  ;;  %v3872_v22 = vmul.f32 0.5, %v7765_v15  ;;  %7792 = vtanh.f32 %v1838_v3  ;;  %v1853_v14 = vmul.f32 0.5, %v829_v0  ;;  %v832_v15 = vld [vmem:[%s8700_s30 + $0x15b0] sm:$0xff] }
 0x2dd   : > { %v7769_v25 = vpop.eup %7768  ;;  %5917 = vst [vmem:[%s8733_s17 + $0x1498] sm:$0xff] %v4893_v16  ;;  %v4895_v26 = vadd.f32 0.5, %v3871_v17  ;;  %v3873_v27 = vmul.f32 0.5, %v7767_v20  ;;  %7794 = vtanh.f32 %v1839_v8  ;;  %v1854_v19 = vmul.f32 0.5, %v830_v5  ;;  %v833_v20 = vld [vmem:[%s8700_s30 + $0x15b8] sm:$0xff] }
 0x2de   : > { %v7771_v30 = vpop.eup %7770  ;;  %5918 = vst [vmem:[%s8733_s17 + $0x14a0] sm:$0xff] %v4894_v21  ;;  %v4896_v31 = vadd.f32 0.5, %v3872_v22  ;;  %v3874_v32 = vmul.f32 0.5, %v7769_v25  ;;  %7796 = vtanh.f32 %v1840_v13  ;;  %v1855_v24 = vmul.f32 0.5, %v831_v10  ;;  %v834_v25 = vld [vmem:[%s8700_s30 + $0x15c0] sm:$0xff] }
 0x2df   : > { %v7773_v35 = vpop.eup %7772  ;;  %5919 = vst [vmem:[%s8733_s17 + $0x14a8] sm:$0xff] %v4895_v26  ;;  %v4897_v36 = vadd.f32 0.5, %v3873_v27  ;;  %v3875_v37 = vmul.f32 0.5, %v7771_v30  ;;  %7798 = vtanh.f32 %v1841_v18  ;;  %v1856_v29 = vmul.f32 0.5, %v832_v15  ;;  %v835_v30 = vld [vmem:[%s8700_s30 + $0x15c8] sm:$0xff] }
 0x2e0   : > { %v7775_v40 = vpop.eup %7774  ;;  %5920 = vst [vmem:[%s8733_s17 + $0x14b0] sm:$0xff] %v4896_v31  ;;  %v4898_v41 = vadd.f32 0.5, %v3874_v32  ;;  %v3876_v42 = vmul.f32 0.5, %v7773_v35  ;;  %7800 = vtanh.f32 %v1842_v23  ;;  %v1857_v34 = vmul.f32 0.5, %v833_v20  ;;  %v836_v35 = vld [vmem:[%s8700_s30 + $0x15d0] sm:$0xff] }
 0x2e1   : > { %v7777_v45 = vpop.eup %7776  ;;  %5921 = vst [vmem:[%s8733_s17 + $0x14b8] sm:$0xff] %v4897_v36  ;;  %v4899_v46 = vadd.f32 0.5, %v3875_v37  ;;  %v3877_v47 = vmul.f32 0.5, %v7775_v40  ;;  %7802 = vtanh.f32 %v1843_v28  ;;  %v1858_v39 = vmul.f32 0.5, %v834_v25  ;;  %v837_v40 = vld [vmem:[%s8700_s30 + $0x15d8] sm:$0xff] }
 0x2e2   : > { %v7779_v50 = vpop.eup %7778  ;;  %5922 = vst [vmem:[%s8733_s17 + $0x14c0] sm:$0xff] %v4898_v41  ;;  %v4900_v51 = vadd.f32 0.5, %v3876_v42  ;;  %v3878_v52 = vmul.f32 0.5, %v7777_v45  ;;  %7804 = vtanh.f32 %v1844_v33  ;;  %v1859_v44 = vmul.f32 0.5, %v835_v30  ;;  %v838_v45 = vld [vmem:[%s8700_s30 + $0x15e0] sm:$0xff] }
 0x2e3   : > { %v7781_v55 = vpop.eup %7780  ;;  %5923 = vst [vmem:[%s8733_s17 + $0x14c8] sm:$0xff] %v4899_v46  ;;  %v4901_v56 = vadd.f32 0.5, %v3877_v47  ;;  %v3879_v57 = vmul.f32 0.5, %v7779_v50  ;;  %7806 = vtanh.f32 %v1845_v38  ;;  %v1860_v49 = vmul.f32 0.5, %v836_v35  ;;  %v839_v50 = vld [vmem:[%s8700_s30 + $0x15e8] sm:$0xff] }
 0x2e4   : > { %v7783_v60 = vpop.eup %7782  ;;  %5924 = vst [vmem:[%s8733_s17 + $0x14d0] sm:$0xff] %v4900_v51  ;;  %v4902_v61 = vadd.f32 0.5, %v3878_v52  ;;  %v3880_v62 = vmul.f32 0.5, %v7781_v55  ;;  %7808 = vtanh.f32 %v1846_v43  ;;  %v1861_v54 = vmul.f32 0.5, %v837_v40  ;;  %v840_v55 = vld [vmem:[%s8700_s30 + $0x15f0] sm:$0xff] }
 0x2e5   : > { %v7785_v1 = vpop.eup %7784  ;;  %5925 = vst [vmem:[%s8733_s17 + $0x14d8] sm:$0xff] %v4901_v56  ;;  %v4903_v2 = vadd.f32 0.5, %v3879_v57  ;;  %v3881_v3 = vmul.f32 0.5, %v7783_v60  ;;  %7810 = vtanh.f32 %v1847_v48  ;;  %v1862_v59 = vmul.f32 0.5, %v838_v45  ;;  %v841_v60 = vld [vmem:[%s8700_s30 + $0x15f8] sm:$0xff] }
 0x2e6   : > { %v7787_v6 = vpop.eup %7786  ;;  %5926 = vst [vmem:[%s8733_s17 + $0x14e0] sm:$0xff] %v4902_v61  ;;  %v4904_v7 = vadd.f32 0.5, %v3880_v62  ;;  %v3882_v8 = vmul.f32 0.5, %v7785_v1  ;;  %7812 = vtanh.f32 %v1848_v53  ;;  %v1863_v0 = vmul.f32 0.5, %v839_v50  ;;  %v842_v1 = vld [vmem:[%s8700_s30 + $0x1600] sm:$0xff] }
 0x2e7   : > { %v7789_v11 = vpop.eup %7788  ;;  %5927 = vst [vmem:[%s8733_s17 + $0x14e8] sm:$0xff] %v4903_v2  ;;  %v4905_v12 = vadd.f32 0.5, %v3881_v3  ;;  %v3883_v13 = vmul.f32 0.5, %v7787_v6  ;;  %7814 = vtanh.f32 %v1849_v58  ;;  %v1864_v5 = vmul.f32 0.5, %v840_v55  ;;  %v843_v6 = vld [vmem:[%s8700_s30 + $0x1608] sm:$0xff] }
 0x2e8   : > { %v7791_v16 = vpop.eup %7790  ;;  %5928 = vst [vmem:[%s8733_s17 + $0x14f0] sm:$0xff] %v4904_v7  ;;  %v4906_v17 = vadd.f32 0.5, %v3882_v8  ;;  %v3884_v18 = vmul.f32 0.5, %v7789_v11  ;;  %7816 = vtanh.f32 %v1850_v63  ;;  %v1865_v10 = vmul.f32 0.5, %v841_v60  ;;  %v844_v11 = vld [vmem:[%s8700_s30 + $0x1610] sm:$0xff] }
 0x2e9   : > { %v7793_v21 = vpop.eup %7792  ;;  %5929 = vst [vmem:[%s8733_s17 + $0x14f8] sm:$0xff] %v4905_v12  ;;  %v4907_v22 = vadd.f32 0.5, %v3883_v13  ;;  %v3885_v23 = vmul.f32 0.5, %v7791_v16  ;;  %7818 = vtanh.f32 %v1851_v4  ;;  %v1866_v15 = vmul.f32 0.5, %v842_v1  ;;  %v845_v16 = vld [vmem:[%s8700_s30 + $0x1618] sm:$0xff] }
 0x2ea   : > { %v7795_v26 = vpop.eup %7794  ;;  %5930 = vst [vmem:[%s8733_s17 + $0x1500] sm:$0xff] %v4906_v17  ;;  %v4908_v27 = vadd.f32 0.5, %v3884_v18  ;;  %v3886_v28 = vmul.f32 0.5, %v7793_v21  ;;  %7820 = vtanh.f32 %v1852_v9  ;;  %v1867_v20 = vmul.f32 0.5, %v843_v6  ;;  %v846_v21 = vld [vmem:[%s8700_s30 + $0x1620] sm:$0xff] }
 0x2eb   : > { %v7797_v31 = vpop.eup %7796  ;;  %5931 = vst [vmem:[%s8733_s17 + $0x1508] sm:$0xff] %v4907_v22  ;;  %v4909_v32 = vadd.f32 0.5, %v3885_v23  ;;  %v3887_v33 = vmul.f32 0.5, %v7795_v26  ;;  %7822 = vtanh.f32 %v1853_v14  ;;  %v1868_v25 = vmul.f32 0.5, %v844_v11  ;;  %v847_v26 = vld [vmem:[%s8700_s30 + $0x1628] sm:$0xff] }
 0x2ec   : > { %v7799_v36 = vpop.eup %7798  ;;  %5932 = vst [vmem:[%s8733_s17 + $0x1510] sm:$0xff] %v4908_v27  ;;  %v4910_v37 = vadd.f32 0.5, %v3886_v28  ;;  %v3888_v38 = vmul.f32 0.5, %v7797_v31  ;;  %7824 = vtanh.f32 %v1854_v19  ;;  %v1869_v30 = vmul.f32 0.5, %v845_v16  ;;  %v848_v31 = vld [vmem:[%s8700_s30 + $0x1630] sm:$0xff] }
 0x2ed   : > { %v7801_v41 = vpop.eup %7800  ;;  %5933 = vst [vmem:[%s8733_s17 + $0x1518] sm:$0xff] %v4909_v32  ;;  %v4911_v42 = vadd.f32 0.5, %v3887_v33  ;;  %v3889_v43 = vmul.f32 0.5, %v7799_v36  ;;  %7826 = vtanh.f32 %v1855_v24  ;;  %v1870_v35 = vmul.f32 0.5, %v846_v21  ;;  %v849_v36 = vld [vmem:[%s8700_s30 + $0x1638] sm:$0xff] }
 0x2ee   : > { %v7803_v46 = vpop.eup %7802  ;;  %5934 = vst [vmem:[%s8733_s17 + $0x1520] sm:$0xff] %v4910_v37  ;;  %v4912_v47 = vadd.f32 0.5, %v3888_v38  ;;  %v3890_v48 = vmul.f32 0.5, %v7801_v41  ;;  %7828 = vtanh.f32 %v1856_v29  ;;  %v1871_v40 = vmul.f32 0.5, %v847_v26  ;;  %v850_v41 = vld [vmem:[%s8700_s30 + $0x1640] sm:$0xff] }
 0x2ef   : > { %v7805_v51 = vpop.eup %7804  ;;  %5935 = vst [vmem:[%s8733_s17 + $0x1528] sm:$0xff] %v4911_v42  ;;  %v4913_v52 = vadd.f32 0.5, %v3889_v43  ;;  %v3891_v53 = vmul.f32 0.5, %v7803_v46  ;;  %7830 = vtanh.f32 %v1857_v34  ;;  %v1872_v45 = vmul.f32 0.5, %v848_v31  ;;  %v851_v46 = vld [vmem:[%s8700_s30 + $0x1648] sm:$0xff] }
 0x2f0   : > { %v7807_v56 = vpop.eup %7806  ;;  %5936 = vst [vmem:[%s8733_s17 + $0x1530] sm:$0xff] %v4912_v47  ;;  %v4914_v57 = vadd.f32 0.5, %v3890_v48  ;;  %v3892_v58 = vmul.f32 0.5, %v7805_v51  ;;  %7832 = vtanh.f32 %v1858_v39  ;;  %v1873_v50 = vmul.f32 0.5, %v849_v36  ;;  %v852_v51 = vld [vmem:[%s8700_s30 + $0x1650] sm:$0xff] }
 0x2f1   : > { %v7809_v61 = vpop.eup %7808  ;;  %5937 = vst [vmem:[%s8733_s17 + $0x1538] sm:$0xff] %v4913_v52  ;;  %v4915_v62 = vadd.f32 0.5, %v3891_v53  ;;  %v3893_v63 = vmul.f32 0.5, %v7807_v56  ;;  %7834 = vtanh.f32 %v1859_v44  ;;  %v1874_v55 = vmul.f32 0.5, %v850_v41  ;;  %v853_v56 = vld [vmem:[%s8700_s30 + $0x1658] sm:$0xff] }
 0x2f2   : > { %v7811_v2 = vpop.eup %7810  ;;  %5938 = vst [vmem:[%s8733_s17 + $0x1540] sm:$0xff] %v4914_v57  ;;  %v4916_v3 = vadd.f32 0.5, %v3892_v58  ;;  %v3894_v4 = vmul.f32 0.5, %v7809_v61  ;;  %7836 = vtanh.f32 %v1860_v49  ;;  %v1875_v60 = vmul.f32 0.5, %v851_v46  ;;  %v854_v61 = vld [vmem:[%s8700_s30 + $0x1660] sm:$0xff] }
 0x2f3   : > { %v7813_v7 = vpop.eup %7812  ;;  %5939 = vst [vmem:[%s8733_s17 + $0x1548] sm:$0xff] %v4915_v62  ;;  %v4917_v8 = vadd.f32 0.5, %v3893_v63  ;;  %v3895_v9 = vmul.f32 0.5, %v7811_v2  ;;  %7838 = vtanh.f32 %v1861_v54  ;;  %v1876_v1 = vmul.f32 0.5, %v852_v51  ;;  %v855_v2 = vld [vmem:[%s8700_s30 + $0x1668] sm:$0xff] }
 0x2f4   : > { %v7815_v12 = vpop.eup %7814  ;;  %5940 = vst [vmem:[%s8733_s17 + $0x1550] sm:$0xff] %v4916_v3  ;;  %v4918_v13 = vadd.f32 0.5, %v3894_v4  ;;  %v3896_v14 = vmul.f32 0.5, %v7813_v7  ;;  %7840 = vtanh.f32 %v1862_v59  ;;  %v1877_v6 = vmul.f32 0.5, %v853_v56  ;;  %v856_v7 = vld [vmem:[%s8700_s30 + $0x1670] sm:$0xff] }
 0x2f5   : > { %v7817_v17 = vpop.eup %7816  ;;  %5941 = vst [vmem:[%s8733_s17 + $0x1558] sm:$0xff] %v4917_v8  ;;  %v4919_v18 = vadd.f32 0.5, %v3895_v9  ;;  %v3897_v19 = vmul.f32 0.5, %v7815_v12  ;;  %7842 = vtanh.f32 %v1863_v0  ;;  %v1878_v11 = vmul.f32 0.5, %v854_v61  ;;  %v857_v12 = vld [vmem:[%s8700_s30 + $0x1678] sm:$0xff] }
 0x2f6   : > { %v7819_v22 = vpop.eup %7818  ;;  %5942 = vst [vmem:[%s8733_s17 + $0x1560] sm:$0xff] %v4918_v13  ;;  %v4920_v23 = vadd.f32 0.5, %v3896_v14  ;;  %v3898_v24 = vmul.f32 0.5, %v7817_v17  ;;  %7844 = vtanh.f32 %v1864_v5  ;;  %v1879_v16 = vmul.f32 0.5, %v855_v2  ;;  %v858_v17 = vld [vmem:[%s8700_s30 + $0x1680] sm:$0xff] }
 0x2f7   : > { %v7821_v27 = vpop.eup %7820  ;;  %5943 = vst [vmem:[%s8733_s17 + $0x1568] sm:$0xff] %v4919_v18  ;;  %v4921_v28 = vadd.f32 0.5, %v3897_v19  ;;  %v3899_v29 = vmul.f32 0.5, %v7819_v22  ;;  %7846 = vtanh.f32 %v1865_v10  ;;  %v1880_v21 = vmul.f32 0.5, %v856_v7  ;;  %v859_v22 = vld [vmem:[%s8700_s30 + $0x1688] sm:$0xff] }
 0x2f8   : > { %v7823_v32 = vpop.eup %7822  ;;  %5944 = vst [vmem:[%s8733_s17 + $0x1570] sm:$0xff] %v4920_v23  ;;  %v4922_v33 = vadd.f32 0.5, %v3898_v24  ;;  %v3900_v34 = vmul.f32 0.5, %v7821_v27  ;;  %7848 = vtanh.f32 %v1866_v15  ;;  %v1881_v26 = vmul.f32 0.5, %v857_v12  ;;  %v860_v27 = vld [vmem:[%s8700_s30 + $0x1690] sm:$0xff] }
 0x2f9   : > { %v7825_v37 = vpop.eup %7824  ;;  %5945 = vst [vmem:[%s8733_s17 + $0x1578] sm:$0xff] %v4921_v28  ;;  %v4923_v38 = vadd.f32 0.5, %v3899_v29  ;;  %v3901_v39 = vmul.f32 0.5, %v7823_v32  ;;  %7850 = vtanh.f32 %v1867_v20  ;;  %v1882_v31 = vmul.f32 0.5, %v858_v17  ;;  %v861_v32 = vld [vmem:[%s8700_s30 + $0x1698] sm:$0xff] }
 0x2fa   : > { %v7827_v42 = vpop.eup %7826  ;;  %5946 = vst [vmem:[%s8733_s17 + $0x1580] sm:$0xff] %v4922_v33  ;;  %v4924_v43 = vadd.f32 0.5, %v3900_v34  ;;  %v3902_v44 = vmul.f32 0.5, %v7825_v37  ;;  %7852 = vtanh.f32 %v1868_v25  ;;  %v1883_v36 = vmul.f32 0.5, %v859_v22  ;;  %v862_v37 = vld [vmem:[%s8700_s30 + $0x16a0] sm:$0xff] }
 0x2fb   : > { %v7829_v47 = vpop.eup %7828  ;;  %5947 = vst [vmem:[%s8733_s17 + $0x1588] sm:$0xff] %v4923_v38  ;;  %v4925_v48 = vadd.f32 0.5, %v3901_v39  ;;  %v3903_v49 = vmul.f32 0.5, %v7827_v42  ;;  %7854 = vtanh.f32 %v1869_v30  ;;  %v1884_v41 = vmul.f32 0.5, %v860_v27  ;;  %v863_v42 = vld [vmem:[%s8700_s30 + $0x16a8] sm:$0xff] }
 0x2fc   : > { %v7831_v52 = vpop.eup %7830  ;;  %5948 = vst [vmem:[%s8733_s17 + $0x1590] sm:$0xff] %v4924_v43  ;;  %v4926_v53 = vadd.f32 0.5, %v3902_v44  ;;  %v3904_v54 = vmul.f32 0.5, %v7829_v47  ;;  %7856 = vtanh.f32 %v1870_v35  ;;  %v1885_v46 = vmul.f32 0.5, %v861_v32  ;;  %v864_v47 = vld [vmem:[%s8700_s30 + $0x16b0] sm:$0xff] }
 0x2fd   : > { %v7833_v57 = vpop.eup %7832  ;;  %5949 = vst [vmem:[%s8733_s17 + $0x1598] sm:$0xff] %v4925_v48  ;;  %v4927_v58 = vadd.f32 0.5, %v3903_v49  ;;  %v3905_v59 = vmul.f32 0.5, %v7831_v52  ;;  %7858 = vtanh.f32 %v1871_v40  ;;  %v1886_v51 = vmul.f32 0.5, %v862_v37  ;;  %v865_v52 = vld [vmem:[%s8700_s30 + $0x16b8] sm:$0xff] }
 0x2fe   : > { %v7835_v62 = vpop.eup %7834  ;;  %5950 = vst [vmem:[%s8733_s17 + $0x15a0] sm:$0xff] %v4926_v53  ;;  %v4928_v63 = vadd.f32 0.5, %v3904_v54  ;;  %v3906_v0 = vmul.f32 0.5, %v7833_v57  ;;  %7860 = vtanh.f32 %v1872_v45  ;;  %v1887_v56 = vmul.f32 0.5, %v863_v42  ;;  %v866_v57 = vld [vmem:[%s8700_s30 + $0x16c0] sm:$0xff] }
 0x2ff   : > { %v7837_v3 = vpop.eup %7836  ;;  %5951 = vst [vmem:[%s8733_s17 + $0x15a8] sm:$0xff] %v4927_v58  ;;  %v4929_v4 = vadd.f32 0.5, %v3905_v59  ;;  %v3907_v5 = vmul.f32 0.5, %v7835_v62  ;;  %7862 = vtanh.f32 %v1873_v50  ;;  %v1888_v61 = vmul.f32 0.5, %v864_v47  ;;  %v867_v62 = vld [vmem:[%s8700_s30 + $0x16c8] sm:$0xff] }
 0x300   : > { %v7839_v8 = vpop.eup %7838  ;;  %5952 = vst [vmem:[%s8733_s17 + $0x15b0] sm:$0xff] %v4928_v63  ;;  %v4930_v9 = vadd.f32 0.5, %v3906_v0  ;;  %v3908_v10 = vmul.f32 0.5, %v7837_v3  ;;  %7864 = vtanh.f32 %v1874_v55  ;;  %v1889_v2 = vmul.f32 0.5, %v865_v52  ;;  %v868_v3 = vld [vmem:[%s8700_s30 + $0x16d0] sm:$0xff] }
 0x301   : > { %v7841_v13 = vpop.eup %7840  ;;  %5953 = vst [vmem:[%s8733_s17 + $0x15b8] sm:$0xff] %v4929_v4  ;;  %v4931_v14 = vadd.f32 0.5, %v3907_v5  ;;  %v3909_v15 = vmul.f32 0.5, %v7839_v8  ;;  %7866 = vtanh.f32 %v1875_v60  ;;  %v1890_v7 = vmul.f32 0.5, %v866_v57  ;;  %v869_v8 = vld [vmem:[%s8700_s30 + $0x16d8] sm:$0xff] }
 0x302   : > { %v7843_v18 = vpop.eup %7842  ;;  %5954 = vst [vmem:[%s8733_s17 + $0x15c0] sm:$0xff] %v4930_v9  ;;  %v4932_v19 = vadd.f32 0.5, %v3908_v10  ;;  %v3910_v20 = vmul.f32 0.5, %v7841_v13  ;;  %7868 = vtanh.f32 %v1876_v1  ;;  %v1891_v12 = vmul.f32 0.5, %v867_v62  ;;  %v870_v13 = vld [vmem:[%s8700_s30 + $0x16e0] sm:$0xff] }
 0x303   : > { %v7845_v23 = vpop.eup %7844  ;;  %5955 = vst [vmem:[%s8733_s17 + $0x15c8] sm:$0xff] %v4931_v14  ;;  %v4933_v24 = vadd.f32 0.5, %v3909_v15  ;;  %v3911_v25 = vmul.f32 0.5, %v7843_v18  ;;  %7870 = vtanh.f32 %v1877_v6  ;;  %v1892_v17 = vmul.f32 0.5, %v868_v3  ;;  %v871_v18 = vld [vmem:[%s8700_s30 + $0x16e8] sm:$0xff] }
 0x304   : > { %v7847_v28 = vpop.eup %7846  ;;  %5956 = vst [vmem:[%s8733_s17 + $0x15d0] sm:$0xff] %v4932_v19  ;;  %v4934_v29 = vadd.f32 0.5, %v3910_v20  ;;  %v3912_v30 = vmul.f32 0.5, %v7845_v23  ;;  %7872 = vtanh.f32 %v1878_v11  ;;  %v1893_v22 = vmul.f32 0.5, %v869_v8  ;;  %v872_v23 = vld [vmem:[%s8700_s30 + $0x16f0] sm:$0xff] }
 0x305   : > { %v7849_v33 = vpop.eup %7848  ;;  %5957 = vst [vmem:[%s8733_s17 + $0x15d8] sm:$0xff] %v4933_v24  ;;  %v4935_v34 = vadd.f32 0.5, %v3911_v25  ;;  %v3913_v35 = vmul.f32 0.5, %v7847_v28  ;;  %7874 = vtanh.f32 %v1879_v16  ;;  %v1894_v27 = vmul.f32 0.5, %v870_v13  ;;  %v873_v28 = vld [vmem:[%s8700_s30 + $0x16f8] sm:$0xff] }
 0x306   : > { %v7851_v38 = vpop.eup %7850  ;;  %5958 = vst [vmem:[%s8733_s17 + $0x15e0] sm:$0xff] %v4934_v29  ;;  %v4936_v39 = vadd.f32 0.5, %v3912_v30  ;;  %v3914_v40 = vmul.f32 0.5, %v7849_v33  ;;  %7876 = vtanh.f32 %v1880_v21  ;;  %v1895_v32 = vmul.f32 0.5, %v871_v18  ;;  %v874_v33 = vld [vmem:[%s8700_s30 + $0x1700] sm:$0xff] }
 0x307   : > { %v7853_v43 = vpop.eup %7852  ;;  %5959 = vst [vmem:[%s8733_s17 + $0x15e8] sm:$0xff] %v4935_v34  ;;  %v4937_v44 = vadd.f32 0.5, %v3913_v35  ;;  %v3915_v45 = vmul.f32 0.5, %v7851_v38  ;;  %7878 = vtanh.f32 %v1881_v26  ;;  %v1896_v37 = vmul.f32 0.5, %v872_v23  ;;  %v875_v38 = vld [vmem:[%s8700_s30 + $0x1708] sm:$0xff] }
 0x308   : > { %v7855_v48 = vpop.eup %7854  ;;  %5960 = vst [vmem:[%s8733_s17 + $0x15f0] sm:$0xff] %v4936_v39  ;;  %v4938_v49 = vadd.f32 0.5, %v3914_v40  ;;  %v3916_v50 = vmul.f32 0.5, %v7853_v43  ;;  %7880 = vtanh.f32 %v1882_v31  ;;  %v1897_v42 = vmul.f32 0.5, %v873_v28  ;;  %v876_v43 = vld [vmem:[%s8700_s30 + $0x1710] sm:$0xff] }
 0x309   : > { %v7857_v53 = vpop.eup %7856  ;;  %5961 = vst [vmem:[%s8733_s17 + $0x15f8] sm:$0xff] %v4937_v44  ;;  %v4939_v54 = vadd.f32 0.5, %v3915_v45  ;;  %v3917_v55 = vmul.f32 0.5, %v7855_v48  ;;  %7882 = vtanh.f32 %v1883_v36  ;;  %v1898_v47 = vmul.f32 0.5, %v874_v33  ;;  %v877_v48 = vld [vmem:[%s8700_s30 + $0x1718] sm:$0xff] }
 0x30a   : > { %v7859_v58 = vpop.eup %7858  ;;  %5962 = vst [vmem:[%s8733_s17 + $0x1600] sm:$0xff] %v4938_v49  ;;  %v4940_v59 = vadd.f32 0.5, %v3916_v50  ;;  %v3918_v60 = vmul.f32 0.5, %v7857_v53  ;;  %7884 = vtanh.f32 %v1884_v41  ;;  %v1899_v52 = vmul.f32 0.5, %v875_v38  ;;  %v878_v53 = vld [vmem:[%s8700_s30 + $0x1720] sm:$0xff] }
 0x30b   : > { %v7861_v63 = vpop.eup %7860  ;;  %5963 = vst [vmem:[%s8733_s17 + $0x1608] sm:$0xff] %v4939_v54  ;;  %v4941_v0 = vadd.f32 0.5, %v3917_v55  ;;  %v3919_v1 = vmul.f32 0.5, %v7859_v58  ;;  %7886 = vtanh.f32 %v1885_v46  ;;  %v1900_v57 = vmul.f32 0.5, %v876_v43  ;;  %v879_v58 = vld [vmem:[%s8700_s30 + $0x1728] sm:$0xff] }
 0x30c   : > { %v7863_v4 = vpop.eup %7862  ;;  %5964 = vst [vmem:[%s8733_s17 + $0x1610] sm:$0xff] %v4940_v59  ;;  %v4942_v5 = vadd.f32 0.5, %v3918_v60  ;;  %v3920_v6 = vmul.f32 0.5, %v7861_v63  ;;  %7888 = vtanh.f32 %v1886_v51  ;;  %v1901_v62 = vmul.f32 0.5, %v877_v48  ;;  %v880_v63 = vld [vmem:[%s8700_s30 + $0x1730] sm:$0xff] }
 0x30d   : > { %v7865_v9 = vpop.eup %7864  ;;  %5965 = vst [vmem:[%s8733_s17 + $0x1618] sm:$0xff] %v4941_v0  ;;  %v4943_v10 = vadd.f32 0.5, %v3919_v1  ;;  %v3921_v11 = vmul.f32 0.5, %v7863_v4  ;;  %7890 = vtanh.f32 %v1887_v56  ;;  %v1902_v3 = vmul.f32 0.5, %v878_v53  ;;  %v881_v4 = vld [vmem:[%s8700_s30 + $0x1738] sm:$0xff] }
 0x30e   : > { %v7867_v14 = vpop.eup %7866  ;;  %5966 = vst [vmem:[%s8733_s17 + $0x1620] sm:$0xff] %v4942_v5  ;;  %v4944_v15 = vadd.f32 0.5, %v3920_v6  ;;  %v3922_v16 = vmul.f32 0.5, %v7865_v9  ;;  %7892 = vtanh.f32 %v1888_v61  ;;  %v1903_v8 = vmul.f32 0.5, %v879_v58  ;;  %v882_v9 = vld [vmem:[%s8700_s30 + $0x1740] sm:$0xff] }
 0x30f   : > { %v7869_v19 = vpop.eup %7868  ;;  %5967 = vst [vmem:[%s8733_s17 + $0x1628] sm:$0xff] %v4943_v10  ;;  %v4945_v20 = vadd.f32 0.5, %v3921_v11  ;;  %v3923_v21 = vmul.f32 0.5, %v7867_v14  ;;  %7894 = vtanh.f32 %v1889_v2  ;;  %v1904_v13 = vmul.f32 0.5, %v880_v63  ;;  %v883_v14 = vld [vmem:[%s8700_s30 + $0x1748] sm:$0xff] }
 0x310   : > { %v7871_v24 = vpop.eup %7870  ;;  %5968 = vst [vmem:[%s8733_s17 + $0x1630] sm:$0xff] %v4944_v15  ;;  %v4946_v25 = vadd.f32 0.5, %v3922_v16  ;;  %v3924_v26 = vmul.f32 0.5, %v7869_v19  ;;  %7896 = vtanh.f32 %v1890_v7  ;;  %v1905_v18 = vmul.f32 0.5, %v881_v4  ;;  %v884_v19 = vld [vmem:[%s8700_s30 + $0x1750] sm:$0xff] }
 0x311   : > { %v7873_v29 = vpop.eup %7872  ;;  %5969 = vst [vmem:[%s8733_s17 + $0x1638] sm:$0xff] %v4945_v20  ;;  %v4947_v30 = vadd.f32 0.5, %v3923_v21  ;;  %v3925_v31 = vmul.f32 0.5, %v7871_v24  ;;  %7898 = vtanh.f32 %v1891_v12  ;;  %v1906_v23 = vmul.f32 0.5, %v882_v9  ;;  %v885_v24 = vld [vmem:[%s8700_s30 + $0x1758] sm:$0xff] }
 0x312   : > { %v7875_v34 = vpop.eup %7874  ;;  %5970 = vst [vmem:[%s8733_s17 + $0x1640] sm:$0xff] %v4946_v25  ;;  %v4948_v35 = vadd.f32 0.5, %v3924_v26  ;;  %v3926_v36 = vmul.f32 0.5, %v7873_v29  ;;  %7900 = vtanh.f32 %v1892_v17  ;;  %v1907_v28 = vmul.f32 0.5, %v883_v14  ;;  %v886_v29 = vld [vmem:[%s8700_s30 + $0x1760] sm:$0xff] }
 0x313   : > { %v7877_v39 = vpop.eup %7876  ;;  %5971 = vst [vmem:[%s8733_s17 + $0x1648] sm:$0xff] %v4947_v30  ;;  %v4949_v40 = vadd.f32 0.5, %v3925_v31  ;;  %v3927_v41 = vmul.f32 0.5, %v7875_v34  ;;  %7902 = vtanh.f32 %v1893_v22  ;;  %v1908_v33 = vmul.f32 0.5, %v884_v19  ;;  %v887_v34 = vld [vmem:[%s8700_s30 + $0x1768] sm:$0xff] }
 0x314   : > { %v7879_v44 = vpop.eup %7878  ;;  %5972 = vst [vmem:[%s8733_s17 + $0x1650] sm:$0xff] %v4948_v35  ;;  %v4950_v45 = vadd.f32 0.5, %v3926_v36  ;;  %v3928_v46 = vmul.f32 0.5, %v7877_v39  ;;  %7904 = vtanh.f32 %v1894_v27  ;;  %v1909_v38 = vmul.f32 0.5, %v885_v24  ;;  %v888_v39 = vld [vmem:[%s8700_s30 + $0x1770] sm:$0xff] }
 0x315   : > { %v7881_v49 = vpop.eup %7880  ;;  %5973 = vst [vmem:[%s8733_s17 + $0x1658] sm:$0xff] %v4949_v40  ;;  %v4951_v50 = vadd.f32 0.5, %v3927_v41  ;;  %v3929_v51 = vmul.f32 0.5, %v7879_v44  ;;  %7906 = vtanh.f32 %v1895_v32  ;;  %v1910_v43 = vmul.f32 0.5, %v886_v29  ;;  %v889_v44 = vld [vmem:[%s8700_s30 + $0x1778] sm:$0xff] }
 0x316   : > { %v7883_v54 = vpop.eup %7882  ;;  %5974 = vst [vmem:[%s8733_s17 + $0x1660] sm:$0xff] %v4950_v45  ;;  %v4952_v55 = vadd.f32 0.5, %v3928_v46  ;;  %v3930_v56 = vmul.f32 0.5, %v7881_v49  ;;  %7908 = vtanh.f32 %v1896_v37  ;;  %v1911_v48 = vmul.f32 0.5, %v887_v34  ;;  %v890_v49 = vld [vmem:[%s8700_s30 + $0x1780] sm:$0xff] }
 0x317   : > { %v7885_v59 = vpop.eup %7884  ;;  %5975 = vst [vmem:[%s8733_s17 + $0x1668] sm:$0xff] %v4951_v50  ;;  %v4953_v60 = vadd.f32 0.5, %v3929_v51  ;;  %v3931_v61 = vmul.f32 0.5, %v7883_v54  ;;  %7910 = vtanh.f32 %v1897_v42  ;;  %v1912_v53 = vmul.f32 0.5, %v888_v39  ;;  %v891_v54 = vld [vmem:[%s8700_s30 + $0x1788] sm:$0xff] }
 0x318   : > { %v7887_v0 = vpop.eup %7886  ;;  %5976 = vst [vmem:[%s8733_s17 + $0x1670] sm:$0xff] %v4952_v55  ;;  %v4954_v1 = vadd.f32 0.5, %v3930_v56  ;;  %v3932_v2 = vmul.f32 0.5, %v7885_v59  ;;  %7912 = vtanh.f32 %v1898_v47  ;;  %v1913_v58 = vmul.f32 0.5, %v889_v44  ;;  %v892_v59 = vld [vmem:[%s8700_s30 + $0x1790] sm:$0xff] }
 0x319   : > { %v7889_v5 = vpop.eup %7888  ;;  %5977 = vst [vmem:[%s8733_s17 + $0x1678] sm:$0xff] %v4953_v60  ;;  %v4955_v6 = vadd.f32 0.5, %v3931_v61  ;;  %v3933_v7 = vmul.f32 0.5, %v7887_v0  ;;  %7914 = vtanh.f32 %v1899_v52  ;;  %v1914_v63 = vmul.f32 0.5, %v890_v49  ;;  %v893_v0 = vld [vmem:[%s8700_s30 + $0x1798] sm:$0xff] }
 0x31a   : > { %v7891_v10 = vpop.eup %7890  ;;  %5978 = vst [vmem:[%s8733_s17 + $0x1680] sm:$0xff] %v4954_v1  ;;  %v4956_v11 = vadd.f32 0.5, %v3932_v2  ;;  %v3934_v12 = vmul.f32 0.5, %v7889_v5  ;;  %7916 = vtanh.f32 %v1900_v57  ;;  %v1915_v4 = vmul.f32 0.5, %v891_v54  ;;  %v894_v5 = vld [vmem:[%s8700_s30 + $0x17a0] sm:$0xff] }
 0x31b   : > { %v7893_v15 = vpop.eup %7892  ;;  %5979 = vst [vmem:[%s8733_s17 + $0x1688] sm:$0xff] %v4955_v6  ;;  %v4957_v16 = vadd.f32 0.5, %v3933_v7  ;;  %v3935_v17 = vmul.f32 0.5, %v7891_v10  ;;  %7918 = vtanh.f32 %v1901_v62  ;;  %v1916_v9 = vmul.f32 0.5, %v892_v59  ;;  %v895_v10 = vld [vmem:[%s8700_s30 + $0x17a8] sm:$0xff] }
 0x31c   : > { %v7895_v20 = vpop.eup %7894  ;;  %5980 = vst [vmem:[%s8733_s17 + $0x1690] sm:$0xff] %v4956_v11  ;;  %v4958_v21 = vadd.f32 0.5, %v3934_v12  ;;  %v3936_v22 = vmul.f32 0.5, %v7893_v15  ;;  %7920 = vtanh.f32 %v1902_v3  ;;  %v1917_v14 = vmul.f32 0.5, %v893_v0  ;;  %v896_v15 = vld [vmem:[%s8700_s30 + $0x17b0] sm:$0xff] }
 0x31d   : > { %v7897_v25 = vpop.eup %7896  ;;  %5981 = vst [vmem:[%s8733_s17 + $0x1698] sm:$0xff] %v4957_v16  ;;  %v4959_v26 = vadd.f32 0.5, %v3935_v17  ;;  %v3937_v27 = vmul.f32 0.5, %v7895_v20  ;;  %7922 = vtanh.f32 %v1903_v8  ;;  %v1918_v19 = vmul.f32 0.5, %v894_v5  ;;  %v897_v20 = vld [vmem:[%s8700_s30 + $0x17b8] sm:$0xff] }
 0x31e   : > { %v7899_v30 = vpop.eup %7898  ;;  %5982 = vst [vmem:[%s8733_s17 + $0x16a0] sm:$0xff] %v4958_v21  ;;  %v4960_v31 = vadd.f32 0.5, %v3936_v22  ;;  %v3938_v32 = vmul.f32 0.5, %v7897_v25  ;;  %7924 = vtanh.f32 %v1904_v13  ;;  %v1919_v24 = vmul.f32 0.5, %v895_v10  ;;  %v898_v25 = vld [vmem:[%s8700_s30 + $0x17c0] sm:$0xff] }
 0x31f   : > { %v7901_v35 = vpop.eup %7900  ;;  %5983 = vst [vmem:[%s8733_s17 + $0x16a8] sm:$0xff] %v4959_v26  ;;  %v4961_v36 = vadd.f32 0.5, %v3937_v27  ;;  %v3939_v37 = vmul.f32 0.5, %v7899_v30  ;;  %7926 = vtanh.f32 %v1905_v18  ;;  %v1920_v29 = vmul.f32 0.5, %v896_v15  ;;  %v899_v30 = vld [vmem:[%s8700_s30 + $0x17c8] sm:$0xff] }
 0x320   : > { %v7903_v40 = vpop.eup %7902  ;;  %5984 = vst [vmem:[%s8733_s17 + $0x16b0] sm:$0xff] %v4960_v31  ;;  %v4962_v41 = vadd.f32 0.5, %v3938_v32  ;;  %v3940_v42 = vmul.f32 0.5, %v7901_v35  ;;  %7928 = vtanh.f32 %v1906_v23  ;;  %v1921_v34 = vmul.f32 0.5, %v897_v20  ;;  %v900_v35 = vld [vmem:[%s8700_s30 + $0x17d0] sm:$0xff] }
 0x321   : > { %v7905_v45 = vpop.eup %7904  ;;  %5985 = vst [vmem:[%s8733_s17 + $0x16b8] sm:$0xff] %v4961_v36  ;;  %v4963_v46 = vadd.f32 0.5, %v3939_v37  ;;  %v3941_v47 = vmul.f32 0.5, %v7903_v40  ;;  %7930 = vtanh.f32 %v1907_v28  ;;  %v1922_v39 = vmul.f32 0.5, %v898_v25  ;;  %v901_v40 = vld [vmem:[%s8700_s30 + $0x17d8] sm:$0xff] }
 0x322   : > { %v7907_v50 = vpop.eup %7906  ;;  %5986 = vst [vmem:[%s8733_s17 + $0x16c0] sm:$0xff] %v4962_v41  ;;  %v4964_v51 = vadd.f32 0.5, %v3940_v42  ;;  %v3942_v52 = vmul.f32 0.5, %v7905_v45  ;;  %7932 = vtanh.f32 %v1908_v33  ;;  %v1923_v44 = vmul.f32 0.5, %v899_v30  ;;  %v902_v45 = vld [vmem:[%s8700_s30 + $0x17e0] sm:$0xff] }
 0x323   : > { %v7909_v55 = vpop.eup %7908  ;;  %5987 = vst [vmem:[%s8733_s17 + $0x16c8] sm:$0xff] %v4963_v46  ;;  %v4965_v56 = vadd.f32 0.5, %v3941_v47  ;;  %v3943_v57 = vmul.f32 0.5, %v7907_v50  ;;  %7934 = vtanh.f32 %v1909_v38  ;;  %v1924_v49 = vmul.f32 0.5, %v900_v35  ;;  %v903_v50 = vld [vmem:[%s8700_s30 + $0x17e8] sm:$0xff] }
 0x324   : > { %v7911_v60 = vpop.eup %7910  ;;  %5988 = vst [vmem:[%s8733_s17 + $0x16d0] sm:$0xff] %v4964_v51  ;;  %v4966_v61 = vadd.f32 0.5, %v3942_v52  ;;  %v3944_v62 = vmul.f32 0.5, %v7909_v55  ;;  %7936 = vtanh.f32 %v1910_v43  ;;  %v1925_v54 = vmul.f32 0.5, %v901_v40  ;;  %v904_v55 = vld [vmem:[%s8700_s30 + $0x17f0] sm:$0xff] }
 0x325   : > { %v7913_v1 = vpop.eup %7912  ;;  %5989 = vst [vmem:[%s8733_s17 + $0x16d8] sm:$0xff] %v4965_v56  ;;  %v4967_v2 = vadd.f32 0.5, %v3943_v57  ;;  %v3945_v3 = vmul.f32 0.5, %v7911_v60  ;;  %7938 = vtanh.f32 %v1911_v48  ;;  %v1926_v59 = vmul.f32 0.5, %v902_v45  ;;  %v905_v60 = vld [vmem:[%s8700_s30 + $0x17f8] sm:$0xff] }
 0x326   : > { %v7915_v6 = vpop.eup %7914  ;;  %5990 = vst [vmem:[%s8733_s17 + $0x16e0] sm:$0xff] %v4966_v61  ;;  %v4968_v7 = vadd.f32 0.5, %v3944_v62  ;;  %v3946_v8 = vmul.f32 0.5, %v7913_v1  ;;  %7940 = vtanh.f32 %v1912_v53  ;;  %v1927_v0 = vmul.f32 0.5, %v903_v50  ;;  %v906_v1 = vld [vmem:[%s8700_s30 + $0x1800] sm:$0xff] }
 0x327   : > { %v7917_v11 = vpop.eup %7916  ;;  %5991 = vst [vmem:[%s8733_s17 + $0x16e8] sm:$0xff] %v4967_v2  ;;  %v4969_v12 = vadd.f32 0.5, %v3945_v3  ;;  %v3947_v13 = vmul.f32 0.5, %v7915_v6  ;;  %7942 = vtanh.f32 %v1913_v58  ;;  %v1928_v5 = vmul.f32 0.5, %v904_v55  ;;  %v907_v6 = vld [vmem:[%s8700_s30 + $0x1808] sm:$0xff] }
 0x328   : > { %v7919_v16 = vpop.eup %7918  ;;  %5992 = vst [vmem:[%s8733_s17 + $0x16f0] sm:$0xff] %v4968_v7  ;;  %v4970_v17 = vadd.f32 0.5, %v3946_v8  ;;  %v3948_v18 = vmul.f32 0.5, %v7917_v11  ;;  %7944 = vtanh.f32 %v1914_v63  ;;  %v1929_v10 = vmul.f32 0.5, %v905_v60  ;;  %v908_v11 = vld [vmem:[%s8700_s30 + $0x1810] sm:$0xff] }
 0x329   : > { %v7921_v21 = vpop.eup %7920  ;;  %5993 = vst [vmem:[%s8733_s17 + $0x16f8] sm:$0xff] %v4969_v12  ;;  %v4971_v22 = vadd.f32 0.5, %v3947_v13  ;;  %v3949_v23 = vmul.f32 0.5, %v7919_v16  ;;  %7946 = vtanh.f32 %v1915_v4  ;;  %v1930_v15 = vmul.f32 0.5, %v906_v1  ;;  %v909_v16 = vld [vmem:[%s8700_s30 + $0x1818] sm:$0xff] }
 0x32a   : > { %v7923_v26 = vpop.eup %7922  ;;  %5994 = vst [vmem:[%s8733_s17 + $0x1700] sm:$0xff] %v4970_v17  ;;  %v4972_v27 = vadd.f32 0.5, %v3948_v18  ;;  %v3950_v28 = vmul.f32 0.5, %v7921_v21  ;;  %7948 = vtanh.f32 %v1916_v9  ;;  %v1931_v20 = vmul.f32 0.5, %v907_v6  ;;  %v910_v21 = vld [vmem:[%s8700_s30 + $0x1820] sm:$0xff] }
 0x32b   : > { %v7925_v31 = vpop.eup %7924  ;;  %5995 = vst [vmem:[%s8733_s17 + $0x1708] sm:$0xff] %v4971_v22  ;;  %v4973_v32 = vadd.f32 0.5, %v3949_v23  ;;  %v3951_v33 = vmul.f32 0.5, %v7923_v26  ;;  %7950 = vtanh.f32 %v1917_v14  ;;  %v1932_v25 = vmul.f32 0.5, %v908_v11  ;;  %v911_v26 = vld [vmem:[%s8700_s30 + $0x1828] sm:$0xff] }
 0x32c   : > { %v7927_v36 = vpop.eup %7926  ;;  %5996 = vst [vmem:[%s8733_s17 + $0x1710] sm:$0xff] %v4972_v27  ;;  %v4974_v37 = vadd.f32 0.5, %v3950_v28  ;;  %v3952_v38 = vmul.f32 0.5, %v7925_v31  ;;  %7952 = vtanh.f32 %v1918_v19  ;;  %v1933_v30 = vmul.f32 0.5, %v909_v16  ;;  %v912_v31 = vld [vmem:[%s8700_s30 + $0x1830] sm:$0xff] }
 0x32d   : > { %v7929_v41 = vpop.eup %7928  ;;  %5997 = vst [vmem:[%s8733_s17 + $0x1718] sm:$0xff] %v4973_v32  ;;  %v4975_v42 = vadd.f32 0.5, %v3951_v33  ;;  %v3953_v43 = vmul.f32 0.5, %v7927_v36  ;;  %7954 = vtanh.f32 %v1919_v24  ;;  %v1934_v35 = vmul.f32 0.5, %v910_v21  ;;  %v913_v36 = vld [vmem:[%s8700_s30 + $0x1838] sm:$0xff] }
 0x32e   : > { %v7931_v46 = vpop.eup %7930  ;;  %5998 = vst [vmem:[%s8733_s17 + $0x1720] sm:$0xff] %v4974_v37  ;;  %v4976_v47 = vadd.f32 0.5, %v3952_v38  ;;  %v3954_v48 = vmul.f32 0.5, %v7929_v41  ;;  %7956 = vtanh.f32 %v1920_v29  ;;  %v1935_v40 = vmul.f32 0.5, %v911_v26  ;;  %v914_v41 = vld [vmem:[%s8700_s30 + $0x1840] sm:$0xff] }
 0x32f   : > { %v7933_v51 = vpop.eup %7932  ;;  %5999 = vst [vmem:[%s8733_s17 + $0x1728] sm:$0xff] %v4975_v42  ;;  %v4977_v52 = vadd.f32 0.5, %v3953_v43  ;;  %v3955_v53 = vmul.f32 0.5, %v7931_v46  ;;  %7958 = vtanh.f32 %v1921_v34  ;;  %v1936_v45 = vmul.f32 0.5, %v912_v31  ;;  %v915_v46 = vld [vmem:[%s8700_s30 + $0x1848] sm:$0xff] }
 0x330   : > { %v7935_v56 = vpop.eup %7934  ;;  %6000 = vst [vmem:[%s8733_s17 + $0x1730] sm:$0xff] %v4976_v47  ;;  %v4978_v57 = vadd.f32 0.5, %v3954_v48  ;;  %v3956_v58 = vmul.f32 0.5, %v7933_v51  ;;  %7960 = vtanh.f32 %v1922_v39  ;;  %v1937_v50 = vmul.f32 0.5, %v913_v36  ;;  %v916_v51 = vld [vmem:[%s8700_s30 + $0x1850] sm:$0xff] }
 0x331   : > { %v7937_v61 = vpop.eup %7936  ;;  %6001 = vst [vmem:[%s8733_s17 + $0x1738] sm:$0xff] %v4977_v52  ;;  %v4979_v62 = vadd.f32 0.5, %v3955_v53  ;;  %v3957_v63 = vmul.f32 0.5, %v7935_v56  ;;  %7962 = vtanh.f32 %v1923_v44  ;;  %v1938_v55 = vmul.f32 0.5, %v914_v41  ;;  %v917_v56 = vld [vmem:[%s8700_s30 + $0x1858] sm:$0xff] }
 0x332   : > { %v7939_v2 = vpop.eup %7938  ;;  %6002 = vst [vmem:[%s8733_s17 + $0x1740] sm:$0xff] %v4978_v57  ;;  %v4980_v3 = vadd.f32 0.5, %v3956_v58  ;;  %v3958_v4 = vmul.f32 0.5, %v7937_v61  ;;  %7964 = vtanh.f32 %v1924_v49  ;;  %v1939_v60 = vmul.f32 0.5, %v915_v46  ;;  %v918_v61 = vld [vmem:[%s8700_s30 + $0x1860] sm:$0xff] }
 0x333   : > { %v7941_v7 = vpop.eup %7940  ;;  %6003 = vst [vmem:[%s8733_s17 + $0x1748] sm:$0xff] %v4979_v62  ;;  %v4981_v8 = vadd.f32 0.5, %v3957_v63  ;;  %v3959_v9 = vmul.f32 0.5, %v7939_v2  ;;  %7966 = vtanh.f32 %v1925_v54  ;;  %v1940_v1 = vmul.f32 0.5, %v916_v51  ;;  %v919_v2 = vld [vmem:[%s8700_s30 + $0x1868] sm:$0xff] }
 0x334   : > { %v7943_v12 = vpop.eup %7942  ;;  %6004 = vst [vmem:[%s8733_s17 + $0x1750] sm:$0xff] %v4980_v3  ;;  %v4982_v13 = vadd.f32 0.5, %v3958_v4  ;;  %v3960_v14 = vmul.f32 0.5, %v7941_v7  ;;  %7968 = vtanh.f32 %v1926_v59  ;;  %v1941_v6 = vmul.f32 0.5, %v917_v56  ;;  %v920_v7 = vld [vmem:[%s8700_s30 + $0x1870] sm:$0xff] }
 0x335   : > { %v7945_v17 = vpop.eup %7944  ;;  %6005 = vst [vmem:[%s8733_s17 + $0x1758] sm:$0xff] %v4981_v8  ;;  %v4983_v18 = vadd.f32 0.5, %v3959_v9  ;;  %v3961_v19 = vmul.f32 0.5, %v7943_v12  ;;  %7970 = vtanh.f32 %v1927_v0  ;;  %v1942_v11 = vmul.f32 0.5, %v918_v61  ;;  %v921_v12 = vld [vmem:[%s8700_s30 + $0x1878] sm:$0xff] }
 0x336   : > { %v7947_v22 = vpop.eup %7946  ;;  %6006 = vst [vmem:[%s8733_s17 + $0x1760] sm:$0xff] %v4982_v13  ;;  %v4984_v23 = vadd.f32 0.5, %v3960_v14  ;;  %v3962_v24 = vmul.f32 0.5, %v7945_v17  ;;  %7972 = vtanh.f32 %v1928_v5  ;;  %v1943_v16 = vmul.f32 0.5, %v919_v2  ;;  %v922_v17 = vld [vmem:[%s8700_s30 + $0x1880] sm:$0xff] }
 0x337   : > { %v7949_v27 = vpop.eup %7948  ;;  %6007 = vst [vmem:[%s8733_s17 + $0x1768] sm:$0xff] %v4983_v18  ;;  %v4985_v28 = vadd.f32 0.5, %v3961_v19  ;;  %v3963_v29 = vmul.f32 0.5, %v7947_v22  ;;  %7974 = vtanh.f32 %v1929_v10  ;;  %v1944_v21 = vmul.f32 0.5, %v920_v7  ;;  %v923_v22 = vld [vmem:[%s8700_s30 + $0x1888] sm:$0xff] }
 0x338   : > { %v7951_v32 = vpop.eup %7950  ;;  %6008 = vst [vmem:[%s8733_s17 + $0x1770] sm:$0xff] %v4984_v23  ;;  %v4986_v33 = vadd.f32 0.5, %v3962_v24  ;;  %v3964_v34 = vmul.f32 0.5, %v7949_v27  ;;  %7976 = vtanh.f32 %v1930_v15  ;;  %v1945_v26 = vmul.f32 0.5, %v921_v12  ;;  %v924_v27 = vld [vmem:[%s8700_s30 + $0x1890] sm:$0xff] }
 0x339   : > { %v7953_v37 = vpop.eup %7952  ;;  %6009 = vst [vmem:[%s8733_s17 + $0x1778] sm:$0xff] %v4985_v28  ;;  %v4987_v38 = vadd.f32 0.5, %v3963_v29  ;;  %v3965_v39 = vmul.f32 0.5, %v7951_v32  ;;  %7978 = vtanh.f32 %v1931_v20  ;;  %v1946_v31 = vmul.f32 0.5, %v922_v17  ;;  %v925_v32 = vld [vmem:[%s8700_s30 + $0x1898] sm:$0xff] }
 0x33a   : > { %v7955_v42 = vpop.eup %7954  ;;  %6010 = vst [vmem:[%s8733_s17 + $0x1780] sm:$0xff] %v4986_v33  ;;  %v4988_v43 = vadd.f32 0.5, %v3964_v34  ;;  %v3966_v44 = vmul.f32 0.5, %v7953_v37  ;;  %7980 = vtanh.f32 %v1932_v25  ;;  %v1947_v36 = vmul.f32 0.5, %v923_v22  ;;  %v926_v37 = vld [vmem:[%s8700_s30 + $0x18a0] sm:$0xff] }
 0x33b   : > { %v7957_v47 = vpop.eup %7956  ;;  %6011 = vst [vmem:[%s8733_s17 + $0x1788] sm:$0xff] %v4987_v38  ;;  %v4989_v48 = vadd.f32 0.5, %v3965_v39  ;;  %v3967_v49 = vmul.f32 0.5, %v7955_v42  ;;  %7982 = vtanh.f32 %v1933_v30  ;;  %v1948_v41 = vmul.f32 0.5, %v924_v27  ;;  %v927_v42 = vld [vmem:[%s8700_s30 + $0x18a8] sm:$0xff] }
 0x33c   : > { %v7959_v52 = vpop.eup %7958  ;;  %6012 = vst [vmem:[%s8733_s17 + $0x1790] sm:$0xff] %v4988_v43  ;;  %v4990_v53 = vadd.f32 0.5, %v3966_v44  ;;  %v3968_v54 = vmul.f32 0.5, %v7957_v47  ;;  %7984 = vtanh.f32 %v1934_v35  ;;  %v1949_v46 = vmul.f32 0.5, %v925_v32  ;;  %v928_v47 = vld [vmem:[%s8700_s30 + $0x18b0] sm:$0xff] }
 0x33d   : > { %v7961_v57 = vpop.eup %7960  ;;  %6013 = vst [vmem:[%s8733_s17 + $0x1798] sm:$0xff] %v4989_v48  ;;  %v4991_v58 = vadd.f32 0.5, %v3967_v49  ;;  %v3969_v59 = vmul.f32 0.5, %v7959_v52  ;;  %7986 = vtanh.f32 %v1935_v40  ;;  %v1950_v51 = vmul.f32 0.5, %v926_v37  ;;  %v929_v52 = vld [vmem:[%s8700_s30 + $0x18b8] sm:$0xff] }
 0x33e   : > { %v7963_v62 = vpop.eup %7962  ;;  %6014 = vst [vmem:[%s8733_s17 + $0x17a0] sm:$0xff] %v4990_v53  ;;  %v4992_v63 = vadd.f32 0.5, %v3968_v54  ;;  %v3970_v0 = vmul.f32 0.5, %v7961_v57  ;;  %7988 = vtanh.f32 %v1936_v45  ;;  %v1951_v56 = vmul.f32 0.5, %v927_v42  ;;  %v930_v57 = vld [vmem:[%s8700_s30 + $0x18c0] sm:$0xff] }
 0x33f   : > { %v7965_v3 = vpop.eup %7964  ;;  %6015 = vst [vmem:[%s8733_s17 + $0x17a8] sm:$0xff] %v4991_v58  ;;  %v4993_v4 = vadd.f32 0.5, %v3969_v59  ;;  %v3971_v5 = vmul.f32 0.5, %v7963_v62  ;;  %7990 = vtanh.f32 %v1937_v50  ;;  %v1952_v61 = vmul.f32 0.5, %v928_v47  ;;  %v931_v62 = vld [vmem:[%s8700_s30 + $0x18c8] sm:$0xff] }
 0x340   : > { %v7967_v8 = vpop.eup %7966  ;;  %6016 = vst [vmem:[%s8733_s17 + $0x17b0] sm:$0xff] %v4992_v63  ;;  %v4994_v9 = vadd.f32 0.5, %v3970_v0  ;;  %v3972_v10 = vmul.f32 0.5, %v7965_v3  ;;  %7992 = vtanh.f32 %v1938_v55  ;;  %v1953_v2 = vmul.f32 0.5, %v929_v52  ;;  %v932_v3 = vld [vmem:[%s8700_s30 + $0x18d0] sm:$0xff] }
 0x341   : > { %v7969_v13 = vpop.eup %7968  ;;  %6017 = vst [vmem:[%s8733_s17 + $0x17b8] sm:$0xff] %v4993_v4  ;;  %v4995_v14 = vadd.f32 0.5, %v3971_v5  ;;  %v3973_v15 = vmul.f32 0.5, %v7967_v8  ;;  %7994 = vtanh.f32 %v1939_v60  ;;  %v1954_v7 = vmul.f32 0.5, %v930_v57  ;;  %v933_v8 = vld [vmem:[%s8700_s30 + $0x18d8] sm:$0xff] }
 0x342   : > { %v7971_v18 = vpop.eup %7970  ;;  %6018 = vst [vmem:[%s8733_s17 + $0x17c0] sm:$0xff] %v4994_v9  ;;  %v4996_v19 = vadd.f32 0.5, %v3972_v10  ;;  %v3974_v20 = vmul.f32 0.5, %v7969_v13  ;;  %7996 = vtanh.f32 %v1940_v1  ;;  %v1955_v12 = vmul.f32 0.5, %v931_v62  ;;  %v934_v13 = vld [vmem:[%s8700_s30 + $0x18e0] sm:$0xff] }
 0x343   : > { %v7973_v23 = vpop.eup %7972  ;;  %6019 = vst [vmem:[%s8733_s17 + $0x17c8] sm:$0xff] %v4995_v14  ;;  %v4997_v24 = vadd.f32 0.5, %v3973_v15  ;;  %v3975_v25 = vmul.f32 0.5, %v7971_v18  ;;  %7998 = vtanh.f32 %v1941_v6  ;;  %v1956_v17 = vmul.f32 0.5, %v932_v3  ;;  %v935_v18 = vld [vmem:[%s8700_s30 + $0x18e8] sm:$0xff] }
 0x344   : > { %v7975_v28 = vpop.eup %7974  ;;  %6020 = vst [vmem:[%s8733_s17 + $0x17d0] sm:$0xff] %v4996_v19  ;;  %v4998_v29 = vadd.f32 0.5, %v3974_v20  ;;  %v3976_v30 = vmul.f32 0.5, %v7973_v23  ;;  %8000 = vtanh.f32 %v1942_v11  ;;  %v1957_v22 = vmul.f32 0.5, %v933_v8  ;;  %v936_v23 = vld [vmem:[%s8700_s30 + $0x18f0] sm:$0xff] }
 0x345   : > { %v7977_v33 = vpop.eup %7976  ;;  %6021 = vst [vmem:[%s8733_s17 + $0x17d8] sm:$0xff] %v4997_v24  ;;  %v4999_v34 = vadd.f32 0.5, %v3975_v25  ;;  %v3977_v35 = vmul.f32 0.5, %v7975_v28  ;;  %8002 = vtanh.f32 %v1943_v16  ;;  %v1958_v27 = vmul.f32 0.5, %v934_v13  ;;  %v937_v28 = vld [vmem:[%s8700_s30 + $0x18f8] sm:$0xff] }
 0x346   : > { %v7979_v38 = vpop.eup %7978  ;;  %6022 = vst [vmem:[%s8733_s17 + $0x17e0] sm:$0xff] %v4998_v29  ;;  %v5000_v39 = vadd.f32 0.5, %v3976_v30  ;;  %v3978_v40 = vmul.f32 0.5, %v7977_v33  ;;  %8004 = vtanh.f32 %v1944_v21  ;;  %v1959_v32 = vmul.f32 0.5, %v935_v18  ;;  %v938_v33 = vld [vmem:[%s8700_s30 + $0x1900] sm:$0xff] }
 0x347   : > { %v7981_v43 = vpop.eup %7980  ;;  %6023 = vst [vmem:[%s8733_s17 + $0x17e8] sm:$0xff] %v4999_v34  ;;  %v5001_v44 = vadd.f32 0.5, %v3977_v35  ;;  %v3979_v45 = vmul.f32 0.5, %v7979_v38  ;;  %8006 = vtanh.f32 %v1945_v26  ;;  %v1960_v37 = vmul.f32 0.5, %v936_v23  ;;  %v939_v38 = vld [vmem:[%s8700_s30 + $0x1908] sm:$0xff] }
 0x348   : > { %v7983_v48 = vpop.eup %7982  ;;  %6024 = vst [vmem:[%s8733_s17 + $0x17f0] sm:$0xff] %v5000_v39  ;;  %v5002_v49 = vadd.f32 0.5, %v3978_v40  ;;  %v3980_v50 = vmul.f32 0.5, %v7981_v43  ;;  %8008 = vtanh.f32 %v1946_v31  ;;  %v1961_v42 = vmul.f32 0.5, %v937_v28  ;;  %v940_v43 = vld [vmem:[%s8700_s30 + $0x1910] sm:$0xff] }
 0x349   : > { %v7985_v53 = vpop.eup %7984  ;;  %6025 = vst [vmem:[%s8733_s17 + $0x17f8] sm:$0xff] %v5001_v44  ;;  %v5003_v54 = vadd.f32 0.5, %v3979_v45  ;;  %v3981_v55 = vmul.f32 0.5, %v7983_v48  ;;  %8010 = vtanh.f32 %v1947_v36  ;;  %v1962_v47 = vmul.f32 0.5, %v938_v33  ;;  %v941_v48 = vld [vmem:[%s8700_s30 + $0x1918] sm:$0xff] }
 0x34a   : > { %v7987_v58 = vpop.eup %7986  ;;  %6026 = vst [vmem:[%s8733_s17 + $0x1800] sm:$0xff] %v5002_v49  ;;  %v5004_v59 = vadd.f32 0.5, %v3980_v50  ;;  %v3982_v60 = vmul.f32 0.5, %v7985_v53  ;;  %8012 = vtanh.f32 %v1948_v41  ;;  %v1963_v52 = vmul.f32 0.5, %v939_v38  ;;  %v942_v53 = vld [vmem:[%s8700_s30 + $0x1920] sm:$0xff] }
 0x34b   : > { %v7989_v63 = vpop.eup %7988  ;;  %6027 = vst [vmem:[%s8733_s17 + $0x1808] sm:$0xff] %v5003_v54  ;;  %v5005_v0 = vadd.f32 0.5, %v3981_v55  ;;  %v3983_v1 = vmul.f32 0.5, %v7987_v58  ;;  %8014 = vtanh.f32 %v1949_v46  ;;  %v1964_v57 = vmul.f32 0.5, %v940_v43  ;;  %v943_v58 = vld [vmem:[%s8700_s30 + $0x1928] sm:$0xff] }
 0x34c   : > { %v7991_v4 = vpop.eup %7990  ;;  %6028 = vst [vmem:[%s8733_s17 + $0x1810] sm:$0xff] %v5004_v59  ;;  %v5006_v5 = vadd.f32 0.5, %v3982_v60  ;;  %v3984_v6 = vmul.f32 0.5, %v7989_v63  ;;  %8016 = vtanh.f32 %v1950_v51  ;;  %v1965_v62 = vmul.f32 0.5, %v941_v48  ;;  %v944_v63 = vld [vmem:[%s8700_s30 + $0x1930] sm:$0xff] }
 0x34d   : > { %v7993_v9 = vpop.eup %7992  ;;  %6029 = vst [vmem:[%s8733_s17 + $0x1818] sm:$0xff] %v5005_v0  ;;  %v5007_v10 = vadd.f32 0.5, %v3983_v1  ;;  %v3985_v11 = vmul.f32 0.5, %v7991_v4  ;;  %8018 = vtanh.f32 %v1951_v56  ;;  %v1966_v3 = vmul.f32 0.5, %v942_v53  ;;  %v945_v4 = vld [vmem:[%s8700_s30 + $0x1938] sm:$0xff] }
 0x34e   : > { %v7995_v14 = vpop.eup %7994  ;;  %6030 = vst [vmem:[%s8733_s17 + $0x1820] sm:$0xff] %v5006_v5  ;;  %v5008_v15 = vadd.f32 0.5, %v3984_v6  ;;  %v3986_v16 = vmul.f32 0.5, %v7993_v9  ;;  %8020 = vtanh.f32 %v1952_v61  ;;  %v1967_v8 = vmul.f32 0.5, %v943_v58  ;;  %v946_v9 = vld [vmem:[%s8700_s30 + $0x1940] sm:$0xff] }
 0x34f   : > { %v7997_v19 = vpop.eup %7996  ;;  %6031 = vst [vmem:[%s8733_s17 + $0x1828] sm:$0xff] %v5007_v10  ;;  %v5009_v20 = vadd.f32 0.5, %v3985_v11  ;;  %v3987_v21 = vmul.f32 0.5, %v7995_v14  ;;  %8022 = vtanh.f32 %v1953_v2  ;;  %v1968_v13 = vmul.f32 0.5, %v944_v63  ;;  %v947_v14 = vld [vmem:[%s8700_s30 + $0x1948] sm:$0xff] }
 0x350   : > { %v7999_v24 = vpop.eup %7998  ;;  %6032 = vst [vmem:[%s8733_s17 + $0x1830] sm:$0xff] %v5008_v15  ;;  %v5010_v25 = vadd.f32 0.5, %v3986_v16  ;;  %v3988_v26 = vmul.f32 0.5, %v7997_v19  ;;  %8024 = vtanh.f32 %v1954_v7  ;;  %v1969_v18 = vmul.f32 0.5, %v945_v4  ;;  %v948_v19 = vld [vmem:[%s8700_s30 + $0x1950] sm:$0xff] }
 0x351   : > { %v8001_v29 = vpop.eup %8000  ;;  %6033 = vst [vmem:[%s8733_s17 + $0x1838] sm:$0xff] %v5009_v20  ;;  %v5011_v30 = vadd.f32 0.5, %v3987_v21  ;;  %v3989_v31 = vmul.f32 0.5, %v7999_v24  ;;  %8026 = vtanh.f32 %v1955_v12  ;;  %v1970_v23 = vmul.f32 0.5, %v946_v9  ;;  %v949_v24 = vld [vmem:[%s8700_s30 + $0x1958] sm:$0xff] }
 0x352   : > { %v8003_v34 = vpop.eup %8002  ;;  %6034 = vst [vmem:[%s8733_s17 + $0x1840] sm:$0xff] %v5010_v25  ;;  %v5012_v35 = vadd.f32 0.5, %v3988_v26  ;;  %v3990_v36 = vmul.f32 0.5, %v8001_v29  ;;  %8028 = vtanh.f32 %v1956_v17  ;;  %v1971_v28 = vmul.f32 0.5, %v947_v14  ;;  %v950_v29 = vld [vmem:[%s8700_s30 + $0x1960] sm:$0xff] }
 0x353   : > { %v8005_v39 = vpop.eup %8004  ;;  %6035 = vst [vmem:[%s8733_s17 + $0x1848] sm:$0xff] %v5011_v30  ;;  %v5013_v40 = vadd.f32 0.5, %v3989_v31  ;;  %v3991_v41 = vmul.f32 0.5, %v8003_v34  ;;  %8030 = vtanh.f32 %v1957_v22  ;;  %v1972_v33 = vmul.f32 0.5, %v948_v19  ;;  %v951_v34 = vld [vmem:[%s8700_s30 + $0x1968] sm:$0xff] }
 0x354   : > { %v8007_v44 = vpop.eup %8006  ;;  %6036 = vst [vmem:[%s8733_s17 + $0x1850] sm:$0xff] %v5012_v35  ;;  %v5014_v45 = vadd.f32 0.5, %v3990_v36  ;;  %v3992_v46 = vmul.f32 0.5, %v8005_v39  ;;  %8032 = vtanh.f32 %v1958_v27  ;;  %v1973_v38 = vmul.f32 0.5, %v949_v24  ;;  %v952_v39 = vld [vmem:[%s8700_s30 + $0x1970] sm:$0xff] }
 0x355   : > { %v8009_v49 = vpop.eup %8008  ;;  %6037 = vst [vmem:[%s8733_s17 + $0x1858] sm:$0xff] %v5013_v40  ;;  %v5015_v50 = vadd.f32 0.5, %v3991_v41  ;;  %v3993_v51 = vmul.f32 0.5, %v8007_v44  ;;  %8034 = vtanh.f32 %v1959_v32  ;;  %v1974_v43 = vmul.f32 0.5, %v950_v29  ;;  %v953_v44 = vld [vmem:[%s8700_s30 + $0x1978] sm:$0xff] }
 0x356   : > { %v8011_v54 = vpop.eup %8010  ;;  %6038 = vst [vmem:[%s8733_s17 + $0x1860] sm:$0xff] %v5014_v45  ;;  %v5016_v55 = vadd.f32 0.5, %v3992_v46  ;;  %v3994_v56 = vmul.f32 0.5, %v8009_v49  ;;  %8036 = vtanh.f32 %v1960_v37  ;;  %v1975_v48 = vmul.f32 0.5, %v951_v34  ;;  %v954_v49 = vld [vmem:[%s8700_s30 + $0x1980] sm:$0xff] }
 0x357   : > { %v8013_v59 = vpop.eup %8012  ;;  %6039 = vst [vmem:[%s8733_s17 + $0x1868] sm:$0xff] %v5015_v50  ;;  %v5017_v60 = vadd.f32 0.5, %v3993_v51  ;;  %v3995_v61 = vmul.f32 0.5, %v8011_v54  ;;  %8038 = vtanh.f32 %v1961_v42  ;;  %v1976_v53 = vmul.f32 0.5, %v952_v39  ;;  %v955_v54 = vld [vmem:[%s8700_s30 + $0x1988] sm:$0xff] }
 0x358   : > { %v8015_v0 = vpop.eup %8014  ;;  %6040 = vst [vmem:[%s8733_s17 + $0x1870] sm:$0xff] %v5016_v55  ;;  %v5018_v1 = vadd.f32 0.5, %v3994_v56  ;;  %v3996_v2 = vmul.f32 0.5, %v8013_v59  ;;  %8040 = vtanh.f32 %v1962_v47  ;;  %v1977_v58 = vmul.f32 0.5, %v953_v44  ;;  %v956_v59 = vld [vmem:[%s8700_s30 + $0x1990] sm:$0xff] }
 0x359   : > { %v8017_v5 = vpop.eup %8016  ;;  %6041 = vst [vmem:[%s8733_s17 + $0x1878] sm:$0xff] %v5017_v60  ;;  %v5019_v6 = vadd.f32 0.5, %v3995_v61  ;;  %v3997_v7 = vmul.f32 0.5, %v8015_v0  ;;  %8042 = vtanh.f32 %v1963_v52  ;;  %v1978_v63 = vmul.f32 0.5, %v954_v49  ;;  %v957_v0 = vld [vmem:[%s8700_s30 + $0x1998] sm:$0xff] }
 0x35a   : > { %v8019_v10 = vpop.eup %8018  ;;  %6042 = vst [vmem:[%s8733_s17 + $0x1880] sm:$0xff] %v5018_v1  ;;  %v5020_v11 = vadd.f32 0.5, %v3996_v2  ;;  %v3998_v12 = vmul.f32 0.5, %v8017_v5  ;;  %8044 = vtanh.f32 %v1964_v57  ;;  %v1979_v4 = vmul.f32 0.5, %v955_v54  ;;  %v958_v5 = vld [vmem:[%s8700_s30 + $0x19a0] sm:$0xff] }
 0x35b   : > { %v8021_v15 = vpop.eup %8020  ;;  %6043 = vst [vmem:[%s8733_s17 + $0x1888] sm:$0xff] %v5019_v6  ;;  %v5021_v16 = vadd.f32 0.5, %v3997_v7  ;;  %v3999_v17 = vmul.f32 0.5, %v8019_v10  ;;  %8046 = vtanh.f32 %v1965_v62  ;;  %v1980_v9 = vmul.f32 0.5, %v956_v59  ;;  %v959_v10 = vld [vmem:[%s8700_s30 + $0x19a8] sm:$0xff] }
 0x35c   : > { %v8023_v20 = vpop.eup %8022  ;;  %6044 = vst [vmem:[%s8733_s17 + $0x1890] sm:$0xff] %v5020_v11  ;;  %v5022_v21 = vadd.f32 0.5, %v3998_v12  ;;  %v4000_v22 = vmul.f32 0.5, %v8021_v15  ;;  %8048 = vtanh.f32 %v1966_v3  ;;  %v1981_v14 = vmul.f32 0.5, %v957_v0  ;;  %v960_v15 = vld [vmem:[%s8700_s30 + $0x19b0] sm:$0xff] }
 0x35d   : > { %v8025_v25 = vpop.eup %8024  ;;  %6045 = vst [vmem:[%s8733_s17 + $0x1898] sm:$0xff] %v5021_v16  ;;  %v5023_v26 = vadd.f32 0.5, %v3999_v17  ;;  %v4001_v27 = vmul.f32 0.5, %v8023_v20  ;;  %8050 = vtanh.f32 %v1967_v8  ;;  %v1982_v19 = vmul.f32 0.5, %v958_v5  ;;  %v961_v20 = vld [vmem:[%s8700_s30 + $0x19b8] sm:$0xff] }
 0x35e   : > { %v8027_v30 = vpop.eup %8026  ;;  %6046 = vst [vmem:[%s8733_s17 + $0x18a0] sm:$0xff] %v5022_v21  ;;  %v5024_v31 = vadd.f32 0.5, %v4000_v22  ;;  %v4002_v32 = vmul.f32 0.5, %v8025_v25  ;;  %8052 = vtanh.f32 %v1968_v13  ;;  %v1983_v24 = vmul.f32 0.5, %v959_v10  ;;  %v962_v25 = vld [vmem:[%s8700_s30 + $0x19c0] sm:$0xff] }
 0x35f   : > { %v8029_v35 = vpop.eup %8028  ;;  %6047 = vst [vmem:[%s8733_s17 + $0x18a8] sm:$0xff] %v5023_v26  ;;  %v5025_v36 = vadd.f32 0.5, %v4001_v27  ;;  %v4003_v37 = vmul.f32 0.5, %v8027_v30  ;;  %8054 = vtanh.f32 %v1969_v18  ;;  %v1984_v29 = vmul.f32 0.5, %v960_v15  ;;  %v963_v30 = vld [vmem:[%s8700_s30 + $0x19c8] sm:$0xff] }
 0x360   : > { %v8031_v40 = vpop.eup %8030  ;;  %6048 = vst [vmem:[%s8733_s17 + $0x18b0] sm:$0xff] %v5024_v31  ;;  %v5026_v41 = vadd.f32 0.5, %v4002_v32  ;;  %v4004_v42 = vmul.f32 0.5, %v8029_v35  ;;  %8056 = vtanh.f32 %v1970_v23  ;;  %v1985_v34 = vmul.f32 0.5, %v961_v20  ;;  %v964_v35 = vld [vmem:[%s8700_s30 + $0x19d0] sm:$0xff] }
 0x361   : > { %v8033_v45 = vpop.eup %8032  ;;  %6049 = vst [vmem:[%s8733_s17 + $0x18b8] sm:$0xff] %v5025_v36  ;;  %v5027_v46 = vadd.f32 0.5, %v4003_v37  ;;  %v4005_v47 = vmul.f32 0.5, %v8031_v40  ;;  %8058 = vtanh.f32 %v1971_v28  ;;  %v1986_v39 = vmul.f32 0.5, %v962_v25  ;;  %v965_v40 = vld [vmem:[%s8700_s30 + $0x19d8] sm:$0xff] }
 0x362   : > { %v8035_v50 = vpop.eup %8034  ;;  %6050 = vst [vmem:[%s8733_s17 + $0x18c0] sm:$0xff] %v5026_v41  ;;  %v5028_v51 = vadd.f32 0.5, %v4004_v42  ;;  %v4006_v52 = vmul.f32 0.5, %v8033_v45  ;;  %8060 = vtanh.f32 %v1972_v33  ;;  %v1987_v44 = vmul.f32 0.5, %v963_v30  ;;  %v966_v45 = vld [vmem:[%s8700_s30 + $0x19e0] sm:$0xff] }
 0x363   : > { %v8037_v55 = vpop.eup %8036  ;;  %6051 = vst [vmem:[%s8733_s17 + $0x18c8] sm:$0xff] %v5027_v46  ;;  %v5029_v56 = vadd.f32 0.5, %v4005_v47  ;;  %v4007_v57 = vmul.f32 0.5, %v8035_v50  ;;  %8062 = vtanh.f32 %v1973_v38  ;;  %v1988_v49 = vmul.f32 0.5, %v964_v35  ;;  %v967_v50 = vld [vmem:[%s8700_s30 + $0x19e8] sm:$0xff] }
 0x364   : > { %v8039_v60 = vpop.eup %8038  ;;  %6052 = vst [vmem:[%s8733_s17 + $0x18d0] sm:$0xff] %v5028_v51  ;;  %v5030_v61 = vadd.f32 0.5, %v4006_v52  ;;  %v4008_v62 = vmul.f32 0.5, %v8037_v55  ;;  %8064 = vtanh.f32 %v1974_v43  ;;  %v1989_v54 = vmul.f32 0.5, %v965_v40  ;;  %v968_v55 = vld [vmem:[%s8700_s30 + $0x19f0] sm:$0xff] }
 0x365   : > { %v8041_v1 = vpop.eup %8040  ;;  %6053 = vst [vmem:[%s8733_s17 + $0x18d8] sm:$0xff] %v5029_v56  ;;  %v5031_v2 = vadd.f32 0.5, %v4007_v57  ;;  %v4009_v3 = vmul.f32 0.5, %v8039_v60  ;;  %8066 = vtanh.f32 %v1975_v48  ;;  %v1990_v59 = vmul.f32 0.5, %v966_v45  ;;  %v969_v60 = vld [vmem:[%s8700_s30 + $0x19f8] sm:$0xff] }
 0x366   : > { %v8043_v6 = vpop.eup %8042  ;;  %6054 = vst [vmem:[%s8733_s17 + $0x18e0] sm:$0xff] %v5030_v61  ;;  %v5032_v7 = vadd.f32 0.5, %v4008_v62  ;;  %v4010_v8 = vmul.f32 0.5, %v8041_v1  ;;  %8068 = vtanh.f32 %v1976_v53  ;;  %v1991_v0 = vmul.f32 0.5, %v967_v50  ;;  %v970_v1 = vld [vmem:[%s8700_s30 + $0x1a00] sm:$0xff] }
 0x367   : > { %v8045_v11 = vpop.eup %8044  ;;  %6055 = vst [vmem:[%s8733_s17 + $0x18e8] sm:$0xff] %v5031_v2  ;;  %v5033_v12 = vadd.f32 0.5, %v4009_v3  ;;  %v4011_v13 = vmul.f32 0.5, %v8043_v6  ;;  %8070 = vtanh.f32 %v1977_v58  ;;  %v1992_v5 = vmul.f32 0.5, %v968_v55  ;;  %v971_v6 = vld [vmem:[%s8700_s30 + $0x1a08] sm:$0xff] }
 0x368   : > { %v8047_v16 = vpop.eup %8046  ;;  %6056 = vst [vmem:[%s8733_s17 + $0x18f0] sm:$0xff] %v5032_v7  ;;  %v5034_v17 = vadd.f32 0.5, %v4010_v8  ;;  %v4012_v18 = vmul.f32 0.5, %v8045_v11  ;;  %8072 = vtanh.f32 %v1978_v63  ;;  %v1993_v10 = vmul.f32 0.5, %v969_v60  ;;  %v972_v11 = vld [vmem:[%s8700_s30 + $0x1a10] sm:$0xff] }
 0x369   : > { %v8049_v21 = vpop.eup %8048  ;;  %6057 = vst [vmem:[%s8733_s17 + $0x18f8] sm:$0xff] %v5033_v12  ;;  %v5035_v22 = vadd.f32 0.5, %v4011_v13  ;;  %v4013_v23 = vmul.f32 0.5, %v8047_v16  ;;  %8074 = vtanh.f32 %v1979_v4  ;;  %v1994_v15 = vmul.f32 0.5, %v970_v1  ;;  %v973_v16 = vld [vmem:[%s8700_s30 + $0x1a18] sm:$0xff] }
 0x36a   : > { %v8051_v26 = vpop.eup %8050  ;;  %6058 = vst [vmem:[%s8733_s17 + $0x1900] sm:$0xff] %v5034_v17  ;;  %v5036_v27 = vadd.f32 0.5, %v4012_v18  ;;  %v4014_v28 = vmul.f32 0.5, %v8049_v21  ;;  %8076 = vtanh.f32 %v1980_v9  ;;  %v1995_v20 = vmul.f32 0.5, %v971_v6  ;;  %v974_v21 = vld [vmem:[%s8700_s30 + $0x1a20] sm:$0xff] }
 0x36b   : > { %v8053_v31 = vpop.eup %8052  ;;  %6059 = vst [vmem:[%s8733_s17 + $0x1908] sm:$0xff] %v5035_v22  ;;  %v5037_v32 = vadd.f32 0.5, %v4013_v23  ;;  %v4015_v33 = vmul.f32 0.5, %v8051_v26  ;;  %8078 = vtanh.f32 %v1981_v14  ;;  %v1996_v25 = vmul.f32 0.5, %v972_v11  ;;  %v975_v26 = vld [vmem:[%s8700_s30 + $0x1a28] sm:$0xff] }
 0x36c   : > { %v8055_v36 = vpop.eup %8054  ;;  %6060 = vst [vmem:[%s8733_s17 + $0x1910] sm:$0xff] %v5036_v27  ;;  %v5038_v37 = vadd.f32 0.5, %v4014_v28  ;;  %v4016_v38 = vmul.f32 0.5, %v8053_v31  ;;  %8080 = vtanh.f32 %v1982_v19  ;;  %v1997_v30 = vmul.f32 0.5, %v973_v16  ;;  %v976_v31 = vld [vmem:[%s8700_s30 + $0x1a30] sm:$0xff] }
 0x36d   : > { %v8057_v41 = vpop.eup %8056  ;;  %6061 = vst [vmem:[%s8733_s17 + $0x1918] sm:$0xff] %v5037_v32  ;;  %v5039_v42 = vadd.f32 0.5, %v4015_v33  ;;  %v4017_v43 = vmul.f32 0.5, %v8055_v36  ;;  %8082 = vtanh.f32 %v1983_v24  ;;  %v1998_v35 = vmul.f32 0.5, %v974_v21  ;;  %v977_v36 = vld [vmem:[%s8700_s30 + $0x1a38] sm:$0xff] }
 0x36e   : > { %v8059_v46 = vpop.eup %8058  ;;  %6062 = vst [vmem:[%s8733_s17 + $0x1920] sm:$0xff] %v5038_v37  ;;  %v5040_v47 = vadd.f32 0.5, %v4016_v38  ;;  %v4018_v48 = vmul.f32 0.5, %v8057_v41  ;;  %8084 = vtanh.f32 %v1984_v29  ;;  %v1999_v40 = vmul.f32 0.5, %v975_v26  ;;  %v978_v41 = vld [vmem:[%s8700_s30 + $0x1a40] sm:$0xff] }
 0x36f   : > { %v8061_v51 = vpop.eup %8060  ;;  %6063 = vst [vmem:[%s8733_s17 + $0x1928] sm:$0xff] %v5039_v42  ;;  %v5041_v52 = vadd.f32 0.5, %v4017_v43  ;;  %v4019_v53 = vmul.f32 0.5, %v8059_v46  ;;  %8086 = vtanh.f32 %v1985_v34  ;;  %v2000_v45 = vmul.f32 0.5, %v976_v31  ;;  %v979_v46 = vld [vmem:[%s8700_s30 + $0x1a48] sm:$0xff] }
 0x370   : > { %v8063_v56 = vpop.eup %8062  ;;  %6064 = vst [vmem:[%s8733_s17 + $0x1930] sm:$0xff] %v5040_v47  ;;  %v5042_v57 = vadd.f32 0.5, %v4018_v48  ;;  %v4020_v58 = vmul.f32 0.5, %v8061_v51  ;;  %8088 = vtanh.f32 %v1986_v39  ;;  %v2001_v50 = vmul.f32 0.5, %v977_v36  ;;  %v980_v51 = vld [vmem:[%s8700_s30 + $0x1a50] sm:$0xff] }
 0x371   : > { %v8065_v61 = vpop.eup %8064  ;;  %6065 = vst [vmem:[%s8733_s17 + $0x1938] sm:$0xff] %v5041_v52  ;;  %v5043_v62 = vadd.f32 0.5, %v4019_v53  ;;  %v4021_v63 = vmul.f32 0.5, %v8063_v56  ;;  %8090 = vtanh.f32 %v1987_v44  ;;  %v2002_v55 = vmul.f32 0.5, %v978_v41  ;;  %v981_v56 = vld [vmem:[%s8700_s30 + $0x1a58] sm:$0xff] }
 0x372   : > { %v8067_v2 = vpop.eup %8066  ;;  %6066 = vst [vmem:[%s8733_s17 + $0x1940] sm:$0xff] %v5042_v57  ;;  %v5044_v3 = vadd.f32 0.5, %v4020_v58  ;;  %v4022_v4 = vmul.f32 0.5, %v8065_v61  ;;  %8092 = vtanh.f32 %v1988_v49  ;;  %v2003_v60 = vmul.f32 0.5, %v979_v46  ;;  %v982_v61 = vld [vmem:[%s8700_s30 + $0x1a60] sm:$0xff] }
 0x373   : > { %v8069_v7 = vpop.eup %8068  ;;  %6067 = vst [vmem:[%s8733_s17 + $0x1948] sm:$0xff] %v5043_v62  ;;  %v5045_v8 = vadd.f32 0.5, %v4021_v63  ;;  %v4023_v9 = vmul.f32 0.5, %v8067_v2  ;;  %8094 = vtanh.f32 %v1989_v54  ;;  %v2004_v1 = vmul.f32 0.5, %v980_v51  ;;  %v983_v2 = vld [vmem:[%s8700_s30 + $0x1a68] sm:$0xff] }
 0x374   : > { %v8071_v12 = vpop.eup %8070  ;;  %6068 = vst [vmem:[%s8733_s17 + $0x1950] sm:$0xff] %v5044_v3  ;;  %v5046_v13 = vadd.f32 0.5, %v4022_v4  ;;  %v4024_v14 = vmul.f32 0.5, %v8069_v7  ;;  %8096 = vtanh.f32 %v1990_v59  ;;  %v2005_v6 = vmul.f32 0.5, %v981_v56  ;;  %v984_v7 = vld [vmem:[%s8700_s30 + $0x1a70] sm:$0xff] }
 0x375   : > { %v8073_v17 = vpop.eup %8072  ;;  %6069 = vst [vmem:[%s8733_s17 + $0x1958] sm:$0xff] %v5045_v8  ;;  %v5047_v18 = vadd.f32 0.5, %v4023_v9  ;;  %v4025_v19 = vmul.f32 0.5, %v8071_v12  ;;  %8098 = vtanh.f32 %v1991_v0  ;;  %v2006_v11 = vmul.f32 0.5, %v982_v61  ;;  %v985_v12 = vld [vmem:[%s8700_s30 + $0x1a78] sm:$0xff] }
 0x376   : > { %v8075_v22 = vpop.eup %8074  ;;  %6070 = vst [vmem:[%s8733_s17 + $0x1960] sm:$0xff] %v5046_v13  ;;  %v5048_v23 = vadd.f32 0.5, %v4024_v14  ;;  %v4026_v24 = vmul.f32 0.5, %v8073_v17  ;;  %8100 = vtanh.f32 %v1992_v5  ;;  %v2007_v16 = vmul.f32 0.5, %v983_v2  ;;  %v986_v17 = vld [vmem:[%s8700_s30 + $0x1a80] sm:$0xff] }
 0x377   : > { %v8077_v27 = vpop.eup %8076  ;;  %6071 = vst [vmem:[%s8733_s17 + $0x1968] sm:$0xff] %v5047_v18  ;;  %v5049_v28 = vadd.f32 0.5, %v4025_v19  ;;  %v4027_v29 = vmul.f32 0.5, %v8075_v22  ;;  %8102 = vtanh.f32 %v1993_v10  ;;  %v2008_v21 = vmul.f32 0.5, %v984_v7  ;;  %v987_v22 = vld [vmem:[%s8700_s30 + $0x1a88] sm:$0xff] }
 0x378   : > { %v8079_v32 = vpop.eup %8078  ;;  %6072 = vst [vmem:[%s8733_s17 + $0x1970] sm:$0xff] %v5048_v23  ;;  %v5050_v33 = vadd.f32 0.5, %v4026_v24  ;;  %v4028_v34 = vmul.f32 0.5, %v8077_v27  ;;  %8104 = vtanh.f32 %v1994_v15  ;;  %v2009_v26 = vmul.f32 0.5, %v985_v12  ;;  %v988_v27 = vld [vmem:[%s8700_s30 + $0x1a90] sm:$0xff] }
 0x379   : > { %v8081_v37 = vpop.eup %8080  ;;  %6073 = vst [vmem:[%s8733_s17 + $0x1978] sm:$0xff] %v5049_v28  ;;  %v5051_v38 = vadd.f32 0.5, %v4027_v29  ;;  %v4029_v39 = vmul.f32 0.5, %v8079_v32  ;;  %8106 = vtanh.f32 %v1995_v20  ;;  %v2010_v31 = vmul.f32 0.5, %v986_v17  ;;  %v989_v32 = vld [vmem:[%s8700_s30 + $0x1a98] sm:$0xff] }
 0x37a   : > { %v8083_v42 = vpop.eup %8082  ;;  %6074 = vst [vmem:[%s8733_s17 + $0x1980] sm:$0xff] %v5050_v33  ;;  %v5052_v43 = vadd.f32 0.5, %v4028_v34  ;;  %v4030_v44 = vmul.f32 0.5, %v8081_v37  ;;  %8108 = vtanh.f32 %v1996_v25  ;;  %v2011_v36 = vmul.f32 0.5, %v987_v22  ;;  %v990_v37 = vld [vmem:[%s8700_s30 + $0x1aa0] sm:$0xff] }
 0x37b   : > { %v8085_v47 = vpop.eup %8084  ;;  %6075 = vst [vmem:[%s8733_s17 + $0x1988] sm:$0xff] %v5051_v38  ;;  %v5053_v48 = vadd.f32 0.5, %v4029_v39  ;;  %v4031_v49 = vmul.f32 0.5, %v8083_v42  ;;  %8110 = vtanh.f32 %v1997_v30  ;;  %v2012_v41 = vmul.f32 0.5, %v988_v27  ;;  %v991_v42 = vld [vmem:[%s8700_s30 + $0x1aa8] sm:$0xff] }
 0x37c   : > { %v8087_v52 = vpop.eup %8086  ;;  %6076 = vst [vmem:[%s8733_s17 + $0x1990] sm:$0xff] %v5052_v43  ;;  %v5054_v53 = vadd.f32 0.5, %v4030_v44  ;;  %v4032_v54 = vmul.f32 0.5, %v8085_v47  ;;  %8112 = vtanh.f32 %v1998_v35  ;;  %v2013_v46 = vmul.f32 0.5, %v989_v32  ;;  %v992_v47 = vld [vmem:[%s8700_s30 + $0x1ab0] sm:$0xff] }
 0x37d   : > { %v8089_v57 = vpop.eup %8088  ;;  %6077 = vst [vmem:[%s8733_s17 + $0x1998] sm:$0xff] %v5053_v48  ;;  %v5055_v58 = vadd.f32 0.5, %v4031_v49  ;;  %v4033_v59 = vmul.f32 0.5, %v8087_v52  ;;  %8114 = vtanh.f32 %v1999_v40  ;;  %v2014_v51 = vmul.f32 0.5, %v990_v37  ;;  %v993_v52 = vld [vmem:[%s8700_s30 + $0x1ab8] sm:$0xff] }
 0x37e   : > { %v8091_v62 = vpop.eup %8090  ;;  %6078 = vst [vmem:[%s8733_s17 + $0x19a0] sm:$0xff] %v5054_v53  ;;  %v5056_v63 = vadd.f32 0.5, %v4032_v54  ;;  %v4034_v0 = vmul.f32 0.5, %v8089_v57  ;;  %8116 = vtanh.f32 %v2000_v45  ;;  %v2015_v56 = vmul.f32 0.5, %v991_v42  ;;  %v994_v57 = vld [vmem:[%s8700_s30 + $0x1ac0] sm:$0xff] }
 0x37f   : > { %v8093_v3 = vpop.eup %8092  ;;  %6079 = vst [vmem:[%s8733_s17 + $0x19a8] sm:$0xff] %v5055_v58  ;;  %v5057_v4 = vadd.f32 0.5, %v4033_v59  ;;  %v4035_v5 = vmul.f32 0.5, %v8091_v62  ;;  %8118 = vtanh.f32 %v2001_v50  ;;  %v2016_v61 = vmul.f32 0.5, %v992_v47  ;;  %v995_v62 = vld [vmem:[%s8700_s30 + $0x1ac8] sm:$0xff] }
 0x380   : > { %v8095_v8 = vpop.eup %8094  ;;  %6080 = vst [vmem:[%s8733_s17 + $0x19b0] sm:$0xff] %v5056_v63  ;;  %v5058_v9 = vadd.f32 0.5, %v4034_v0  ;;  %v4036_v10 = vmul.f32 0.5, %v8093_v3  ;;  %8120 = vtanh.f32 %v2002_v55  ;;  %v2017_v2 = vmul.f32 0.5, %v993_v52  ;;  %v996_v3 = vld [vmem:[%s8700_s30 + $0x1ad0] sm:$0xff] }
 0x381   : > { %v8097_v13 = vpop.eup %8096  ;;  %6081 = vst [vmem:[%s8733_s17 + $0x19b8] sm:$0xff] %v5057_v4  ;;  %v5059_v14 = vadd.f32 0.5, %v4035_v5  ;;  %v4037_v15 = vmul.f32 0.5, %v8095_v8  ;;  %8122 = vtanh.f32 %v2003_v60  ;;  %v2018_v7 = vmul.f32 0.5, %v994_v57  ;;  %v997_v8 = vld [vmem:[%s8700_s30 + $0x1ad8] sm:$0xff] }
 0x382   : > { %v8099_v18 = vpop.eup %8098  ;;  %6082 = vst [vmem:[%s8733_s17 + $0x19c0] sm:$0xff] %v5058_v9  ;;  %v5060_v19 = vadd.f32 0.5, %v4036_v10  ;;  %v4038_v20 = vmul.f32 0.5, %v8097_v13  ;;  %8124 = vtanh.f32 %v2004_v1  ;;  %v2019_v12 = vmul.f32 0.5, %v995_v62  ;;  %v998_v13 = vld [vmem:[%s8700_s30 + $0x1ae0] sm:$0xff] }
 0x383   : > { %v8101_v23 = vpop.eup %8100  ;;  %6083 = vst [vmem:[%s8733_s17 + $0x19c8] sm:$0xff] %v5059_v14  ;;  %v5061_v24 = vadd.f32 0.5, %v4037_v15  ;;  %v4039_v25 = vmul.f32 0.5, %v8099_v18  ;;  %8126 = vtanh.f32 %v2005_v6  ;;  %v2020_v17 = vmul.f32 0.5, %v996_v3  ;;  %v999_v18 = vld [vmem:[%s8700_s30 + $0x1ae8] sm:$0xff] }
 0x384   : > { %v8103_v28 = vpop.eup %8102  ;;  %6084 = vst [vmem:[%s8733_s17 + $0x19d0] sm:$0xff] %v5060_v19  ;;  %v5062_v29 = vadd.f32 0.5, %v4038_v20  ;;  %v4040_v30 = vmul.f32 0.5, %v8101_v23  ;;  %8128 = vtanh.f32 %v2006_v11  ;;  %v2021_v22 = vmul.f32 0.5, %v997_v8  ;;  %v1000_v23 = vld [vmem:[%s8700_s30 + $0x1af0] sm:$0xff] }
 0x385   : > { %v8105_v33 = vpop.eup %8104  ;;  %6085 = vst [vmem:[%s8733_s17 + $0x19d8] sm:$0xff] %v5061_v24  ;;  %v5063_v34 = vadd.f32 0.5, %v4039_v25  ;;  %v4041_v35 = vmul.f32 0.5, %v8103_v28  ;;  %8130 = vtanh.f32 %v2007_v16  ;;  %v2022_v27 = vmul.f32 0.5, %v998_v13  ;;  %v1001_v28 = vld [vmem:[%s8700_s30 + $0x1af8] sm:$0xff] }
 0x386   : > { %v8107_v38 = vpop.eup %8106  ;;  %6086 = vst [vmem:[%s8733_s17 + $0x19e0] sm:$0xff] %v5062_v29  ;;  %v5064_v39 = vadd.f32 0.5, %v4040_v30  ;;  %v4042_v40 = vmul.f32 0.5, %v8105_v33  ;;  %8132 = vtanh.f32 %v2008_v21  ;;  %v2023_v32 = vmul.f32 0.5, %v999_v18  ;;  %v1002_v33 = vld [vmem:[%s8700_s30 + $0x1b00] sm:$0xff] }
 0x387   : > { %v8109_v43 = vpop.eup %8108  ;;  %6087 = vst [vmem:[%s8733_s17 + $0x19e8] sm:$0xff] %v5063_v34  ;;  %v5065_v44 = vadd.f32 0.5, %v4041_v35  ;;  %v4043_v45 = vmul.f32 0.5, %v8107_v38  ;;  %8134 = vtanh.f32 %v2009_v26  ;;  %v2024_v37 = vmul.f32 0.5, %v1000_v23  ;;  %v1003_v38 = vld [vmem:[%s8700_s30 + $0x1b08] sm:$0xff] }
 0x388   : > { %v8111_v48 = vpop.eup %8110  ;;  %6088 = vst [vmem:[%s8733_s17 + $0x19f0] sm:$0xff] %v5064_v39  ;;  %v5066_v49 = vadd.f32 0.5, %v4042_v40  ;;  %v4044_v50 = vmul.f32 0.5, %v8109_v43  ;;  %8136 = vtanh.f32 %v2010_v31  ;;  %v2025_v42 = vmul.f32 0.5, %v1001_v28  ;;  %v1004_v43 = vld [vmem:[%s8700_s30 + $0x1b10] sm:$0xff] }
 0x389   : > { %v8113_v53 = vpop.eup %8112  ;;  %6089 = vst [vmem:[%s8733_s17 + $0x19f8] sm:$0xff] %v5065_v44  ;;  %v5067_v54 = vadd.f32 0.5, %v4043_v45  ;;  %v4045_v55 = vmul.f32 0.5, %v8111_v48  ;;  %8138 = vtanh.f32 %v2011_v36  ;;  %v2026_v47 = vmul.f32 0.5, %v1002_v33  ;;  %v1005_v48 = vld [vmem:[%s8700_s30 + $0x1b18] sm:$0xff] }
 0x38a   : > { %v8115_v58 = vpop.eup %8114  ;;  %6090 = vst [vmem:[%s8733_s17 + $0x1a00] sm:$0xff] %v5066_v49  ;;  %v5068_v59 = vadd.f32 0.5, %v4044_v50  ;;  %v4046_v60 = vmul.f32 0.5, %v8113_v53  ;;  %8140 = vtanh.f32 %v2012_v41  ;;  %v2027_v52 = vmul.f32 0.5, %v1003_v38  ;;  %v1006_v53 = vld [vmem:[%s8700_s30 + $0x1b20] sm:$0xff] }
 0x38b   : > { %v8117_v63 = vpop.eup %8116  ;;  %6091 = vst [vmem:[%s8733_s17 + $0x1a08] sm:$0xff] %v5067_v54  ;;  %v5069_v0 = vadd.f32 0.5, %v4045_v55  ;;  %v4047_v1 = vmul.f32 0.5, %v8115_v58  ;;  %8142 = vtanh.f32 %v2013_v46  ;;  %v2028_v57 = vmul.f32 0.5, %v1004_v43  ;;  %v1007_v58 = vld [vmem:[%s8700_s30 + $0x1b28] sm:$0xff] }
 0x38c   : > { %v8119_v4 = vpop.eup %8118  ;;  %6092 = vst [vmem:[%s8733_s17 + $0x1a10] sm:$0xff] %v5068_v59  ;;  %v5070_v5 = vadd.f32 0.5, %v4046_v60  ;;  %v4048_v6 = vmul.f32 0.5, %v8117_v63  ;;  %8144 = vtanh.f32 %v2014_v51  ;;  %v2029_v62 = vmul.f32 0.5, %v1005_v48  ;;  %v1008_v63 = vld [vmem:[%s8700_s30 + $0x1b30] sm:$0xff] }
 0x38d   : > { %v8121_v9 = vpop.eup %8120  ;;  %6093 = vst [vmem:[%s8733_s17 + $0x1a18] sm:$0xff] %v5069_v0  ;;  %v5071_v10 = vadd.f32 0.5, %v4047_v1  ;;  %v4049_v11 = vmul.f32 0.5, %v8119_v4  ;;  %8146 = vtanh.f32 %v2015_v56  ;;  %v2030_v3 = vmul.f32 0.5, %v1006_v53  ;;  %v1009_v4 = vld [vmem:[%s8700_s30 + $0x1b38] sm:$0xff] }
 0x38e   : > { %v8123_v14 = vpop.eup %8122  ;;  %6094 = vst [vmem:[%s8733_s17 + $0x1a20] sm:$0xff] %v5070_v5  ;;  %v5072_v15 = vadd.f32 0.5, %v4048_v6  ;;  %v4050_v16 = vmul.f32 0.5, %v8121_v9  ;;  %8148 = vtanh.f32 %v2016_v61  ;;  %v2031_v8 = vmul.f32 0.5, %v1007_v58  ;;  %v1010_v9 = vld [vmem:[%s8700_s30 + $0x1b40] sm:$0xff] }
 0x38f   : > { %v8125_v19 = vpop.eup %8124  ;;  %6095 = vst [vmem:[%s8733_s17 + $0x1a28] sm:$0xff] %v5071_v10  ;;  %v5073_v20 = vadd.f32 0.5, %v4049_v11  ;;  %v4051_v21 = vmul.f32 0.5, %v8123_v14  ;;  %8150 = vtanh.f32 %v2017_v2  ;;  %v2032_v13 = vmul.f32 0.5, %v1008_v63  ;;  %v1011_v14 = vld [vmem:[%s8700_s30 + $0x1b48] sm:$0xff] }
 0x390   : > { %v8127_v24 = vpop.eup %8126  ;;  %6096 = vst [vmem:[%s8733_s17 + $0x1a30] sm:$0xff] %v5072_v15  ;;  %v5074_v25 = vadd.f32 0.5, %v4050_v16  ;;  %v4052_v26 = vmul.f32 0.5, %v8125_v19  ;;  %8152 = vtanh.f32 %v2018_v7  ;;  %v2033_v18 = vmul.f32 0.5, %v1009_v4  ;;  %v1012_v19 = vld [vmem:[%s8700_s30 + $0x1b50] sm:$0xff] }
 0x391   : > { %v8129_v29 = vpop.eup %8128  ;;  %6097 = vst [vmem:[%s8733_s17 + $0x1a38] sm:$0xff] %v5073_v20  ;;  %v5075_v30 = vadd.f32 0.5, %v4051_v21  ;;  %v4053_v31 = vmul.f32 0.5, %v8127_v24  ;;  %8154 = vtanh.f32 %v2019_v12  ;;  %v2034_v23 = vmul.f32 0.5, %v1010_v9  ;;  %v1013_v24 = vld [vmem:[%s8700_s30 + $0x1b58] sm:$0xff] }
 0x392   : > { %v8131_v34 = vpop.eup %8130  ;;  %6098 = vst [vmem:[%s8733_s17 + $0x1a40] sm:$0xff] %v5074_v25  ;;  %v5076_v35 = vadd.f32 0.5, %v4052_v26  ;;  %v4054_v36 = vmul.f32 0.5, %v8129_v29  ;;  %8156 = vtanh.f32 %v2020_v17  ;;  %v2035_v28 = vmul.f32 0.5, %v1011_v14  ;;  %v1014_v29 = vld [vmem:[%s8700_s30 + $0x1b60] sm:$0xff] }
 0x393   : > { %v8133_v39 = vpop.eup %8132  ;;  %6099 = vst [vmem:[%s8733_s17 + $0x1a48] sm:$0xff] %v5075_v30  ;;  %v5077_v40 = vadd.f32 0.5, %v4053_v31  ;;  %v4055_v41 = vmul.f32 0.5, %v8131_v34  ;;  %8158 = vtanh.f32 %v2021_v22  ;;  %v2036_v33 = vmul.f32 0.5, %v1012_v19  ;;  %v1015_v34 = vld [vmem:[%s8700_s30 + $0x1b68] sm:$0xff] }
 0x394   : > { %v8135_v44 = vpop.eup %8134  ;;  %6100 = vst [vmem:[%s8733_s17 + $0x1a50] sm:$0xff] %v5076_v35  ;;  %v5078_v45 = vadd.f32 0.5, %v4054_v36  ;;  %v4056_v46 = vmul.f32 0.5, %v8133_v39  ;;  %8160 = vtanh.f32 %v2022_v27  ;;  %v2037_v38 = vmul.f32 0.5, %v1013_v24  ;;  %v1016_v39 = vld [vmem:[%s8700_s30 + $0x1b70] sm:$0xff] }
 0x395   : > { %v8137_v49 = vpop.eup %8136  ;;  %6101 = vst [vmem:[%s8733_s17 + $0x1a58] sm:$0xff] %v5077_v40  ;;  %v5079_v50 = vadd.f32 0.5, %v4055_v41  ;;  %v4057_v51 = vmul.f32 0.5, %v8135_v44  ;;  %8162 = vtanh.f32 %v2023_v32  ;;  %v2038_v43 = vmul.f32 0.5, %v1014_v29  ;;  %v1017_v44 = vld [vmem:[%s8700_s30 + $0x1b78] sm:$0xff] }
 0x396   : > { %v8139_v54 = vpop.eup %8138  ;;  %6102 = vst [vmem:[%s8733_s17 + $0x1a60] sm:$0xff] %v5078_v45  ;;  %v5080_v55 = vadd.f32 0.5, %v4056_v46  ;;  %v4058_v56 = vmul.f32 0.5, %v8137_v49  ;;  %8164 = vtanh.f32 %v2024_v37  ;;  %v2039_v48 = vmul.f32 0.5, %v1015_v34  ;;  %v1018_v49 = vld [vmem:[%s8700_s30 + $0x1b80] sm:$0xff] }
 0x397   : > { %v8141_v59 = vpop.eup %8140  ;;  %6103 = vst [vmem:[%s8733_s17 + $0x1a68] sm:$0xff] %v5079_v50  ;;  %v5081_v60 = vadd.f32 0.5, %v4057_v51  ;;  %v4059_v61 = vmul.f32 0.5, %v8139_v54  ;;  %8166 = vtanh.f32 %v2025_v42  ;;  %v2040_v53 = vmul.f32 0.5, %v1016_v39  ;;  %v1019_v54 = vld [vmem:[%s8700_s30 + $0x1b88] sm:$0xff] }
 0x398   : > { %v8143_v0 = vpop.eup %8142  ;;  %6104 = vst [vmem:[%s8733_s17 + $0x1a70] sm:$0xff] %v5080_v55  ;;  %v5082_v1 = vadd.f32 0.5, %v4058_v56  ;;  %v4060_v2 = vmul.f32 0.5, %v8141_v59  ;;  %8168 = vtanh.f32 %v2026_v47  ;;  %v2041_v58 = vmul.f32 0.5, %v1017_v44  ;;  %v1020_v59 = vld [vmem:[%s8700_s30 + $0x1b90] sm:$0xff] }
 0x399   : > { %v8145_v5 = vpop.eup %8144  ;;  %6105 = vst [vmem:[%s8733_s17 + $0x1a78] sm:$0xff] %v5081_v60  ;;  %v5083_v6 = vadd.f32 0.5, %v4059_v61  ;;  %v4061_v7 = vmul.f32 0.5, %v8143_v0  ;;  %8170 = vtanh.f32 %v2027_v52  ;;  %v2042_v63 = vmul.f32 0.5, %v1018_v49  ;;  %v1021_v0 = vld [vmem:[%s8700_s30 + $0x1b98] sm:$0xff] }
 0x39a   : > { %v8147_v10 = vpop.eup %8146  ;;  %6106 = vst [vmem:[%s8733_s17 + $0x1a80] sm:$0xff] %v5082_v1  ;;  %v5084_v11 = vadd.f32 0.5, %v4060_v2  ;;  %v4062_v12 = vmul.f32 0.5, %v8145_v5  ;;  %8172 = vtanh.f32 %v2028_v57  ;;  %v2043_v4 = vmul.f32 0.5, %v1019_v54  ;;  %v1022_v5 = vld [vmem:[%s8700_s30 + $0x1ba0] sm:$0xff] }
 0x39b   : > { %v8149_v15 = vpop.eup %8148  ;;  %6107 = vst [vmem:[%s8733_s17 + $0x1a88] sm:$0xff] %v5083_v6  ;;  %v5085_v16 = vadd.f32 0.5, %v4061_v7  ;;  %v4063_v17 = vmul.f32 0.5, %v8147_v10  ;;  %8174 = vtanh.f32 %v2029_v62  ;;  %v2044_v9 = vmul.f32 0.5, %v1020_v59  ;;  %v1023_v10 = vld [vmem:[%s8700_s30 + $0x1ba8] sm:$0xff] }
 0x39c   : > { %v8151_v20 = vpop.eup %8150  ;;  %6108 = vst [vmem:[%s8733_s17 + $0x1a90] sm:$0xff] %v5084_v11  ;;  %v5086_v21 = vadd.f32 0.5, %v4062_v12  ;;  %v4064_v22 = vmul.f32 0.5, %v8149_v15  ;;  %8176 = vtanh.f32 %v2030_v3  ;;  %v2045_v14 = vmul.f32 0.5, %v1021_v0  ;;  %v1024_v15 = vld [vmem:[%s8700_s30 + $0x1bb0] sm:$0xff] }
 0x39d   : > { %v8153_v25 = vpop.eup %8152  ;;  %6109 = vst [vmem:[%s8733_s17 + $0x1a98] sm:$0xff] %v5085_v16  ;;  %v5087_v26 = vadd.f32 0.5, %v4063_v17  ;;  %v4065_v27 = vmul.f32 0.5, %v8151_v20  ;;  %8178 = vtanh.f32 %v2031_v8  ;;  %v2046_v19 = vmul.f32 0.5, %v1022_v5  ;;  %v1025_v20 = vld [vmem:[%s8700_s30 + $0x1bb8] sm:$0xff] }
 0x39e   : > { %v8155_v30 = vpop.eup %8154  ;;  %6110 = vst [vmem:[%s8733_s17 + $0x1aa0] sm:$0xff] %v5086_v21  ;;  %v5088_v31 = vadd.f32 0.5, %v4064_v22  ;;  %v4066_v32 = vmul.f32 0.5, %v8153_v25  ;;  %8180 = vtanh.f32 %v2032_v13  ;;  %v2047_v24 = vmul.f32 0.5, %v1023_v10  ;;  %v1026_v25 = vld [vmem:[%s8700_s30 + $0x1bc0] sm:$0xff] }
 0x39f   : > { %v8157_v35 = vpop.eup %8156  ;;  %6111 = vst [vmem:[%s8733_s17 + $0x1aa8] sm:$0xff] %v5087_v26  ;;  %v5089_v36 = vadd.f32 0.5, %v4065_v27  ;;  %v4067_v37 = vmul.f32 0.5, %v8155_v30  ;;  %8182 = vtanh.f32 %v2033_v18  ;;  %v2048_v29 = vmul.f32 0.5, %v1024_v15  ;;  %v1027_v30 = vld [vmem:[%s8700_s30 + $0x1bc8] sm:$0xff] }
 0x3a0   : > { %v8159_v40 = vpop.eup %8158  ;;  %6112 = vst [vmem:[%s8733_s17 + $0x1ab0] sm:$0xff] %v5088_v31  ;;  %v5090_v41 = vadd.f32 0.5, %v4066_v32  ;;  %v4068_v42 = vmul.f32 0.5, %v8157_v35  ;;  %8184 = vtanh.f32 %v2034_v23  ;;  %v2049_v34 = vmul.f32 0.5, %v1025_v20  ;;  %v1028_v35 = vld [vmem:[%s8700_s30 + $0x1bd0] sm:$0xff] }
 0x3a1   : > { %v8161_v45 = vpop.eup %8160  ;;  %6113 = vst [vmem:[%s8733_s17 + $0x1ab8] sm:$0xff] %v5089_v36  ;;  %v5091_v46 = vadd.f32 0.5, %v4067_v37  ;;  %v4069_v47 = vmul.f32 0.5, %v8159_v40  ;;  %8186 = vtanh.f32 %v2035_v28  ;;  %v2050_v39 = vmul.f32 0.5, %v1026_v25  ;;  %v1029_v40 = vld [vmem:[%s8700_s30 + $0x1bd8] sm:$0xff] }
 0x3a2   : > { %v8163_v50 = vpop.eup %8162  ;;  %6114 = vst [vmem:[%s8733_s17 + $0x1ac0] sm:$0xff] %v5090_v41  ;;  %v5092_v51 = vadd.f32 0.5, %v4068_v42  ;;  %v4070_v52 = vmul.f32 0.5, %v8161_v45  ;;  %8188 = vtanh.f32 %v2036_v33  ;;  %v2051_v44 = vmul.f32 0.5, %v1027_v30  ;;  %v1030_v45 = vld [vmem:[%s8700_s30 + $0x1be0] sm:$0xff] }
 0x3a3   : > { %v8165_v55 = vpop.eup %8164  ;;  %6115 = vst [vmem:[%s8733_s17 + $0x1ac8] sm:$0xff] %v5091_v46  ;;  %v5093_v56 = vadd.f32 0.5, %v4069_v47  ;;  %v4071_v57 = vmul.f32 0.5, %v8163_v50  ;;  %8190 = vtanh.f32 %v2037_v38  ;;  %v2052_v49 = vmul.f32 0.5, %v1028_v35  ;;  %v1031_v50 = vld [vmem:[%s8700_s30 + $0x1be8] sm:$0xff] }
 0x3a4   : > { %v8167_v60 = vpop.eup %8166  ;;  %6116 = vst [vmem:[%s8733_s17 + $0x1ad0] sm:$0xff] %v5092_v51  ;;  %v5094_v61 = vadd.f32 0.5, %v4070_v52  ;;  %v4072_v62 = vmul.f32 0.5, %v8165_v55  ;;  %8192 = vtanh.f32 %v2038_v43  ;;  %v2053_v54 = vmul.f32 0.5, %v1029_v40  ;;  %v1032_v55 = vld [vmem:[%s8700_s30 + $0x1bf0] sm:$0xff] }
 0x3a5   : > { %v8169_v1 = vpop.eup %8168  ;;  %6117 = vst [vmem:[%s8733_s17 + $0x1ad8] sm:$0xff] %v5093_v56  ;;  %v5095_v2 = vadd.f32 0.5, %v4071_v57  ;;  %v4073_v3 = vmul.f32 0.5, %v8167_v60  ;;  %8194 = vtanh.f32 %v2039_v48  ;;  %v2054_v59 = vmul.f32 0.5, %v1030_v45  ;;  %v1033_v60 = vld [vmem:[%s8700_s30 + $0x1bf8] sm:$0xff] }
 0x3a6   : > { %v8171_v6 = vpop.eup %8170  ;;  %6118 = vst [vmem:[%s8733_s17 + $0x1ae0] sm:$0xff] %v5094_v61  ;;  %v5096_v7 = vadd.f32 0.5, %v4072_v62  ;;  %v4074_v8 = vmul.f32 0.5, %v8169_v1  ;;  %8196 = vtanh.f32 %v2040_v53  ;;  %v2055_v0 = vmul.f32 0.5, %v1031_v50  ;;  %v1034_v1 = vld [vmem:[%s8700_s30 + $0x1c00] sm:$0xff] }
 0x3a7   : > { %v8173_v11 = vpop.eup %8172  ;;  %6119 = vst [vmem:[%s8733_s17 + $0x1ae8] sm:$0xff] %v5095_v2  ;;  %v5097_v12 = vadd.f32 0.5, %v4073_v3  ;;  %v4075_v13 = vmul.f32 0.5, %v8171_v6  ;;  %8198 = vtanh.f32 %v2041_v58  ;;  %v2056_v5 = vmul.f32 0.5, %v1032_v55  ;;  %v1035_v6 = vld [vmem:[%s8700_s30 + $0x1c08] sm:$0xff] }
 0x3a8   : > { %v8175_v16 = vpop.eup %8174  ;;  %6120 = vst [vmem:[%s8733_s17 + $0x1af0] sm:$0xff] %v5096_v7  ;;  %v5098_v17 = vadd.f32 0.5, %v4074_v8  ;;  %v4076_v18 = vmul.f32 0.5, %v8173_v11  ;;  %8200 = vtanh.f32 %v2042_v63  ;;  %v2057_v10 = vmul.f32 0.5, %v1033_v60  ;;  %v1036_v11 = vld [vmem:[%s8700_s30 + $0x1c10] sm:$0xff] }
 0x3a9   : > { %v8177_v21 = vpop.eup %8176  ;;  %6121 = vst [vmem:[%s8733_s17 + $0x1af8] sm:$0xff] %v5097_v12  ;;  %v5099_v22 = vadd.f32 0.5, %v4075_v13  ;;  %v4077_v23 = vmul.f32 0.5, %v8175_v16  ;;  %8202 = vtanh.f32 %v2043_v4  ;;  %v2058_v15 = vmul.f32 0.5, %v1034_v1  ;;  %v1037_v16 = vld [vmem:[%s8700_s30 + $0x1c18] sm:$0xff] }
 0x3aa   : > { %v8179_v26 = vpop.eup %8178  ;;  %6122 = vst [vmem:[%s8733_s17 + $0x1b00] sm:$0xff] %v5098_v17  ;;  %v5100_v27 = vadd.f32 0.5, %v4076_v18  ;;  %v4078_v28 = vmul.f32 0.5, %v8177_v21  ;;  %8204 = vtanh.f32 %v2044_v9  ;;  %v2059_v20 = vmul.f32 0.5, %v1035_v6  ;;  %v1038_v21 = vld [vmem:[%s8700_s30 + $0x1c20] sm:$0xff] }
 0x3ab   : > { %v8181_v31 = vpop.eup %8180  ;;  %6123 = vst [vmem:[%s8733_s17 + $0x1b08] sm:$0xff] %v5099_v22  ;;  %v5101_v32 = vadd.f32 0.5, %v4077_v23  ;;  %v4079_v33 = vmul.f32 0.5, %v8179_v26  ;;  %8206 = vtanh.f32 %v2045_v14  ;;  %v2060_v25 = vmul.f32 0.5, %v1036_v11  ;;  %v1039_v26 = vld [vmem:[%s8700_s30 + $0x1c28] sm:$0xff] }
 0x3ac   : > { %v8183_v36 = vpop.eup %8182  ;;  %6124 = vst [vmem:[%s8733_s17 + $0x1b10] sm:$0xff] %v5100_v27  ;;  %v5102_v37 = vadd.f32 0.5, %v4078_v28  ;;  %v4080_v38 = vmul.f32 0.5, %v8181_v31  ;;  %8208 = vtanh.f32 %v2046_v19  ;;  %v2061_v30 = vmul.f32 0.5, %v1037_v16  ;;  %v1040_v31 = vld [vmem:[%s8700_s30 + $0x1c30] sm:$0xff] }
 0x3ad   : > { %v8185_v41 = vpop.eup %8184  ;;  %6125 = vst [vmem:[%s8733_s17 + $0x1b18] sm:$0xff] %v5101_v32  ;;  %v5103_v42 = vadd.f32 0.5, %v4079_v33  ;;  %v4081_v43 = vmul.f32 0.5, %v8183_v36  ;;  %8210 = vtanh.f32 %v2047_v24  ;;  %v2062_v35 = vmul.f32 0.5, %v1038_v21  ;;  %v1041_v36 = vld [vmem:[%s8700_s30 + $0x1c38] sm:$0xff] }
 0x3ae   : > { %v8187_v46 = vpop.eup %8186  ;;  %6126 = vst [vmem:[%s8733_s17 + $0x1b20] sm:$0xff] %v5102_v37  ;;  %v5104_v47 = vadd.f32 0.5, %v4080_v38  ;;  %v4082_v48 = vmul.f32 0.5, %v8185_v41  ;;  %8212 = vtanh.f32 %v2048_v29  ;;  %v2063_v40 = vmul.f32 0.5, %v1039_v26  ;;  %v1042_v41 = vld [vmem:[%s8700_s30 + $0x1c40] sm:$0xff] }
 0x3af   : > { %v8189_v51 = vpop.eup %8188  ;;  %6127 = vst [vmem:[%s8733_s17 + $0x1b28] sm:$0xff] %v5103_v42  ;;  %v5105_v52 = vadd.f32 0.5, %v4081_v43  ;;  %v4083_v53 = vmul.f32 0.5, %v8187_v46  ;;  %8214 = vtanh.f32 %v2049_v34  ;;  %v2064_v45 = vmul.f32 0.5, %v1040_v31  ;;  %v1043_v46 = vld [vmem:[%s8700_s30 + $0x1c48] sm:$0xff] }
 0x3b0   : > { %v8191_v56 = vpop.eup %8190  ;;  %6128 = vst [vmem:[%s8733_s17 + $0x1b30] sm:$0xff] %v5104_v47  ;;  %v5106_v57 = vadd.f32 0.5, %v4082_v48  ;;  %v4084_v58 = vmul.f32 0.5, %v8189_v51  ;;  %8216 = vtanh.f32 %v2050_v39  ;;  %v2065_v50 = vmul.f32 0.5, %v1041_v36  ;;  %v1044_v51 = vld [vmem:[%s8700_s30 + $0x1c50] sm:$0xff] }
 0x3b1   : > { %v8193_v61 = vpop.eup %8192  ;;  %6129 = vst [vmem:[%s8733_s17 + $0x1b38] sm:$0xff] %v5105_v52  ;;  %v5107_v62 = vadd.f32 0.5, %v4083_v53  ;;  %v4085_v63 = vmul.f32 0.5, %v8191_v56  ;;  %8218 = vtanh.f32 %v2051_v44  ;;  %v2066_v55 = vmul.f32 0.5, %v1042_v41  ;;  %v1045_v56 = vld [vmem:[%s8700_s30 + $0x1c58] sm:$0xff] }
 0x3b2   : > { %v8195_v2 = vpop.eup %8194  ;;  %6130 = vst [vmem:[%s8733_s17 + $0x1b40] sm:$0xff] %v5106_v57  ;;  %v5108_v3 = vadd.f32 0.5, %v4084_v58  ;;  %v4086_v4 = vmul.f32 0.5, %v8193_v61  ;;  %8220 = vtanh.f32 %v2052_v49  ;;  %v2067_v60 = vmul.f32 0.5, %v1043_v46  ;;  %v1046_v61 = vld [vmem:[%s8700_s30 + $0x1c60] sm:$0xff] }
 0x3b3   : > { %v8197_v7 = vpop.eup %8196  ;;  %6131 = vst [vmem:[%s8733_s17 + $0x1b48] sm:$0xff] %v5107_v62  ;;  %v5109_v8 = vadd.f32 0.5, %v4085_v63  ;;  %v4087_v9 = vmul.f32 0.5, %v8195_v2  ;;  %8222 = vtanh.f32 %v2053_v54  ;;  %v2068_v1 = vmul.f32 0.5, %v1044_v51  ;;  %v1047_v2 = vld [vmem:[%s8700_s30 + $0x1c68] sm:$0xff] }
 0x3b4   : > { %v8199_v12 = vpop.eup %8198  ;;  %6132 = vst [vmem:[%s8733_s17 + $0x1b50] sm:$0xff] %v5108_v3  ;;  %v5110_v13 = vadd.f32 0.5, %v4086_v4  ;;  %v4088_v14 = vmul.f32 0.5, %v8197_v7  ;;  %8224 = vtanh.f32 %v2054_v59  ;;  %v2069_v6 = vmul.f32 0.5, %v1045_v56  ;;  %v1048_v7 = vld [vmem:[%s8700_s30 + $0x1c70] sm:$0xff] }
 0x3b5   : > { %v8201_v17 = vpop.eup %8200  ;;  %6133 = vst [vmem:[%s8733_s17 + $0x1b58] sm:$0xff] %v5109_v8  ;;  %v5111_v18 = vadd.f32 0.5, %v4087_v9  ;;  %v4089_v19 = vmul.f32 0.5, %v8199_v12  ;;  %8226 = vtanh.f32 %v2055_v0  ;;  %v2070_v11 = vmul.f32 0.5, %v1046_v61  ;;  %v1049_v12 = vld [vmem:[%s8700_s30 + $0x1c78] sm:$0xff] }
 0x3b6   : > { %v8203_v22 = vpop.eup %8202  ;;  %6134 = vst [vmem:[%s8733_s17 + $0x1b60] sm:$0xff] %v5110_v13  ;;  %v5112_v23 = vadd.f32 0.5, %v4088_v14  ;;  %v4090_v24 = vmul.f32 0.5, %v8201_v17  ;;  %8228 = vtanh.f32 %v2056_v5  ;;  %v2071_v16 = vmul.f32 0.5, %v1047_v2  ;;  %v1050_v17 = vld [vmem:[%s8700_s30 + $0x1c80] sm:$0xff] }
 0x3b7   : > { %v8205_v27 = vpop.eup %8204  ;;  %6135 = vst [vmem:[%s8733_s17 + $0x1b68] sm:$0xff] %v5111_v18  ;;  %v5113_v28 = vadd.f32 0.5, %v4089_v19  ;;  %v4091_v29 = vmul.f32 0.5, %v8203_v22  ;;  %8230 = vtanh.f32 %v2057_v10  ;;  %v2072_v21 = vmul.f32 0.5, %v1048_v7  ;;  %v1051_v22 = vld [vmem:[%s8700_s30 + $0x1c88] sm:$0xff] }
 0x3b8   : > { %v8207_v32 = vpop.eup %8206  ;;  %6136 = vst [vmem:[%s8733_s17 + $0x1b70] sm:$0xff] %v5112_v23  ;;  %v5114_v33 = vadd.f32 0.5, %v4090_v24  ;;  %v4092_v34 = vmul.f32 0.5, %v8205_v27  ;;  %8232 = vtanh.f32 %v2058_v15  ;;  %v2073_v26 = vmul.f32 0.5, %v1049_v12  ;;  %v1052_v27 = vld [vmem:[%s8700_s30 + $0x1c90] sm:$0xff] }
 0x3b9   : > { %v8209_v37 = vpop.eup %8208  ;;  %6137 = vst [vmem:[%s8733_s17 + $0x1b78] sm:$0xff] %v5113_v28  ;;  %v5115_v38 = vadd.f32 0.5, %v4091_v29  ;;  %v4093_v39 = vmul.f32 0.5, %v8207_v32  ;;  %8234 = vtanh.f32 %v2059_v20  ;;  %v2074_v31 = vmul.f32 0.5, %v1050_v17  ;;  %v1053_v32 = vld [vmem:[%s8700_s30 + $0x1c98] sm:$0xff] }
 0x3ba   : > { %v8211_v42 = vpop.eup %8210  ;;  %6138 = vst [vmem:[%s8733_s17 + $0x1b80] sm:$0xff] %v5114_v33  ;;  %v5116_v43 = vadd.f32 0.5, %v4092_v34  ;;  %v4094_v44 = vmul.f32 0.5, %v8209_v37  ;;  %8236 = vtanh.f32 %v2060_v25  ;;  %v2075_v36 = vmul.f32 0.5, %v1051_v22  ;;  %v1054_v37 = vld [vmem:[%s8700_s30 + $0x1ca0] sm:$0xff] }
 0x3bb   : > { %v8213_v47 = vpop.eup %8212  ;;  %6139 = vst [vmem:[%s8733_s17 + $0x1b88] sm:$0xff] %v5115_v38  ;;  %v5117_v48 = vadd.f32 0.5, %v4093_v39  ;;  %v4095_v49 = vmul.f32 0.5, %v8211_v42  ;;  %8238 = vtanh.f32 %v2061_v30  ;;  %v2076_v41 = vmul.f32 0.5, %v1052_v27  ;;  %v1055_v42 = vld [vmem:[%s8700_s30 + $0x1ca8] sm:$0xff] }
 0x3bc   : > { %v8215_v52 = vpop.eup %8214  ;;  %6140 = vst [vmem:[%s8733_s17 + $0x1b90] sm:$0xff] %v5116_v43  ;;  %v5118_v53 = vadd.f32 0.5, %v4094_v44  ;;  %v4096_v54 = vmul.f32 0.5, %v8213_v47  ;;  %8240 = vtanh.f32 %v2062_v35  ;;  %v2077_v46 = vmul.f32 0.5, %v1053_v32  ;;  %v1056_v47 = vld [vmem:[%s8700_s30 + $0x1cb0] sm:$0xff] }
 0x3bd   : > { %v8217_v57 = vpop.eup %8216  ;;  %6141 = vst [vmem:[%s8733_s17 + $0x1b98] sm:$0xff] %v5117_v48  ;;  %v5119_v58 = vadd.f32 0.5, %v4095_v49  ;;  %v4097_v59 = vmul.f32 0.5, %v8215_v52  ;;  %8242 = vtanh.f32 %v2063_v40  ;;  %v2078_v51 = vmul.f32 0.5, %v1054_v37  ;;  %v1057_v52 = vld [vmem:[%s8700_s30 + $0x1cb8] sm:$0xff] }
 0x3be   : > { %v8219_v62 = vpop.eup %8218  ;;  %6142 = vst [vmem:[%s8733_s17 + $0x1ba0] sm:$0xff] %v5118_v53  ;;  %v5120_v63 = vadd.f32 0.5, %v4096_v54  ;;  %v4098_v0 = vmul.f32 0.5, %v8217_v57  ;;  %8244 = vtanh.f32 %v2064_v45  ;;  %v2079_v56 = vmul.f32 0.5, %v1055_v42  ;;  %v1058_v57 = vld [vmem:[%s8700_s30 + $0x1cc0] sm:$0xff] }
 0x3bf   : > { %v8221_v3 = vpop.eup %8220  ;;  %6143 = vst [vmem:[%s8733_s17 + $0x1ba8] sm:$0xff] %v5119_v58  ;;  %v5121_v4 = vadd.f32 0.5, %v4097_v59  ;;  %v4099_v5 = vmul.f32 0.5, %v8219_v62  ;;  %8246 = vtanh.f32 %v2065_v50  ;;  %v2080_v61 = vmul.f32 0.5, %v1056_v47  ;;  %v1059_v62 = vld [vmem:[%s8700_s30 + $0x1cc8] sm:$0xff] }
 0x3c0   : > { %v8223_v8 = vpop.eup %8222  ;;  %6144 = vst [vmem:[%s8733_s17 + $0x1bb0] sm:$0xff] %v5120_v63  ;;  %v5122_v9 = vadd.f32 0.5, %v4098_v0  ;;  %v4100_v10 = vmul.f32 0.5, %v8221_v3  ;;  %8248 = vtanh.f32 %v2066_v55  ;;  %v2081_v2 = vmul.f32 0.5, %v1057_v52  ;;  %v1060_v3 = vld [vmem:[%s8700_s30 + $0x1cd0] sm:$0xff] }
 0x3c1   : > { %v8225_v13 = vpop.eup %8224  ;;  %6145 = vst [vmem:[%s8733_s17 + $0x1bb8] sm:$0xff] %v5121_v4  ;;  %v5123_v14 = vadd.f32 0.5, %v4099_v5  ;;  %v4101_v15 = vmul.f32 0.5, %v8223_v8  ;;  %8250 = vtanh.f32 %v2067_v60  ;;  %v2082_v7 = vmul.f32 0.5, %v1058_v57  ;;  %v1061_v8 = vld [vmem:[%s8700_s30 + $0x1cd8] sm:$0xff] }
 0x3c2   : > { %v8227_v18 = vpop.eup %8226  ;;  %6146 = vst [vmem:[%s8733_s17 + $0x1bc0] sm:$0xff] %v5122_v9  ;;  %v5124_v19 = vadd.f32 0.5, %v4100_v10  ;;  %v4102_v20 = vmul.f32 0.5, %v8225_v13  ;;  %8252 = vtanh.f32 %v2068_v1  ;;  %v2083_v12 = vmul.f32 0.5, %v1059_v62  ;;  %v1062_v13 = vld [vmem:[%s8700_s30 + $0x1ce0] sm:$0xff] }
 0x3c3   : > { %v8229_v23 = vpop.eup %8228  ;;  %6147 = vst [vmem:[%s8733_s17 + $0x1bc8] sm:$0xff] %v5123_v14  ;;  %v5125_v24 = vadd.f32 0.5, %v4101_v15  ;;  %v4103_v25 = vmul.f32 0.5, %v8227_v18  ;;  %8254 = vtanh.f32 %v2069_v6  ;;  %v2084_v17 = vmul.f32 0.5, %v1060_v3  ;;  %v1063_v18 = vld [vmem:[%s8700_s30 + $0x1ce8] sm:$0xff] }
 0x3c4   : > { %v8231_v28 = vpop.eup %8230  ;;  %6148 = vst [vmem:[%s8733_s17 + $0x1bd0] sm:$0xff] %v5124_v19  ;;  %v5126_v29 = vadd.f32 0.5, %v4102_v20  ;;  %v4104_v30 = vmul.f32 0.5, %v8229_v23  ;;  %8256 = vtanh.f32 %v2070_v11  ;;  %v2085_v22 = vmul.f32 0.5, %v1061_v8  ;;  %v1064_v23 = vld [vmem:[%s8700_s30 + $0x1cf0] sm:$0xff] }
 0x3c5   : > { %v8233_v33 = vpop.eup %8232  ;;  %6149 = vst [vmem:[%s8733_s17 + $0x1bd8] sm:$0xff] %v5125_v24  ;;  %v5127_v34 = vadd.f32 0.5, %v4103_v25  ;;  %v4105_v35 = vmul.f32 0.5, %v8231_v28  ;;  %8258 = vtanh.f32 %v2071_v16  ;;  %v2086_v27 = vmul.f32 0.5, %v1062_v13  ;;  %v1065_v28 = vld [vmem:[%s8700_s30 + $0x1cf8] sm:$0xff] }
 0x3c6   : > { %v8235_v38 = vpop.eup %8234  ;;  %6150 = vst [vmem:[%s8733_s17 + $0x1be0] sm:$0xff] %v5126_v29  ;;  %v5128_v39 = vadd.f32 0.5, %v4104_v30  ;;  %v4106_v40 = vmul.f32 0.5, %v8233_v33  ;;  %8260 = vtanh.f32 %v2072_v21  ;;  %v2087_v32 = vmul.f32 0.5, %v1063_v18  ;;  %v1066_v33 = vld [vmem:[%s8700_s30 + $0x1d00] sm:$0xff] }
 0x3c7   : > { %v8237_v43 = vpop.eup %8236  ;;  %6151 = vst [vmem:[%s8733_s17 + $0x1be8] sm:$0xff] %v5127_v34  ;;  %v5129_v44 = vadd.f32 0.5, %v4105_v35  ;;  %v4107_v45 = vmul.f32 0.5, %v8235_v38  ;;  %8262 = vtanh.f32 %v2073_v26  ;;  %v2088_v37 = vmul.f32 0.5, %v1064_v23  ;;  %v1067_v38 = vld [vmem:[%s8700_s30 + $0x1d08] sm:$0xff] }
 0x3c8   : > { %v8239_v48 = vpop.eup %8238  ;;  %6152 = vst [vmem:[%s8733_s17 + $0x1bf0] sm:$0xff] %v5128_v39  ;;  %v5130_v49 = vadd.f32 0.5, %v4106_v40  ;;  %v4108_v50 = vmul.f32 0.5, %v8237_v43  ;;  %8264 = vtanh.f32 %v2074_v31  ;;  %v2089_v42 = vmul.f32 0.5, %v1065_v28  ;;  %v1068_v43 = vld [vmem:[%s8700_s30 + $0x1d10] sm:$0xff] }
 0x3c9   : > { %v8241_v53 = vpop.eup %8240  ;;  %6153 = vst [vmem:[%s8733_s17 + $0x1bf8] sm:$0xff] %v5129_v44  ;;  %v5131_v54 = vadd.f32 0.5, %v4107_v45  ;;  %v4109_v55 = vmul.f32 0.5, %v8239_v48  ;;  %8266 = vtanh.f32 %v2075_v36  ;;  %v2090_v47 = vmul.f32 0.5, %v1066_v33  ;;  %v1069_v48 = vld [vmem:[%s8700_s30 + $0x1d18] sm:$0xff] }
 0x3ca   : > { %v8243_v58 = vpop.eup %8242  ;;  %6154 = vst [vmem:[%s8733_s17 + $0x1c00] sm:$0xff] %v5130_v49  ;;  %v5132_v59 = vadd.f32 0.5, %v4108_v50  ;;  %v4110_v60 = vmul.f32 0.5, %v8241_v53  ;;  %8268 = vtanh.f32 %v2076_v41  ;;  %v2091_v52 = vmul.f32 0.5, %v1067_v38  ;;  %v1070_v53 = vld [vmem:[%s8700_s30 + $0x1d20] sm:$0xff] }
 0x3cb   : > { %v8245_v63 = vpop.eup %8244  ;;  %6155 = vst [vmem:[%s8733_s17 + $0x1c08] sm:$0xff] %v5131_v54  ;;  %v5133_v0 = vadd.f32 0.5, %v4109_v55  ;;  %v4111_v1 = vmul.f32 0.5, %v8243_v58  ;;  %8270 = vtanh.f32 %v2077_v46  ;;  %v2092_v57 = vmul.f32 0.5, %v1068_v43  ;;  %v1071_v58 = vld [vmem:[%s8700_s30 + $0x1d28] sm:$0xff] }
 0x3cc   : > { %v8247_v4 = vpop.eup %8246  ;;  %6156 = vst [vmem:[%s8733_s17 + $0x1c10] sm:$0xff] %v5132_v59  ;;  %v5134_v5 = vadd.f32 0.5, %v4110_v60  ;;  %v4112_v6 = vmul.f32 0.5, %v8245_v63  ;;  %8272 = vtanh.f32 %v2078_v51  ;;  %v2093_v62 = vmul.f32 0.5, %v1069_v48  ;;  %v1072_v63 = vld [vmem:[%s8700_s30 + $0x1d30] sm:$0xff] }
 0x3cd   : > { %v8249_v9 = vpop.eup %8248  ;;  %6157 = vst [vmem:[%s8733_s17 + $0x1c18] sm:$0xff] %v5133_v0  ;;  %v5135_v10 = vadd.f32 0.5, %v4111_v1  ;;  %v4113_v11 = vmul.f32 0.5, %v8247_v4  ;;  %8274 = vtanh.f32 %v2079_v56  ;;  %v2094_v3 = vmul.f32 0.5, %v1070_v53  ;;  %v1073_v4 = vld [vmem:[%s8700_s30 + $0x1d38] sm:$0xff] }
 0x3ce   : > { %v8251_v14 = vpop.eup %8250  ;;  %6158 = vst [vmem:[%s8733_s17 + $0x1c20] sm:$0xff] %v5134_v5  ;;  %v5136_v15 = vadd.f32 0.5, %v4112_v6  ;;  %v4114_v16 = vmul.f32 0.5, %v8249_v9  ;;  %8276 = vtanh.f32 %v2080_v61  ;;  %v2095_v8 = vmul.f32 0.5, %v1071_v58  ;;  %v1074_v9 = vld [vmem:[%s8700_s30 + $0x1d40] sm:$0xff] }
 0x3cf   : > { %v8253_v19 = vpop.eup %8252  ;;  %6159 = vst [vmem:[%s8733_s17 + $0x1c28] sm:$0xff] %v5135_v10  ;;  %v5137_v20 = vadd.f32 0.5, %v4113_v11  ;;  %v4115_v21 = vmul.f32 0.5, %v8251_v14  ;;  %8278 = vtanh.f32 %v2081_v2  ;;  %v2096_v13 = vmul.f32 0.5, %v1072_v63  ;;  %v1075_v14 = vld [vmem:[%s8700_s30 + $0x1d48] sm:$0xff] }
 0x3d0   : > { %v8255_v24 = vpop.eup %8254  ;;  %6160 = vst [vmem:[%s8733_s17 + $0x1c30] sm:$0xff] %v5136_v15  ;;  %v5138_v25 = vadd.f32 0.5, %v4114_v16  ;;  %v4116_v26 = vmul.f32 0.5, %v8253_v19  ;;  %8280 = vtanh.f32 %v2082_v7  ;;  %v2097_v18 = vmul.f32 0.5, %v1073_v4  ;;  %v1076_v19 = vld [vmem:[%s8700_s30 + $0x1d50] sm:$0xff] }
 0x3d1   : > { %v8257_v29 = vpop.eup %8256  ;;  %6161 = vst [vmem:[%s8733_s17 + $0x1c38] sm:$0xff] %v5137_v20  ;;  %v5139_v30 = vadd.f32 0.5, %v4115_v21  ;;  %v4117_v31 = vmul.f32 0.5, %v8255_v24  ;;  %8282 = vtanh.f32 %v2083_v12  ;;  %v2098_v23 = vmul.f32 0.5, %v1074_v9  ;;  %v1077_v24 = vld [vmem:[%s8700_s30 + $0x1d58] sm:$0xff] }
 0x3d2   : > { %v8259_v34 = vpop.eup %8258  ;;  %6162 = vst [vmem:[%s8733_s17 + $0x1c40] sm:$0xff] %v5138_v25  ;;  %v5140_v35 = vadd.f32 0.5, %v4116_v26  ;;  %v4118_v36 = vmul.f32 0.5, %v8257_v29  ;;  %8284 = vtanh.f32 %v2084_v17  ;;  %v2099_v28 = vmul.f32 0.5, %v1075_v14  ;;  %v1078_v29 = vld [vmem:[%s8700_s30 + $0x1d60] sm:$0xff] }
 0x3d3   : > { %v8261_v39 = vpop.eup %8260  ;;  %6163 = vst [vmem:[%s8733_s17 + $0x1c48] sm:$0xff] %v5139_v30  ;;  %v5141_v40 = vadd.f32 0.5, %v4117_v31  ;;  %v4119_v41 = vmul.f32 0.5, %v8259_v34  ;;  %8286 = vtanh.f32 %v2085_v22  ;;  %v2100_v33 = vmul.f32 0.5, %v1076_v19  ;;  %v1079_v34 = vld [vmem:[%s8700_s30 + $0x1d68] sm:$0xff] }
 0x3d4   : > { %v8263_v44 = vpop.eup %8262  ;;  %6164 = vst [vmem:[%s8733_s17 + $0x1c50] sm:$0xff] %v5140_v35  ;;  %v5142_v45 = vadd.f32 0.5, %v4118_v36  ;;  %v4120_v46 = vmul.f32 0.5, %v8261_v39  ;;  %8288 = vtanh.f32 %v2086_v27  ;;  %v2101_v38 = vmul.f32 0.5, %v1077_v24  ;;  %v1080_v39 = vld [vmem:[%s8700_s30 + $0x1d70] sm:$0xff] }
 0x3d5   : > { %v8265_v49 = vpop.eup %8264  ;;  %6165 = vst [vmem:[%s8733_s17 + $0x1c58] sm:$0xff] %v5141_v40  ;;  %v5143_v50 = vadd.f32 0.5, %v4119_v41  ;;  %v4121_v51 = vmul.f32 0.5, %v8263_v44  ;;  %8290 = vtanh.f32 %v2087_v32  ;;  %v2102_v43 = vmul.f32 0.5, %v1078_v29  ;;  %v1081_v44 = vld [vmem:[%s8700_s30 + $0x1d78] sm:$0xff] }
 0x3d6   : > { %v8267_v54 = vpop.eup %8266  ;;  %6166 = vst [vmem:[%s8733_s17 + $0x1c60] sm:$0xff] %v5142_v45  ;;  %v5144_v55 = vadd.f32 0.5, %v4120_v46  ;;  %v4122_v56 = vmul.f32 0.5, %v8265_v49  ;;  %8292 = vtanh.f32 %v2088_v37  ;;  %v2103_v48 = vmul.f32 0.5, %v1079_v34  ;;  %v1082_v49 = vld [vmem:[%s8700_s30 + $0x1d80] sm:$0xff] }
 0x3d7   : > { %v8269_v59 = vpop.eup %8268  ;;  %6167 = vst [vmem:[%s8733_s17 + $0x1c68] sm:$0xff] %v5143_v50  ;;  %v5145_v60 = vadd.f32 0.5, %v4121_v51  ;;  %v4123_v61 = vmul.f32 0.5, %v8267_v54  ;;  %8294 = vtanh.f32 %v2089_v42  ;;  %v2104_v53 = vmul.f32 0.5, %v1080_v39  ;;  %v1083_v54 = vld [vmem:[%s8700_s30 + $0x1d88] sm:$0xff] }
 0x3d8   : > { %v8271_v0 = vpop.eup %8270  ;;  %6168 = vst [vmem:[%s8733_s17 + $0x1c70] sm:$0xff] %v5144_v55  ;;  %v5146_v1 = vadd.f32 0.5, %v4122_v56  ;;  %v4124_v2 = vmul.f32 0.5, %v8269_v59  ;;  %8296 = vtanh.f32 %v2090_v47  ;;  %v2105_v58 = vmul.f32 0.5, %v1081_v44  ;;  %v1084_v59 = vld [vmem:[%s8700_s30 + $0x1d90] sm:$0xff] }
 0x3d9   : > { %v8273_v5 = vpop.eup %8272  ;;  %6169 = vst [vmem:[%s8733_s17 + $0x1c78] sm:$0xff] %v5145_v60  ;;  %v5147_v6 = vadd.f32 0.5, %v4123_v61  ;;  %v4125_v7 = vmul.f32 0.5, %v8271_v0  ;;  %8298 = vtanh.f32 %v2091_v52  ;;  %v2106_v63 = vmul.f32 0.5, %v1082_v49  ;;  %v1085_v0 = vld [vmem:[%s8700_s30 + $0x1d98] sm:$0xff] }
 0x3da   : > { %v8275_v10 = vpop.eup %8274  ;;  %6170 = vst [vmem:[%s8733_s17 + $0x1c80] sm:$0xff] %v5146_v1  ;;  %v5148_v11 = vadd.f32 0.5, %v4124_v2  ;;  %v4126_v12 = vmul.f32 0.5, %v8273_v5  ;;  %8300 = vtanh.f32 %v2092_v57  ;;  %v2107_v4 = vmul.f32 0.5, %v1083_v54  ;;  %v1086_v5 = vld [vmem:[%s8700_s30 + $0x1da0] sm:$0xff] }
 0x3db   : > { %v8277_v15 = vpop.eup %8276  ;;  %6171 = vst [vmem:[%s8733_s17 + $0x1c88] sm:$0xff] %v5147_v6  ;;  %v5149_v16 = vadd.f32 0.5, %v4125_v7  ;;  %v4127_v17 = vmul.f32 0.5, %v8275_v10  ;;  %8302 = vtanh.f32 %v2093_v62  ;;  %v2108_v9 = vmul.f32 0.5, %v1084_v59  ;;  %v1087_v10 = vld [vmem:[%s8700_s30 + $0x1da8] sm:$0xff] }
 0x3dc   : > { %v8279_v20 = vpop.eup %8278  ;;  %6172 = vst [vmem:[%s8733_s17 + $0x1c90] sm:$0xff] %v5148_v11  ;;  %v5150_v21 = vadd.f32 0.5, %v4126_v12  ;;  %v4128_v22 = vmul.f32 0.5, %v8277_v15  ;;  %8304 = vtanh.f32 %v2094_v3  ;;  %v2109_v14 = vmul.f32 0.5, %v1085_v0  ;;  %v1088_v15 = vld [vmem:[%s8700_s30 + $0x1db0] sm:$0xff] }
 0x3dd   : > { %v8281_v25 = vpop.eup %8280  ;;  %6173 = vst [vmem:[%s8733_s17 + $0x1c98] sm:$0xff] %v5149_v16  ;;  %v5151_v26 = vadd.f32 0.5, %v4127_v17  ;;  %v4129_v27 = vmul.f32 0.5, %v8279_v20  ;;  %8306 = vtanh.f32 %v2095_v8  ;;  %v2110_v19 = vmul.f32 0.5, %v1086_v5  ;;  %v1089_v20 = vld [vmem:[%s8700_s30 + $0x1db8] sm:$0xff] }
 0x3de   : > { %v8283_v30 = vpop.eup %8282  ;;  %6174 = vst [vmem:[%s8733_s17 + $0x1ca0] sm:$0xff] %v5150_v21  ;;  %v5152_v31 = vadd.f32 0.5, %v4128_v22  ;;  %v4130_v32 = vmul.f32 0.5, %v8281_v25  ;;  %8308 = vtanh.f32 %v2096_v13  ;;  %v2111_v24 = vmul.f32 0.5, %v1087_v10  ;;  %v1090_v25 = vld [vmem:[%s8700_s30 + $0x1dc0] sm:$0xff] }
 0x3df   : > { %v8285_v35 = vpop.eup %8284  ;;  %6175 = vst [vmem:[%s8733_s17 + $0x1ca8] sm:$0xff] %v5151_v26  ;;  %v5153_v36 = vadd.f32 0.5, %v4129_v27  ;;  %v4131_v37 = vmul.f32 0.5, %v8283_v30  ;;  %8310 = vtanh.f32 %v2097_v18  ;;  %v2112_v29 = vmul.f32 0.5, %v1088_v15  ;;  %v1091_v30 = vld [vmem:[%s8700_s30 + $0x1dc8] sm:$0xff] }
 0x3e0   : > { %v8287_v40 = vpop.eup %8286  ;;  %6176 = vst [vmem:[%s8733_s17 + $0x1cb0] sm:$0xff] %v5152_v31  ;;  %v5154_v41 = vadd.f32 0.5, %v4130_v32  ;;  %v4132_v42 = vmul.f32 0.5, %v8285_v35  ;;  %8312 = vtanh.f32 %v2098_v23  ;;  %v2113_v34 = vmul.f32 0.5, %v1089_v20  ;;  %v1092_v35 = vld [vmem:[%s8700_s30 + $0x1dd0] sm:$0xff] }
 0x3e1   : > { %v8289_v45 = vpop.eup %8288  ;;  %6177 = vst [vmem:[%s8733_s17 + $0x1cb8] sm:$0xff] %v5153_v36  ;;  %v5155_v46 = vadd.f32 0.5, %v4131_v37  ;;  %v4133_v47 = vmul.f32 0.5, %v8287_v40  ;;  %8314 = vtanh.f32 %v2099_v28  ;;  %v2114_v39 = vmul.f32 0.5, %v1090_v25  ;;  %v1093_v40 = vld [vmem:[%s8700_s30 + $0x1dd8] sm:$0xff] }
 0x3e2   : > { %v8291_v50 = vpop.eup %8290  ;;  %6178 = vst [vmem:[%s8733_s17 + $0x1cc0] sm:$0xff] %v5154_v41  ;;  %v5156_v51 = vadd.f32 0.5, %v4132_v42  ;;  %v4134_v52 = vmul.f32 0.5, %v8289_v45  ;;  %8316 = vtanh.f32 %v2100_v33  ;;  %v2115_v44 = vmul.f32 0.5, %v1091_v30  ;;  %v1094_v45 = vld [vmem:[%s8700_s30 + $0x1de0] sm:$0xff] }
 0x3e3   : > { %v8293_v55 = vpop.eup %8292  ;;  %6179 = vst [vmem:[%s8733_s17 + $0x1cc8] sm:$0xff] %v5155_v46  ;;  %v5157_v56 = vadd.f32 0.5, %v4133_v47  ;;  %v4135_v57 = vmul.f32 0.5, %v8291_v50  ;;  %8318 = vtanh.f32 %v2101_v38  ;;  %v2116_v49 = vmul.f32 0.5, %v1092_v35  ;;  %v1095_v50 = vld [vmem:[%s8700_s30 + $0x1de8] sm:$0xff] }
 0x3e4   : > { %v8295_v60 = vpop.eup %8294  ;;  %6180 = vst [vmem:[%s8733_s17 + $0x1cd0] sm:$0xff] %v5156_v51  ;;  %v5158_v61 = vadd.f32 0.5, %v4134_v52  ;;  %v4136_v62 = vmul.f32 0.5, %v8293_v55  ;;  %8320 = vtanh.f32 %v2102_v43  ;;  %v2117_v54 = vmul.f32 0.5, %v1093_v40  ;;  %v1096_v55 = vld [vmem:[%s8700_s30 + $0x1df0] sm:$0xff] }
 0x3e5   : > { %v8297_v1 = vpop.eup %8296  ;;  %6181 = vst [vmem:[%s8733_s17 + $0x1cd8] sm:$0xff] %v5157_v56  ;;  %v5159_v2 = vadd.f32 0.5, %v4135_v57  ;;  %v4137_v3 = vmul.f32 0.5, %v8295_v60  ;;  %8322 = vtanh.f32 %v2103_v48  ;;  %v2118_v59 = vmul.f32 0.5, %v1094_v45  ;;  %v1097_v60 = vld [vmem:[%s8700_s30 + $0x1df8] sm:$0xff] }
 0x3e6   : > { %v8299_v6 = vpop.eup %8298  ;;  %6182 = vst [vmem:[%s8733_s17 + $0x1ce0] sm:$0xff] %v5158_v61  ;;  %v5160_v7 = vadd.f32 0.5, %v4136_v62  ;;  %v4138_v8 = vmul.f32 0.5, %v8297_v1  ;;  %8324 = vtanh.f32 %v2104_v53  ;;  %v2119_v0 = vmul.f32 0.5, %v1095_v50  ;;  %v1098_v1 = vld [vmem:[%s8700_s30 + $0x1e00] sm:$0xff] }
 0x3e7   : > { %v8301_v11 = vpop.eup %8300  ;;  %6183 = vst [vmem:[%s8733_s17 + $0x1ce8] sm:$0xff] %v5159_v2  ;;  %v5161_v12 = vadd.f32 0.5, %v4137_v3  ;;  %v4139_v13 = vmul.f32 0.5, %v8299_v6  ;;  %8326 = vtanh.f32 %v2105_v58  ;;  %v2120_v5 = vmul.f32 0.5, %v1096_v55  ;;  %v1099_v6 = vld [vmem:[%s8700_s30 + $0x1e08] sm:$0xff] }
 0x3e8   : > { %v8303_v16 = vpop.eup %8302  ;;  %6184 = vst [vmem:[%s8733_s17 + $0x1cf0] sm:$0xff] %v5160_v7  ;;  %v5162_v17 = vadd.f32 0.5, %v4138_v8  ;;  %v4140_v18 = vmul.f32 0.5, %v8301_v11  ;;  %8328 = vtanh.f32 %v2106_v63  ;;  %v2121_v10 = vmul.f32 0.5, %v1097_v60  ;;  %v1100_v11 = vld [vmem:[%s8700_s30 + $0x1e10] sm:$0xff] }
 0x3e9   : > { %v8305_v21 = vpop.eup %8304  ;;  %6185 = vst [vmem:[%s8733_s17 + $0x1cf8] sm:$0xff] %v5161_v12  ;;  %v5163_v22 = vadd.f32 0.5, %v4139_v13  ;;  %v4141_v23 = vmul.f32 0.5, %v8303_v16  ;;  %8330 = vtanh.f32 %v2107_v4  ;;  %v2122_v15 = vmul.f32 0.5, %v1098_v1  ;;  %v1101_v16 = vld [vmem:[%s8700_s30 + $0x1e18] sm:$0xff] }
 0x3ea   : > { %v8307_v26 = vpop.eup %8306  ;;  %6186 = vst [vmem:[%s8733_s17 + $0x1d00] sm:$0xff] %v5162_v17  ;;  %v5164_v27 = vadd.f32 0.5, %v4140_v18  ;;  %v4142_v28 = vmul.f32 0.5, %v8305_v21  ;;  %8332 = vtanh.f32 %v2108_v9  ;;  %v2123_v20 = vmul.f32 0.5, %v1099_v6  ;;  %v1102_v21 = vld [vmem:[%s8700_s30 + $0x1e20] sm:$0xff] }
 0x3eb   : > { %v8309_v31 = vpop.eup %8308  ;;  %6187 = vst [vmem:[%s8733_s17 + $0x1d08] sm:$0xff] %v5163_v22  ;;  %v5165_v32 = vadd.f32 0.5, %v4141_v23  ;;  %v4143_v33 = vmul.f32 0.5, %v8307_v26  ;;  %8334 = vtanh.f32 %v2109_v14  ;;  %v2124_v25 = vmul.f32 0.5, %v1100_v11  ;;  %v1103_v26 = vld [vmem:[%s8700_s30 + $0x1e28] sm:$0xff] }
 0x3ec   : > { %v8311_v36 = vpop.eup %8310  ;;  %6188 = vst [vmem:[%s8733_s17 + $0x1d10] sm:$0xff] %v5164_v27  ;;  %v5166_v37 = vadd.f32 0.5, %v4142_v28  ;;  %v4144_v38 = vmul.f32 0.5, %v8309_v31  ;;  %8336 = vtanh.f32 %v2110_v19  ;;  %v2125_v30 = vmul.f32 0.5, %v1101_v16  ;;  %v1104_v31 = vld [vmem:[%s8700_s30 + $0x1e30] sm:$0xff] }
 0x3ed   : > { %v8313_v41 = vpop.eup %8312  ;;  %6189 = vst [vmem:[%s8733_s17 + $0x1d18] sm:$0xff] %v5165_v32  ;;  %v5167_v42 = vadd.f32 0.5, %v4143_v33  ;;  %v4145_v43 = vmul.f32 0.5, %v8311_v36  ;;  %8338 = vtanh.f32 %v2111_v24  ;;  %v2126_v35 = vmul.f32 0.5, %v1102_v21  ;;  %v1105_v36 = vld [vmem:[%s8700_s30 + $0x1e38] sm:$0xff] }
 0x3ee   : > { %v8315_v46 = vpop.eup %8314  ;;  %6190 = vst [vmem:[%s8733_s17 + $0x1d20] sm:$0xff] %v5166_v37  ;;  %v5168_v47 = vadd.f32 0.5, %v4144_v38  ;;  %v4146_v48 = vmul.f32 0.5, %v8313_v41  ;;  %8340 = vtanh.f32 %v2112_v29  ;;  %v2127_v40 = vmul.f32 0.5, %v1103_v26  ;;  %v1106_v41 = vld [vmem:[%s8700_s30 + $0x1e40] sm:$0xff] }
 0x3ef   : > { %v8317_v51 = vpop.eup %8316  ;;  %6191 = vst [vmem:[%s8733_s17 + $0x1d28] sm:$0xff] %v5167_v42  ;;  %v5169_v52 = vadd.f32 0.5, %v4145_v43  ;;  %v4147_v53 = vmul.f32 0.5, %v8315_v46  ;;  %8342 = vtanh.f32 %v2113_v34  ;;  %v2128_v45 = vmul.f32 0.5, %v1104_v31  ;;  %v1107_v46 = vld [vmem:[%s8700_s30 + $0x1e48] sm:$0xff] }
 0x3f0   : > { %v8319_v56 = vpop.eup %8318  ;;  %6192 = vst [vmem:[%s8733_s17 + $0x1d30] sm:$0xff] %v5168_v47  ;;  %v5170_v57 = vadd.f32 0.5, %v4146_v48  ;;  %v4148_v58 = vmul.f32 0.5, %v8317_v51  ;;  %8344 = vtanh.f32 %v2114_v39  ;;  %v2129_v50 = vmul.f32 0.5, %v1105_v36  ;;  %v1108_v51 = vld [vmem:[%s8700_s30 + $0x1e50] sm:$0xff] }
 0x3f1   : > { %v8321_v61 = vpop.eup %8320  ;;  %6193 = vst [vmem:[%s8733_s17 + $0x1d38] sm:$0xff] %v5169_v52  ;;  %v5171_v62 = vadd.f32 0.5, %v4147_v53  ;;  %v4149_v63 = vmul.f32 0.5, %v8319_v56  ;;  %8346 = vtanh.f32 %v2115_v44  ;;  %v2130_v55 = vmul.f32 0.5, %v1106_v41  ;;  %v1109_v56 = vld [vmem:[%s8700_s30 + $0x1e58] sm:$0xff] }
 0x3f2   : > { %v8323_v2 = vpop.eup %8322  ;;  %6194 = vst [vmem:[%s8733_s17 + $0x1d40] sm:$0xff] %v5170_v57  ;;  %v5172_v3 = vadd.f32 0.5, %v4148_v58  ;;  %v4150_v4 = vmul.f32 0.5, %v8321_v61  ;;  %8348 = vtanh.f32 %v2116_v49  ;;  %v2131_v60 = vmul.f32 0.5, %v1107_v46  ;;  %v1110_v61 = vld [vmem:[%s8700_s30 + $0x1e60] sm:$0xff] }
 0x3f3   : > { %v8325_v7 = vpop.eup %8324  ;;  %6195 = vst [vmem:[%s8733_s17 + $0x1d48] sm:$0xff] %v5171_v62  ;;  %v5173_v8 = vadd.f32 0.5, %v4149_v63  ;;  %v4151_v9 = vmul.f32 0.5, %v8323_v2  ;;  %8350 = vtanh.f32 %v2117_v54  ;;  %v2132_v1 = vmul.f32 0.5, %v1108_v51  ;;  %v1111_v2 = vld [vmem:[%s8700_s30 + $0x1e68] sm:$0xff] }
 0x3f4   : > { %v8327_v12 = vpop.eup %8326  ;;  %6196 = vst [vmem:[%s8733_s17 + $0x1d50] sm:$0xff] %v5172_v3  ;;  %v5174_v13 = vadd.f32 0.5, %v4150_v4  ;;  %v4152_v14 = vmul.f32 0.5, %v8325_v7  ;;  %8352 = vtanh.f32 %v2118_v59  ;;  %v2133_v6 = vmul.f32 0.5, %v1109_v56  ;;  %v1112_v7 = vld [vmem:[%s8700_s30 + $0x1e70] sm:$0xff] }
 0x3f5   : > { %v8329_v17 = vpop.eup %8328  ;;  %6197 = vst [vmem:[%s8733_s17 + $0x1d58] sm:$0xff] %v5173_v8  ;;  %v5175_v18 = vadd.f32 0.5, %v4151_v9  ;;  %v4153_v19 = vmul.f32 0.5, %v8327_v12  ;;  %8354 = vtanh.f32 %v2119_v0  ;;  %v2134_v11 = vmul.f32 0.5, %v1110_v61  ;;  %v1113_v12 = vld [vmem:[%s8700_s30 + $0x1e78] sm:$0xff] }
 0x3f6   : > { %v8331_v22 = vpop.eup %8330  ;;  %6198 = vst [vmem:[%s8733_s17 + $0x1d60] sm:$0xff] %v5174_v13  ;;  %v5176_v23 = vadd.f32 0.5, %v4152_v14  ;;  %v4154_v24 = vmul.f32 0.5, %v8329_v17  ;;  %8356 = vtanh.f32 %v2120_v5  ;;  %v2135_v16 = vmul.f32 0.5, %v1111_v2  ;;  %v1114_v17 = vld [vmem:[%s8700_s30 + $0x1e80] sm:$0xff] }
 0x3f7   : > { %v8333_v27 = vpop.eup %8332  ;;  %6199 = vst [vmem:[%s8733_s17 + $0x1d68] sm:$0xff] %v5175_v18  ;;  %v5177_v28 = vadd.f32 0.5, %v4153_v19  ;;  %v4155_v29 = vmul.f32 0.5, %v8331_v22  ;;  %8358 = vtanh.f32 %v2121_v10  ;;  %v2136_v21 = vmul.f32 0.5, %v1112_v7  ;;  %v1115_v22 = vld [vmem:[%s8700_s30 + $0x1e88] sm:$0xff] }
 0x3f8   : > { %v8335_v32 = vpop.eup %8334  ;;  %6200 = vst [vmem:[%s8733_s17 + $0x1d70] sm:$0xff] %v5176_v23  ;;  %v5178_v33 = vadd.f32 0.5, %v4154_v24  ;;  %v4156_v34 = vmul.f32 0.5, %v8333_v27  ;;  %8360 = vtanh.f32 %v2122_v15  ;;  %v2137_v26 = vmul.f32 0.5, %v1113_v12  ;;  %v1116_v27 = vld [vmem:[%s8700_s30 + $0x1e90] sm:$0xff] }
 0x3f9   : > { %v8337_v37 = vpop.eup %8336  ;;  %6201 = vst [vmem:[%s8733_s17 + $0x1d78] sm:$0xff] %v5177_v28  ;;  %v5179_v38 = vadd.f32 0.5, %v4155_v29  ;;  %v4157_v39 = vmul.f32 0.5, %v8335_v32  ;;  %8362 = vtanh.f32 %v2123_v20  ;;  %v2138_v31 = vmul.f32 0.5, %v1114_v17  ;;  %v1117_v32 = vld [vmem:[%s8700_s30 + $0x1e98] sm:$0xff] }
 0x3fa   : > { %v8339_v42 = vpop.eup %8338  ;;  %6202 = vst [vmem:[%s8733_s17 + $0x1d80] sm:$0xff] %v5178_v33  ;;  %v5180_v43 = vadd.f32 0.5, %v4156_v34  ;;  %v4158_v44 = vmul.f32 0.5, %v8337_v37  ;;  %8364 = vtanh.f32 %v2124_v25  ;;  %v2139_v36 = vmul.f32 0.5, %v1115_v22  ;;  %v1118_v37 = vld [vmem:[%s8700_s30 + $0x1ea0] sm:$0xff] }
 0x3fb   : > { %v8341_v47 = vpop.eup %8340  ;;  %6203 = vst [vmem:[%s8733_s17 + $0x1d88] sm:$0xff] %v5179_v38  ;;  %v5181_v48 = vadd.f32 0.5, %v4157_v39  ;;  %v4159_v49 = vmul.f32 0.5, %v8339_v42  ;;  %8366 = vtanh.f32 %v2125_v30  ;;  %v2140_v41 = vmul.f32 0.5, %v1116_v27  ;;  %v1119_v42 = vld [vmem:[%s8700_s30 + $0x1ea8] sm:$0xff] }
 0x3fc   : > { %v8343_v52 = vpop.eup %8342  ;;  %6204 = vst [vmem:[%s8733_s17 + $0x1d90] sm:$0xff] %v5180_v43  ;;  %v5182_v53 = vadd.f32 0.5, %v4158_v44  ;;  %v4160_v54 = vmul.f32 0.5, %v8341_v47  ;;  %8368 = vtanh.f32 %v2126_v35  ;;  %v2141_v46 = vmul.f32 0.5, %v1117_v32  ;;  %v1120_v47 = vld [vmem:[%s8700_s30 + $0x1eb0] sm:$0xff] }
 0x3fd   : > { %v8345_v57 = vpop.eup %8344  ;;  %6205 = vst [vmem:[%s8733_s17 + $0x1d98] sm:$0xff] %v5181_v48  ;;  %v5183_v58 = vadd.f32 0.5, %v4159_v49  ;;  %v4161_v59 = vmul.f32 0.5, %v8343_v52  ;;  %8370 = vtanh.f32 %v2127_v40  ;;  %v2142_v51 = vmul.f32 0.5, %v1118_v37  ;;  %v1121_v52 = vld [vmem:[%s8700_s30 + $0x1eb8] sm:$0xff] }
 0x3fe   : > { %v8347_v62 = vpop.eup %8346  ;;  %6206 = vst [vmem:[%s8733_s17 + $0x1da0] sm:$0xff] %v5182_v53  ;;  %v5184_v63 = vadd.f32 0.5, %v4160_v54  ;;  %v4162_v0 = vmul.f32 0.5, %v8345_v57  ;;  %8372 = vtanh.f32 %v2128_v45  ;;  %v2143_v56 = vmul.f32 0.5, %v1119_v42  ;;  %v1122_v57 = vld [vmem:[%s8700_s30 + $0x1ec0] sm:$0xff] }
 0x3ff   : > { %v8349_v3 = vpop.eup %8348  ;;  %6207 = vst [vmem:[%s8733_s17 + $0x1da8] sm:$0xff] %v5183_v58  ;;  %v5185_v4 = vadd.f32 0.5, %v4161_v59  ;;  %v4163_v5 = vmul.f32 0.5, %v8347_v62  ;;  %8374 = vtanh.f32 %v2129_v50  ;;  %v2144_v61 = vmul.f32 0.5, %v1120_v47  ;;  %v1123_v62 = vld [vmem:[%s8700_s30 + $0x1ec8] sm:$0xff] }
 0x400   : > { %v8351_v8 = vpop.eup %8350  ;;  %6208 = vst [vmem:[%s8733_s17 + $0x1db0] sm:$0xff] %v5184_v63  ;;  %v5186_v9 = vadd.f32 0.5, %v4162_v0  ;;  %v4164_v10 = vmul.f32 0.5, %v8349_v3  ;;  %8376 = vtanh.f32 %v2130_v55  ;;  %v2145_v2 = vmul.f32 0.5, %v1121_v52  ;;  %v1124_v3 = vld [vmem:[%s8700_s30 + $0x1ed0] sm:$0xff] }
 0x401   : > { %v8353_v13 = vpop.eup %8352  ;;  %6209 = vst [vmem:[%s8733_s17 + $0x1db8] sm:$0xff] %v5185_v4  ;;  %v5187_v14 = vadd.f32 0.5, %v4163_v5  ;;  %v4165_v15 = vmul.f32 0.5, %v8351_v8  ;;  %8378 = vtanh.f32 %v2131_v60  ;;  %v2146_v7 = vmul.f32 0.5, %v1122_v57  ;;  %v1125_v8 = vld [vmem:[%s8700_s30 + $0x1ed8] sm:$0xff] }
 0x402   : > { %v8355_v18 = vpop.eup %8354  ;;  %6210 = vst [vmem:[%s8733_s17 + $0x1dc0] sm:$0xff] %v5186_v9  ;;  %v5188_v19 = vadd.f32 0.5, %v4164_v10  ;;  %v4166_v20 = vmul.f32 0.5, %v8353_v13  ;;  %8380 = vtanh.f32 %v2132_v1  ;;  %v2147_v12 = vmul.f32 0.5, %v1123_v62  ;;  %v1126_v13 = vld [vmem:[%s8700_s30 + $0x1ee0] sm:$0xff] }
 0x403   : > { %v8357_v23 = vpop.eup %8356  ;;  %6211 = vst [vmem:[%s8733_s17 + $0x1dc8] sm:$0xff] %v5187_v14  ;;  %v5189_v24 = vadd.f32 0.5, %v4165_v15  ;;  %v4167_v25 = vmul.f32 0.5, %v8355_v18  ;;  %8382 = vtanh.f32 %v2133_v6  ;;  %v2148_v17 = vmul.f32 0.5, %v1124_v3  ;;  %v1127_v18 = vld [vmem:[%s8700_s30 + $0x1ee8] sm:$0xff] }
 0x404   : > { %v8359_v28 = vpop.eup %8358  ;;  %6212 = vst [vmem:[%s8733_s17 + $0x1dd0] sm:$0xff] %v5188_v19  ;;  %v5190_v29 = vadd.f32 0.5, %v4166_v20  ;;  %v4168_v30 = vmul.f32 0.5, %v8357_v23  ;;  %8384 = vtanh.f32 %v2134_v11  ;;  %v2149_v22 = vmul.f32 0.5, %v1125_v8  ;;  %v1128_v23 = vld [vmem:[%s8700_s30 + $0x1ef0] sm:$0xff] }
 0x405   : > { %v8361_v33 = vpop.eup %8360  ;;  %6213 = vst [vmem:[%s8733_s17 + $0x1dd8] sm:$0xff] %v5189_v24  ;;  %v5191_v34 = vadd.f32 0.5, %v4167_v25  ;;  %v4169_v35 = vmul.f32 0.5, %v8359_v28  ;;  %8386 = vtanh.f32 %v2135_v16  ;;  %v2150_v27 = vmul.f32 0.5, %v1126_v13  ;;  %v1129_v28 = vld [vmem:[%s8700_s30 + $0x1ef8] sm:$0xff] }
 0x406   : > { %v8363_v38 = vpop.eup %8362  ;;  %6214 = vst [vmem:[%s8733_s17 + $0x1de0] sm:$0xff] %v5190_v29  ;;  %v5192_v39 = vadd.f32 0.5, %v4168_v30  ;;  %v4170_v40 = vmul.f32 0.5, %v8361_v33  ;;  %8388 = vtanh.f32 %v2136_v21  ;;  %v2151_v32 = vmul.f32 0.5, %v1127_v18  ;;  %v1130_v33 = vld [vmem:[%s8700_s30 + $0x1f00] sm:$0xff] }
 0x407   : > { %v8365_v43 = vpop.eup %8364  ;;  %6215 = vst [vmem:[%s8733_s17 + $0x1de8] sm:$0xff] %v5191_v34  ;;  %v5193_v44 = vadd.f32 0.5, %v4169_v35  ;;  %v4171_v45 = vmul.f32 0.5, %v8363_v38  ;;  %8390 = vtanh.f32 %v2137_v26  ;;  %v2152_v37 = vmul.f32 0.5, %v1128_v23  ;;  %v1131_v38 = vld [vmem:[%s8700_s30 + $0x1f08] sm:$0xff] }
 0x408   : > { %v8367_v48 = vpop.eup %8366  ;;  %6216 = vst [vmem:[%s8733_s17 + $0x1df0] sm:$0xff] %v5192_v39  ;;  %v5194_v49 = vadd.f32 0.5, %v4170_v40  ;;  %v4172_v50 = vmul.f32 0.5, %v8365_v43  ;;  %8392 = vtanh.f32 %v2138_v31  ;;  %v2153_v42 = vmul.f32 0.5, %v1129_v28  ;;  %v1132_v43 = vld [vmem:[%s8700_s30 + $0x1f10] sm:$0xff] }
 0x409   : > { %v8369_v53 = vpop.eup %8368  ;;  %6217 = vst [vmem:[%s8733_s17 + $0x1df8] sm:$0xff] %v5193_v44  ;;  %v5195_v54 = vadd.f32 0.5, %v4171_v45  ;;  %v4173_v55 = vmul.f32 0.5, %v8367_v48  ;;  %8394 = vtanh.f32 %v2139_v36  ;;  %v2154_v47 = vmul.f32 0.5, %v1130_v33  ;;  %v1133_v48 = vld [vmem:[%s8700_s30 + $0x1f18] sm:$0xff] }
 0x40a   : > { %v8371_v58 = vpop.eup %8370  ;;  %6218 = vst [vmem:[%s8733_s17 + $0x1e00] sm:$0xff] %v5194_v49  ;;  %v5196_v59 = vadd.f32 0.5, %v4172_v50  ;;  %v4174_v60 = vmul.f32 0.5, %v8369_v53  ;;  %8396 = vtanh.f32 %v2140_v41  ;;  %v2155_v52 = vmul.f32 0.5, %v1131_v38  ;;  %v1134_v53 = vld [vmem:[%s8700_s30 + $0x1f20] sm:$0xff] }
 0x40b   : > { %v8373_v63 = vpop.eup %8372  ;;  %6219 = vst [vmem:[%s8733_s17 + $0x1e08] sm:$0xff] %v5195_v54  ;;  %v5197_v0 = vadd.f32 0.5, %v4173_v55  ;;  %v4175_v1 = vmul.f32 0.5, %v8371_v58  ;;  %8398 = vtanh.f32 %v2141_v46  ;;  %v2156_v57 = vmul.f32 0.5, %v1132_v43  ;;  %v1135_v58 = vld [vmem:[%s8700_s30 + $0x1f28] sm:$0xff] }
 0x40c   : > { %v8375_v4 = vpop.eup %8374  ;;  %6220 = vst [vmem:[%s8733_s17 + $0x1e10] sm:$0xff] %v5196_v59  ;;  %v5198_v5 = vadd.f32 0.5, %v4174_v60  ;;  %v4176_v6 = vmul.f32 0.5, %v8373_v63  ;;  %8400 = vtanh.f32 %v2142_v51  ;;  %v2157_v62 = vmul.f32 0.5, %v1133_v48  ;;  %v1136_v63 = vld [vmem:[%s8700_s30 + $0x1f30] sm:$0xff] }
 0x40d   : > { %v8377_v9 = vpop.eup %8376  ;;  %6221 = vst [vmem:[%s8733_s17 + $0x1e18] sm:$0xff] %v5197_v0  ;;  %v5199_v10 = vadd.f32 0.5, %v4175_v1  ;;  %v4177_v11 = vmul.f32 0.5, %v8375_v4  ;;  %8402 = vtanh.f32 %v2143_v56  ;;  %v2158_v3 = vmul.f32 0.5, %v1134_v53  ;;  %v1137_v4 = vld [vmem:[%s8700_s30 + $0x1f38] sm:$0xff] }
 0x40e   : > { %v8379_v14 = vpop.eup %8378  ;;  %6222 = vst [vmem:[%s8733_s17 + $0x1e20] sm:$0xff] %v5198_v5  ;;  %v5200_v15 = vadd.f32 0.5, %v4176_v6  ;;  %v4178_v16 = vmul.f32 0.5, %v8377_v9  ;;  %8404 = vtanh.f32 %v2144_v61  ;;  %v2159_v8 = vmul.f32 0.5, %v1135_v58  ;;  %v1138_v9 = vld [vmem:[%s8700_s30 + $0x1f40] sm:$0xff] }
 0x40f   : > { %v8381_v19 = vpop.eup %8380  ;;  %6223 = vst [vmem:[%s8733_s17 + $0x1e28] sm:$0xff] %v5199_v10  ;;  %v5201_v20 = vadd.f32 0.5, %v4177_v11  ;;  %v4179_v21 = vmul.f32 0.5, %v8379_v14  ;;  %8406 = vtanh.f32 %v2145_v2  ;;  %v2160_v13 = vmul.f32 0.5, %v1136_v63  ;;  %v1139_v14 = vld [vmem:[%s8700_s30 + $0x1f48] sm:$0xff] }
 0x410   : > { %v8383_v24 = vpop.eup %8382  ;;  %6224 = vst [vmem:[%s8733_s17 + $0x1e30] sm:$0xff] %v5200_v15  ;;  %v5202_v25 = vadd.f32 0.5, %v4178_v16  ;;  %v4180_v26 = vmul.f32 0.5, %v8381_v19  ;;  %8408 = vtanh.f32 %v2146_v7  ;;  %v2161_v18 = vmul.f32 0.5, %v1137_v4  ;;  %v1140_v19 = vld [vmem:[%s8700_s30 + $0x1f50] sm:$0xff] }
 0x411   : > { %v8385_v29 = vpop.eup %8384  ;;  %6225 = vst [vmem:[%s8733_s17 + $0x1e38] sm:$0xff] %v5201_v20  ;;  %v5203_v30 = vadd.f32 0.5, %v4179_v21  ;;  %v4181_v31 = vmul.f32 0.5, %v8383_v24  ;;  %8410 = vtanh.f32 %v2147_v12  ;;  %v2162_v23 = vmul.f32 0.5, %v1138_v9  ;;  %v1141_v24 = vld [vmem:[%s8700_s30 + $0x1f58] sm:$0xff] }
 0x412   : > { %v8387_v34 = vpop.eup %8386  ;;  %6226 = vst [vmem:[%s8733_s17 + $0x1e40] sm:$0xff] %v5202_v25  ;;  %v5204_v35 = vadd.f32 0.5, %v4180_v26  ;;  %v4182_v36 = vmul.f32 0.5, %v8385_v29  ;;  %8412 = vtanh.f32 %v2148_v17  ;;  %v2163_v28 = vmul.f32 0.5, %v1139_v14  ;;  %v1142_v29 = vld [vmem:[%s8700_s30 + $0x1f60] sm:$0xff] }
 0x413   : > { %v8389_v39 = vpop.eup %8388  ;;  %6227 = vst [vmem:[%s8733_s17 + $0x1e48] sm:$0xff] %v5203_v30  ;;  %v5205_v40 = vadd.f32 0.5, %v4181_v31  ;;  %v4183_v41 = vmul.f32 0.5, %v8387_v34  ;;  %8414 = vtanh.f32 %v2149_v22  ;;  %v2164_v33 = vmul.f32 0.5, %v1140_v19  ;;  %v1143_v34 = vld [vmem:[%s8700_s30 + $0x1f68] sm:$0xff] }
 0x414   : > { %v8391_v44 = vpop.eup %8390  ;;  %6228 = vst [vmem:[%s8733_s17 + $0x1e50] sm:$0xff] %v5204_v35  ;;  %v5206_v45 = vadd.f32 0.5, %v4182_v36  ;;  %v4184_v46 = vmul.f32 0.5, %v8389_v39  ;;  %8416 = vtanh.f32 %v2150_v27  ;;  %v2165_v38 = vmul.f32 0.5, %v1141_v24  ;;  %v1144_v39 = vld [vmem:[%s8700_s30 + $0x1f70] sm:$0xff] }
 0x415   : > { %v8393_v49 = vpop.eup %8392  ;;  %6229 = vst [vmem:[%s8733_s17 + $0x1e58] sm:$0xff] %v5205_v40  ;;  %v5207_v50 = vadd.f32 0.5, %v4183_v41  ;;  %v4185_v51 = vmul.f32 0.5, %v8391_v44  ;;  %8418 = vtanh.f32 %v2151_v32  ;;  %v2166_v43 = vmul.f32 0.5, %v1142_v29  ;;  %v1145_v44 = vld [vmem:[%s8700_s30 + $0x1f78] sm:$0xff] }
 0x416   : > { %v8395_v54 = vpop.eup %8394  ;;  %6230 = vst [vmem:[%s8733_s17 + $0x1e60] sm:$0xff] %v5206_v45  ;;  %v5208_v55 = vadd.f32 0.5, %v4184_v46  ;;  %v4186_v56 = vmul.f32 0.5, %v8393_v49  ;;  %8420 = vtanh.f32 %v2152_v37  ;;  %v2167_v48 = vmul.f32 0.5, %v1143_v34  ;;  %v1146_v49 = vld [vmem:[%s8700_s30 + $0x1f80] sm:$0xff] }
 0x417   : > { %v8397_v59 = vpop.eup %8396  ;;  %6231 = vst [vmem:[%s8733_s17 + $0x1e68] sm:$0xff] %v5207_v50  ;;  %v5209_v60 = vadd.f32 0.5, %v4185_v51  ;;  %v4187_v61 = vmul.f32 0.5, %v8395_v54  ;;  %8422 = vtanh.f32 %v2153_v42  ;;  %v2168_v53 = vmul.f32 0.5, %v1144_v39  ;;  %v1147_v54 = vld [vmem:[%s8700_s30 + $0x1f88] sm:$0xff] }
 0x418   : > { %v8399_v0 = vpop.eup %8398  ;;  %6232 = vst [vmem:[%s8733_s17 + $0x1e70] sm:$0xff] %v5208_v55  ;;  %v5210_v1 = vadd.f32 0.5, %v4186_v56  ;;  %v4188_v2 = vmul.f32 0.5, %v8397_v59  ;;  %8424 = vtanh.f32 %v2154_v47  ;;  %v2169_v58 = vmul.f32 0.5, %v1145_v44  ;;  %v1148_v59 = vld [vmem:[%s8700_s30 + $0x1f90] sm:$0xff] }
 0x419   : > { %v8401_v5 = vpop.eup %8400  ;;  %6233 = vst [vmem:[%s8733_s17 + $0x1e78] sm:$0xff] %v5209_v60  ;;  %v5211_v6 = vadd.f32 0.5, %v4187_v61  ;;  %v4189_v7 = vmul.f32 0.5, %v8399_v0  ;;  %8426 = vtanh.f32 %v2155_v52  ;;  %v2170_v63 = vmul.f32 0.5, %v1146_v49  ;;  %v1149_v0 = vld [vmem:[%s8700_s30 + $0x1f98] sm:$0xff] }
 0x41a   : > { %v8403_v10 = vpop.eup %8402  ;;  %6234 = vst [vmem:[%s8733_s17 + $0x1e80] sm:$0xff] %v5210_v1  ;;  %v5212_v11 = vadd.f32 0.5, %v4188_v2  ;;  %v4190_v12 = vmul.f32 0.5, %v8401_v5  ;;  %8428 = vtanh.f32 %v2156_v57  ;;  %v2171_v4 = vmul.f32 0.5, %v1147_v54  ;;  %v1150_v5 = vld [vmem:[%s8700_s30 + $0x1fa0] sm:$0xff] }
 0x41b   : > { %v8405_v15 = vpop.eup %8404  ;;  %6235 = vst [vmem:[%s8733_s17 + $0x1e88] sm:$0xff] %v5211_v6  ;;  %v5213_v16 = vadd.f32 0.5, %v4189_v7  ;;  %v4191_v17 = vmul.f32 0.5, %v8403_v10  ;;  %8430 = vtanh.f32 %v2157_v62  ;;  %v2172_v9 = vmul.f32 0.5, %v1148_v59  ;;  %v1151_v10 = vld [vmem:[%s8700_s30 + $0x1fa8] sm:$0xff] }
 0x41c   : > { %v8407_v20 = vpop.eup %8406  ;;  %6236 = vst [vmem:[%s8733_s17 + $0x1e90] sm:$0xff] %v5212_v11  ;;  %v5214_v21 = vadd.f32 0.5, %v4190_v12  ;;  %v4192_v22 = vmul.f32 0.5, %v8405_v15  ;;  %8432 = vtanh.f32 %v2158_v3  ;;  %v2173_v14 = vmul.f32 0.5, %v1149_v0  ;;  %v1152_v15 = vld [vmem:[%s8700_s30 + $0x1fb0] sm:$0xff] }
 0x41d   : > { %v8409_v25 = vpop.eup %8408  ;;  %6237 = vst [vmem:[%s8733_s17 + $0x1e98] sm:$0xff] %v5213_v16  ;;  %v5215_v26 = vadd.f32 0.5, %v4191_v17  ;;  %v4193_v27 = vmul.f32 0.5, %v8407_v20  ;;  %8434 = vtanh.f32 %v2159_v8  ;;  %v2174_v19 = vmul.f32 0.5, %v1150_v5  ;;  %v1153_v20 = vld [vmem:[%s8700_s30 + $0x1fb8] sm:$0xff] }
 0x41e   : > { %v8411_v30 = vpop.eup %8410  ;;  %6238 = vst [vmem:[%s8733_s17 + $0x1ea0] sm:$0xff] %v5214_v21  ;;  %v5216_v31 = vadd.f32 0.5, %v4192_v22  ;;  %v4194_v32 = vmul.f32 0.5, %v8409_v25  ;;  %8436 = vtanh.f32 %v2160_v13  ;;  %v2175_v24 = vmul.f32 0.5, %v1151_v10  ;;  %v1154_v25 = vld [vmem:[%s8700_s30 + $0x1fc0] sm:$0xff] }
 0x41f   : > { %v8413_v35 = vpop.eup %8412  ;;  %6239 = vst [vmem:[%s8733_s17 + $0x1ea8] sm:$0xff] %v5215_v26  ;;  %v5217_v36 = vadd.f32 0.5, %v4193_v27  ;;  %v4195_v37 = vmul.f32 0.5, %v8411_v30  ;;  %8438 = vtanh.f32 %v2161_v18  ;;  %v2176_v29 = vmul.f32 0.5, %v1152_v15  ;;  %v1155_v30 = vld [vmem:[%s8700_s30 + $0x1fc8] sm:$0xff] }
 0x420   : > { %v8415_v40 = vpop.eup %8414  ;;  %6240 = vst [vmem:[%s8733_s17 + $0x1eb0] sm:$0xff] %v5216_v31  ;;  %v5218_v41 = vadd.f32 0.5, %v4194_v32  ;;  %v4196_v42 = vmul.f32 0.5, %v8413_v35  ;;  %8440 = vtanh.f32 %v2162_v23  ;;  %v2177_v34 = vmul.f32 0.5, %v1153_v20  ;;  %v1156_v35 = vld [vmem:[%s8700_s30 + $0x1fd0] sm:$0xff] }
 0x421   : > { %v8417_v45 = vpop.eup %8416  ;;  %6241 = vst [vmem:[%s8733_s17 + $0x1eb8] sm:$0xff] %v5217_v36  ;;  %v5219_v46 = vadd.f32 0.5, %v4195_v37  ;;  %v4197_v47 = vmul.f32 0.5, %v8415_v40  ;;  %8442 = vtanh.f32 %v2163_v28  ;;  %v2178_v39 = vmul.f32 0.5, %v1154_v25  ;;  %v1157_v40 = vld [vmem:[%s8700_s30 + $0x1fd8] sm:$0xff] }
 0x422   : > { %v8419_v50 = vpop.eup %8418  ;;  %6242 = vst [vmem:[%s8733_s17 + $0x1ec0] sm:$0xff] %v5218_v41  ;;  %v5220_v51 = vadd.f32 0.5, %v4196_v42  ;;  %v4198_v52 = vmul.f32 0.5, %v8417_v45  ;;  %8444 = vtanh.f32 %v2164_v33  ;;  %v2179_v44 = vmul.f32 0.5, %v1155_v30  ;;  %v1158_v45 = vld [vmem:[%s8700_s30 + $0x1fe0] sm:$0xff] }
 0x423   : > { %v8421_v55 = vpop.eup %8420  ;;  %6243 = vst [vmem:[%s8733_s17 + $0x1ec8] sm:$0xff] %v5219_v46  ;;  %v5221_v56 = vadd.f32 0.5, %v4197_v47  ;;  %v4199_v57 = vmul.f32 0.5, %v8419_v50  ;;  %8446 = vtanh.f32 %v2165_v38  ;;  %v2180_v49 = vmul.f32 0.5, %v1156_v35  ;;  %v1159_v50 = vld [vmem:[%s8700_s30 + $0x1fe8] sm:$0xff] }
 0x424   : > { %v8423_v60 = vpop.eup %8422  ;;  %6244 = vst [vmem:[%s8733_s17 + $0x1ed0] sm:$0xff] %v5220_v51  ;;  %v5222_v61 = vadd.f32 0.5, %v4198_v52  ;;  %v4200_v62 = vmul.f32 0.5, %v8421_v55  ;;  %8448 = vtanh.f32 %v2166_v43  ;;  %v2181_v54 = vmul.f32 0.5, %v1157_v40  ;;  %v1160_v55 = vld [vmem:[%s8700_s30 + $0x1ff0] sm:$0xff] }
 0x425   : > { %v8425_v1 = vpop.eup %8424  ;;  %6245 = vst [vmem:[%s8733_s17 + $0x1ed8] sm:$0xff] %v5221_v56  ;;  %v5223_v2 = vadd.f32 0.5, %v4199_v57  ;;  %v4201_v3 = vmul.f32 0.5, %v8423_v60  ;;  %8450 = vtanh.f32 %v2167_v48  ;;  %v2182_v59 = vmul.f32 0.5, %v1158_v45  ;;  %v1161_v60 = vld [vmem:[%s8700_s30 + $0x1ff8] sm:$0xff] }
 0x426   : > { %v8427_v6 = vpop.eup %8426  ;;  %6246 = vst [vmem:[%s8733_s17 + $0x1ee0] sm:$0xff] %v5222_v61  ;;  %v5224_v7 = vadd.f32 0.5, %v4200_v62  ;;  %v4202_v8 = vmul.f32 0.5, %v8425_v1  ;;  %8452 = vtanh.f32 %v2168_v53  ;;  %v2183_v0 = vmul.f32 0.5, %v1159_v50 }
 0x427   : > { %v8429_v11 = vpop.eup %8428  ;;  %6247 = vst [vmem:[%s8733_s17 + $0x1ee8] sm:$0xff] %v5223_v2  ;;  %v5225_v12 = vadd.f32 0.5, %v4201_v3  ;;  %v4203_v13 = vmul.f32 0.5, %v8427_v6  ;;  %8454 = vtanh.f32 %v2169_v58 }
 0x428   : > { %v8431_v16 = vpop.eup %8430  ;;  %6248 = vst [vmem:[%s8733_s17 + $0x1ef0] sm:$0xff] %v5224_v7  ;;  %v5226_v17 = vadd.f32 0.5, %v4202_v8  ;;  %v4204_v18 = vmul.f32 0.5, %v8429_v11  ;;  %8456 = vtanh.f32 %v2170_v63  ;;  %v2185_v8 = vmul.f32 0.5, %v1161_v60 }
 0x429   : > { %v8433_v21 = vpop.eup %8432  ;;  %6249 = vst [vmem:[%s8733_s17 + $0x1ef8] sm:$0xff] %v5225_v12  ;;  %v5227_v22 = vadd.f32 0.5, %v4203_v13  ;;  %v4205_v23 = vmul.f32 0.5, %v8431_v16  ;;  %8458 = vtanh.f32 %v2171_v4  ;;  %v2184_v4 = vmul.f32 0.5, %v1160_v55 }
 0x42a   : > { %v8435_v26 = vpop.eup %8434  ;;  %6250 = vst [vmem:[%s8733_s17 + $0x1f00] sm:$0xff] %v5226_v17  ;;  %v5228_v27 = vadd.f32 0.5, %v4204_v18  ;;  %v4206_v28 = vmul.f32 0.5, %v8433_v21  ;;  %8460 = vtanh.f32 %v2172_v9 }
 0x42b   : > { %v8437_v31 = vpop.eup %8436  ;;  %6251 = vst [vmem:[%s8733_s17 + $0x1f08] sm:$0xff] %v5227_v22  ;;  %v5229_v32 = vadd.f32 0.5, %v4205_v23  ;;  %v4207_v33 = vmul.f32 0.5, %v8435_v26  ;;  %8462 = vtanh.f32 %v2173_v14 }
 0x42c   : > { %v8439_v36 = vpop.eup %8438  ;;  %6252 = vst [vmem:[%s8733_s17 + $0x1f10] sm:$0xff] %v5228_v27  ;;  %v5230_v37 = vadd.f32 0.5, %v4206_v28  ;;  %v4208_v38 = vmul.f32 0.5, %v8437_v31  ;;  %8464 = vtanh.f32 %v2174_v19 }
 0x42d   : > { %v8441_v41 = vpop.eup %8440  ;;  %6253 = vst [vmem:[%s8733_s17 + $0x1f18] sm:$0xff] %v5229_v32  ;;  %v5231_v42 = vadd.f32 0.5, %v4207_v33  ;;  %v4209_v43 = vmul.f32 0.5, %v8439_v36  ;;  %8466 = vtanh.f32 %v2175_v24 }
 0x42e   : > { %v8443_v46 = vpop.eup %8442  ;;  %6254 = vst [vmem:[%s8733_s17 + $0x1f20] sm:$0xff] %v5230_v37  ;;  %v5232_v47 = vadd.f32 0.5, %v4208_v38  ;;  %v4210_v48 = vmul.f32 0.5, %v8441_v41  ;;  %8468 = vtanh.f32 %v2176_v29 }
 0x42f   : > { %v8445_v51 = vpop.eup %8444  ;;  %6255 = vst [vmem:[%s8733_s17 + $0x1f28] sm:$0xff] %v5231_v42  ;;  %v5233_v52 = vadd.f32 0.5, %v4209_v43  ;;  %v4211_v53 = vmul.f32 0.5, %v8443_v46  ;;  %8470 = vtanh.f32 %v2177_v34 }
 0x430   : > { %v8447_v56 = vpop.eup %8446  ;;  %6256 = vst [vmem:[%s8733_s17 + $0x1f30] sm:$0xff] %v5232_v47  ;;  %v5234_v57 = vadd.f32 0.5, %v4210_v48  ;;  %v4212_v58 = vmul.f32 0.5, %v8445_v51  ;;  %8472 = vtanh.f32 %v2178_v39 }
 0x431   : > { %v8449_v61 = vpop.eup %8448  ;;  %6257 = vst [vmem:[%s8733_s17 + $0x1f38] sm:$0xff] %v5233_v52  ;;  %v5235_v62 = vadd.f32 0.5, %v4211_v53  ;;  %v4213_v63 = vmul.f32 0.5, %v8447_v56  ;;  %8474 = vtanh.f32 %v2179_v44 }
 0x432   : > { %v8451_v1 = vpop.eup %8450  ;;  %6258 = vst [vmem:[%s8733_s17 + $0x1f40] sm:$0xff] %v5234_v57  ;;  %v5236_v2 = vadd.f32 0.5, %v4212_v58  ;;  %v4214_v3 = vmul.f32 0.5, %v8449_v61  ;;  %8476 = vtanh.f32 %v2180_v49 }
 0x433   : > { %v8453_v5 = vpop.eup %8452  ;;  %6259 = vst [vmem:[%s8733_s17 + $0x1f48] sm:$0xff] %v5235_v62  ;;  %v5237_v6 = vadd.f32 0.5, %v4213_v63  ;;  %v4215_v7 = vmul.f32 0.5, %v8451_v1  ;;  %8478 = vtanh.f32 %v2181_v54 }
 0x434   : > { %v8455_v9 = vpop.eup %8454  ;;  %6260 = vst [vmem:[%s8733_s17 + $0x1f50] sm:$0xff] %v5236_v2  ;;  %v5238_v10 = vadd.f32 0.5, %v4214_v3  ;;  %v4216_v11 = vmul.f32 0.5, %v8453_v5  ;;  %8480 = vtanh.f32 %v2182_v59 }
 0x435   : > { %v8457_v12 = vpop.eup %8456  ;;  %6261 = vst [vmem:[%s8733_s17 + $0x1f58] sm:$0xff] %v5237_v6  ;;  %v5239_v13 = vadd.f32 0.5, %v4215_v7  ;;  %v4217_v14 = vmul.f32 0.5, %v8455_v9  ;;  %8482 = vtanh.f32 %v2183_v0 }
 0x436   : > { %v8459_v15 = vpop.eup %8458  ;;  %6262 = vst [vmem:[%s8733_s17 + $0x1f60] sm:$0xff] %v5238_v10  ;;  %v5240_v16 = vadd.f32 0.5, %v4216_v11  ;;  %v4218_v17 = vmul.f32 0.5, %v8457_v12  ;;  %8484 = vtanh.f32 %v2184_v4 }
 0x437   : > { %v8461_v18 = vpop.eup %8460  ;;  %6263 = vst [vmem:[%s8733_s17 + $0x1f68] sm:$0xff] %v5239_v13  ;;  %v5241_v19 = vadd.f32 0.5, %v4217_v14  ;;  %v4219_v20 = vmul.f32 0.5, %v8459_v15  ;;  %8486 = vtanh.f32 %v2185_v8 }
 0x438   : > { %v8463_v21 = vpop.eup %8462  ;;  %6264 = vst [vmem:[%s8733_s17 + $0x1f70] sm:$0xff] %v5240_v16  ;;  %v5242_v22 = vadd.f32 0.5, %v4218_v17  ;;  %v4220_v23 = vmul.f32 0.5, %v8461_v18 }
 0x439   : > { %v8465_v24 = vpop.eup %8464  ;;  %6265 = vst [vmem:[%s8733_s17 + $0x1f78] sm:$0xff] %v5241_v19  ;;  %v5243_v25 = vadd.f32 0.5, %v4219_v20  ;;  %v4221_v26 = vmul.f32 0.5, %v8463_v21 }
 0x43a   : > { %v8467_v27 = vpop.eup %8466  ;;  %6266 = vst [vmem:[%s8733_s17 + $0x1f80] sm:$0xff] %v5242_v22  ;;  %v5244_v28 = vadd.f32 0.5, %v4220_v23  ;;  %v4222_v29 = vmul.f32 0.5, %v8465_v24 }
 0x43b   : > { %v8469_v30 = vpop.eup %8468  ;;  %6267 = vst [vmem:[%s8733_s17 + $0x1f88] sm:$0xff] %v5243_v25  ;;  %v5245_v31 = vadd.f32 0.5, %v4221_v26  ;;  %v4223_v32 = vmul.f32 0.5, %v8467_v27 }
 0x43c   : > { %v8471_v33 = vpop.eup %8470  ;;  %6268 = vst [vmem:[%s8733_s17 + $0x1f90] sm:$0xff] %v5244_v28  ;;  %v5246_v34 = vadd.f32 0.5, %v4222_v29  ;;  %v4224_v35 = vmul.f32 0.5, %v8469_v30 }
 0x43d   : > { %v8473_v36 = vpop.eup %8472  ;;  %6269 = vst [vmem:[%s8733_s17 + $0x1f98] sm:$0xff] %v5245_v31  ;;  %v5247_v37 = vadd.f32 0.5, %v4223_v32  ;;  %v4225_v38 = vmul.f32 0.5, %v8471_v33 }
 0x43e   : > { %v8475_v39 = vpop.eup %8474  ;;  %6270 = vst [vmem:[%s8733_s17 + $0x1fa0] sm:$0xff] %v5246_v34  ;;  %v5248_v40 = vadd.f32 0.5, %v4224_v35  ;;  %v4226_v41 = vmul.f32 0.5, %v8473_v36 }
 0x43f   : > { %v8477_v42 = vpop.eup %8476  ;;  %6271 = vst [vmem:[%s8733_s17 + $0x1fa8] sm:$0xff] %v5247_v37  ;;  %v5249_v43 = vadd.f32 0.5, %v4225_v38  ;;  %v4227_v44 = vmul.f32 0.5, %v8475_v39 }
 0x440   : > { %v8479_v45 = vpop.eup %8478  ;;  %6272 = vst [vmem:[%s8733_s17 + $0x1fb0] sm:$0xff] %v5248_v40  ;;  %v5250_v46 = vadd.f32 0.5, %v4226_v41  ;;  %v4228_v47 = vmul.f32 0.5, %v8477_v42 }
 0x441   : > { %v8481_v48 = vpop.eup %8480  ;;  %6273 = vst [vmem:[%s8733_s17 + $0x1fb8] sm:$0xff] %v5249_v43  ;;  %v5251_v49 = vadd.f32 0.5, %v4227_v44  ;;  %v4229_v50 = vmul.f32 0.5, %v8479_v45 }
 0x442   : > { %v8483_v51 = vpop.eup %8482  ;;  %6274 = vst [vmem:[%s8733_s17 + $0x1fc0] sm:$0xff] %v5250_v46  ;;  %v5252_v52 = vadd.f32 0.5, %v4228_v47  ;;  %v4230_v53 = vmul.f32 0.5, %v8481_v48 }
 0x443   : > { %v8485_v54 = vpop.eup %8484  ;;  %6275 = vst [vmem:[%s8733_s17 + $0x1fc8] sm:$0xff] %v5251_v49  ;;  %v5253_v55 = vadd.f32 0.5, %v4229_v50  ;;  %v4231_v56 = vmul.f32 0.5, %v8483_v51 }
 0x444   : > { %v8487_v57 = vpop.eup %8486  ;;  %6276 = vst [vmem:[%s8733_s17 + $0x1fd0] sm:$0xff] %v5252_v52  ;;  %v5254_v58 = vadd.f32 0.5, %v4230_v53  ;;  %v4232_v59 = vmul.f32 0.5, %v8485_v54 }
 0x445   : > { %6277 = vst [vmem:[%s8733_s17 + $0x1fd8] sm:$0xff] %v5253_v55  ;;  %v5255_v60 = vadd.f32 0.5, %v4231_v56  ;;  %v4233_v61 = vmul.f32 0.5, %v8487_v57 }
 0x446   : > { %6278 = vst [vmem:[%s8733_s17 + $0x1fe0] sm:$0xff] %v5254_v58  ;;  %v5256_v62 = vadd.f32 0.5, %v4232_v59 }
 0x447   : > { %6279 = vst [vmem:[%s8733_s17 + $0x1fe8] sm:$0xff] %v5255_v60  ;;  %v5257_v63 = vadd.f32 0.5, %v4233_v61 }
 0x448   : > { %6280 = vst [vmem:[%s8733_s17 + $0x1ff0] sm:$0xff] %v5256_v62 }
 0x449   : > { %6281 = vst [vmem:[%s8733_s17 + $0x1ff8] sm:$0xff] %v5257_v63 }
 0x44a   : > { %8529 = shalt.err (!%p8526_p9)
}
 0x44b   : > { %s8530_s13 = scalar_lea.hbm %s10760_s2, 131072  ;;  %s8534_s20 = scalar_lea.hbm %s10808_s1, 524288 }
 0x44c   : > { %p8531_p13 = scmp.ne.s32.totalorder %s10760_s2, %s8530_s13  ;;  %p8535_p2 = scmp.lt.s32.totalorder %s10760_s2, %s10808_s1 }
 0x44d   : > { %p8536_p3 = scmp.lt.s32.totalorder %s8534_s20, %s8530_s13 }
 0x44e   : > { %p8532_p1 = pnand %p8531_p13, %p10817_p11 }
 0x44f   : > { %p8537_p6 = por %p8536_p3, %p8535_p2 }
 0x450   : > { %p8533_p0 = pneg %p8532_p1 }
 0x452   : > { %p8538_p10 = pnand %p8537_p6, %p8533_p0 }
 0x454   : > { %8541 = shalt.err (!%p8538_p10)
}
 0x455   : > { %s8586_s24 = smov 2048   ;;  %s8587_s26 = smov 128  }
 0x456   : > { %6392 = dma.vmem_to_hbm [thread:$0]  (%p10817_p11), %s10762_s27, 131072, %s10760_s2, %s6283_s10, %s8586_s24, %s8586_s24, %s8587_s26  }
 0x457 PF: > { %p6403_p12 = scmp.ge.s32.totalorder %s8580_s9, 2  ;;  %s6312_s30 = sand.u32 1, %s8568_s6  }
 0x458   : > { %p10818_p4 = scmp.ne.s32.totalorder %s10814_s19, 0  ;;  %s6313_s17 = scalar_lea.sflag [#allocation4], %s6312_s30 }
 0x45a   : > { %p6399_p5 = pnand %p6403_p12, %p10818_p4 }
 0x45c   : > { %p6400_p7 = pneg %p6399_p5 }
 0x45e   : > { %8563 = dma.done.wait (%p6400_p7), %s6313_s17, 131072  }
 0x45f   : > { %8565 = vsyncadd (%p6400_p7), %s6313_s17, 4294836224  ;;  %p14_p8 = scmp.ge.s32.totalorder %s8623_s12, 6   ;;  %s10819_s6 = smov %s8572_s7 }
 0x460   : > { %s10820_s7 = smov %s8576_s8  ;;  %s10821_s8 = smov %s8635_s15 }
 0x461   : > { %s10822_s9 = smov %s8623_s12  ;;  %16 = sbr.rel (!%p14_p8) target bundleno = 5 (0x5), region = 69 }
 0x466   :  { %6318 = vsyncpa [#allocation3], 1 }
 0x467   :  { %6320 = vsyncpa [#allocation3 + $0x1], 1 }
 0x468   :  { %6321 = vsyncpa [#allocation4], 1 }
 0x469   :  { %6323 = vsyncpa [#allocation4 + $0x1], 1 }

</bundles_post_ra>
